<compile_context>
chip_gen: v7x
topology: tpu7x:2x2x1
jax: 0.10.0
libtpu: 0.0.40
codegen_flags: <defaults>
</compile_context>

<pallas_src>
import jax
import jax.numpy as jnp
from jax.experimental import pallas as pl
from jax.experimental.pallas import tpu as pltpu


def _pick_tb(n, howo, target_rows=256):
    """Largest batch-block TB (divisor of n) with TB*HoWo <= ~target MXU rows,
    subject to legal block shapes. TB = n (full dim) is always legal."""
    cap = max(1, target_rows // max(howo, 1))
    best = n
    for tb in range(1, n + 1):
        if n % tb:
            continue
        if tb > cap:
            break
        if tb == n or (tb % 8 == 0 and (tb * howo) % 8 == 0):
            best = tb
    return best


def pool_forward(x, w_conv, b_conv, w_1x1, b_1x1):
    """Pallas forward pass of Pool. x: (N, C, H, W) float32, C must be 512."""
    N, C, H, W = x.shape
    Cout = w_conv.shape[0]
    KH, KW, S = 3, 3, 2
    Ho = (H + 2 - KH) // S + 1
    Wo = (W + 2 - KW) // S + 1
    HoWo = Ho * Wo
    NTAP = KH * KW

    # ---- layout prep in the wrapper (cheap strided slices / transposes) ----
    x_pad = jnp.pad(x, ((0, 0), (0, 0), (1, 1), (1, 1)))
    taps = []
    for ky in range(KH):
        for kx in range(KW):
            t = x_pad[:, :, ky::S, kx::S][:, :, :Ho, :Wo]      # (N, C, Ho, Wo)
            taps.append(t)
    patches = jnp.stack(taps, axis=0)                           # (9, N, C, Ho, Wo)
    patches = jnp.transpose(patches, (0, 1, 3, 4, 2)).reshape(NTAP, N * HoWo, C)

    wk = jnp.transpose(w_conv, (2, 3, 1, 0)).reshape(NTAP, C, Cout)  # (9, Cin, Cout)
    w1 = jnp.transpose(w_1x1[:, :, 0, 0], (1, 0))                    # (Cin, Cout)
    b = b_conv.reshape(1, Cout)
    b1 = b_1x1.reshape(1, Cout)

    TB = _pick_tb(N, HoWo)          # images per grid step
    NB = N // TB
    TBHW = TB * HoWo                # matmul M dimension

    # ---- fused Pallas kernel: conv3x3 (9 taps) + 1x1 + L2-mask + max pool ----
    def kernel(patch_ref, wk_ref, b_ref, w1_ref, b1_ref, out_ref, acc_ref):
        # 9-tap accumulation, fully unrolled; weights are VMEM-resident.
        acc_ref[...] = jnp.dot(patch_ref[0], wk_ref[0],
                               preferred_element_type=jnp.float32)
        for k in range(1, NTAP):
            acc_ref[...] += jnp.dot(patch_ref[k], wk_ref[k],
                                    preferred_element_type=jnp.float32)

        y = acc_ref[...] + b_ref[...]                           # conv3x3 + bias
        z = jnp.dot(y, w1_ref[...],
                    preferred_element_type=jnp.float32) + b1_ref[...]  # 1x1 conv

        # Per-image epilogue: keep z only at spatial argmax of the channel
        # L2-norm (equivalent to norm/max >= 1 mask), then global max pool.
        z3 = z.reshape(TB, HoWo, Cout)
        n2 = jnp.sum(z3 * z3, axis=-1, keepdims=True)           # (TB, HoWo, 1)
        m2 = jnp.max(n2, axis=1, keepdims=True)                 # (TB, 1, 1)
        zw = jnp.where(n2 >= m2, z3, jnp.zeros_like(z3))        # NaN-free select
        out_ref[...] = jnp.max(zw, axis=1).astype(out_ref.dtype)  # (TB, Cout)

    max_out = pl.pallas_call(
        kernel,
        out_shape=jax.ShapeDtypeStruct((N, Cout), jnp.float32),
        grid=(NB,),
        in_specs=[
            # activations: one (9, TB*HoWo, C) slab per batch block
            pl.BlockSpec((NTAP, TBHW, C), lambda nb: (0, nb, 0)),
            # weights / biases: constant index -> stay resident across steps
            pl.BlockSpec((NTAP, C, Cout), lambda nb: (0, 0, 0)),
            pl.BlockSpec((1, Cout), lambda nb: (0, 0)),
            pl.BlockSpec((C, Cout), lambda nb: (0, 0)),
            pl.BlockSpec((1, Cout), lambda nb: (0, 0)),
        ],
        out_specs=pl.BlockSpec((TB, Cout), lambda nb: (nb, 0)),
        scratch_shapes=[pltpu.VMEM((TBHW, Cout), jnp.float32)],
        compiler_params=pltpu.CompilerParams(
            dimension_semantics=("parallel",),
            vmem_limit_bytes=64 << 20,   # resident f32 weights (~19 MiB dbl-buffered)
        ),
    )(patches, wk, b, w1, b1)

    # Global average pool is a trivial reduce; keep it in XLA (perf review #4).
    avg_data = jnp.mean(x, axis=(2, 3))                          # (N, C)
    return jnp.concatenate([max_out, avg_data], axis=1)          # (N, Cout + C)


def pool_reference(x, w_conv, b_conv, w_1x1, b_1x1):
    """Pure-JAX reference of the PyTorch forward."""
    hp = jax.lax.Precision.HIGHEST
    y = jax.lax.conv_general_dilated(
        x, w_conv, window_strides=(2, 2), padding=((1, 1), (1, 1)),
        dimension_numbers=("NCHW", "OIHW", "NCHW"), precision=hp)
    y = y + b_conv.reshape(1, -1, 1, 1)
    z = jax.lax.conv_general_dilated(
        y, w_1x1, window_strides=(1, 1), padding="VALID",
        dimension_numbers=("NCHW", "OIHW", "NCHW"), precision=hp)
    z = z + b_1x1.reshape(1, -1, 1, 1)
    nrm = jnp.sqrt(jnp.sum(z * z, axis=1, keepdims=True))        # (N,1,Ho,Wo)
    mx = jnp.max(nrm.reshape(x.shape[0], -1), axis=1).reshape(-1, 1, 1, 1)
    wgt = nrm / mx
    wgt = jnp.where(wgt < 1.0, jnp.zeros_like(wgt), wgt)
    zm = z * wgt
    max_data = jnp.max(zm, axis=(2, 3))                          # (N, Cout)
    avg_data = jnp.mean(x, axis=(2, 3))                          # (N, C)
    return jnp.concatenate([max_data, avg_data], axis=1)


if __name__ == "__main__":
    key = jax.random.PRNGKey(0)
    k1, k2, k3, k4, k5 = jax.random.split(key, 5)

    # Channels are fixed at 512 by the module's conv definitions; keep spatial small.
    N, C, H, W = 2, 512, 8, 8
    x = jax.random.normal(k1, (N, C, H, W), dtype=jnp.float32)
    w_conv = jax.random.normal(k2, (512, 512, 3, 3), dtype=jnp.float32) * (1.0 / (512 * 9) ** 0.5)
    b_conv = jax.random.normal(k3, (512,), dtype=jnp.float32) * 0.01
    w_1x1 = jax.random.normal(k4, (512, 512, 1, 1), dtype=jnp.float32) * (1.0 / 512 ** 0.5)
    b_1x1 = jax.random.normal(k5, (512,), dtype=jnp.float32) * 0.01

    out = jax.jit(pool_forward)(x, w_conv, b_conv, w_1x1, b_1x1)
    jax.block_until_ready(out)

    ref = pool_reference(x, w_conv, b_conv, w_1x1, b_1x1)
    assert out.shape == (N, 2 * 512), out.shape
    max_err = float(jnp.max(jnp.abs(out - ref)))
    assert jnp.allclose(out, ref, rtol=5e-2, atol=5e-2), f"max abs err {max_err}"
    print("KERNEL_OK")
</pallas_src>

<mosaic_0001>
module attributes {stable_mosaic.version = 11 : i64} {
  func.func @kernel(%arg0: i32, %arg1: memref<9x32x512xf32, #tpu.memory_space<vmem>>, %arg2: memref<9x512x512xf32, #tpu.memory_space<vmem>>, %arg3: memref<1x512xf32, #tpu.memory_space<vmem>>, %arg4: memref<512x512xf32, #tpu.memory_space<vmem>>, %arg5: memref<1x512xf32, #tpu.memory_space<vmem>>, %arg6: memref<2x512xf32, #tpu.memory_space<vmem>>, %arg7: memref<32x512xf32, #tpu.memory_space<vmem>>) attributes {dimension_semantics = [#tpu.dimension_semantics<parallel>], iteration_bounds = array<i64: 1>, scalar_prefetch = 0 : i64, scratch_operands = 1 : i64, tpu.core_type = #tpu.core_type<tc>, window_params = [{transform_indices = @transform_0, window_bounds = array<i64: 9, 32, 512>}, {pipeline_mode = #tpu.pipeline_mode<synchronous>, transform_indices = @transform_1, window_bounds = array<i64: 9, 512, 512>}, {pipeline_mode = #tpu.pipeline_mode<synchronous>, transform_indices = @transform_2, window_bounds = array<i64: 1, 512>}, {pipeline_mode = #tpu.pipeline_mode<synchronous>, transform_indices = @transform_3, window_bounds = array<i64: 512, 512>}, {pipeline_mode = #tpu.pipeline_mode<synchronous>, transform_indices = @transform_4, window_bounds = array<i64: 1, 512>}, {transform_indices = @transform_5, window_bounds = array<i64: 2, 512>}]} {
    %c0 = arith.constant 0 : index
    %c0_0 = arith.constant 0 : index
    %c0_1 = arith.constant 0 : index
    %0 = vector.load %arg1[%c0, %c0_0, %c0_1] : memref<9x32x512xf32, #tpu.memory_space<vmem>>, vector<1x32x512xf32>
    %1 = vector.shape_cast %0 : vector<1x32x512xf32> to vector<32x512xf32>
    %c0_2 = arith.constant 0 : index
    %c0_3 = arith.constant 0 : index
    %c0_4 = arith.constant 0 : index
    %2 = vector.load %arg2[%c0_2, %c0_3, %c0_4] : memref<9x512x512xf32, #tpu.memory_space<vmem>>, vector<1x512x512xf32>
    %3 = vector.shape_cast %2 : vector<1x512x512xf32> to vector<512x512xf32>
    %cst = arith.constant dense<0.000000e+00> : vector<32x512xf32>
    %4 = tpu.matmul %1, %3, %cst {dimension_numbers = #tpu.dot_dimension_numbers<[1], [0], [0], [1], [0, 0, 1, 1], [], []>} : vector<32x512xf32>, vector<512x512xf32>, vector<32x512xf32> -> vector<32x512xf32>
    %c0_5 = arith.constant 0 : index
    %c0_6 = arith.constant 0 : index
    %5 = vector.load %arg7[%c0_5, %c0_6] : memref<32x512xf32, #tpu.memory_space<vmem>>, vector<32x512xf32>
    tpu.vector_store %arg7[%c0_5, %c0_6], %4 {strides = array<i32>} : memref<32x512xf32, #tpu.memory_space<vmem>>, vector<32x512xf32>,
    %c0_7 = arith.constant 0 : index
    %c0_8 = arith.constant 0 : index
    %6 = vector.load %arg7[%c0_7, %c0_8] : memref<32x512xf32, #tpu.memory_space<vmem>>, vector<32x512xf32>
    %c1 = arith.constant 1 : index
    %c0_9 = arith.constant 0 : index
    %c0_10 = arith.constant 0 : index
    %7 = vector.load %arg1[%c1, %c0_9, %c0_10] : memref<9x32x512xf32, #tpu.memory_space<vmem>>, vector<1x32x512xf32>
    %8 = vector.shape_cast %7 : vector<1x32x512xf32> to vector<32x512xf32>
    %c1_11 = arith.constant 1 : index
    %c0_12 = arith.constant 0 : index
    %c0_13 = arith.constant 0 : index
    %9 = vector.load %arg2[%c1_11, %c0_12, %c0_13] : memref<9x512x512xf32, #tpu.memory_space<vmem>>, vector<1x512x512xf32>
    %10 = vector.shape_cast %9 : vector<1x512x512xf32> to vector<512x512xf32>
    %cst_14 = arith.constant dense<0.000000e+00> : vector<32x512xf32>
    %11 = tpu.matmul %8, %10, %cst_14 {dimension_numbers = #tpu.dot_dimension_numbers<[1], [0], [0], [1], [0, 0, 1, 1], [], []>} : vector<32x512xf32>, vector<512x512xf32>, vector<32x512xf32> -> vector<32x512xf32>
    %12 = arith.addf %6, %11 : vector<32x512xf32>
    %c0_15 = arith.constant 0 : index
    %c0_16 = arith.constant 0 : index
    %13 = vector.load %arg7[%c0_15, %c0_16] : memref<32x512xf32, #tpu.memory_space<vmem>>, vector<32x512xf32>
    tpu.vector_store %arg7[%c0_15, %c0_16], %12 {strides = array<i32>} : memref<32x512xf32, #tpu.memory_space<vmem>>, vector<32x512xf32>,
    %c0_17 = arith.constant 0 : index
    %c0_18 = arith.constant 0 : index
    %14 = vector.load %arg7[%c0_17, %c0_18] : memref<32x512xf32, #tpu.memory_space<vmem>>, vector<32x512xf32>
    %c2 = arith.constant 2 : index
    %c0_19 = arith.constant 0 : index
    %c0_20 = arith.constant 0 : index
    %15 = vector.load %arg1[%c2, %c0_19, %c0_20] : memref<9x32x512xf32, #tpu.memory_space<vmem>>, vector<1x32x512xf32>
    %16 = vector.shape_cast %15 : vector<1x32x512xf32> to vector<32x512xf32>
    %c2_21 = arith.constant 2 : index
    %c0_22 = arith.constant 0 : index
    %c0_23 = arith.constant 0 : index
    %17 = vector.load %arg2[%c2_21, %c0_22, %c0_23] : memref<9x512x512xf32, #tpu.memory_space<vmem>>, vector<1x512x512xf32>
    %18 = vector.shape_cast %17 : vector<1x512x512xf32> to vector<512x512xf32>
    %cst_24 = arith.constant dense<0.000000e+00> : vector<32x512xf32>
    %19 = tpu.matmul %16, %18, %cst_24 {dimension_numbers = #tpu.dot_dimension_numbers<[1], [0], [0], [1], [0, 0, 1, 1], [], []>} : vector<32x512xf32>, vector<512x512xf32>, vector<32x512xf32> -> vector<32x512xf32>
    %20 = arith.addf %14, %19 : vector<32x512xf32>
    %c0_25 = arith.constant 0 : index
    %c0_26 = arith.constant 0 : index
    %21 = vector.load %arg7[%c0_25, %c0_26] : memref<32x512xf32, #tpu.memory_space<vmem>>, vector<32x512xf32>
    tpu.vector_store %arg7[%c0_25, %c0_26], %20 {strides = array<i32>} : memref<32x512xf32, #tpu.memory_space<vmem>>, vector<32x512xf32>,
    %c0_27 = arith.constant 0 : index
    %c0_28 = arith.constant 0 : index
    %22 = vector.load %arg7[%c0_27, %c0_28] : memref<32x512xf32, #tpu.memory_space<vmem>>, vector<32x512xf32>
    %c3 = arith.constant 3 : index
    %c0_29 = arith.constant 0 : index
    %c0_30 = arith.constant 0 : index
    %23 = vector.load %arg1[%c3, %c0_29, %c0_30] : memref<9x32x512xf32, #tpu.memory_space<vmem>>, vector<1x32x512xf32>
    %24 = vector.shape_cast %23 : vector<1x32x512xf32> to vector<32x512xf32>
    %c3_31 = arith.constant 3 : index
    %c0_32 = arith.constant 0 : index
    %c0_33 = arith.constant 0 : index
    %25 = vector.load %arg2[%c3_31, %c0_32, %c0_33] : memref<9x512x512xf32, #tpu.memory_space<vmem>>, vector<1x512x512xf32>
    %26 = vector.shape_cast %25 : vector<1x512x512xf32> to vector<512x512xf32>
    %cst_34 = arith.constant dense<0.000000e+00> : vector<32x512xf32>
    %27 = tpu.matmul %24, %26, %cst_34 {dimension_numbers = #tpu.dot_dimension_numbers<[1], [0], [0], [1], [0, 0, 1, 1], [], []>} : vector<32x512xf32>, vector<512x512xf32>, vector<32x512xf32> -> vector<32x512xf32>
    %28 = arith.addf %22, %27 : vector<32x512xf32>
    %c0_35 = arith.constant 0 : index
    %c0_36 = arith.constant 0 : index
    %29 = vector.load %arg7[%c0_35, %c0_36] : memref<32x512xf32, #tpu.memory_space<vmem>>, vector<32x512xf32>
    tpu.vector_store %arg7[%c0_35, %c0_36], %28 {strides = array<i32>} : memref<32x512xf32, #tpu.memory_space<vmem>>, vector<32x512xf32>,
    %c0_37 = arith.constant 0 : index
    %c0_38 = arith.constant 0 : index
    %30 = vector.load %arg7[%c0_37, %c0_38] : memref<32x512xf32, #tpu.memory_space<vmem>>, vector<32x512xf32>
    %c4 = arith.constant 4 : index
    %c0_39 = arith.constant 0 : index
    %c0_40 = arith.constant 0 : index
    %31 = vector.load %arg1[%c4, %c0_39, %c0_40] : memref<9x32x512xf32, #tpu.memory_space<vmem>>, vector<1x32x512xf32>
    %32 = vector.shape_cast %31 : vector<1x32x512xf32> to vector<32x512xf32>
    %c4_41 = arith.constant 4 : index
    %c0_42 = arith.constant 0 : index
    %c0_43 = arith.constant 0 : index
    %33 = vector.load %arg2[%c4_41, %c0_42, %c0_43] : memref<9x512x512xf32, #tpu.memory_space<vmem>>, vector<1x512x512xf32>
    %34 = vector.shape_cast %33 : vector<1x512x512xf32> to vector<512x512xf32>
    %cst_44 = arith.constant dense<0.000000e+00> : vector<32x512xf32>
    %35 = tpu.matmul %32, %34, %cst_44 {dimension_numbers = #tpu.dot_dimension_numbers<[1], [0], [0], [1], [0, 0, 1, 1], [], []>} : vector<32x512xf32>, vector<512x512xf32>, vector<32x512xf32> -> vector<32x512xf32>
    %36 = arith.addf %30, %35 : vector<32x512xf32>
    %c0_45 = arith.constant 0 : index
    %c0_46 = arith.constant 0 : index
    %37 = vector.load %arg7[%c0_45, %c0_46] : memref<32x512xf32, #tpu.memory_space<vmem>>, vector<32x512xf32>
    tpu.vector_store %arg7[%c0_45, %c0_46], %36 {strides = array<i32>} : memref<32x512xf32, #tpu.memory_space<vmem>>, vector<32x512xf32>,
    %c0_47 = arith.constant 0 : index
    %c0_48 = arith.constant 0 : index
    %38 = vector.load %arg7[%c0_47, %c0_48] : memref<32x512xf32, #tpu.memory_space<vmem>>, vector<32x512xf32>
    %c5 = arith.constant 5 : index
    %c0_49 = arith.constant 0 : index
    %c0_50 = arith.constant 0 : index
    %39 = vector.load %arg1[%c5, %c0_49, %c0_50] : memref<9x32x512xf32, #tpu.memory_space<vmem>>, vector<1x32x512xf32>
    %40 = vector.shape_cast %39 : vector<1x32x512xf32> to vector<32x512xf32>
    %c5_51 = arith.constant 5 : index
    %c0_52 = arith.constant 0 : index
    %c0_53 = arith.constant 0 : index
    %41 = vector.load %arg2[%c5_51, %c0_52, %c0_53] : memref<9x512x512xf32, #tpu.memory_space<vmem>>, vector<1x512x512xf32>
    %42 = vector.shape_cast %41 : vector<1x512x512xf32> to vector<512x512xf32>
    %cst_54 = arith.constant dense<0.000000e+00> : vector<32x512xf32>
    %43 = tpu.matmul %40, %42, %cst_54 {dimension_numbers = #tpu.dot_dimension_numbers<[1], [0], [0], [1], [0, 0, 1, 1], [], []>} : vector<32x512xf32>, vector<512x512xf32>, vector<32x512xf32> -> vector<32x512xf32>
    %44 = arith.addf %38, %43 : vector<32x512xf32>
    %c0_55 = arith.constant 0 : index
    %c0_56 = arith.constant 0 : index
    %45 = vector.load %arg7[%c0_55, %c0_56] : memref<32x512xf32, #tpu.memory_space<vmem>>, vector<32x512xf32>
    tpu.vector_store %arg7[%c0_55, %c0_56], %44 {strides = array<i32>} : memref<32x512xf32, #tpu.memory_space<vmem>>, vector<32x512xf32>,
    %c0_57 = arith.constant 0 : index
    %c0_58 = arith.constant 0 : index
    %46 = vector.load %arg7[%c0_57, %c0_58] : memref<32x512xf32, #tpu.memory_space<vmem>>, vector<32x512xf32>
    %c6 = arith.constant 6 : index
    %c0_59 = arith.constant 0 : index
    %c0_60 = arith.constant 0 : index
    %47 = vector.load %arg1[%c6, %c0_59, %c0_60] : memref<9x32x512xf32, #tpu.memory_space<vmem>>, vector<1x32x512xf32>
    %48 = vector.shape_cast %47 : vector<1x32x512xf32> to vector<32x512xf32>
    %c6_61 = arith.constant 6 : index
    %c0_62 = arith.constant 0 : index
    %c0_63 = arith.constant 0 : index
    %49 = vector.load %arg2[%c6_61, %c0_62, %c0_63] : memref<9x512x512xf32, #tpu.memory_space<vmem>>, vector<1x512x512xf32>
    %50 = vector.shape_cast %49 : vector<1x512x512xf32> to vector<512x512xf32>
    %cst_64 = arith.constant dense<0.000000e+00> : vector<32x512xf32>
    %51 = tpu.matmul %48, %50, %cst_64 {dimension_numbers = #tpu.dot_dimension_numbers<[1], [0], [0], [1], [0, 0, 1, 1], [], []>} : vector<32x512xf32>, vector<512x512xf32>, vector<32x512xf32> -> vector<32x512xf32>
    %52 = arith.addf %46, %51 : vector<32x512xf32>
    %c0_65 = arith.constant 0 : index
    %c0_66 = arith.constant 0 : index
    %53 = vector.load %arg7[%c0_65, %c0_66] : memref<32x512xf32, #tpu.memory_space<vmem>>, vector<32x512xf32>
    tpu.vector_store %arg7[%c0_65, %c0_66], %52 {strides = array<i32>} : memref<32x512xf32, #tpu.memory_space<vmem>>, vector<32x512xf32>,
    %c0_67 = arith.constant 0 : index
    %c0_68 = arith.constant 0 : index
    %54 = vector.load %arg7[%c0_67, %c0_68] : memref<32x512xf32, #tpu.memory_space<vmem>>, vector<32x512xf32>
    %c7 = arith.constant 7 : index
    %c0_69 = arith.constant 0 : index
    %c0_70 = arith.constant 0 : index
    %55 = vector.load %arg1[%c7, %c0_69, %c0_70] : memref<9x32x512xf32, #tpu.memory_space<vmem>>, vector<1x32x512xf32>
    %56 = vector.shape_cast %55 : vector<1x32x512xf32> to vector<32x512xf32>
    %c7_71 = arith.constant 7 : index
    %c0_72 = arith.constant 0 : index
    %c0_73 = arith.constant 0 : index
    %57 = vector.load %arg2[%c7_71, %c0_72, %c0_73] : memref<9x512x512xf32, #tpu.memory_space<vmem>>, vector<1x512x512xf32>
    %58 = vector.shape_cast %57 : vector<1x512x512xf32> to vector<512x512xf32>
    %cst_74 = arith.constant dense<0.000000e+00> : vector<32x512xf32>
    %59 = tpu.matmul %56, %58, %cst_74 {dimension_numbers = #tpu.dot_dimension_numbers<[1], [0], [0], [1], [0, 0, 1, 1], [], []>} : vector<32x512xf32>, vector<512x512xf32>, vector<32x512xf32> -> vector<32x512xf32>
    %60 = arith.addf %54, %59 : vector<32x512xf32>
    %c0_75 = arith.constant 0 : index
    %c0_76 = arith.constant 0 : index
    %61 = vector.load %arg7[%c0_75, %c0_76] : memref<32x512xf32, #tpu.memory_space<vmem>>, vector<32x512xf32>
    tpu.vector_store %arg7[%c0_75, %c0_76], %60 {strides = array<i32>} : memref<32x512xf32, #tpu.memory_space<vmem>>, vector<32x512xf32>,
    %c0_77 = arith.constant 0 : index
    %c0_78 = arith.constant 0 : index
    %62 = vector.load %arg7[%c0_77, %c0_78] : memref<32x512xf32, #tpu.memory_space<vmem>>, vector<32x512xf32>
    %c8 = arith.constant 8 : index
    %c0_79 = arith.constant 0 : index
    %c0_80 = arith.constant 0 : index
    %63 = vector.load %arg1[%c8, %c0_79, %c0_80] : memref<9x32x512xf32, #tpu.memory_space<vmem>>, vector<1x32x512xf32>
    %64 = vector.shape_cast %63 : vector<1x32x512xf32> to vector<32x512xf32>
    %c8_81 = arith.constant 8 : index
    %c0_82 = arith.constant 0 : index
    %c0_83 = arith.constant 0 : index
    %65 = vector.load %arg2[%c8_81, %c0_82, %c0_83] : memref<9x512x512xf32, #tpu.memory_space<vmem>>, vector<1x512x512xf32>
    %66 = vector.shape_cast %65 : vector<1x512x512xf32> to vector<512x512xf32>
    %cst_84 = arith.constant dense<0.000000e+00> : vector<32x512xf32>
    %67 = tpu.matmul %64, %66, %cst_84 {dimension_numbers = #tpu.dot_dimension_numbers<[1], [0], [0], [1], [0, 0, 1, 1], [], []>} : vector<32x512xf32>, vector<512x512xf32>, vector<32x512xf32> -> vector<32x512xf32>
    %68 = arith.addf %62, %67 : vector<32x512xf32>
    %c0_85 = arith.constant 0 : index
    %c0_86 = arith.constant 0 : index
    %69 = vector.load %arg7[%c0_85, %c0_86] : memref<32x512xf32, #tpu.memory_space<vmem>>, vector<32x512xf32>
    tpu.vector_store %arg7[%c0_85, %c0_86], %68 {strides = array<i32>} : memref<32x512xf32, #tpu.memory_space<vmem>>, vector<32x512xf32>,
    %c0_87 = arith.constant 0 : index
    %c0_88 = arith.constant 0 : index
    %70 = vector.load %arg7[%c0_87, %c0_88] : memref<32x512xf32, #tpu.memory_space<vmem>>, vector<32x512xf32>
    %c0_89 = arith.constant 0 : index
    %c0_90 = arith.constant 0 : index
    %71 = vector.load %arg3[%c0_89, %c0_90] : memref<1x512xf32, #tpu.memory_space<vmem>>, vector<1x512xf32>
    %72 = vector.broadcast %71 : vector<1x512xf32> to vector<32x512xf32>
    %73 = arith.addf %70, %72 : vector<32x512xf32>
    %c0_91 = arith.constant 0 : index
    %c0_92 = arith.constant 0 : index
    %74 = vector.load %arg4[%c0_91, %c0_92] : memref<512x512xf32, #tpu.memory_space<vmem>>, vector<512x512xf32>
    %cst_93 = arith.constant dense<0.000000e+00> : vector<32x512xf32>
    %75 = tpu.matmul %73, %74, %cst_93 {dimension_numbers = #tpu.dot_dimension_numbers<[1], [0], [0], [1], [0, 0, 1, 1], [], []>} : vector<32x512xf32>, vector<512x512xf32>, vector<32x512xf32> -> vector<32x512xf32>
    %c0_94 = arith.constant 0 : index
    %c0_95 = arith.constant 0 : index
    %76 = vector.load %arg5[%c0_94, %c0_95] : memref<1x512xf32, #tpu.memory_space<vmem>>, vector<1x512xf32>
    %77 = vector.broadcast %76 : vector<1x512xf32> to vector<32x512xf32>
    %78 = arith.addf %75, %77 : vector<32x512xf32>
    %79 = vector.shape_cast %78 : vector<32x512xf32> to vector<2x16x512xf32>
    %80 = arith.mulf %79, %79 : vector<2x16x512xf32>
    %cst_96 = arith.constant dense<0.000000e+00> : vector<2x16xf32>
    %81 = vector.multi_reduction <add>, %80, %cst_96 [2] : vector<2x16x512xf32> to vector<2x16xf32>
    %82 = vector.shape_cast %81 : vector<2x16xf32> to vector<2x16x1xf32>
    %cst_97 = arith.constant dense<0xFF800000> : vector<2x1xf32>
    %83 = vector.multi_reduction <maximumf>, %82, %cst_97 [1] : vector<2x16x1xf32> to vector<2x1xf32>
    %84 = vector.shape_cast %83 : vector<2x1xf32> to vector<2x1x1xf32>
    %85 = vector.broadcast %84 : vector<2x1x1xf32> to vector<2x16x1xf32>
    %86 = arith.cmpf oge, %82, %85 : vector<2x16x1xf32>
    %cst_98 = arith.constant 0.000000e+00 : f32
    %87 = vector.broadcast %cst_98 : f32 to vector<2x16x512xf32>
    %88 = vector.shape_cast %86 : vector<2x16x1xi1> to vector<2x16x1xi1>
    %89 = vector.broadcast %88 : vector<2x16x1xi1> to vector<2x16x512xi1>
    %90 = arith.select %89, %79, %87 : vector<2x16x512xi1>, vector<2x16x512xf32>
    %cst_99 = arith.constant dense<0xFF800000> : vector<2x512xf32>
    %91 = vector.multi_reduction <maximumf>, %90, %cst_99 [1] : vector<2x16x512xf32> to vector<2x512xf32>
    %c0_100 = arith.constant 0 : index
    %c0_101 = arith.constant 0 : index
    %92 = vector.load %arg6[%c0_100, %c0_101] : memref<2x512xf32, #tpu.memory_space<vmem>>, vector<2x512xf32>
    tpu.vector_store %arg6[%c0_100, %c0_101], %91 {strides = array<i32>} : memref<2x512xf32, #tpu.memory_space<vmem>>, vector<2x512xf32>,
    return
  }
  func.func @transform_0(%arg0: i32) -> (i32, i32, i32) {
    %c0_i32 = arith.constant 0 : i32
    %c0_i32_0 = arith.constant 0 : i32
    %c0_i32_1 = arith.constant 0 : i32
    return %c0_i32, %arg0, %c0_i32_0 : i32, i32, i32
  }
  func.func @transform_1(%arg0: i32) -> (i32, i32, i32) {
    %c0_i32 = arith.constant 0 : i32
    %c0_i32_0 = arith.constant 0 : i32
    %c0_i32_1 = arith.constant 0 : i32
    %c0_i32_2 = arith.constant 0 : i32
    return %c0_i32, %c0_i32_0, %c0_i32_1 : i32, i32, i32
  }
  func.func @transform_2(%arg0: i32) -> (i32, i32) {
    %c0_i32 = arith.constant 0 : i32
    %c0_i32_0 = arith.constant 0 : i32
    %c0_i32_1 = arith.constant 0 : i32
    return %c0_i32, %c0_i32_0 : i32, i32
  }
  func.func @transform_3(%arg0: i32) -> (i32, i32) {
    %c0_i32 = arith.constant 0 : i32
    %c0_i32_0 = arith.constant 0 : i32
    %c0_i32_1 = arith.constant 0 : i32
    return %c0_i32, %c0_i32_0 : i32, i32
  }
  func.func @transform_4(%arg0: i32) -> (i32, i32) {
    %c0_i32 = arith.constant 0 : i32
    %c0_i32_0 = arith.constant 0 : i32
    %c0_i32_1 = arith.constant 0 : i32
    return %c0_i32, %c0_i32_0 : i32, i32
  }
  func.func @transform_5(%arg0: i32) -> (i32, i32) {
    %c0_i32 = arith.constant 0 : i32
    %c0_i32_0 = arith.constant 0 : i32
    return %arg0, %c0_i32 : i32, i32
  }
}

</mosaic_0001>

<bundles_post_ra>
// kernel: pool_forward.1
= control target key start
LH: loop header
LB: loop body
LE: loop exit
PB: predicated region body
PF: predicated region fallthrough
CT: control target
= control target key end

     0   :  { %10 = vsyncpa [#allocation4], 0  ;;  %s10350_s0 = inlined_call_operand.hbm [shape: f32[9,32,512], index: 0, kind: input, shape index: {}]   ;;  %s10351_s1 = inlined_call_operand.hbm [shape: f32[9,512,512], index: 1, kind: input, shape index: {}]   ;;  %s10352_s2 = inlined_call_operand.hbm [shape: f32[1,512], index: 2, kind: input, shape index: {}]   ;;  %s10353_s3 = inlined_call_operand.hbm [shape: f32[512,512], index: 3, kind: input, shape index: {}]   ;;  %s10354_s4 = inlined_call_operand.hbm [shape: f32[1,512], index: 4, kind: input, shape index: {}]   ;;  %s10355_s5 = inlined_call_operand.hbm [shape: f32[2,512], index: 5, kind: output, shape index: {}]  }
   0x1   :  { %11 = vsyncpa [#allocation7], 0 }
   0x2   :  { %12 = vsyncpa [#allocation10], 0 }
   0x3   :  { %13 = vsyncpa [#allocation5], 0  ;;  %s10062_s18 = smov [#allocation6]   ;;  %s10063_s20 = smov [#allocation9]  }
   0x4   :  { %s31_s19 = sshll.u32 %s10062_s18, 4  ;;  %s53_s21 = sshll.u32 %s10063_s20, 4  ;;  %s32_s19 = int_to_ptr.vmem [resolvable:$true] %s31_s19  ;;  %s10101_s21 = int_to_ptr.vmem [resolvable:$true] %s53_s21 }
   0x5   :  { %s9922_s24 = scalar_lea.hbm %s10351_s1, 294912 }
   0x6   :  { %p9923_p0 = scmp.ne.s32.totalorder %s10351_s1, %s9922_s24  ;;  %p9926_p1 = scmp.lt.u32.totalorder %s9922_s24, %s10351_s1 }
   0x8   :  { %p9928_p2 = pnand %p9926_p1, %p9923_p0 }
   0xa   :  { %9931 = shalt.err (!%p9928_p2)
}
   0xb   :  { %s9932_s29 = scalar_lea.vmem %s32_s19, 294912  ;;  %p9937_p4 = scmp.lt.s32.totalorder %s32_s19, %s32_s19 }
   0xc   :  { %p9933_p3 = scmp.ne.s32.totalorder %s32_s19, %s9932_s29  ;;  %p9938_p5 = scmp.lt.s32.totalorder %s9932_s29, %s9932_s29 }
   0xe   :  { %p9939_p6 = por %p9938_p5, %p9937_p4 }
  0x10   :  { %p9940_p7 = pnand %p9939_p6, %p9933_p3 }
  0x12   :  { %9943 = shalt.err (!%p9940_p7)
}
  0x13   :  { %s10064_s30 = smov 512   ;;  %s10065_s6 = smov 32  }
  0x14   :  { %37 = dma.hbm_to_vmem [thread:$0]  %s10351_s1, 294912, %s32_s19, [#allocation7], %s10064_s30, %s10064_s30, %s10065_s6  }
  0x15   :  { %s9944_s11 = scalar_lea.hbm %s10353_s3, 32768 }
  0x16   :  { %p9945_p8 = scmp.ne.s32.totalorder %s10353_s3, %s9944_s11  ;;  %p9948_p9 = scmp.lt.u32.totalorder %s9944_s11, %s10353_s3 }
  0x18   :  { %p9950_p10 = pnand %p9948_p9, %p9945_p8 }
  0x1a   :  { %9953 = shalt.err (!%p9950_p10)
}
  0x1b   :  { %s9954_s16 = scalar_lea.vmem %s10101_s21, 32768  ;;  %p9959_p12 = scmp.lt.s32.totalorder %s10101_s21, %s10101_s21 }
  0x1c   :  { %p9955_p11 = scmp.ne.s32.totalorder %s10101_s21, %s9954_s16  ;;  %p9960_p13 = scmp.lt.s32.totalorder %s9954_s16, %s9954_s16 }
  0x1e   :  { %p9961_p0 = por %p9960_p13, %p9959_p12 }
  0x20   :  { %p9962_p1 = pnand %p9961_p0, %p9955_p11 }
  0x22   :  { %9965 = shalt.err (!%p9962_p1)
}
  0x23   :  { %59 = dma.hbm_to_vmem [thread:$0]  %s10353_s3, 32768, %s10101_s21, [#allocation10], %s10064_s30, %s10064_s30, %s10065_s6  }
  0x24   :  { %s10066_s18 = smov [#allocation3]   ;;  %s10067_s20 = smov [#allocation8]  }
  0x25   :  { %s19_s19 = sshll.u32 %s10066_s18, 4  ;;  %s44_s22 = sshll.u32 %s10067_s20, 4  ;;  %s20_s19 = int_to_ptr.vmem [resolvable:$true] %s19_s19  ;;  %s45_s22 = int_to_ptr.vmem [resolvable:$true] %s44_s22 }
  0x26   :  { %s9966_s25 = scalar_lea.hbm %s10350_s0, 18432 }
  0x27   :  { %p9967_p2 = scmp.ne.s32.totalorder %s10350_s0, %s9966_s25  ;;  %p9970_p3 = scmp.lt.u32.totalorder %s9966_s25, %s10350_s0 }
  0x29   :  { %p9972_p4 = pnand %p9970_p3, %p9967_p2 }
  0x2b   :  { %9975 = shalt.err (!%p9972_p4)
}
  0x2c   :  { %s9976_s3 = scalar_lea.vmem %s20_s19, 18432  ;;  %p9981_p6 = scmp.lt.s32.totalorder %s20_s19, %s20_s19 }
  0x2d   :  { %p9977_p5 = scmp.ne.s32.totalorder %s20_s19, %s9976_s3  ;;  %p9982_p7 = scmp.lt.s32.totalorder %s9976_s3, %s9976_s3 }
  0x2f   :  { %p9983_p8 = por %p9982_p7, %p9981_p6 }
  0x31   :  { %p9984_p9 = pnand %p9983_p8, %p9977_p5 }
  0x33   :  { %9987 = shalt.err (!%p9984_p9)
}
  0x34   :  { %25 = dma.hbm_to_vmem [thread:$0]  %s10350_s0, 18432, %s20_s19, [#allocation4], %s10064_s30, %s10064_s30, %s10065_s6  }
  0x35   :  { %s9988_s10 = scalar_lea.hbm %s10352_s2, 64 }
  0x36   :  { %p9989_p10 = scmp.ne.s32.totalorder %s10352_s2, %s9988_s10  ;;  %p9992_p11 = scmp.lt.u32.totalorder %s9988_s10, %s10352_s2 }
  0x38   :  { %p9994_p12 = pnand %p9992_p11, %p9989_p10 }
  0x3a   :  { %9997 = shalt.err (!%p9994_p12)
}
  0x3b   :  { %s9998_s15 = scalar_lea.vmem %s45_s22, 64  ;;  %p10003_p0 = scmp.lt.s32.totalorder %s45_s22, %s45_s22 }
  0x3c   :  { %p9999_p13 = scmp.ne.s32.totalorder %s45_s22, %s9998_s15  ;;  %p10004_p1 = scmp.lt.s32.totalorder %s9998_s15, %s9998_s15 }
  0x3e   :  { %p10005_p2 = por %p10004_p1, %p10003_p0 }
  0x40   :  { %p10006_p3 = pnand %p10005_p2, %p9999_p13 }
  0x42   :  { %10009 = shalt.err (!%p10006_p3)
}
  0x43   :  { %47 = dma.hbm_to_vmem [thread:$0]  %s10352_s2, 64, %s45_s22, [#allocation7]  }
  0x44   :  { %s10068_s6 = smov [#allocation11]   ;;  %s10010_s18 = scalar_lea.hbm %s10354_s4, 64 }
  0x45   :  { %s66_s16 = sshll.u32 %s10068_s6, 4  ;;  %p10011_p4 = scmp.ne.s32.totalorder %s10354_s4, %s10010_s18  ;;  %s67_s16 = int_to_ptr.vmem [resolvable:$true] %s66_s16 }
  0x46   :  { %p10014_p5 = scmp.lt.u32.totalorder %s10010_s18, %s10354_s4 }
  0x48   :  { %p10016_p6 = pnand %p10014_p5, %p10011_p4 }
  0x4a   :  { %10019 = shalt.err (!%p10016_p6)
}
  0x4b   :  { %s10020_s25 = scalar_lea.vmem %s67_s16, 64  ;;  %p10025_p8 = scmp.lt.s32.totalorder %s67_s16, %s67_s16 }
  0x4c   :  { %p10021_p7 = scmp.ne.s32.totalorder %s67_s16, %s10020_s25  ;;  %p10026_p9 = scmp.lt.s32.totalorder %s10020_s25, %s10020_s25 }
  0x4e   :  { %p10027_p10 = por %p10026_p9, %p10025_p8 }
  0x50   :  { %p10028_p11 = pnand %p10027_p10, %p10021_p7 }
  0x52   :  { %10031 = shalt.err (!%p10028_p11)
}
  0x53   :  { %69 = dma.hbm_to_vmem [thread:$0]  %s10354_s4, 64, %s67_s16, [#allocation10]  }
  0x54   :  { %10054 = dma.done.wait [#allocation4], 18432  }
  0x55   :  { %10055 = vsyncadd [#allocation4], 4294948864 }
  0x56   :  { %10056 = dma.done.wait [#allocation7], 294976  }
  0x57   :  { %10057 = vsyncadd [#allocation7], 4294672320 }
  0x58   :  { %10058 = dma.done.wait [#allocation10], 32832  }
  0x59   :  { %10059 = vsyncadd [#allocation10], 4294934464  ;;  %v102_v0 = vld [vmem:[#allocation6 + $0x8] sm:$0xff]  ;;  %v104_v2 = vld [vmem:[#allocation6 + $0x18] sm:$0xff]  ;;  %vm7022_vm4 = vcmask 1041409   ;;  %vm7024_vm5 = vcmask 1043459  }
  0x5a   :  { %v106_v1 = vld [vmem:[#allocation6 + $0x28] sm:$0xff]  ;;  %v108_v4 = vld [vmem:[#allocation6 + $0x38] sm:$0xff]  ;;  %v101_v5 = vld [vmem:[#allocation6] sm:$0xff]  ;;  %vm7026_vm6 = vcmask 1045509   ;;  %s10070_s4 = smov [#allocation12]   ;;  %vm7028_vm7 = vcmask 1047559  }
  0x5b   :  { %v7049_v3 = vpack.c.bf16 %v106_v1, %v102_v0  ;;  %v105_v6 = vld [vmem:[#allocation6 + $0x20] sm:$0xff]  ;;  %v7177_v7 = vpack.c.bf16 %v108_v4, %v104_v2  ;;  %v103_v9 = vld [vmem:[#allocation6 + $0x10] sm:$0xff]  ;;  %v110_v11 = vld [vmem:[#allocation6 + $0x48] sm:$0xff]  ;;  %s7038_s26 = sshll.u32 %s10070_s4, 4  ;;  %s7039_s26 = int_to_ptr.vmem [resolvable:$true] %s7038_s26 }
  0x5c   :  { %v7051_v8 = vpack.c.bf16 %v105_v6, %v101_v5  ;;  %v107_v10 = vld [vmem:[#allocation6 + $0x30] sm:$0xff]  ;;  %v114_v13 = vld [vmem:[#allocation6 + $0x68] sm:$0xff]  ;;  %v112_v14 = vld [vmem:[#allocation6 + $0x58] sm:$0xff]  ;;  %s10032_s27 = scalar_lea.vmem %s7039_s26, 128  ;;  %p10037_p13 = scmp.lt.s32.totalorder %s7039_s26, %s7039_s26 }
  0x5d   :  { %7050 = vmatprep.subr.bf16.mxu0 %v7049_v3  ;;  %v7179_v12 = vpack.c.bf16 %v107_v10, %v103_v9  ;;  %v116_v15 = vld [vmem:[#allocation6 + $0x78] sm:$0xff]  ;;  %7178 = vmatprep.subr.bf16.mxu1 %v7177_v7  ;;  %v7053_v16 = vpack.c.bf16 %v114_v13, %v110_v11  ;;  %v109_v18 = vld [vmem:[#allocation6 + $0x40] sm:$0xff]  ;;  %v111_v20 = vld [vmem:[#allocation6 + $0x50] sm:$0xff]  ;;  %p10033_p12 = scmp.ne.s32.totalorder %s7039_s26, %s10032_s27  ;;  %p10038_p0 = scmp.lt.s32.totalorder %s10032_s27, %s10032_s27 }
  0x5e   :  { %7052 = vmatpush1.bf16.msra.mxu0 %v7051_v8  ;;  %v7181_v17 = vpack.c.bf16 %v116_v15, %v112_v14  ;;  %v113_v19 = vld [vmem:[#allocation6 + $0x60] sm:$0xff]  ;;  %v115_v22 = vld [vmem:[#allocation6 + $0x70] sm:$0xff]  ;;  %v118_v23 = vld [vmem:[#allocation6 + $0x88] sm:$0xff] }
  0x5f   :  { %7180 = vmatpush1.bf16.msra.mxu1 %v7179_v12  ;;  %v7055_v21 = vpack.c.bf16 %v113_v19, %v109_v18  ;;  %v122_v24 = vld [vmem:[#allocation6 + $0xa8] sm:$0xff]  ;;  %7054 = vmatprep.subr.bf16.mxu0 %v7053_v16  ;;  %v7183_v25 = vpack.c.bf16 %v115_v22, %v111_v20  ;;  %v120_v27 = vld [vmem:[#allocation6 + $0x98] sm:$0xff]  ;;  %v117_v29 = vld [vmem:[#allocation6 + $0x80] sm:$0xff]  ;;  %p10039_p1 = por %p10038_p0, %p10037_p13 }
  0x60   :  { %7182 = vmatprep.subr.bf16.mxu1 %v7181_v17  ;;  %v7057_v26 = vpack.c.bf16 %v122_v24, %v118_v23  ;;  %v124_v28 = vld [vmem:[#allocation6 + $0xb8] sm:$0xff]  ;;  %v121_v31 = vld [vmem:[#allocation6 + $0xa0] sm:$0xff]  ;;  %v119_v32 = vld [vmem:[#allocation6 + $0x90] sm:$0xff] }
  0x61   :  { %v7185_v30 = vpack.c.bf16 %v124_v28, %v120_v27  ;;  %v123_v33 = vld [vmem:[#allocation6 + $0xb0] sm:$0xff]  ;;  %v7059_v34 = vpack.c.bf16 %v121_v31, %v117_v29  ;;  %v126_v35 = vld [vmem:[#allocation6 + $0xc8] sm:$0xff]  ;;  %v128_v37 = vld [vmem:[#allocation6 + $0xd8] sm:$0xff]  ;;  %p10040_p2 = pnand %p10039_p1, %p10033_p12 }
  0x62   :  { %7056 = vmatpush1.bf16.msra.mxu0 %v7055_v21  ;;  %v130_v36 = vld [vmem:[#allocation6 + $0xe8] sm:$0xff]  ;;  %v7187_v38 = vpack.c.bf16 %v123_v33, %v119_v32  ;;  %v132_v40 = vld [vmem:[#allocation6 + $0xf8] sm:$0xff]  ;;  %v125_v41 = vld [vmem:[#allocation6 + $0xc0] sm:$0xff] }
  0x63   :  { %7184 = vmatpush1.bf16.msra.mxu1 %v7183_v25  ;;  %7058 = vmatprep.subr.bf16.mxu0 %v7057_v26  ;;  %v7061_v39 = vpack.c.bf16 %v130_v36, %v126_v35  ;;  %v129_v42 = vld [vmem:[#allocation6 + $0xe0] sm:$0xff]  ;;  %v7189_v43 = vpack.c.bf16 %v132_v40, %v128_v37  ;;  %v127_v44 = vld [vmem:[#allocation6 + $0xd0] sm:$0xff]  ;;  %v134_v46 = vld [vmem:[#allocation6 + $0x108] sm:$0xff] }
  0x64   :  { %7186 = vmatprep.subr.bf16.mxu1 %v7185_v30  ;;  %v131_v45 = vld [vmem:[#allocation6 + $0xf0] sm:$0xff]  ;;  %v138_v47 = vld [vmem:[#allocation6 + $0x128] sm:$0xff]  ;;  %v136_v48 = vld [vmem:[#allocation6 + $0x118] sm:$0xff]  ;;  %v7063_v50 = vpack.c.bf16 %v129_v42, %v125_v41 }
  0x65   :  { %v140_v49 = vld [vmem:[#allocation6 + $0x138] sm:$0xff]  ;;  %v7191_v51 = vpack.c.bf16 %v131_v45, %v127_v44  ;;  %v7065_v52 = vpack.c.bf16 %v138_v47, %v134_v46  ;;  %v133_v53 = vld [vmem:[#allocation6 + $0x100] sm:$0xff]  ;;  %v135_v55 = vld [vmem:[#allocation6 + $0x110] sm:$0xff] }
  0x66   :  { %7060 = vmatpush1.bf16.msra.mxu0 %v7059_v34  ;;  %v137_v54 = vld [vmem:[#allocation6 + $0x120] sm:$0xff]  ;;  %v7193_v56 = vpack.c.bf16 %v140_v49, %v136_v48  ;;  %v139_v57 = vld [vmem:[#allocation6 + $0x130] sm:$0xff]  ;;  %v142_v58 = vld [vmem:[#allocation6 + $0x148] sm:$0xff] }
  0x67   :  { %7188 = vmatpush1.bf16.msra.mxu1 %v7187_v38  ;;  %7062 = vmatprep.subr.bf16.mxu0 %v7061_v39  ;;  %v146_v59 = vld [vmem:[#allocation6 + $0x168] sm:$0xff]  ;;  %v144_v60 = vld [vmem:[#allocation6 + $0x158] sm:$0xff]  ;;  %v7067_v62 = vpack.c.bf16 %v137_v54, %v133_v53  ;;  %v7195_v63 = vpack.c.bf16 %v139_v57, %v135_v55  ;;  %v141_v1 = vld [vmem:[#allocation6 + $0x140] sm:$0xff] }
  0x68   :  { %7190 = vmatprep.subr.bf16.mxu1 %v7189_v43  ;;  %v148_v61 = vld [vmem:[#allocation6 + $0x178] sm:$0xff]  ;;  %v7069_v0 = vpack.c.bf16 %v146_v59, %v142_v58  ;;  %v145_v2 = vld [vmem:[#allocation6 + $0x160] sm:$0xff]  ;;  %v143_v3 = vld [vmem:[#allocation6 + $0x150] sm:$0xff] }
  0x69   :  { %v7197_v4 = vpack.c.bf16 %v148_v61, %v144_v60  ;;  %v147_v5 = vld [vmem:[#allocation6 + $0x170] sm:$0xff]  ;;  %v150_v6 = vld [vmem:[#allocation6 + $0x188] sm:$0xff]  ;;  %v152_v8 = vld [vmem:[#allocation6 + $0x198] sm:$0xff]  ;;  %v7071_v10 = vpack.c.bf16 %v145_v2, %v141_v1 }
  0x6a   :  { %7064 = vmatpush1.bf16.msra.mxu0 %v7063_v50  ;;  %v154_v7 = vld [vmem:[#allocation6 + $0x1a8] sm:$0xff]  ;;  %v156_v9 = vld [vmem:[#allocation6 + $0x1b8] sm:$0xff]  ;;  %v7199_v11 = vpack.c.bf16 %v147_v5, %v143_v3  ;;  %v149_v13 = vld [vmem:[#allocation6 + $0x180] sm:$0xff] }
  0x6b   :  { %7192 = vmatpush1.bf16.msra.mxu1 %v7191_v51  ;;  %7066 = vmatprep.subr.bf16.mxu0 %v7065_v52  ;;  %v7073_v12 = vpack.c.bf16 %v154_v7, %v150_v6  ;;  %v153_v14 = vld [vmem:[#allocation6 + $0x1a0] sm:$0xff]  ;;  %v151_v15 = vld [vmem:[#allocation6 + $0x190] sm:$0xff]  ;;  %v7201_v16 = vpack.c.bf16 %v156_v9, %v152_v8  ;;  %v158_v18 = vld [vmem:[#allocation6 + $0x1c8] sm:$0xff] }
  0x6c   :  { %7194 = vmatprep.subr.bf16.mxu1 %v7193_v56  ;;  %v155_v17 = vld [vmem:[#allocation6 + $0x1b0] sm:$0xff]  ;;  %v162_v19 = vld [vmem:[#allocation6 + $0x1e8] sm:$0xff]  ;;  %v160_v20 = vld [vmem:[#allocation6 + $0x1d8] sm:$0xff]  ;;  %v7075_v22 = vpack.c.bf16 %v153_v14, %v149_v13 }
  0x6d   :  { %v164_v21 = vld [vmem:[#allocation6 + $0x1f8] sm:$0xff]  ;;  %v7203_v23 = vpack.c.bf16 %v155_v17, %v151_v15  ;;  %v7077_v24 = vpack.c.bf16 %v162_v19, %v158_v18  ;;  %v157_v25 = vld [vmem:[#allocation6 + $0x1c0] sm:$0xff]  ;;  %v159_v27 = vld [vmem:[#allocation6 + $0x1d0] sm:$0xff] }
  0x6e   :  { %7068 = vmatpush1.bf16.msra.mxu0 %v7067_v62  ;;  %v161_v26 = vld [vmem:[#allocation6 + $0x1e0] sm:$0xff]  ;;  %v7205_v28 = vpack.c.bf16 %v164_v21, %v160_v20  ;;  %v163_v29 = vld [vmem:[#allocation6 + $0x1f0] sm:$0xff]  ;;  %v166_v30 = vld [vmem:[#allocation6 + $0x208] sm:$0xff] }
  0x6f   :  { %7196 = vmatpush1.bf16.msra.mxu1 %v7195_v63  ;;  %7070 = vmatprep.subr.bf16.mxu0 %v7069_v0  ;;  %v170_v31 = vld [vmem:[#allocation6 + $0x228] sm:$0xff]  ;;  %v168_v32 = vld [vmem:[#allocation6 + $0x218] sm:$0xff]  ;;  %v7079_v34 = vpack.c.bf16 %v161_v26, %v157_v25  ;;  %v7207_v35 = vpack.c.bf16 %v163_v29, %v159_v27  ;;  %v165_v37 = vld [vmem:[#allocation6 + $0x200] sm:$0xff] }
  0x70   :  { %7198 = vmatprep.subr.bf16.mxu1 %v7197_v4  ;;  %v172_v33 = vld [vmem:[#allocation6 + $0x238] sm:$0xff]  ;;  %v7081_v36 = vpack.c.bf16 %v170_v31, %v166_v30  ;;  %v169_v38 = vld [vmem:[#allocation6 + $0x220] sm:$0xff]  ;;  %v167_v39 = vld [vmem:[#allocation6 + $0x210] sm:$0xff] }
  0x71   :  { %v7209_v40 = vpack.c.bf16 %v172_v33, %v168_v32  ;;  %v171_v41 = vld [vmem:[#allocation6 + $0x230] sm:$0xff]  ;;  %v174_v42 = vld [vmem:[#allocation6 + $0x248] sm:$0xff]  ;;  %v176_v44 = vld [vmem:[#allocation6 + $0x258] sm:$0xff]  ;;  %v7083_v46 = vpack.c.bf16 %v169_v38, %v165_v37 }
  0x72   :  { %7072 = vmatpush1.bf16.msra.mxu0 %v7071_v10  ;;  %v178_v43 = vld [vmem:[#allocation6 + $0x268] sm:$0xff]  ;;  %v180_v45 = vld [vmem:[#allocation6 + $0x278] sm:$0xff]  ;;  %v7211_v47 = vpack.c.bf16 %v171_v41, %v167_v39  ;;  %v173_v49 = vld [vmem:[#allocation6 + $0x240] sm:$0xff] }
  0x73   :  { %7200 = vmatpush1.bf16.msra.mxu1 %v7199_v11  ;;  %7074 = vmatprep.subr.bf16.mxu0 %v7073_v12  ;;  %v7085_v48 = vpack.c.bf16 %v178_v43, %v174_v42  ;;  %v177_v50 = vld [vmem:[#allocation6 + $0x260] sm:$0xff]  ;;  %v175_v51 = vld [vmem:[#allocation6 + $0x250] sm:$0xff]  ;;  %v7213_v52 = vpack.c.bf16 %v180_v45, %v176_v44  ;;  %v182_v54 = vld [vmem:[#allocation6 + $0x288] sm:$0xff] }
  0x74   :  { %7202 = vmatprep.subr.bf16.mxu1 %v7201_v16  ;;  %v179_v53 = vld [vmem:[#allocation6 + $0x270] sm:$0xff]  ;;  %v186_v55 = vld [vmem:[#allocation6 + $0x2a8] sm:$0xff]  ;;  %v184_v56 = vld [vmem:[#allocation6 + $0x298] sm:$0xff]  ;;  %v7087_v58 = vpack.c.bf16 %v177_v50, %v173_v49 }
  0x75   :  { %v188_v57 = vld [vmem:[#allocation6 + $0x2b8] sm:$0xff]  ;;  %v7215_v59 = vpack.c.bf16 %v179_v53, %v175_v51  ;;  %v7089_v60 = vpack.c.bf16 %v186_v55, %v182_v54  ;;  %v181_v61 = vld [vmem:[#allocation6 + $0x280] sm:$0xff]  ;;  %v183_v63 = vld [vmem:[#allocation6 + $0x290] sm:$0xff] }
  0x76   :  { %7076 = vmatpush1.bf16.msra.mxu0 %v7075_v22  ;;  %v185_v62 = vld [vmem:[#allocation6 + $0x2a0] sm:$0xff]  ;;  %v7217_v0 = vpack.c.bf16 %v188_v57, %v184_v56  ;;  %v187_v1 = vld [vmem:[#allocation6 + $0x2b0] sm:$0xff]  ;;  %v190_v2 = vld [vmem:[#allocation6 + $0x2c8] sm:$0xff] }
  0x77   :  { %7204 = vmatpush1.bf16.msra.mxu1 %v7203_v23  ;;  %7078 = vmatprep.subr.bf16.mxu0 %v7077_v24  ;;  %v194_v3 = vld [vmem:[#allocation6 + $0x2e8] sm:$0xff]  ;;  %v192_v4 = vld [vmem:[#allocation6 + $0x2d8] sm:$0xff]  ;;  %v7091_v6 = vpack.c.bf16 %v185_v62, %v181_v61  ;;  %v189_v7 = vld [vmem:[#allocation6 + $0x2c0] sm:$0xff]  ;;  %v7219_v8 = vpack.c.bf16 %v187_v1, %v183_v63 }
  0x78   :  { %7206 = vmatprep.subr.bf16.mxu1 %v7205_v28  ;;  %v196_v5 = vld [vmem:[#allocation6 + $0x2f8] sm:$0xff]  ;;  %v7093_v9 = vpack.c.bf16 %v194_v3, %v190_v2  ;;  %v193_v10 = vld [vmem:[#allocation6 + $0x2e0] sm:$0xff]  ;;  %v191_v11 = vld [vmem:[#allocation6 + $0x2d0] sm:$0xff] }
  0x79   :  { %v195_v12 = vld [vmem:[#allocation6 + $0x2f0] sm:$0xff]  ;;  %v7221_v13 = vpack.c.bf16 %v196_v5, %v192_v4  ;;  %v198_v14 = vld [vmem:[#allocation6 + $0x308] sm:$0xff]  ;;  %v200_v17 = vld [vmem:[#allocation6 + $0x318] sm:$0xff]  ;;  %v7095_v19 = vpack.c.bf16 %v193_v10, %v189_v7 }
  0x7a   :  { %7080 = vmatpush1.bf16.msra.mxu0 %v7079_v34  ;;  %v202_v15 = vld [vmem:[#allocation6 + $0x328] sm:$0xff]  ;;  %v204_v18 = vld [vmem:[#allocation6 + $0x338] sm:$0xff]  ;;  %v7223_v20 = vpack.c.bf16 %v195_v12, %v191_v11  ;;  %v197_v22 = vld [vmem:[#allocation6 + $0x300] sm:$0xff] }
  0x7b   :  { %7208 = vmatpush1.bf16.msra.mxu1 %v7207_v35  ;;  %7082 = vmatprep.subr.bf16.mxu0 %v7081_v36  ;;  %v86_v16 = vld [vmem:[#allocation3 + $0x8] sm:$0xff]  ;;  %v7097_v21 = vpack.c.bf16 %v202_v15, %v198_v14  ;;  %v201_v23 = vld [vmem:[#allocation6 + $0x320] sm:$0xff]  ;;  %v199_v24 = vld [vmem:[#allocation6 + $0x310] sm:$0xff]  ;;  %v7225_v25 = vpack.c.bf16 %v204_v18, %v200_v17 }
  0x7c   :  { %7210 = vmatprep.subr.bf16.mxu1 %v7209_v40  ;;  %421 = vmatprep.mubr.f32.mxu0 %v86_v16  ;;  %v203_v26 = vld [vmem:[#allocation6 + $0x330] sm:$0xff]  ;;  %v206_v27 = vld [vmem:[#allocation6 + $0x348] sm:$0xff]  ;;  %v208_v29 = vld [vmem:[#allocation6 + $0x358] sm:$0xff]  ;;  %v7099_v31 = vpack.c.bf16 %v201_v23, %v197_v22 }
  0x7d   :  { %599 = vmatprep.mubr.f32.mxu1 %v86_v16  ;;  %v210_v28 = vld [vmem:[#allocation6 + $0x368] sm:$0xff]  ;;  %v212_v30 = vld [vmem:[#allocation6 + $0x378] sm:$0xff]  ;;  %v7227_v32 = vpack.c.bf16 %v203_v26, %v199_v24  ;;  %v205_v34 = vld [vmem:[#allocation6 + $0x340] sm:$0xff] }
  0x7e   :  { %7084 = vmatpush1.bf16.msra.mxu0 %v7083_v46  ;;  %v7101_v33 = vpack.c.bf16 %v210_v28, %v206_v27  ;;  %v209_v35 = vld [vmem:[#allocation6 + $0x360] sm:$0xff]  ;;  %v207_v36 = vld [vmem:[#allocation6 + $0x350] sm:$0xff]  ;;  %v7229_v37 = vpack.c.bf16 %v212_v30, %v208_v29  ;;  %v214_v39 = vld [vmem:[#allocation6 + $0x388] sm:$0xff] }
  0x7f   :  { %7212 = vmatpush1.bf16.msra.mxu1 %v7211_v47  ;;  %7086 = vmatprep.subr.bf16.mxu0 %v7085_v48  ;;  %v211_v38 = vld [vmem:[#allocation6 + $0x370] sm:$0xff]  ;;  %v218_v40 = vld [vmem:[#allocation6 + $0x3a8] sm:$0xff]  ;;  %v216_v41 = vld [vmem:[#allocation6 + $0x398] sm:$0xff]  ;;  %v7103_v43 = vpack.c.bf16 %v209_v35, %v205_v34 }
  0x80   :  { %7214 = vmatprep.subr.bf16.mxu1 %v7213_v52  ;;  %v220_v42 = vld [vmem:[#allocation6 + $0x3b8] sm:$0xff]  ;;  %v7231_v44 = vpack.c.bf16 %v211_v38, %v207_v36  ;;  %v7105_v45 = vpack.c.bf16 %v218_v40, %v214_v39  ;;  %v213_v46 = vld [vmem:[#allocation6 + $0x380] sm:$0xff]  ;;  %v215_v48 = vld [vmem:[#allocation6 + $0x390] sm:$0xff] }
  0x81   :  { %v217_v47 = vld [vmem:[#allocation6 + $0x3a0] sm:$0xff]  ;;  %v7233_v49 = vpack.c.bf16 %v220_v42, %v216_v41  ;;  %v219_v50 = vld [vmem:[#allocation6 + $0x3b0] sm:$0xff]  ;;  %v222_v51 = vld [vmem:[#allocation6 + $0x3c8] sm:$0xff] }
  0x82   :  { %7088 = vmatpush1.bf16.msra.mxu0 %v7087_v58  ;;  %v226_v52 = vld [vmem:[#allocation6 + $0x3e8] sm:$0xff]  ;;  %v224_v53 = vld [vmem:[#allocation6 + $0x3d8] sm:$0xff]  ;;  %v7107_v55 = vpack.c.bf16 %v217_v47, %v213_v46  ;;  %v7235_v56 = vpack.c.bf16 %v219_v50, %v215_v48  ;;  %v221_v58 = vld [vmem:[#allocation6 + $0x3c0] sm:$0xff] }
  0x83   :  { %7216 = vmatpush1.bf16.msra.mxu1 %v7215_v59  ;;  %7090 = vmatprep.subr.bf16.mxu0 %v7089_v60  ;;  %v228_v54 = vld [vmem:[#allocation6 + $0x3f8] sm:$0xff]  ;;  %v7109_v57 = vpack.c.bf16 %v226_v52, %v222_v51  ;;  %v225_v59 = vld [vmem:[#allocation6 + $0x3e0] sm:$0xff]  ;;  %v223_v60 = vld [vmem:[#allocation6 + $0x3d0] sm:$0xff] }
  0x84   :  { %7218 = vmatprep.subr.bf16.mxu1 %v7217_v0  ;;  %v7237_v61 = vpack.c.bf16 %v228_v54, %v224_v53  ;;  %v227_v62 = vld [vmem:[#allocation6 + $0x3f0] sm:$0xff]  ;;  %v230_v63 = vld [vmem:[#allocation6 + $0x408] sm:$0xff]  ;;  %v232_v1 = vld [vmem:[#allocation6 + $0x418] sm:$0xff]  ;;  %v7111_v3 = vpack.c.bf16 %v225_v59, %v221_v58 }
  0x85   :  { %v234_v0 = vld [vmem:[#allocation6 + $0x428] sm:$0xff]  ;;  %v236_v2 = vld [vmem:[#allocation6 + $0x438] sm:$0xff]  ;;  %v7239_v4 = vpack.c.bf16 %v227_v62, %v223_v60  ;;  %v233_v7 = vld [vmem:[#allocation6 + $0x420] sm:$0xff] }
  0x86   :  { %7092 = vmatpush1.bf16.msra.mxu0 %v7091_v6  ;;  %v7113_v5 = vpack.c.bf16 %v234_v0, %v230_v63  ;;  %v229_v6 = vld [vmem:[#allocation6 + $0x400] sm:$0xff]  ;;  %v235_v10 = vld [vmem:[#allocation6 + $0x430] sm:$0xff]  ;;  %v238_v11 = vld [vmem:[#allocation6 + $0x448] sm:$0xff] }
  0x87   :  { %7220 = vmatpush1.bf16.msra.mxu1 %v7219_v8  ;;  %7094 = vmatprep.subr.bf16.mxu0 %v7093_v9  ;;  %v231_v8 = vld [vmem:[#allocation6 + $0x410] sm:$0xff]  ;;  %v7241_v9 = vpack.c.bf16 %v236_v2, %v232_v1  ;;  %v242_v12 = vld [vmem:[#allocation6 + $0x468] sm:$0xff]  ;;  %v244_v14 = vld [vmem:[#allocation6 + $0x478] sm:$0xff]  ;;  %v7115_v16 = vpack.c.bf16 %v233_v7, %v229_v6 }
  0x88   :  { %7222 = vmatprep.subr.bf16.mxu1 %v7221_v13  ;;  %v240_v13 = vld [vmem:[#allocation6 + $0x458] sm:$0xff]  ;;  %v85_v15 = vld [vmem:[#allocation3] sm:$0xff]  ;;  %v7243_v17 = vpack.c.bf16 %v235_v10, %v231_v8  ;;  %v7117_v18 = vpack.c.bf16 %v242_v12, %v238_v11  ;;  %v243_v23 = vld [vmem:[#allocation6 + $0x470] sm:$0xff] }
  0x89   :  { %v7245_v22 = vpack.c.bf16 %v244_v14, %v240_v13  ;;  %v246_v24 = vld [vmem:[#allocation6 + $0x488] sm:$0xff]  ;;  %v248_v26 = vld [vmem:[#allocation6 + $0x498] sm:$0xff]  ;;  %v251_v35 = vld [vmem:[#allocation6 + $0x4b0] sm:$0xff] }
  0x8a   :  { %7096 = vmatpush1.bf16.msra.mxu0 %v7095_v19  ;;  %v237_v19 = vld [vmem:[#allocation6 + $0x440] sm:$0xff]  ;;  %v252_v27 = vld [vmem:[#allocation6 + $0x4b8] sm:$0xff]  ;;  %v254_v36 = vld [vmem:[#allocation6 + $0x4c8] sm:$0xff] }
  0x8b   :  { %7224 = vmatpush1.bf16.msra.mxu1 %v7223_v20  ;;  %7098 = vmatprep.subr.bf16.mxu0 %v7097_v21  ;;  %v241_v20 = vld [vmem:[#allocation6 + $0x460] sm:$0xff]  ;;  %v239_v21 = vld [vmem:[#allocation6 + $0x450] sm:$0xff]  ;;  %v7249_v34 = vpack.c.bf16 %v252_v27, %v248_v26  ;;  %v256_v38 = vld [vmem:[#allocation6 + $0x4d8] sm:$0xff] }
  0x8c   :  { %7226 = vmatprep.subr.bf16.mxu1 %v7225_v25  ;;  %v250_v25 = vld [vmem:[#allocation6 + $0x4a8] sm:$0xff]  ;;  %v7119_v28 = vpack.c.bf16 %v241_v20, %v237_v19  ;;  %v7247_v29 = vpack.c.bf16 %v243_v23, %v239_v21  ;;  %v260_v39 = vld [vmem:[#allocation6 + $0x4f8] sm:$0xff]  ;;  %v259_v47 = vld [vmem:[#allocation6 + $0x4f0] sm:$0xff] }
  0x8d   :  { %v7121_v30 = vpack.c.bf16 %v250_v25, %v246_v24  ;;  %v7253_v46 = vpack.c.bf16 %v260_v39, %v256_v38  ;;  %v262_v48 = vld [vmem:[#allocation6 + $0x508] sm:$0xff]  ;;  %v264_v50 = vld [vmem:[#allocation6 + $0x518] sm:$0xff]  ;;  %v261_v53 = vld [vmem:[#allocation6 + $0x500] sm:$0xff] }
  0x8e   :  { %7100 = vmatpush1.bf16.msra.mxu0 %v7099_v31  ;;  %v245_v31 = vld [vmem:[#allocation6 + $0x480] sm:$0xff]  ;;  %v268_v51 = vld [vmem:[#allocation6 + $0x538] sm:$0xff]  ;;  %v267_v58 = vld [vmem:[#allocation6 + $0x530] sm:$0xff] }
  0x8f   :  { %7228 = vmatpush1.bf16.msra.mxu1 %v7227_v32  ;;  %7102 = vmatprep.subr.bf16.mxu0 %v7101_v33  ;;  %v249_v32 = vld [vmem:[#allocation6 + $0x4a0] sm:$0xff]  ;;  %v247_v33 = vld [vmem:[#allocation6 + $0x490] sm:$0xff]  ;;  %v7257_v59 = vpack.c.bf16 %v268_v51, %v264_v50  ;;  %v270_v60 = vld [vmem:[#allocation6 + $0x548] sm:$0xff] }
  0x90   :  { %7230 = vmatprep.subr.bf16.mxu1 %v7229_v37  ;;  %v258_v37 = vld [vmem:[#allocation6 + $0x4e8] sm:$0xff]  ;;  %v7123_v40 = vpack.c.bf16 %v249_v32, %v245_v31  ;;  %v7251_v41 = vpack.c.bf16 %v251_v35, %v247_v33  ;;  %v272_v63 = vld [vmem:[#allocation6 + $0x558] sm:$0xff]  ;;  %v89_v1 = vld [vmem:[#allocation3 + $0x20] sm:$0xff] }
  0x91   :  { %v7125_v42 = vpack.c.bf16 %v258_v37, %v254_v36  ;;  %v90_v62 = vld [vmem:[#allocation3 + $0x28] sm:$0xff]  ;;  %v276_v0 = vld [vmem:[#allocation6 + $0x578] sm:$0xff]  ;;  %v273_v6 = vld [vmem:[#allocation6 + $0x560] sm:$0xff] }
  0x92   :  { %7104 = vmatpush1.bf16.msra.mxu0 %v7103_v43  ;;  %v253_v43 = vld [vmem:[#allocation6 + $0x4c0] sm:$0xff]  ;;  %v271_v7 = vld [vmem:[#allocation6 + $0x550] sm:$0xff]  ;;  %v94_v8 = vld [vmem:[#allocation3 + $0x48] sm:$0xff] }
  0x93   :  { %7232 = vmatpush1.bf16.msra.mxu1 %v7231_v44  ;;  %7106 = vmatprep.subr.bf16.mxu0 %v7105_v45  ;;  %v257_v44 = vld [vmem:[#allocation6 + $0x4e0] sm:$0xff]  ;;  %v255_v45 = vld [vmem:[#allocation6 + $0x4d0] sm:$0xff]  ;;  %v278_v11 = vld [vmem:[#allocation6 + $0x588] sm:$0xff] }
  0x94   :  { %7234 = vmatprep.subr.bf16.mxu1 %v7233_v49  ;;  %v266_v49 = vld [vmem:[#allocation6 + $0x528] sm:$0xff]  ;;  %v7127_v52 = vpack.c.bf16 %v257_v44, %v253_v43  ;;  %v7255_v54 = vpack.c.bf16 %v259_v47, %v255_v45  ;;  %v275_v10 = vld [vmem:[#allocation6 + $0x570] sm:$0xff]  ;;  %v280_v13 = vld [vmem:[#allocation6 + $0x598] sm:$0xff] }
  0x95   :  { %v282_v12 = vld [vmem:[#allocation6 + $0x5a8] sm:$0xff]  ;;  %v284_v14 = vld [vmem:[#allocation6 + $0x5b8] sm:$0xff]  ;;  %v7263_v19 = vpack.c.bf16 %v275_v10, %v271_v7  ;;  %v281_v21 = vld [vmem:[#allocation6 + $0x5a0] sm:$0xff] }
  0x96   :  { %7108 = vmatpush1.bf16.msra.mxu0 %v7107_v55  ;;  %v7129_v55 = vpack.c.bf16 %v266_v49, %v262_v48  ;;  %v7137_v20 = vpack.c.bf16 %v282_v12, %v278_v11  ;;  %v283_v23 = vld [vmem:[#allocation6 + $0x5b0] sm:$0xff]  ;;  %v7265_v24 = vpack.c.bf16 %v284_v14, %v280_v13  ;;  %v286_v25 = vld [vmem:[#allocation6 + $0x5c8] sm:$0xff]  ;;  %v97_v27 = vld [vmem:[#allocation3 + $0x60] sm:$0xff] }
  0x97   :  { %7236 = vmatpush1.bf16.msra.mxu1 %v7235_v56  ;;  %7110 = vmatprep.subr.bf16.mxu0 %v7109_v57  ;;  %v265_v56 = vld [vmem:[#allocation6 + $0x520] sm:$0xff]  ;;  %v263_v57 = vld [vmem:[#allocation6 + $0x510] sm:$0xff]  ;;  %v290_v26 = vld [vmem:[#allocation6 + $0x5e8] sm:$0xff] }
  0x98   :  { %7238 = vmatprep.subr.bf16.mxu1 %v7237_v61  ;;  %v274_v61 = vld [vmem:[#allocation6 + $0x568] sm:$0xff]  ;;  %v7131_v2 = vpack.c.bf16 %v265_v56, %v261_v53  ;;  %v88_v31 = vld [vmem:[#allocation3 + $0x18] sm:$0xff]  ;;  %v7141_v33 = vpack.c.bf16 %v290_v26, %v286_v25  ;;  %v289_v35 = vld [vmem:[#allocation6 + $0x5e0] sm:$0xff] }
  0x99   :  { %v287_v36 = vld [vmem:[#allocation6 + $0x5d0] sm:$0xff]  ;;  %v294_v39 = vld [vmem:[#allocation6 + $0x608] sm:$0xff]  ;;  %v297_v47 = vld [vmem:[#allocation6 + $0x620] sm:$0xff] }
  0x9a   :  { %7112 = vmatpush1.bf16.msra.mxu0 %v7111_v3  ;;  %v269_v3 = vld [vmem:[#allocation6 + $0x540] sm:$0xff]  ;;  %v291_v38 = vld [vmem:[#allocation6 + $0x5f0] sm:$0xff]  ;;  %v302_v51 = vld [vmem:[#allocation6 + $0x648] sm:$0xff] }
  0x9b   :  { %7240 = vmatpush1.bf16.msra.mxu1 %v7239_v4  ;;  %7114 = vmatprep.subr.bf16.mxu0 %v7113_v5  ;;  %v7259_v4 = vpack.c.bf16 %v267_v58, %v263_v57  ;;  %v7133_v5 = vpack.c.bf16 %v274_v61, %v270_v60  ;;  %v7271_v44 = vpack.c.bf16 %v291_v38, %v287_v36  ;;  %v295_v48 = vld [vmem:[#allocation6 + $0x610] sm:$0xff]  ;;  %v304_v53 = vld [vmem:[#allocation6 + $0x658] sm:$0xff]  ;;  %v301_v58 = vld [vmem:[#allocation6 + $0x640] sm:$0xff] }
  0x9c   :  { %7242 = vmatprep.subr.bf16.mxu1 %v7241_v9  ;;  %v7261_v9 = vpack.c.bf16 %v276_v0, %v272_v63  ;;  %v299_v50 = vld [vmem:[#allocation6 + $0x630] sm:$0xff]  ;;  %v310_v63 = vld [vmem:[#allocation6 + $0x688] sm:$0xff]  ;;  %v313_v7 = vld [vmem:[#allocation6 + $0x6a0] sm:$0xff] }
  0x9d   :  { %422 = vmatmul.mubr.f32.vlgmr.msra.gmra.mrb[0].mxu0 %v85_v15  ;;  %v7275_v56 = vpack.c.bf16 %v299_v50, %v295_v48  ;;  %v303_v60 = vld [vmem:[#allocation6 + $0x650] sm:$0xff]  ;;  %v314_v0 = vld [vmem:[#allocation6 + $0x6a8] sm:$0xff]  ;;  %v320_v13 = vld [vmem:[#allocation6 + $0x6d8] sm:$0xff] }
  0x9e   :  { %7116 = vmatpush1.bf16.msra.mxu0 %v7115_v16  ;;  %600 = vmatmul.mubr.f32.vlgmr.msra.gmra.mrb[0].mxu1 %v85_v15  ;;  %v93_v15 = vld [vmem:[#allocation3 + $0x40] sm:$0xff]  ;;  %v7135_v16 = vpack.c.bf16 %v273_v6, %v269_v3  ;;  %v315_v10 = vld [vmem:[#allocation6 + $0x6b0] sm:$0xff]  ;;  %v318_v11 = vld [vmem:[#allocation6 + $0x6c8] sm:$0xff] }
  0x9f   :  { %7244 = vmatpush1.bf16.msra.mxu1 %v7243_v17  ;;  %7118 = vmatprep.subr.bf16.mxu0 %v7117_v18  ;;  %v277_v17 = vld [vmem:[#allocation6 + $0x580] sm:$0xff]  ;;  %v98_v18 = vld [vmem:[#allocation3 + $0x68] sm:$0xff]  ;;  %v324_v14 = vld [vmem:[#allocation6 + $0x6f8] sm:$0xff] }
  0xa0   :  { %7246 = vmatprep.subr.bf16.mxu1 %v7245_v22  ;;  %427 = vmatprep.mubr.f32.mxu0 %v90_v62  ;;  %v279_v22 = vld [vmem:[#allocation6 + $0x590] sm:$0xff]  ;;  %v309_v6 = vld [vmem:[#allocation6 + $0x680] sm:$0xff]  ;;  %v322_v12 = vld [vmem:[#allocation6 + $0x6e8] sm:$0xff] }
  0xa1   :  { %605 = vmatprep.mubr.f32.mxu1 %v90_v62  ;;  %428 = vmatmul.mubr.f32.gmra.mrb[2].mxu0 %v89_v1  ;;  %v7267_v32 = vpack.c.bf16 %v283_v23, %v279_v22  ;;  %v307_v62 = vld [vmem:[#allocation6 + $0x670] sm:$0xff]  ;;  %v326_v23 = vld [vmem:[#allocation6 + $0x708] sm:$0xff]  ;;  %v328_v25 = vld [vmem:[#allocation6 + $0x718] sm:$0xff] }
  0xa2   :  { %7120 = vmatpush1.bf16.msra.mxu0 %v7119_v28  ;;  %606 = vmatmul.mubr.f32.gmra.mrb[2].mxu1 %v89_v1  ;;  %v288_v28 = vld [vmem:[#allocation6 + $0x5d8] sm:$0xff]  ;;  %v323_v22 = vld [vmem:[#allocation6 + $0x6f0] sm:$0xff]  ;;  %v338_v36 = vld [vmem:[#allocation6 + $0x768] sm:$0xff] }
  0xa3   :  { %7248 = vmatpush1.bf16.msra.mxu1 %v7247_v29  ;;  %7122 = vmatprep.subr.bf16.mxu0 %v7121_v30  ;;  %v292_v29 = vld [vmem:[#allocation6 + $0x5f8] sm:$0xff]  ;;  %v7139_v30 = vpack.c.bf16 %v281_v21, %v277_v17  ;;  %v7157_v17 = vpack.c.bf16 %v322_v12, %v318_v11  ;;  %v7285_v21 = vpack.c.bf16 %v324_v14, %v320_v13  ;;  %v346_v48 = vld [vmem:[#allocation6 + $0x7a8] sm:$0xff]  ;;  %v763_v14 = vld [vmem:[#allocation6 + $0x800] sm:$0xff] }
  0xa4   :  { %7250 = vmatprep.subr.bf16.mxu1 %v7249_v34  ;;  %433 = vmatprep.mubr.f32.mxu0 %v94_v8  ;;  %v285_v34 = vld [vmem:[#allocation6 + $0x5c0] sm:$0xff]  ;;  %v7269_v37 = vpack.c.bf16 %v292_v29, %v288_v28  ;;  %v312_v1 = vld [vmem:[#allocation6 + $0x698] sm:$0xff] }
  0xa5   :  { %611 = vmatprep.mubr.f32.mxu1 %v94_v8  ;;  %434 = vmatmul.mubr.f32.gmra.mrb[4].mxu0 %v93_v15  ;;  %v7143_v43 = vpack.c.bf16 %v289_v35, %v285_v34  ;;  %v311_v8 = vld [vmem:[#allocation6 + $0x690] sm:$0xff]  ;;  %v332_v26 = vld [vmem:[#allocation6 + $0x738] sm:$0xff]  ;;  %v334_v35 = vld [vmem:[#allocation6 + $0x748] sm:$0xff] }
  0xa6   :  { %7124 = vmatpush1.bf16.msra.mxu0 %v7123_v40  ;;  %612 = vmatmul.mubr.f32.gmra.mrb[4].mxu1 %v93_v15  ;;  %v298_v40 = vld [vmem:[#allocation6 + $0x628] sm:$0xff]  ;;  %v7155_v15 = vpack.c.bf16 %v313_v7, %v309_v6  ;;  %v331_v34 = vld [vmem:[#allocation6 + $0x730] sm:$0xff]  ;;  %v340_v38 = vld [vmem:[#allocation6 + $0x778] sm:$0xff] }
  0xa7   :  { %7252 = vmatpush1.bf16.msra.mxu1 %v7251_v41  ;;  %7126 = vmatprep.subr.bf16.mxu0 %v7125_v42  ;;  %v296_v41 = vld [vmem:[#allocation6 + $0x618] sm:$0xff]  ;;  %v7145_v45 = vpack.c.bf16 %v298_v40, %v294_v39  ;;  %v355_v6 = vld [vmem:[#allocation6 + $0x7f0] sm:$0xff]  ;;  %v764_v7 = vld [vmem:[#allocation6 + $0x808] sm:$0xff] }
  0xa8   :  { %7254 = vmatprep.subr.bf16.mxu1 %v7253_v46  ;;  %439 = vmatprep.mubr.f32.mxu0 %v98_v18  ;;  %v300_v42 = vld [vmem:[#allocation6 + $0x638] sm:$0xff]  ;;  %v293_v46 = vld [vmem:[#allocation6 + $0x600] sm:$0xff] }
  0xa9   :  { %617 = vmatprep.mubr.f32.mxu1 %v98_v18  ;;  %440 = vmatmul.mubr.f32.gmra.mrb[6].mxu0 %v97_v27  ;;  %v7273_v49 = vpack.c.bf16 %v300_v42, %v296_v41  ;;  %v317_v18 = vld [vmem:[#allocation6 + $0x6c0] sm:$0xff]  ;;  %v7165_v41 = vpack.c.bf16 %v338_v36, %v334_v35  ;;  %v348_v50 = vld [vmem:[#allocation6 + $0x7b8] sm:$0xff] }
  0xaa   :  { %7128 = vmatpush1.bf16.msra.mxu0 %v7127_v52  ;;  %618 = vmatmul.mubr.f32.gmra.mrb[6].mxu1 %v97_v27  ;;  %v306_v52 = vld [vmem:[#allocation6 + $0x668] sm:$0xff]  ;;  %v333_v42 = vld [vmem:[#allocation6 + $0x740] sm:$0xff]  ;;  %v786_v35 = vld [vmem:[#allocation6 + $0x8b8] sm:$0xff] }
  0xab   :  { %7256 = vmatpush1.bf16.msra.mxu1 %v7255_v54  ;;  %7130 = vmatprep.subr.bf16.mxu0 %v7129_v55  ;;  %v308_v54 = vld [vmem:[#allocation6 + $0x678] sm:$0xff]  ;;  %v7147_v55 = vpack.c.bf16 %v297_v47, %v293_v46  ;;  %v7149_v57 = vpack.c.bf16 %v306_v52, %v302_v51  ;;  %v339_v46 = vld [vmem:[#allocation6 + $0x770] sm:$0xff]  ;;  %v342_v47 = vld [vmem:[#allocation6 + $0x788] sm:$0xff] }
  0xac   :  { %7258 = vmatprep.subr.bf16.mxu1 %v7257_v59  ;;  %510 = vmatprep.mubr.f32.mxu0 %v88_v31  ;;  %v305_v59 = vld [vmem:[#allocation6 + $0x660] sm:$0xff]  ;;  %v7277_v61 = vpack.c.bf16 %v308_v54, %v304_v53  ;;  %v7169_v53 = vpack.c.bf16 %v346_v48, %v342_v47  ;;  %v92_v36 = vld [vmem:[#allocation3 + $0x38] sm:$0xff]  ;;  %v792_v47 = vld [vmem:[#allocation6 + $0x8e8] sm:$0xff] }
  0xad   :  { %688 = vmatprep.mubr.f32.mxu1 %v88_v31  ;;  %v7151_v3 = vpack.c.bf16 %v305_v59, %v301_v58  ;;  %v329_v31 = vld [vmem:[#allocation6 + $0x720] sm:$0xff]  ;;  %v347_v58 = vld [vmem:[#allocation6 + $0x7b0] sm:$0xff]  ;;  %v350_v59 = vld [vmem:[#allocation6 + $0x7c8] sm:$0xff] }
  0xae   :  { %7132 = vmatpush1.bf16.msra.mxu0 %v7131_v2  ;;  %v316_v2 = vld [vmem:[#allocation6 + $0x6b8] sm:$0xff]  ;;  %v341_v54 = vld [vmem:[#allocation6 + $0x780] sm:$0xff] }
  0xaf   :  { %7260 = vmatpush1.bf16.msra.mxu1 %v7259_v4  ;;  %7134 = vmatprep.subr.bf16.mxu0 %v7133_v5  ;;  %v7279_v4 = vpack.c.bf16 %v307_v62, %v303_v60  ;;  %v7153_v5 = vpack.c.bf16 %v314_v0, %v310_v63  ;;  %v354_v60 = vld [vmem:[#allocation6 + $0x7e8] sm:$0xff]  ;;  %v356_v62 = vld [vmem:[#allocation6 + $0x7f8] sm:$0xff] }
  0xb0   :  { %7262 = vmatprep.subr.bf16.mxu1 %v7261_v9  ;;  %v7281_v9 = vpack.c.bf16 %v316_v2, %v312_v1  ;;  %v7173_v1 = vpack.c.bf16 %v354_v60, %v350_v59  ;;  %v349_v2 = vld [vmem:[#allocation6 + $0x7c0] sm:$0xff]  ;;  %v790_v48 = vld [vmem:[#allocation6 + $0x8d8] sm:$0xff]  ;;  %v793_v59 = vld [vmem:[#allocation6 + $0x8f0] sm:$0xff] }
  0xb1   :  { %v796_v60 = vld [vmem:[#allocation6 + $0x908] sm:$0xff] }
  0xb2   :  { %7136 = vmatpush1.bf16.msra.mxu0 %v7135_v16  ;;  %v7283_v16 = vpack.c.bf16 %v315_v10, %v311_v8  ;;  %v768_v8 = vld [vmem:[#allocation6 + $0x828] sm:$0xff]  ;;  %v770_v10 = vld [vmem:[#allocation6 + $0x838] sm:$0xff] }
  0xb3   :  { %7264 = vmatpush1.bf16.msra.mxu1 %v7263_v19  ;;  %7138 = vmatprep.subr.bf16.mxu0 %v7137_v20  ;;  %v321_v19 = vld [vmem:[#allocation6 + $0x6e0] sm:$0xff]  ;;  %v319_v20 = vld [vmem:[#allocation6 + $0x6d0] sm:$0xff]  ;;  %v7305_v13 = vpack.c.bf16 %v768_v8, %v764_v7 }
  0xb4   :  { %7266 = vmatprep.subr.bf16.mxu1 %v7265_v24  ;;  %v330_v24 = vld [vmem:[#allocation6 + $0x728] sm:$0xff]  ;;  %v7159_v27 = vpack.c.bf16 %v321_v19, %v317_v18  ;;  %v7287_v28 = vpack.c.bf16 %v323_v22, %v319_v20  ;;  %v769_v18 = vld [vmem:[#allocation6 + $0x830] sm:$0xff]  ;;  %v778_v22 = vld [vmem:[#allocation6 + $0x878] sm:$0xff] }
  0xb5   :  { %v7161_v29 = vpack.c.bf16 %v330_v24, %v326_v23  ;;  %v772_v19 = vld [vmem:[#allocation6 + $0x848] sm:$0xff]  ;;  %v87_v23 = vld [vmem:[#allocation3 + $0x10] sm:$0xff] }
  0xb6   :  { %7140 = vmatpush1.bf16.msra.mxu0 %v7139_v30  ;;  %v325_v30 = vld [vmem:[#allocation6 + $0x700] sm:$0xff]  ;;  %v776_v20 = vld [vmem:[#allocation6 + $0x868] sm:$0xff]  ;;  %v797_v7 = vld [vmem:[#allocation6 + $0x910] sm:$0xff] }
  0xb7   :  { %7268 = vmatpush1.bf16.msra.mxu1 %v7267_v32  ;;  %7142 = vmatprep.subr.bf16.mxu0 %v7141_v33  ;;  %v327_v32 = vld [vmem:[#allocation6 + $0x710] sm:$0xff]  ;;  %v7289_v33 = vpack.c.bf16 %v332_v26, %v328_v25  ;;  %v7163_v39 = vpack.c.bf16 %v329_v31, %v325_v30  ;;  %v7309_v26 = vpack.c.bf16 %v776_v20, %v772_v19  ;;  %v807_v19 = vld [vmem:[#allocation6 + $0x960] sm:$0xff] }
  0xb8   :  { %7270 = vmatprep.subr.bf16.mxu1 %v7269_v37  ;;  %v336_v37 = vld [vmem:[#allocation6 + $0x758] sm:$0xff]  ;;  %v7291_v40 = vpack.c.bf16 %v331_v34, %v327_v32  ;;  %v777_v31 = vld [vmem:[#allocation6 + $0x870] sm:$0xff]  ;;  %v780_v32 = vld [vmem:[#allocation6 + $0x888] sm:$0xff] }
  0xb9   :  { %v782_v34 = vld [vmem:[#allocation6 + $0x898] sm:$0xff]  ;;  %v805_v20 = vld [vmem:[#allocation6 + $0x950] sm:$0xff] }
  0xba   :  { %7144 = vmatpush1.bf16.msra.mxu0 %v7143_v43  ;;  %v337_v43 = vld [vmem:[#allocation6 + $0x760] sm:$0xff] }
  0xbb   :  { %7272 = vmatpush1.bf16.msra.mxu1 %v7271_v44  ;;  %7146 = vmatprep.subr.bf16.mxu0 %v7145_v45  ;;  %v335_v44 = vld [vmem:[#allocation6 + $0x750] sm:$0xff]  ;;  %v7293_v45 = vpack.c.bf16 %v340_v38, %v336_v37  ;;  %v7167_v51 = vpack.c.bf16 %v337_v43, %v333_v42  ;;  %v783_v42 = vld [vmem:[#allocation6 + $0x8a0] sm:$0xff] }
  0xbc   :  { %7274 = vmatprep.subr.bf16.mxu1 %v7273_v49  ;;  %v344_v49 = vld [vmem:[#allocation6 + $0x798] sm:$0xff]  ;;  %v7295_v52 = vpack.c.bf16 %v339_v46, %v335_v44  ;;  %v91_v38 = vld [vmem:[#allocation3 + $0x30] sm:$0xff]  ;;  %v7441_v44 = vpack.c.bf16 %v786_v35, %v782_v34  ;;  %v788_v46 = vld [vmem:[#allocation6 + $0x8c8] sm:$0xff] }
  0xbd   :  { %v781_v43 = vld [vmem:[#allocation6 + $0x890] sm:$0xff]  ;;  %v820_v35 = vld [vmem:[#allocation6 + $0x9c8] sm:$0xff] }
  0xbe   :  { %7148 = vmatpush1.bf16.msra.mxu0 %v7147_v55  ;;  %v345_v55 = vld [vmem:[#allocation6 + $0x7a0] sm:$0xff]  ;;  %v817_v34 = vld [vmem:[#allocation6 + $0x9b0] sm:$0xff] }
  0xbf   :  { %7276 = vmatpush1.bf16.msra.mxu1 %v7275_v56  ;;  %7150 = vmatprep.subr.bf16.mxu0 %v7149_v57  ;;  %v343_v56 = vld [vmem:[#allocation6 + $0x790] sm:$0xff]  ;;  %v7297_v57 = vpack.c.bf16 %v348_v50, %v344_v49  ;;  %v7171_v63 = vpack.c.bf16 %v345_v55, %v341_v54  ;;  %v794_v49 = vld [vmem:[#allocation6 + $0x8f8] sm:$0xff]  ;;  %v7317_v54 = vpack.c.bf16 %v792_v47, %v788_v46  ;;  %v787_v55 = vld [vmem:[#allocation6 + $0x8c0] sm:$0xff] }
  0xc0   :  { %7278 = vmatprep.subr.bf16.mxu1 %v7277_v61  ;;  %v352_v61 = vld [vmem:[#allocation6 + $0x7d8] sm:$0xff]  ;;  %v7299_v0 = vpack.c.bf16 %v347_v58, %v343_v56  ;;  %v791_v56 = vld [vmem:[#allocation6 + $0x8e0] sm:$0xff]  ;;  %v7445_v58 = vpack.c.bf16 %v794_v49, %v790_v48  ;;  %v825_v46 = vld [vmem:[#allocation6 + $0x9f0] sm:$0xff] }
  0xc1   :  { %v96_v50 = vld [vmem:[#allocation3 + $0x58] sm:$0xff]  ;;  %v828_v47 = vld [vmem:[#allocation6 + $0xa08] sm:$0xff] }
  0xc2   :  { %7152 = vmatpush1.bf16.msra.mxu0 %v7151_v3  ;;  %v353_v3 = vld [vmem:[#allocation6 + $0x7e0] sm:$0xff]  ;;  %v832_v48 = vld [vmem:[#allocation6 + $0xa28] sm:$0xff]  ;;  %v830_v49 = vld [vmem:[#allocation6 + $0xa18] sm:$0xff] }
  0xc3   :  { %7280 = vmatpush1.bf16.msra.mxu1 %v7279_v4  ;;  %7154 = vmatprep.subr.bf16.mxu0 %v7153_v5  ;;  %v351_v4 = vld [vmem:[#allocation6 + $0x7d0] sm:$0xff]  ;;  %v7301_v5 = vpack.c.bf16 %v356_v62, %v352_v61  ;;  %v7175_v11 = vpack.c.bf16 %v353_v3, %v349_v2  ;;  %v800_v61 = vld [vmem:[#allocation6 + $0x928] sm:$0xff]  ;;  %v798_v62 = vld [vmem:[#allocation6 + $0x918] sm:$0xff] }
  0xc4   :  { %7282 = vmatprep.subr.bf16.mxu1 %v7281_v9  ;;  %v766_v9 = vld [vmem:[#allocation6 + $0x818] sm:$0xff]  ;;  %v7303_v12 = vpack.c.bf16 %v355_v6, %v351_v4  ;;  %v99_v2 = vld [vmem:[#allocation3 + $0x70] sm:$0xff]  ;;  %v7321_v4 = vpack.c.bf16 %v800_v61, %v796_v60  ;;  %v799_v6 = vld [vmem:[#allocation6 + $0x920] sm:$0xff] }
  0xc5   :  { %v840_v60 = vld [vmem:[#allocation6 + $0xa68] sm:$0xff]  ;;  %v838_v61 = vld [vmem:[#allocation6 + $0xa58] sm:$0xff] }
  0xc6   :  { %7156 = vmatpush1.bf16.msra.mxu0 %v7155_v15  ;;  %v767_v15 = vld [vmem:[#allocation6 + $0x820] sm:$0xff] }
  0xc7   :  { %7284 = vmatpush1.bf16.msra.mxu1 %v7283_v16  ;;  %7158 = vmatprep.subr.bf16.mxu0 %v7157_v17  ;;  %v765_v16 = vld [vmem:[#allocation6 + $0x810] sm:$0xff]  ;;  %v7433_v17 = vpack.c.bf16 %v770_v10, %v766_v9  ;;  %v7307_v24 = vpack.c.bf16 %v767_v15, %v763_v14  ;;  %v804_v10 = vld [vmem:[#allocation6 + $0x948] sm:$0xff] }
  0xc8   :  { %7286 = vmatprep.subr.bf16.mxu1 %v7285_v21  ;;  %v774_v21 = vld [vmem:[#allocation6 + $0x858] sm:$0xff]  ;;  %v7435_v25 = vpack.c.bf16 %v769_v18, %v765_v16  ;;  %v801_v9 = vld [vmem:[#allocation6 + $0x930] sm:$0xff]  ;;  %v747_v14 = vld [vmem:[#allocation3 + $0x88] sm:$0xff] }
  0xc9   :  { %v7437_v30 = vpack.c.bf16 %v778_v22, %v774_v21  ;;  %v7451_v16 = vpack.c.bf16 %v801_v9, %v797_v7  ;;  %v803_v18 = vld [vmem:[#allocation6 + $0x940] sm:$0xff]  ;;  %v809_v22 = vld [vmem:[#allocation6 + $0x970] sm:$0xff]  ;;  %v844_v7 = vld [vmem:[#allocation6 + $0xa88] sm:$0xff] }
  0xca   :  { %7160 = vmatpush1.bf16.msra.mxu0 %v7159_v27  ;;  %v771_v27 = vld [vmem:[#allocation6 + $0x840] sm:$0xff]  ;;  %v846_v9 = vld [vmem:[#allocation6 + $0xa98] sm:$0xff] }
  0xcb   :  { %7288 = vmatpush1.bf16.msra.mxu1 %v7287_v28  ;;  %7162 = vmatprep.subr.bf16.mxu0 %v7161_v29  ;;  %v775_v28 = vld [vmem:[#allocation6 + $0x860] sm:$0xff]  ;;  %v773_v29 = vld [vmem:[#allocation6 + $0x850] sm:$0xff] }
  0xcc   :  { %7290 = vmatprep.subr.bf16.mxu1 %v7289_v33  ;;  %v784_v33 = vld [vmem:[#allocation6 + $0x8a8] sm:$0xff]  ;;  %v7311_v37 = vpack.c.bf16 %v775_v28, %v771_v27  ;;  %v7327_v27 = vpack.c.bf16 %v807_v19, %v803_v18  ;;  %v7455_v28 = vpack.c.bf16 %v809_v22, %v805_v20  ;;  %v849_v18 = vld [vmem:[#allocation6 + $0xab0] sm:$0xff]  ;;  %v858_v22 = vld [vmem:[#allocation6 + $0xaf8] sm:$0xff] }
  0xcd   :  { %v852_v19 = vld [vmem:[#allocation6 + $0xac8] sm:$0xff] }
  0xce   :  { %7164 = vmatpush1.bf16.msra.mxu0 %v7163_v39  ;;  %v7439_v39 = vpack.c.bf16 %v777_v31, %v773_v29  ;;  %v815_v31 = vld [vmem:[#allocation6 + $0x9a0] sm:$0xff]  ;;  %v856_v20 = vld [vmem:[#allocation6 + $0xae8] sm:$0xff] }
  0xcf   :  { %7292 = vmatpush1.bf16.msra.mxu1 %v7291_v40  ;;  %7166 = vmatprep.subr.bf16.mxu0 %v7165_v41  ;;  %v7313_v40 = vpack.c.bf16 %v784_v33, %v780_v32  ;;  %v779_v41 = vld [vmem:[#allocation6 + $0x880] sm:$0xff]  ;;  %v813_v32 = vld [vmem:[#allocation6 + $0x990] sm:$0xff] }
  0xd0   :  { %7294 = vmatprep.subr.bf16.mxu1 %v7293_v45  ;;  %v785_v45 = vld [vmem:[#allocation6 + $0x8b0] sm:$0xff] }
  0xd2   :  { %7168 = vmatpush1.bf16.msra.mxu0 %v7167_v51  ;;  %v7315_v51 = vpack.c.bf16 %v783_v42, %v779_v41  ;;  %v819_v42 = vld [vmem:[#allocation6 + $0x9c0] sm:$0xff] }
  0xd3   :  { %7296 = vmatpush1.bf16.msra.mxu1 %v7295_v52  ;;  %7170 = vmatprep.subr.bf16.mxu0 %v7169_v53  ;;  %v95_v52 = vld [vmem:[#allocation3 + $0x50] sm:$0xff]  ;;  %v7443_v53 = vpack.c.bf16 %v785_v45, %v781_v43  ;;  %v823_v43 = vld [vmem:[#allocation6 + $0x9e0] sm:$0xff] }
  0xd4   :  { %7298 = vmatprep.subr.bf16.mxu1 %v7297_v57  ;;  %v789_v57 = vld [vmem:[#allocation6 + $0x8d0] sm:$0xff] }
  0xd5   :  { %v7447_v3 = vpack.c.bf16 %v793_v59, %v789_v57  ;;  %v836_v59 = vld [vmem:[#allocation6 + $0xa48] sm:$0xff] }
  0xd6   :  { %7172 = vmatpush1.bf16.msra.mxu0 %v7171_v63  ;;  %v802_v63 = vld [vmem:[#allocation6 + $0x938] sm:$0xff] }
  0xd7   :  { %7300 = vmatpush1.bf16.msra.mxu1 %v7299_v0  ;;  %7174 = vmatprep.subr.bf16.mxu0 %v7173_v1  ;;  %v100_v0 = vld [vmem:[#allocation3 + $0x78] sm:$0xff]  ;;  %v7319_v1 = vpack.c.bf16 %v791_v56, %v787_v55  ;;  %v7449_v8 = vpack.c.bf16 %v802_v63, %v798_v62  ;;  %v831_v55 = vld [vmem:[#allocation6 + $0xa20] sm:$0xff]  ;;  %v829_v56 = vld [vmem:[#allocation6 + $0xa10] sm:$0xff] }
  0xd8   :  { %7302 = vmatprep.subr.bf16.mxu1 %v7301_v5  ;;  %v795_v5 = vld [vmem:[#allocation6 + $0x900] sm:$0xff]  ;;  %v842_v62 = vld [vmem:[#allocation6 + $0xa78] sm:$0xff] }
  0xd9   :  { %v7323_v15 = vpack.c.bf16 %v799_v6, %v795_v5  ;;  %v7469_v5 = vpack.c.bf16 %v842_v62, %v838_v61  ;;  %v841_v6 = vld [vmem:[#allocation6 + $0xa70] sm:$0xff]  ;;  %v875_v62 = vld [vmem:[#allocation6 + $0xb80] sm:$0xff] }
  0xda   :  { %7176 = vmatpush1.bf16.msra.mxu0 %v7175_v11  ;;  %v808_v11 = vld [vmem:[#allocation6 + $0x968] sm:$0xff] }
  0xdb   :  { %7304 = vmatpush1.bf16.msra.mxu1 %v7303_v12  ;;  %7306 = vmatprep.subr.bf16.mxu0 %v7305_v13  ;;  %v806_v12 = vld [vmem:[#allocation6 + $0x958] sm:$0xff] }
  0xdc   :  { %7434 = vmatprep.subr.bf16.mxu1 %v7433_v17  ;;  %v810_v13 = vld [vmem:[#allocation6 + $0x978] sm:$0xff]  ;;  %v7325_v17 = vpack.c.bf16 %v808_v11, %v804_v10 }
  0xdd   :  { %511 = vmatmul.mubr.f32.vlgmr.msra.gmra.mrb[0].mxu0 %v87_v23  ;;  %v7453_v21 = vpack.c.bf16 %v810_v13, %v806_v12  ;;  %v850_v10 = vld [vmem:[#allocation6 + $0xab8] sm:$0xff] }
  0xde   :  { %689 = vmatmul.mubr.f32.vlgmr.msra.gmra.mrb[0].mxu1 %v87_v23  ;;  %7308 = vmatpush1.bf16.msra.mxu0 %v7307_v24  ;;  %v812_v23 = vld [vmem:[#allocation6 + $0x988] sm:$0xff] }
  0xdf   :  { %7436 = vmatpush1.bf16.msra.mxu1 %v7435_v25  ;;  %7310 = vmatprep.subr.bf16.mxu0 %v7309_v26  ;;  %v816_v24 = vld [vmem:[#allocation6 + $0x9a8] sm:$0xff]  ;;  %v814_v25 = vld [vmem:[#allocation6 + $0x998] sm:$0xff] }
  0xe0   :  { %7438 = vmatprep.subr.bf16.mxu1 %v7437_v30  ;;  %516 = vmatprep.mubr.f32.mxu0 %v92_v36  ;;  %v818_v26 = vld [vmem:[#allocation6 + $0x9b8] sm:$0xff]  ;;  %v7329_v29 = vpack.c.bf16 %v816_v24, %v812_v23  ;;  %v811_v30 = vld [vmem:[#allocation6 + $0x980] sm:$0xff] }
  0xe1   :  { %694 = vmatprep.mubr.f32.mxu1 %v92_v36  ;;  %517 = vmatmul.mubr.f32.gmra.mrb[2].mxu0 %v91_v38  ;;  %v7457_v33 = vpack.c.bf16 %v818_v26, %v814_v25  ;;  %v824_v36 = vld [vmem:[#allocation6 + $0x9e8] sm:$0xff]  ;;  %v7349_v25 = vpack.c.bf16 %v856_v20, %v852_v19  ;;  %v851_v26 = vld [vmem:[#allocation6 + $0xac0] sm:$0xff] }
  0xe2   :  { %7312 = vmatpush1.bf16.msra.mxu0 %v7311_v37  ;;  %695 = vmatmul.mubr.f32.gmra.mrb[2].mxu1 %v91_v38  ;;  %v822_v37 = vld [vmem:[#allocation6 + $0x9d8] sm:$0xff]  ;;  %v7333_v41 = vpack.c.bf16 %v824_v36, %v820_v35 }
  0xe3   :  { %7440 = vmatpush1.bf16.msra.mxu1 %v7439_v39  ;;  %7314 = vmatprep.subr.bf16.mxu0 %v7313_v40  ;;  %v826_v38 = vld [vmem:[#allocation6 + $0x9f8] sm:$0xff]  ;;  %v7331_v39 = vpack.c.bf16 %v815_v31, %v811_v30  ;;  %v7459_v40 = vpack.c.bf16 %v817_v34, %v813_v32  ;;  %v857_v30 = vld [vmem:[#allocation6 + $0xaf0] sm:$0xff]  ;;  %v860_v31 = vld [vmem:[#allocation6 + $0xb08] sm:$0xff] }
  0xe4   :  { %7442 = vmatprep.subr.bf16.mxu1 %v7441_v44  ;;  %522 = vmatprep.mubr.f32.mxu0 %v96_v50  ;;  %v821_v44 = vld [vmem:[#allocation6 + $0x9d0] sm:$0xff]  ;;  %v7461_v45 = vpack.c.bf16 %v826_v38, %v822_v37  ;;  %v864_v32 = vld [vmem:[#allocation6 + $0xb28] sm:$0xff]  ;;  %v866_v34 = vld [vmem:[#allocation6 + $0xb38] sm:$0xff] }
  0xe5   :  { %700 = vmatprep.mubr.f32.mxu1 %v96_v50  ;;  %523 = vmatmul.mubr.f32.gmra.mrb[4].mxu0 %v95_v52  ;;  %v834_v50 = vld [vmem:[#allocation6 + $0xa38] sm:$0xff]  ;;  %v7353_v37 = vpack.c.bf16 %v864_v32, %v860_v31  ;;  %v859_v38 = vld [vmem:[#allocation6 + $0xb00] sm:$0xff] }
  0xe6   :  { %7316 = vmatpush1.bf16.msra.mxu0 %v7315_v51  ;;  %701 = vmatmul.mubr.f32.gmra.mrb[4].mxu1 %v95_v52  ;;  %v7335_v51 = vpack.c.bf16 %v823_v43, %v819_v42  ;;  %v7463_v52 = vpack.c.bf16 %v825_v46, %v821_v44  ;;  %v7465_v57 = vpack.c.bf16 %v834_v50, %v830_v49  ;;  %v865_v42 = vld [vmem:[#allocation6 + $0xb30] sm:$0xff]  ;;  %v868_v43 = vld [vmem:[#allocation6 + $0xb48] sm:$0xff]  ;;  %v874_v46 = vld [vmem:[#allocation6 + $0xb78] sm:$0xff] }
  0xe7   :  { %7444 = vmatpush1.bf16.msra.mxu1 %v7443_v53  ;;  %7318 = vmatprep.subr.bf16.mxu0 %v7317_v54  ;;  %v7337_v53 = vpack.c.bf16 %v832_v48, %v828_v47  ;;  %v827_v54 = vld [vmem:[#allocation6 + $0xa00] sm:$0xff]  ;;  %v872_v44 = vld [vmem:[#allocation6 + $0xb68] sm:$0xff] }
  0xe8   :  { %7446 = vmatprep.subr.bf16.mxu1 %v7445_v58  ;;  %528 = vmatprep.mubr.f32.mxu0 %v100_v0  ;;  %v833_v58 = vld [vmem:[#allocation6 + $0xa30] sm:$0xff]  ;;  %v7339_v63 = vpack.c.bf16 %v831_v55, %v827_v54  ;;  %v7357_v49 = vpack.c.bf16 %v872_v44, %v868_v43  ;;  %v867_v50 = vld [vmem:[#allocation6 + $0xb40] sm:$0xff]  ;;  %v876_v55 = vld [vmem:[#allocation6 + $0xb88] sm:$0xff] }
  0xe9   :  { %706 = vmatprep.mubr.f32.mxu1 %v100_v0  ;;  %529 = vmatmul.mubr.f32.gmra.mrb[6].mxu0 %v99_v2  ;;  %v7467_v0 = vpack.c.bf16 %v833_v58, %v829_v56  ;;  %v873_v54 = vld [vmem:[#allocation6 + $0xb70] sm:$0xff]  ;;  %v880_v56 = vld [vmem:[#allocation6 + $0xba8] sm:$0xff]  ;;  %v882_v58 = vld [vmem:[#allocation6 + $0xbb8] sm:$0xff] }
  0xea   :  { %7320 = vmatpush1.bf16.msra.mxu0 %v7319_v1  ;;  %707 = vmatmul.mubr.f32.gmra.mrb[6].mxu1 %v99_v2  ;;  %v7341_v1 = vpack.c.bf16 %v840_v60, %v836_v59  ;;  %v835_v2 = vld [vmem:[#allocation6 + $0xa40] sm:$0xff]  ;;  %v7361_v61 = vpack.c.bf16 %v880_v56, %v876_v55  ;;  %v914_v43 = vld [vmem:[#allocation6 + $0xcb8] sm:$0xff]  ;;  %v751_v44 = vld [vmem:[#allocation3 + $0xa8] sm:$0xff] }
  0xeb   :  { %7448 = vmatpush1.bf16.msra.mxu1 %v7447_v3  ;;  %7322 = vmatprep.subr.bf16.mxu0 %v7321_v4  ;;  %v839_v3 = vld [vmem:[#allocation6 + $0xa60] sm:$0xff]  ;;  %v837_v4 = vld [vmem:[#allocation6 + $0xa50] sm:$0xff]  ;;  %v920_v55 = vld [vmem:[#allocation6 + $0xce8] sm:$0xff] }
  0xec   :  { %7450 = vmatprep.subr.bf16.mxu1 %v7449_v8  ;;  %1083 = vmatprep.mubr.f32.mxu0 %v747_v14  ;;  %v848_v8 = vld [vmem:[#allocation6 + $0xaa8] sm:$0xff]  ;;  %v7343_v11 = vpack.c.bf16 %v839_v3, %v835_v2  ;;  %v7471_v12 = vpack.c.bf16 %v841_v6, %v837_v4  ;;  %v881_v2 = vld [vmem:[#allocation6 + $0xbb0] sm:$0xff]  ;;  %v890_v6 = vld [vmem:[#allocation6 + $0xbf8] sm:$0xff] }
  0xed   :  { %1261 = vmatprep.mubr.f32.mxu1 %v747_v14  ;;  %v7345_v13 = vpack.c.bf16 %v848_v8, %v844_v7  ;;  %v843_v14 = vld [vmem:[#allocation6 + $0xa80] sm:$0xff]  ;;  %v884_v3 = vld [vmem:[#allocation6 + $0xbc8] sm:$0xff]  ;;  %v918_v56 = vld [vmem:[#allocation6 + $0xcd8] sm:$0xff] }
  0xee   :  { %7324 = vmatpush1.bf16.msra.mxu0 %v7323_v15  ;;  %v847_v15 = vld [vmem:[#allocation6 + $0xaa0] sm:$0xff]  ;;  %v888_v4 = vld [vmem:[#allocation6 + $0xbe8] sm:$0xff] }
  0xef   :  { %7452 = vmatpush1.bf16.msra.mxu1 %v7451_v16  ;;  %7326 = vmatprep.subr.bf16.mxu0 %v7325_v17  ;;  %v845_v16 = vld [vmem:[#allocation6 + $0xa90] sm:$0xff]  ;;  %v7473_v17 = vpack.c.bf16 %v850_v10, %v846_v9  ;;  %v7347_v23 = vpack.c.bf16 %v847_v15, %v843_v14  ;;  %v7365_v9 = vpack.c.bf16 %v888_v4, %v884_v3  ;;  %v883_v10 = vld [vmem:[#allocation6 + $0xbc0] sm:$0xff]  ;;  %v892_v15 = vld [vmem:[#allocation6 + $0xc08] sm:$0xff] }
  0xf0   :  { %7454 = vmatprep.subr.bf16.mxu1 %v7453_v21  ;;  %v854_v21 = vld [vmem:[#allocation6 + $0xad8] sm:$0xff]  ;;  %v7475_v24 = vpack.c.bf16 %v849_v18, %v845_v16  ;;  %v889_v14 = vld [vmem:[#allocation6 + $0xbf0] sm:$0xff]  ;;  %v896_v16 = vld [vmem:[#allocation6 + $0xc28] sm:$0xff] }
  0xf1   :  { %v898_v18 = vld [vmem:[#allocation6 + $0xc38] sm:$0xff]  ;;  %v746_v31 = vld [vmem:[#allocation3 + $0x80] sm:$0xff]  ;;  %v921_v3 = vld [vmem:[#allocation6 + $0xcf0] sm:$0xff] }
  0xf2   :  { %7328 = vmatpush1.bf16.msra.mxu0 %v7327_v27  ;;  %v855_v27 = vld [vmem:[#allocation6 + $0xae0] sm:$0xff]  ;;  %v924_v4 = vld [vmem:[#allocation6 + $0xd08] sm:$0xff] }
  0xf3   :  { %7456 = vmatpush1.bf16.msra.mxu1 %v7455_v28  ;;  %7330 = vmatprep.subr.bf16.mxu0 %v7329_v29  ;;  %v853_v28 = vld [vmem:[#allocation6 + $0xad0] sm:$0xff]  ;;  %v7477_v29 = vpack.c.bf16 %v858_v22, %v854_v21  ;;  %v7351_v35 = vpack.c.bf16 %v855_v27, %v851_v26  ;;  %v7369_v21 = vpack.c.bf16 %v896_v16, %v892_v15  ;;  %v891_v22 = vld [vmem:[#allocation6 + $0xc00] sm:$0xff]  ;;  %v900_v27 = vld [vmem:[#allocation6 + $0xc48] sm:$0xff] }
  0xf4   :  { %7458 = vmatprep.subr.bf16.mxu1 %v7457_v33  ;;  %v862_v33 = vld [vmem:[#allocation6 + $0xb18] sm:$0xff]  ;;  %v7479_v36 = vpack.c.bf16 %v857_v30, %v853_v28  ;;  %v897_v26 = vld [vmem:[#allocation6 + $0xc30] sm:$0xff]  ;;  %v904_v28 = vld [vmem:[#allocation6 + $0xc68] sm:$0xff] }
  0xf5   :  { %v906_v30 = vld [vmem:[#allocation6 + $0xc78] sm:$0xff]  ;;  %v925_v15 = vld [vmem:[#allocation6 + $0xd10] sm:$0xff] }
  0xf6   :  { %7332 = vmatpush1.bf16.msra.mxu0 %v7331_v39  ;;  %v863_v39 = vld [vmem:[#allocation6 + $0xb20] sm:$0xff] }
  0xf7   :  { %7460 = vmatpush1.bf16.msra.mxu1 %v7459_v40  ;;  %7334 = vmatprep.subr.bf16.mxu0 %v7333_v41  ;;  %v861_v40 = vld [vmem:[#allocation6 + $0xb10] sm:$0xff]  ;;  %v7481_v41 = vpack.c.bf16 %v866_v34, %v862_v33  ;;  %v7355_v47 = vpack.c.bf16 %v863_v39, %v859_v38  ;;  %v7373_v34 = vpack.c.bf16 %v904_v28, %v900_v27  ;;  %v935_v27 = vld [vmem:[#allocation6 + $0xd60] sm:$0xff] }
  0xf8   :  { %7462 = vmatprep.subr.bf16.mxu1 %v7461_v45  ;;  %v870_v45 = vld [vmem:[#allocation6 + $0xb58] sm:$0xff]  ;;  %v7483_v48 = vpack.c.bf16 %v865_v42, %v861_v40  ;;  %v905_v39 = vld [vmem:[#allocation6 + $0xc70] sm:$0xff]  ;;  %v908_v40 = vld [vmem:[#allocation6 + $0xc88] sm:$0xff] }
  0xf9   :  { %v910_v42 = vld [vmem:[#allocation6 + $0xc98] sm:$0xff]  ;;  %v933_v28 = vld [vmem:[#allocation6 + $0xd50] sm:$0xff] }
  0xfa   :  { %7336 = vmatpush1.bf16.msra.mxu0 %v7335_v51  ;;  %v871_v51 = vld [vmem:[#allocation6 + $0xb60] sm:$0xff] }
  0xfb   :  { %7464 = vmatpush1.bf16.msra.mxu1 %v7463_v52  ;;  %7338 = vmatprep.subr.bf16.mxu0 %v7337_v53  ;;  %v869_v52 = vld [vmem:[#allocation6 + $0xb50] sm:$0xff]  ;;  %v7485_v53 = vpack.c.bf16 %v874_v46, %v870_v45  ;;  %v7359_v59 = vpack.c.bf16 %v871_v51, %v867_v50  ;;  %v750_v46 = vld [vmem:[#allocation3 + $0xa0] sm:$0xff] }
  0xfc   :  { %7466 = vmatprep.subr.bf16.mxu1 %v7465_v57  ;;  %v878_v57 = vld [vmem:[#allocation6 + $0xb98] sm:$0xff]  ;;  %v7487_v60 = vpack.c.bf16 %v873_v54, %v869_v52  ;;  %v911_v50 = vld [vmem:[#allocation6 + $0xca0] sm:$0xff]  ;;  %v909_v51 = vld [vmem:[#allocation6 + $0xc90] sm:$0xff]  ;;  %v7505_v52 = vpack.c.bf16 %v914_v43, %v910_v42 }
  0xfd   :  { %v916_v54 = vld [vmem:[#allocation6 + $0xcc8] sm:$0xff]  ;;  %v945_v42 = vld [vmem:[#allocation6 + $0xdb0] sm:$0xff] }
  0xfe   :  { %7340 = vmatpush1.bf16.msra.mxu0 %v7339_v63  ;;  %v879_v63 = vld [vmem:[#allocation6 + $0xba0] sm:$0xff]  ;;  %v948_v43 = vld [vmem:[#allocation6 + $0xdc8] sm:$0xff] }
  0xff   :  { %7468 = vmatpush1.bf16.msra.mxu1 %v7467_v0  ;;  %7342 = vmatprep.subr.bf16.mxu0 %v7341_v1  ;;  %v877_v0 = vld [vmem:[#allocation6 + $0xb90] sm:$0xff]  ;;  %v7489_v1 = vpack.c.bf16 %v882_v58, %v878_v57  ;;  %v7363_v7 = vpack.c.bf16 %v879_v63, %v875_v62  ;;  %v922_v57 = vld [vmem:[#allocation6 + $0xcf8] sm:$0xff]  ;;  %v755_v58 = vld [vmem:[#allocation3 + $0xc8] sm:$0xff]  ;;  %v7381_v62 = vpack.c.bf16 %v920_v55, %v916_v54 }
 0x100   :  { %7470 = vmatprep.subr.bf16.mxu1 %v7469_v5  ;;  %v886_v5 = vld [vmem:[#allocation6 + $0xbd8] sm:$0xff]  ;;  %v7491_v8 = vpack.c.bf16 %v881_v2, %v877_v0  ;;  %v915_v63 = vld [vmem:[#allocation6 + $0xcc0] sm:$0xff]  ;;  %v7509_v2 = vpack.c.bf16 %v922_v57, %v918_v56  ;;  %v953_v54 = vld [vmem:[#allocation6 + $0xdf0] sm:$0xff] }
 0x101   :  { %v919_v0 = vld [vmem:[#allocation6 + $0xce0] sm:$0xff]  ;;  %v956_v55 = vld [vmem:[#allocation6 + $0xe08] sm:$0xff]  ;;  %v958_v57 = vld [vmem:[#allocation6 + $0xe18] sm:$0xff] }
 0x102   :  { %7344 = vmatpush1.bf16.msra.mxu0 %v7343_v11  ;;  %v887_v11 = vld [vmem:[#allocation6 + $0xbe0] sm:$0xff]  ;;  %v960_v56 = vld [vmem:[#allocation6 + $0xe28] sm:$0xff] }
 0x103   :  { %7472 = vmatpush1.bf16.msra.mxu1 %v7471_v12  ;;  %7346 = vmatprep.subr.bf16.mxu0 %v7345_v13  ;;  %v885_v12 = vld [vmem:[#allocation6 + $0xbd0] sm:$0xff]  ;;  %v7493_v13 = vpack.c.bf16 %v890_v6, %v886_v5  ;;  %v7367_v19 = vpack.c.bf16 %v887_v11, %v883_v10  ;;  %v928_v5 = vld [vmem:[#allocation6 + $0xd28] sm:$0xff]  ;;  %v926_v6 = vld [vmem:[#allocation6 + $0xd18] sm:$0xff] }
 0x104   :  { %7474 = vmatprep.subr.bf16.mxu1 %v7473_v17  ;;  %v894_v17 = vld [vmem:[#allocation6 + $0xc18] sm:$0xff]  ;;  %v7495_v20 = vpack.c.bf16 %v889_v14, %v885_v12  ;;  %v758_v10 = vld [vmem:[#allocation3 + $0xe0] sm:$0xff]  ;;  %v7385_v12 = vpack.c.bf16 %v928_v5, %v924_v4  ;;  %v968_v4 = vld [vmem:[#allocation6 + $0xe68] sm:$0xff] }
 0x105   :  { %v927_v14 = vld [vmem:[#allocation6 + $0xd20] sm:$0xff]  ;;  %v966_v5 = vld [vmem:[#allocation6 + $0xe58] sm:$0xff] }
 0x106   :  { %7348 = vmatpush1.bf16.msra.mxu0 %v7347_v23  ;;  %v895_v23 = vld [vmem:[#allocation6 + $0xc20] sm:$0xff] }
 0x107   :  { %7476 = vmatpush1.bf16.msra.mxu1 %v7475_v24  ;;  %7350 = vmatprep.subr.bf16.mxu0 %v7349_v25  ;;  %v893_v24 = vld [vmem:[#allocation6 + $0xc10] sm:$0xff]  ;;  %v7497_v25 = vpack.c.bf16 %v898_v18, %v894_v17  ;;  %v7371_v32 = vpack.c.bf16 %v895_v23, %v891_v22  ;;  %v932_v18 = vld [vmem:[#allocation6 + $0xd48] sm:$0xff]  ;;  %v749_v22 = vld [vmem:[#allocation3 + $0x98] sm:$0xff] }
 0x108   :  { %7478 = vmatprep.subr.bf16.mxu1 %v7477_v29  ;;  %v902_v29 = vld [vmem:[#allocation6 + $0xc58] sm:$0xff]  ;;  %v7499_v33 = vpack.c.bf16 %v897_v26, %v893_v24  ;;  %v929_v17 = vld [vmem:[#allocation6 + $0xd30] sm:$0xff]  ;;  %v931_v26 = vld [vmem:[#allocation6 + $0xd40] sm:$0xff] }
 0x109   :  { %v7501_v38 = vpack.c.bf16 %v906_v30, %v902_v29  ;;  %v7515_v24 = vpack.c.bf16 %v929_v17, %v925_v15  ;;  %v937_v30 = vld [vmem:[#allocation6 + $0xd70] sm:$0xff]  ;;  %v972_v15 = vld [vmem:[#allocation6 + $0xe88] sm:$0xff]  ;;  %v974_v17 = vld [vmem:[#allocation6 + $0xe98] sm:$0xff] }
 0x10a   :  { %7352 = vmatpush1.bf16.msra.mxu0 %v7351_v35  ;;  %v899_v35 = vld [vmem:[#allocation6 + $0xc40] sm:$0xff] }
 0x10b   :  { %7480 = vmatpush1.bf16.msra.mxu1 %v7479_v36  ;;  %7354 = vmatprep.subr.bf16.mxu0 %v7353_v37  ;;  %v903_v36 = vld [vmem:[#allocation6 + $0xc60] sm:$0xff]  ;;  %v901_v37 = vld [vmem:[#allocation6 + $0xc50] sm:$0xff] }
 0x10c   :  { %7482 = vmatprep.subr.bf16.mxu1 %v7481_v41  ;;  %v912_v41 = vld [vmem:[#allocation6 + $0xca8] sm:$0xff]  ;;  %v7375_v45 = vpack.c.bf16 %v903_v36, %v899_v35  ;;  %v7391_v35 = vpack.c.bf16 %v935_v27, %v931_v26  ;;  %v7519_v36 = vpack.c.bf16 %v937_v30, %v933_v28  ;;  %v977_v26 = vld [vmem:[#allocation6 + $0xeb0] sm:$0xff]  ;;  %v986_v30 = vld [vmem:[#allocation6 + $0xef8] sm:$0xff] }
 0x10d   :  { %v980_v27 = vld [vmem:[#allocation6 + $0xec8] sm:$0xff] }
 0x10e   :  { %7356 = vmatpush1.bf16.msra.mxu0 %v7355_v47  ;;  %v7503_v47 = vpack.c.bf16 %v905_v39, %v901_v37  ;;  %v943_v39 = vld [vmem:[#allocation6 + $0xda0] sm:$0xff]  ;;  %v984_v28 = vld [vmem:[#allocation6 + $0xee8] sm:$0xff] }
 0x10f   :  { %7484 = vmatpush1.bf16.msra.mxu1 %v7483_v48  ;;  %7358 = vmatprep.subr.bf16.mxu0 %v7357_v49  ;;  %v7377_v48 = vpack.c.bf16 %v912_v41, %v908_v40  ;;  %v907_v49 = vld [vmem:[#allocation6 + $0xc80] sm:$0xff]  ;;  %v941_v40 = vld [vmem:[#allocation6 + $0xd90] sm:$0xff] }
 0x110   :  { %7486 = vmatprep.subr.bf16.mxu1 %v7485_v53  ;;  %v913_v53 = vld [vmem:[#allocation6 + $0xcb0] sm:$0xff] }
 0x112   :  { %7360 = vmatpush1.bf16.msra.mxu0 %v7359_v59  ;;  %v7379_v59 = vpack.c.bf16 %v911_v50, %v907_v49  ;;  %v947_v50 = vld [vmem:[#allocation6 + $0xdc0] sm:$0xff] }
 0x113   :  { %7488 = vmatpush1.bf16.msra.mxu1 %v7487_v60  ;;  %7362 = vmatprep.subr.bf16.mxu0 %v7361_v61  ;;  %v754_v60 = vld [vmem:[#allocation3 + $0xc0] sm:$0xff]  ;;  %v7507_v61 = vpack.c.bf16 %v913_v53, %v909_v51 }
 0x114   :  { %7490 = vmatprep.subr.bf16.mxu1 %v7489_v1  ;;  %v917_v1 = vld [vmem:[#allocation6 + $0xcd0] sm:$0xff]  ;;  %v951_v51 = vld [vmem:[#allocation6 + $0xde0] sm:$0xff] }
 0x115   :  { %v7511_v11 = vpack.c.bf16 %v921_v3, %v917_v1  ;;  %v964_v3 = vld [vmem:[#allocation6 + $0xe48] sm:$0xff] }
 0x116   :  { %7364 = vmatpush1.bf16.msra.mxu0 %v7363_v7  ;;  %v930_v7 = vld [vmem:[#allocation6 + $0xd38] sm:$0xff] }
 0x117   :  { %7492 = vmatpush1.bf16.msra.mxu1 %v7491_v8  ;;  %7366 = vmatprep.subr.bf16.mxu0 %v7365_v9  ;;  %v759_v8 = vld [vmem:[#allocation3 + $0xe8] sm:$0xff]  ;;  %v7383_v9 = vpack.c.bf16 %v919_v0, %v915_v63  ;;  %v7513_v16 = vpack.c.bf16 %v930_v7, %v926_v6  ;;  %v959_v63 = vld [vmem:[#allocation6 + $0xe20] sm:$0xff]  ;;  %v957_v0 = vld [vmem:[#allocation6 + $0xe10] sm:$0xff] }
 0x118   :  { %7494 = vmatprep.subr.bf16.mxu1 %v7493_v13  ;;  %v923_v13 = vld [vmem:[#allocation6 + $0xd00] sm:$0xff]  ;;  %v970_v6 = vld [vmem:[#allocation6 + $0xe78] sm:$0xff] }
 0x119   :  { %v7387_v23 = vpack.c.bf16 %v927_v14, %v923_v13  ;;  %v7533_v13 = vpack.c.bf16 %v970_v6, %v966_v5  ;;  %v969_v14 = vld [vmem:[#allocation6 + $0xe70] sm:$0xff]  ;;  %v1003_v6 = vld [vmem:[#allocation6 + $0xf80] sm:$0xff] }
 0x11a   :  { %7368 = vmatpush1.bf16.msra.mxu0 %v7367_v19  ;;  %v936_v19 = vld [vmem:[#allocation6 + $0xd68] sm:$0xff] }
 0x11b   :  { %7496 = vmatpush1.bf16.msra.mxu1 %v7495_v20  ;;  %7370 = vmatprep.subr.bf16.mxu0 %v7369_v21  ;;  %v934_v20 = vld [vmem:[#allocation6 + $0xd58] sm:$0xff] }
 0x11c   :  { %7498 = vmatprep.subr.bf16.mxu1 %v7497_v25  ;;  %v938_v21 = vld [vmem:[#allocation6 + $0xd78] sm:$0xff]  ;;  %v7389_v25 = vpack.c.bf16 %v936_v19, %v932_v18 }
 0x11d   :  { %1084 = vmatmul.mubr.f32.vlgmr.msra.gmra.mrb[0].mxu0 %v746_v31  ;;  %v7517_v29 = vpack.c.bf16 %v938_v21, %v934_v20  ;;  %v978_v18 = vld [vmem:[#allocation6 + $0xeb8] sm:$0xff] }
 0x11e   :  { %7372 = vmatpush1.bf16.msra.mxu0 %v7371_v32  ;;  %1262 = vmatmul.mubr.f32.vlgmr.msra.gmra.mrb[0].mxu1 %v746_v31  ;;  %v940_v31 = vld [vmem:[#allocation6 + $0xd88] sm:$0xff] }
 0x11f   :  { %7500 = vmatpush1.bf16.msra.mxu1 %v7499_v33  ;;  %7374 = vmatprep.subr.bf16.mxu0 %v7373_v34  ;;  %v944_v32 = vld [vmem:[#allocation6 + $0xda8] sm:$0xff]  ;;  %v942_v33 = vld [vmem:[#allocation6 + $0xd98] sm:$0xff] }
 0x120   :  { %7502 = vmatprep.subr.bf16.mxu1 %v7501_v38  ;;  %1089 = vmatprep.mubr.f32.mxu0 %v751_v44  ;;  %v946_v34 = vld [vmem:[#allocation6 + $0xdb8] sm:$0xff]  ;;  %v7393_v37 = vpack.c.bf16 %v944_v32, %v940_v31  ;;  %v939_v38 = vld [vmem:[#allocation6 + $0xd80] sm:$0xff] }
 0x121   :  { %1267 = vmatprep.mubr.f32.mxu1 %v751_v44  ;;  %1090 = vmatmul.mubr.f32.gmra.mrb[2].mxu0 %v750_v46  ;;  %v7521_v41 = vpack.c.bf16 %v946_v34, %v942_v33  ;;  %v952_v44 = vld [vmem:[#allocation6 + $0xde8] sm:$0xff]  ;;  %v7413_v33 = vpack.c.bf16 %v984_v28, %v980_v27  ;;  %v979_v34 = vld [vmem:[#allocation6 + $0xec0] sm:$0xff] }
 0x122   :  { %7376 = vmatpush1.bf16.msra.mxu0 %v7375_v45  ;;  %1268 = vmatmul.mubr.f32.gmra.mrb[2].mxu1 %v750_v46  ;;  %v950_v45 = vld [vmem:[#allocation6 + $0xdd8] sm:$0xff]  ;;  %v7397_v49 = vpack.c.bf16 %v952_v44, %v948_v43 }
 0x123   :  { %7504 = vmatpush1.bf16.msra.mxu1 %v7503_v47  ;;  %7378 = vmatprep.subr.bf16.mxu0 %v7377_v48  ;;  %v954_v46 = vld [vmem:[#allocation6 + $0xdf8] sm:$0xff]  ;;  %v7395_v47 = vpack.c.bf16 %v943_v39, %v939_v38  ;;  %v7523_v48 = vpack.c.bf16 %v945_v42, %v941_v40  ;;  %v985_v38 = vld [vmem:[#allocation6 + $0xef0] sm:$0xff]  ;;  %v988_v39 = vld [vmem:[#allocation6 + $0xf08] sm:$0xff] }
 0x124   :  { %7506 = vmatprep.subr.bf16.mxu1 %v7505_v52  ;;  %1095 = vmatprep.mubr.f32.mxu0 %v755_v58  ;;  %v949_v52 = vld [vmem:[#allocation6 + $0xdd0] sm:$0xff]  ;;  %v7525_v53 = vpack.c.bf16 %v954_v46, %v950_v45  ;;  %v992_v40 = vld [vmem:[#allocation6 + $0xf28] sm:$0xff]  ;;  %v994_v42 = vld [vmem:[#allocation6 + $0xf38] sm:$0xff] }
 0x125   :  { %1273 = vmatprep.mubr.f32.mxu1 %v755_v58  ;;  %1096 = vmatmul.mubr.f32.gmra.mrb[4].mxu0 %v754_v60  ;;  %v962_v58 = vld [vmem:[#allocation6 + $0xe38] sm:$0xff]  ;;  %v7417_v45 = vpack.c.bf16 %v992_v40, %v988_v39  ;;  %v987_v46 = vld [vmem:[#allocation6 + $0xf00] sm:$0xff]  ;;  %v748_v39 = vld [vmem:[#allocation3 + $0x90] sm:$0xff] }
 0x126   :  { %7380 = vmatpush1.bf16.msra.mxu0 %v7379_v59  ;;  %1274 = vmatmul.mubr.f32.gmra.mrb[4].mxu1 %v754_v60  ;;  %v7399_v59 = vpack.c.bf16 %v951_v51, %v947_v50  ;;  %v7527_v60 = vpack.c.bf16 %v953_v54, %v949_v52  ;;  %v7529_v1 = vpack.c.bf16 %v962_v58, %v958_v57  ;;  %v993_v50 = vld [vmem:[#allocation6 + $0xf30] sm:$0xff]  ;;  %v996_v51 = vld [vmem:[#allocation6 + $0xf48] sm:$0xff]  ;;  %v1002_v54 = vld [vmem:[#allocation6 + $0xf78] sm:$0xff] }
 0x127   :  { %7508 = vmatpush1.bf16.msra.mxu1 %v7507_v61  ;;  %7382 = vmatprep.subr.bf16.mxu0 %v7381_v62  ;;  %v7401_v61 = vpack.c.bf16 %v960_v56, %v956_v55  ;;  %v955_v62 = vld [vmem:[#allocation6 + $0xe00] sm:$0xff]  ;;  %v1000_v52 = vld [vmem:[#allocation6 + $0xf68] sm:$0xff] }
 0x128   :  { %7510 = vmatprep.subr.bf16.mxu1 %v7509_v2  ;;  %1101 = vmatprep.mubr.f32.mxu0 %v759_v8  ;;  %v961_v2 = vld [vmem:[#allocation6 + $0xe30] sm:$0xff]  ;;  %v7403_v7 = vpack.c.bf16 %v959_v63, %v955_v62  ;;  %v7421_v57 = vpack.c.bf16 %v1000_v52, %v996_v51  ;;  %v995_v58 = vld [vmem:[#allocation6 + $0xf40] sm:$0xff]  ;;  %v1004_v63 = vld [vmem:[#allocation6 + $0xf88] sm:$0xff] }
 0x129   :  { %1279 = vmatprep.mubr.f32.mxu1 %v759_v8  ;;  %1102 = vmatmul.mubr.f32.gmra.mrb[6].mxu0 %v758_v10  ;;  %v7531_v8 = vpack.c.bf16 %v961_v2, %v957_v0  ;;  %v1001_v62 = vld [vmem:[#allocation6 + $0xf70] sm:$0xff]  ;;  %v1008_v0 = vld [vmem:[#allocation6 + $0xfa8] sm:$0xff]  ;;  %v1010_v2 = vld [vmem:[#allocation6 + $0xfb8] sm:$0xff] }
 0x12a   :  { %7384 = vmatpush1.bf16.msra.mxu0 %v7383_v9  ;;  %1280 = vmatmul.mubr.f32.gmra.mrb[6].mxu1 %v758_v10  ;;  %v7405_v9 = vpack.c.bf16 %v968_v4, %v964_v3  ;;  %v963_v10 = vld [vmem:[#allocation6 + $0xe40] sm:$0xff]  ;;  %v7425_v5 = vpack.c.bf16 %v1008_v0, %v1004_v63  ;;  %v1464_v51 = vld [vmem:[#allocation6 + $0x10b8] sm:$0xff]  ;;  %v1470_v63 = vld [vmem:[#allocation6 + $0x10e8] sm:$0xff] }
 0x12b   :  { %7512 = vmatpush1.bf16.msra.mxu1 %v7511_v11  ;;  %7386 = vmatprep.subr.bf16.mxu0 %v7385_v12  ;;  %v967_v11 = vld [vmem:[#allocation6 + $0xe60] sm:$0xff]  ;;  %v965_v12 = vld [vmem:[#allocation6 + $0xe50] sm:$0xff]  ;;  %v753_v52 = vld [vmem:[#allocation3 + $0xb8] sm:$0xff] }
 0x12c   :  { %7514 = vmatprep.subr.bf16.mxu1 %v7513_v16  ;;  %1172 = vmatprep.mubr.f32.mxu0 %v749_v22  ;;  %v976_v16 = vld [vmem:[#allocation6 + $0xea8] sm:$0xff]  ;;  %v7407_v19 = vpack.c.bf16 %v967_v11, %v963_v10  ;;  %v7535_v20 = vpack.c.bf16 %v969_v14, %v965_v12  ;;  %v1009_v10 = vld [vmem:[#allocation6 + $0xfb0] sm:$0xff]  ;;  %v1018_v14 = vld [vmem:[#allocation6 + $0xff8] sm:$0xff] }
 0x12d   :  { %1350 = vmatprep.mubr.f32.mxu1 %v749_v22  ;;  %v7409_v21 = vpack.c.bf16 %v976_v16, %v972_v15  ;;  %v971_v22 = vld [vmem:[#allocation6 + $0xe80] sm:$0xff]  ;;  %v1012_v11 = vld [vmem:[#allocation6 + $0xfc8] sm:$0xff]  ;;  %v1468_v0 = vld [vmem:[#allocation6 + $0x10d8] sm:$0xff] }
 0x12e   :  { %7388 = vmatpush1.bf16.msra.mxu0 %v7387_v23  ;;  %v975_v23 = vld [vmem:[#allocation6 + $0xea0] sm:$0xff]  ;;  %v1016_v12 = vld [vmem:[#allocation6 + $0xfe8] sm:$0xff] }
 0x12f   :  { %7516 = vmatpush1.bf16.msra.mxu1 %v7515_v24  ;;  %7390 = vmatprep.subr.bf16.mxu0 %v7389_v25  ;;  %v973_v24 = vld [vmem:[#allocation6 + $0xe90] sm:$0xff]  ;;  %v7537_v25 = vpack.c.bf16 %v978_v18, %v974_v17  ;;  %v7411_v31 = vpack.c.bf16 %v975_v23, %v971_v22  ;;  %v7429_v17 = vpack.c.bf16 %v1016_v12, %v1012_v11  ;;  %v1011_v18 = vld [vmem:[#allocation6 + $0xfc0] sm:$0xff]  ;;  %v1442_v23 = vld [vmem:[#allocation6 + $0x1008] sm:$0xff] }
 0x130   :  { %7518 = vmatprep.subr.bf16.mxu1 %v7517_v29  ;;  %v982_v29 = vld [vmem:[#allocation6 + $0xed8] sm:$0xff]  ;;  %v7539_v32 = vpack.c.bf16 %v977_v26, %v973_v24  ;;  %v1017_v22 = vld [vmem:[#allocation6 + $0xff0] sm:$0xff]  ;;  %v1446_v24 = vld [vmem:[#allocation6 + $0x1028] sm:$0xff] }
 0x131   :  { %v1448_v26 = vld [vmem:[#allocation6 + $0x1038] sm:$0xff]  ;;  %v1471_v11 = vld [vmem:[#allocation6 + $0x10f0] sm:$0xff]  ;;  %v1474_v12 = vld [vmem:[#allocation6 + $0x1108] sm:$0xff] }
 0x132   :  { %7392 = vmatpush1.bf16.msra.mxu0 %v7391_v35  ;;  %v983_v35 = vld [vmem:[#allocation6 + $0xee0] sm:$0xff] }
 0x133   :  { %7520 = vmatpush1.bf16.msra.mxu1 %v7519_v36  ;;  %7394 = vmatprep.subr.bf16.mxu0 %v7393_v37  ;;  %v981_v36 = vld [vmem:[#allocation6 + $0xed0] sm:$0xff]  ;;  %v7541_v37 = vpack.c.bf16 %v986_v30, %v982_v29  ;;  %v7415_v43 = vpack.c.bf16 %v983_v35, %v979_v34  ;;  %v7561_v29 = vpack.c.bf16 %v1446_v24, %v1442_v23  ;;  %v1441_v30 = vld [vmem:[#allocation6 + $0x1000] sm:$0xff]  ;;  %v1450_v35 = vld [vmem:[#allocation6 + $0x1048] sm:$0xff] }
 0x134   :  { %7522 = vmatprep.subr.bf16.mxu1 %v7521_v41  ;;  %v990_v41 = vld [vmem:[#allocation6 + $0xf18] sm:$0xff]  ;;  %v7543_v44 = vpack.c.bf16 %v985_v38, %v981_v36  ;;  %v1447_v34 = vld [vmem:[#allocation6 + $0x1030] sm:$0xff]  ;;  %v1454_v36 = vld [vmem:[#allocation6 + $0x1068] sm:$0xff] }
 0x135   :  { %v1456_v38 = vld [vmem:[#allocation6 + $0x1078] sm:$0xff]  ;;  %v1475_v23 = vld [vmem:[#allocation6 + $0x1110] sm:$0xff] }
 0x136   :  { %7396 = vmatpush1.bf16.msra.mxu0 %v7395_v47  ;;  %v991_v47 = vld [vmem:[#allocation6 + $0xf20] sm:$0xff] }
 0x137   :  { %7524 = vmatpush1.bf16.msra.mxu1 %v7523_v48  ;;  %7398 = vmatprep.subr.bf16.mxu0 %v7397_v49  ;;  %v989_v48 = vld [vmem:[#allocation6 + $0xf10] sm:$0xff]  ;;  %v7545_v49 = vpack.c.bf16 %v994_v42, %v990_v41  ;;  %v7419_v55 = vpack.c.bf16 %v991_v47, %v987_v46  ;;  %v7565_v42 = vpack.c.bf16 %v1454_v36, %v1450_v35  ;;  %v1485_v35 = vld [vmem:[#allocation6 + $0x1160] sm:$0xff] }
 0x138   :  { %7526 = vmatprep.subr.bf16.mxu1 %v7525_v53  ;;  %v998_v53 = vld [vmem:[#allocation6 + $0xf58] sm:$0xff]  ;;  %v7547_v56 = vpack.c.bf16 %v993_v50, %v989_v48  ;;  %v1455_v47 = vld [vmem:[#allocation6 + $0x1070] sm:$0xff]  ;;  %v1458_v48 = vld [vmem:[#allocation6 + $0x1088] sm:$0xff] }
 0x139   :  { %v1460_v50 = vld [vmem:[#allocation6 + $0x1098] sm:$0xff]  ;;  %v1483_v36 = vld [vmem:[#allocation6 + $0x1150] sm:$0xff] }
 0x13a   :  { %7400 = vmatpush1.bf16.msra.mxu0 %v7399_v59  ;;  %v999_v59 = vld [vmem:[#allocation6 + $0xf60] sm:$0xff] }
 0x13b   :  { %7528 = vmatpush1.bf16.msra.mxu1 %v7527_v60  ;;  %7402 = vmatprep.subr.bf16.mxu0 %v7401_v61  ;;  %v997_v60 = vld [vmem:[#allocation6 + $0xf50] sm:$0xff]  ;;  %v7549_v61 = vpack.c.bf16 %v1002_v54, %v998_v53  ;;  %v7423_v3 = vpack.c.bf16 %v999_v59, %v995_v58  ;;  %v1461_v58 = vld [vmem:[#allocation6 + $0x10a0] sm:$0xff] }
 0x13c   :  { %7530 = vmatprep.subr.bf16.mxu1 %v7529_v1  ;;  %v1006_v1 = vld [vmem:[#allocation6 + $0xf98] sm:$0xff]  ;;  %v7551_v4 = vpack.c.bf16 %v1001_v62, %v997_v60  ;;  %v752_v54 = vld [vmem:[#allocation3 + $0xb0] sm:$0xff]  ;;  %v7697_v60 = vpack.c.bf16 %v1464_v51, %v1460_v50  ;;  %v1466_v62 = vld [vmem:[#allocation6 + $0x10c8] sm:$0xff] }
 0x13d   :  { %v1459_v59 = vld [vmem:[#allocation6 + $0x1090] sm:$0xff]  ;;  %v1498_v51 = vld [vmem:[#allocation6 + $0x11c8] sm:$0xff] }
 0x13e   :  { %7404 = vmatpush1.bf16.msra.mxu0 %v7403_v7  ;;  %v1007_v7 = vld [vmem:[#allocation6 + $0xfa0] sm:$0xff]  ;;  %v1495_v50 = vld [vmem:[#allocation6 + $0x11b0] sm:$0xff] }
 0x13f   :  { %7532 = vmatpush1.bf16.msra.mxu1 %v7531_v8  ;;  %7406 = vmatprep.subr.bf16.mxu0 %v7405_v9  ;;  %v1005_v8 = vld [vmem:[#allocation6 + $0xf90] sm:$0xff]  ;;  %v7553_v9 = vpack.c.bf16 %v1010_v2, %v1006_v1  ;;  %v7427_v15 = vpack.c.bf16 %v1007_v7, %v1003_v6  ;;  %v1472_v1 = vld [vmem:[#allocation6 + $0x10f8] sm:$0xff]  ;;  %v7573_v6 = vpack.c.bf16 %v1470_v63, %v1466_v62  ;;  %v1465_v7 = vld [vmem:[#allocation6 + $0x10c0] sm:$0xff] }
 0x140   :  { %7534 = vmatprep.subr.bf16.mxu1 %v7533_v13  ;;  %v1014_v13 = vld [vmem:[#allocation6 + $0xfd8] sm:$0xff]  ;;  %v7555_v16 = vpack.c.bf16 %v1009_v10, %v1005_v8  ;;  %v1469_v8 = vld [vmem:[#allocation6 + $0x10e0] sm:$0xff]  ;;  %v7701_v10 = vpack.c.bf16 %v1472_v1, %v1468_v0  ;;  %v1503_v62 = vld [vmem:[#allocation6 + $0x11f0] sm:$0xff] }
 0x141   :  { %v757_v2 = vld [vmem:[#allocation3 + $0xd8] sm:$0xff]  ;;  %v1506_v63 = vld [vmem:[#allocation6 + $0x1208] sm:$0xff] }
 0x142   :  { %7408 = vmatpush1.bf16.msra.mxu0 %v7407_v19  ;;  %v1015_v19 = vld [vmem:[#allocation6 + $0xfe0] sm:$0xff]  ;;  %v1510_v0 = vld [vmem:[#allocation6 + $0x1228] sm:$0xff]  ;;  %v1508_v1 = vld [vmem:[#allocation6 + $0x1218] sm:$0xff] }
 0x143   :  { %7536 = vmatpush1.bf16.msra.mxu1 %v7535_v20  ;;  %7410 = vmatprep.subr.bf16.mxu0 %v7409_v21  ;;  %v1013_v20 = vld [vmem:[#allocation6 + $0xfd0] sm:$0xff]  ;;  %v7557_v21 = vpack.c.bf16 %v1018_v14, %v1014_v13  ;;  %v7431_v27 = vpack.c.bf16 %v1015_v19, %v1011_v18  ;;  %v1478_v13 = vld [vmem:[#allocation6 + $0x1128] sm:$0xff]  ;;  %v1476_v14 = vld [vmem:[#allocation6 + $0x1118] sm:$0xff] }
 0x144   :  { %7538 = vmatprep.subr.bf16.mxu1 %v7537_v25  ;;  %v1444_v25 = vld [vmem:[#allocation6 + $0x1018] sm:$0xff]  ;;  %v7559_v28 = vpack.c.bf16 %v1017_v22, %v1013_v20  ;;  %v760_v18 = vld [vmem:[#allocation3 + $0xf0] sm:$0xff]  ;;  %v7577_v20 = vpack.c.bf16 %v1478_v13, %v1474_v12  ;;  %v1477_v22 = vld [vmem:[#allocation6 + $0x1120] sm:$0xff] }
 0x145   :  { %v1518_v12 = vld [vmem:[#allocation6 + $0x1268] sm:$0xff]  ;;  %v1516_v13 = vld [vmem:[#allocation6 + $0x1258] sm:$0xff] }
 0x146   :  { %7412 = vmatpush1.bf16.msra.mxu0 %v7411_v31  ;;  %v1445_v31 = vld [vmem:[#allocation6 + $0x1020] sm:$0xff] }
 0x147   :  { %7540 = vmatpush1.bf16.msra.mxu1 %v7539_v32  ;;  %7414 = vmatprep.subr.bf16.mxu0 %v7413_v33  ;;  %v1443_v32 = vld [vmem:[#allocation6 + $0x1010] sm:$0xff]  ;;  %v7689_v33 = vpack.c.bf16 %v1448_v26, %v1444_v25  ;;  %v7563_v40 = vpack.c.bf16 %v1445_v31, %v1441_v30  ;;  %v1482_v26 = vld [vmem:[#allocation6 + $0x1148] sm:$0xff] }
 0x148   :  { %7542 = vmatprep.subr.bf16.mxu1 %v7541_v37  ;;  %v1452_v37 = vld [vmem:[#allocation6 + $0x1058] sm:$0xff]  ;;  %v7691_v41 = vpack.c.bf16 %v1447_v34, %v1443_v32  ;;  %v1479_v25 = vld [vmem:[#allocation6 + $0x1130] sm:$0xff]  ;;  %v1425_v30 = vld [vmem:[#allocation3 + $0x108] sm:$0xff] }
 0x149   :  { %v7693_v46 = vpack.c.bf16 %v1456_v38, %v1452_v37  ;;  %v7707_v32 = vpack.c.bf16 %v1479_v25, %v1475_v23  ;;  %v1481_v34 = vld [vmem:[#allocation6 + $0x1140] sm:$0xff]  ;;  %v1487_v38 = vld [vmem:[#allocation6 + $0x1170] sm:$0xff]  ;;  %v1522_v23 = vld [vmem:[#allocation6 + $0x1288] sm:$0xff] }
 0x14a   :  { %7416 = vmatpush1.bf16.msra.mxu0 %v7415_v43  ;;  %v1449_v43 = vld [vmem:[#allocation6 + $0x1040] sm:$0xff]  ;;  %v1524_v25 = vld [vmem:[#allocation6 + $0x1298] sm:$0xff] }
 0x14b   :  { %7544 = vmatpush1.bf16.msra.mxu1 %v7543_v44  ;;  %7418 = vmatprep.subr.bf16.mxu0 %v7417_v45  ;;  %v1453_v44 = vld [vmem:[#allocation6 + $0x1060] sm:$0xff]  ;;  %v1451_v45 = vld [vmem:[#allocation6 + $0x1050] sm:$0xff] }
 0x14c   :  { %7546 = vmatprep.subr.bf16.mxu1 %v7545_v49  ;;  %v1462_v49 = vld [vmem:[#allocation6 + $0x10a8] sm:$0xff]  ;;  %v7567_v53 = vpack.c.bf16 %v1453_v44, %v1449_v43  ;;  %v7583_v43 = vpack.c.bf16 %v1485_v35, %v1481_v34  ;;  %v7711_v44 = vpack.c.bf16 %v1487_v38, %v1483_v36  ;;  %v1527_v34 = vld [vmem:[#allocation6 + $0x12b0] sm:$0xff]  ;;  %v1536_v38 = vld [vmem:[#allocation6 + $0x12f8] sm:$0xff] }
 0x14d   :  { %v1530_v35 = vld [vmem:[#allocation6 + $0x12c8] sm:$0xff] }
 0x14e   :  { %7420 = vmatpush1.bf16.msra.mxu0 %v7419_v55  ;;  %v7695_v55 = vpack.c.bf16 %v1455_v47, %v1451_v45  ;;  %v1493_v47 = vld [vmem:[#allocation6 + $0x11a0] sm:$0xff]  ;;  %v1534_v36 = vld [vmem:[#allocation6 + $0x12e8] sm:$0xff] }
 0x14f   :  { %7548 = vmatpush1.bf16.msra.mxu1 %v7547_v56  ;;  %7422 = vmatprep.subr.bf16.mxu0 %v7421_v57  ;;  %v7569_v56 = vpack.c.bf16 %v1462_v49, %v1458_v48  ;;  %v1457_v57 = vld [vmem:[#allocation6 + $0x1080] sm:$0xff]  ;;  %v1491_v48 = vld [vmem:[#allocation6 + $0x1190] sm:$0xff] }
 0x150   :  { %7550 = vmatprep.subr.bf16.mxu1 %v7549_v61  ;;  %v1463_v61 = vld [vmem:[#allocation6 + $0x10b0] sm:$0xff] }
 0x152   :  { %7424 = vmatpush1.bf16.msra.mxu0 %v7423_v3  ;;  %v7571_v3 = vpack.c.bf16 %v1461_v58, %v1457_v57  ;;  %v1497_v58 = vld [vmem:[#allocation6 + $0x11c0] sm:$0xff] }
 0x153   :  { %7552 = vmatpush1.bf16.msra.mxu1 %v7551_v4  ;;  %7426 = vmatprep.subr.bf16.mxu0 %v7425_v5  ;;  %v756_v4 = vld [vmem:[#allocation3 + $0xd0] sm:$0xff]  ;;  %v7699_v5 = vpack.c.bf16 %v1463_v61, %v1459_v59  ;;  %v1501_v59 = vld [vmem:[#allocation6 + $0x11e0] sm:$0xff] }
 0x154   :  { %7554 = vmatprep.subr.bf16.mxu1 %v7553_v9  ;;  %v1467_v9 = vld [vmem:[#allocation6 + $0x10d0] sm:$0xff] }
 0x155   :  { %v7703_v19 = vpack.c.bf16 %v1471_v11, %v1467_v9  ;;  %v1514_v11 = vld [vmem:[#allocation6 + $0x1248] sm:$0xff] }
 0x156   :  { %7428 = vmatpush1.bf16.msra.mxu0 %v7427_v15  ;;  %v1480_v15 = vld [vmem:[#allocation6 + $0x1138] sm:$0xff] }
 0x157   :  { %7556 = vmatpush1.bf16.msra.mxu1 %v7555_v16  ;;  %7430 = vmatprep.subr.bf16.mxu0 %v7429_v17  ;;  %v761_v16 = vld [vmem:[#allocation3 + $0xf8] sm:$0xff]  ;;  %v7575_v17 = vpack.c.bf16 %v1469_v8, %v1465_v7  ;;  %v7705_v24 = vpack.c.bf16 %v1480_v15, %v1476_v14  ;;  %v1509_v7 = vld [vmem:[#allocation6 + $0x1220] sm:$0xff]  ;;  %v1507_v8 = vld [vmem:[#allocation6 + $0x1210] sm:$0xff] }
 0x158   :  { %7558 = vmatprep.subr.bf16.mxu1 %v7557_v21  ;;  %v1473_v21 = vld [vmem:[#allocation6 + $0x1100] sm:$0xff]  ;;  %v1520_v14 = vld [vmem:[#allocation6 + $0x1278] sm:$0xff] }
 0x159   :  { %v7579_v31 = vpack.c.bf16 %v1477_v22, %v1473_v21  ;;  %v7725_v21 = vpack.c.bf16 %v1520_v14, %v1516_v13  ;;  %v1519_v22 = vld [vmem:[#allocation6 + $0x1270] sm:$0xff]  ;;  %v1553_v14 = vld [vmem:[#allocation6 + $0x1380] sm:$0xff] }
 0x15a   :  { %7432 = vmatpush1.bf16.msra.mxu0 %v7431_v27  ;;  %v1486_v27 = vld [vmem:[#allocation6 + $0x1168] sm:$0xff] }
 0x15b   :  { %7560 = vmatpush1.bf16.msra.mxu1 %v7559_v28  ;;  %7562 = vmatprep.subr.bf16.mxu0 %v7561_v29  ;;  %v1484_v28 = vld [vmem:[#allocation6 + $0x1158] sm:$0xff] }
 0x15c   :  { %7690 = vmatprep.subr.bf16.mxu1 %v7689_v33  ;;  %v1488_v29 = vld [vmem:[#allocation6 + $0x1178] sm:$0xff]  ;;  %v7581_v33 = vpack.c.bf16 %v1486_v27, %v1482_v26 }
 0x15d   :  { %1173 = vmatmul.mubr.f32.vlgmr.msra.gmra.mrb[0].mxu0 %v748_v39  ;;  %v7709_v37 = vpack.c.bf16 %v1488_v29, %v1484_v28  ;;  %v1528_v26 = vld [vmem:[#allocation6 + $0x12b8] sm:$0xff] }
 0x15e   :  { %1351 = vmatmul.mubr.f32.vlgmr.msra.gmra.mrb[0].mxu1 %v748_v39  ;;  %7564 = vmatpush1.bf16.msra.mxu0 %v7563_v40  ;;  %v1490_v39 = vld [vmem:[#allocation6 + $0x1188] sm:$0xff] }
 0x15f   :  { %7692 = vmatpush1.bf16.msra.mxu1 %v7691_v41  ;;  %7566 = vmatprep.subr.bf16.mxu0 %v7565_v42  ;;  %v1494_v40 = vld [vmem:[#allocation6 + $0x11a8] sm:$0xff]  ;;  %v1492_v41 = vld [vmem:[#allocation6 + $0x1198] sm:$0xff] }
 0x160   :  { %7694 = vmatprep.subr.bf16.mxu1 %v7693_v46  ;;  %1178 = vmatprep.mubr.f32.mxu0 %v753_v52  ;;  %v1496_v42 = vld [vmem:[#allocation6 + $0x11b8] sm:$0xff]  ;;  %v7585_v45 = vpack.c.bf16 %v1494_v40, %v1490_v39  ;;  %v1489_v46 = vld [vmem:[#allocation6 + $0x1180] sm:$0xff] }
 0x161   :  { %1356 = vmatprep.mubr.f32.mxu1 %v753_v52  ;;  %1179 = vmatmul.mubr.f32.gmra.mrb[2].mxu0 %v752_v54  ;;  %v7713_v49 = vpack.c.bf16 %v1496_v42, %v1492_v41  ;;  %v1502_v52 = vld [vmem:[#allocation6 + $0x11e8] sm:$0xff]  ;;  %v7605_v41 = vpack.c.bf16 %v1534_v36, %v1530_v35  ;;  %v1529_v42 = vld [vmem:[#allocation6 + $0x12c0] sm:$0xff] }
 0x162   :  { %7568 = vmatpush1.bf16.msra.mxu0 %v7567_v53  ;;  %1357 = vmatmul.mubr.f32.gmra.mrb[2].mxu1 %v752_v54  ;;  %v1500_v53 = vld [vmem:[#allocation6 + $0x11d8] sm:$0xff]  ;;  %v7589_v57 = vpack.c.bf16 %v1502_v52, %v1498_v51 }
 0x163   :  { %7696 = vmatpush1.bf16.msra.mxu1 %v7695_v55  ;;  %7570 = vmatprep.subr.bf16.mxu0 %v7569_v56  ;;  %v1504_v54 = vld [vmem:[#allocation6 + $0x11f8] sm:$0xff]  ;;  %v7587_v55 = vpack.c.bf16 %v1493_v47, %v1489_v46  ;;  %v7715_v56 = vpack.c.bf16 %v1495_v50, %v1491_v48  ;;  %v1535_v46 = vld [vmem:[#allocation6 + $0x12f0] sm:$0xff]  ;;  %v1538_v47 = vld [vmem:[#allocation6 + $0x1308] sm:$0xff] }
 0x164   :  { %7698 = vmatprep.subr.bf16.mxu1 %v7697_v60  ;;  %1184 = vmatprep.mubr.f32.mxu0 %v757_v2  ;;  %v1499_v60 = vld [vmem:[#allocation6 + $0x11d0] sm:$0xff]  ;;  %v7717_v61 = vpack.c.bf16 %v1504_v54, %v1500_v53  ;;  %v1542_v48 = vld [vmem:[#allocation6 + $0x1328] sm:$0xff]  ;;  %v1544_v50 = vld [vmem:[#allocation6 + $0x1338] sm:$0xff] }
 0x165   :  { %1362 = vmatprep.mubr.f32.mxu1 %v757_v2  ;;  %1185 = vmatmul.mubr.f32.gmra.mrb[4].mxu0 %v756_v4  ;;  %v1512_v2 = vld [vmem:[#allocation6 + $0x1238] sm:$0xff]  ;;  %v7609_v53 = vpack.c.bf16 %v1542_v48, %v1538_v47  ;;  %v1537_v54 = vld [vmem:[#allocation6 + $0x1300] sm:$0xff] }
 0x166   :  { %7572 = vmatpush1.bf16.msra.mxu0 %v7571_v3  ;;  %1363 = vmatmul.mubr.f32.gmra.mrb[4].mxu1 %v756_v4  ;;  %v7591_v3 = vpack.c.bf16 %v1501_v59, %v1497_v58  ;;  %v7719_v4 = vpack.c.bf16 %v1503_v62, %v1499_v60  ;;  %v7721_v9 = vpack.c.bf16 %v1512_v2, %v1508_v1  ;;  %v1543_v58 = vld [vmem:[#allocation6 + $0x1330] sm:$0xff]  ;;  %v1546_v59 = vld [vmem:[#allocation6 + $0x1348] sm:$0xff]  ;;  %v1552_v62 = vld [vmem:[#allocation6 + $0x1378] sm:$0xff] }
 0x167   :  { %7700 = vmatpush1.bf16.msra.mxu1 %v7699_v5  ;;  %7574 = vmatprep.subr.bf16.mxu0 %v7573_v6  ;;  %v7593_v5 = vpack.c.bf16 %v1510_v0, %v1506_v63  ;;  %v1505_v6 = vld [vmem:[#allocation6 + $0x1200] sm:$0xff]  ;;  %v1550_v60 = vld [vmem:[#allocation6 + $0x1368] sm:$0xff] }
 0x168   :  { %7702 = vmatprep.subr.bf16.mxu1 %v7701_v10  ;;  %1190 = vmatprep.mubr.f32.mxu0 %v761_v16  ;;  %v1511_v10 = vld [vmem:[#allocation6 + $0x1230] sm:$0xff]  ;;  %v7595_v15 = vpack.c.bf16 %v1509_v7, %v1505_v6  ;;  %v7613_v1 = vpack.c.bf16 %v1550_v60, %v1546_v59  ;;  %v1545_v2 = vld [vmem:[#allocation6 + $0x1340] sm:$0xff]  ;;  %v1554_v7 = vld [vmem:[#allocation6 + $0x1388] sm:$0xff] }
 0x169   :  { %1368 = vmatprep.mubr.f32.mxu1 %v761_v16  ;;  %1191 = vmatmul.mubr.f32.gmra.mrb[6].mxu0 %v760_v18  ;;  %v7723_v16 = vpack.c.bf16 %v1511_v10, %v1507_v8  ;;  %v1551_v6 = vld [vmem:[#allocation6 + $0x1370] sm:$0xff]  ;;  %v1558_v8 = vld [vmem:[#allocation6 + $0x13a8] sm:$0xff]  ;;  %v1560_v10 = vld [vmem:[#allocation6 + $0x13b8] sm:$0xff] }
 0x16a   :  { %7576 = vmatpush1.bf16.msra.mxu0 %v7575_v17  ;;  %1369 = vmatmul.mubr.f32.gmra.mrb[6].mxu1 %v760_v18  ;;  %v7597_v17 = vpack.c.bf16 %v1518_v12, %v1514_v11  ;;  %v1513_v18 = vld [vmem:[#allocation6 + $0x1240] sm:$0xff]  ;;  %v7617_v13 = vpack.c.bf16 %v1558_v8, %v1554_v7  ;;  %v1592_v59 = vld [vmem:[#allocation6 + $0x14b8] sm:$0xff]  ;;  %v1429_v60 = vld [vmem:[#allocation3 + $0x128] sm:$0xff] }
 0x16b   :  { %7704 = vmatpush1.bf16.msra.mxu1 %v7703_v19  ;;  %7578 = vmatprep.subr.bf16.mxu0 %v7577_v20  ;;  %v1517_v19 = vld [vmem:[#allocation6 + $0x1260] sm:$0xff]  ;;  %v1515_v20 = vld [vmem:[#allocation6 + $0x1250] sm:$0xff]  ;;  %v1598_v7 = vld [vmem:[#allocation6 + $0x14e8] sm:$0xff] }
 0x16c   :  { %7706 = vmatprep.subr.bf16.mxu1 %v7705_v24  ;;  %1761 = vmatprep.mubr.f32.mxu0 %v1425_v30  ;;  %v1526_v24 = vld [vmem:[#allocation6 + $0x12a8] sm:$0xff]  ;;  %v7599_v27 = vpack.c.bf16 %v1517_v19, %v1513_v18  ;;  %v7727_v28 = vpack.c.bf16 %v1519_v22, %v1515_v20  ;;  %v1559_v18 = vld [vmem:[#allocation6 + $0x13b0] sm:$0xff]  ;;  %v1568_v22 = vld [vmem:[#allocation6 + $0x13f8] sm:$0xff] }
 0x16d   :  { %1939 = vmatprep.mubr.f32.mxu1 %v1425_v30  ;;  %v7601_v29 = vpack.c.bf16 %v1526_v24, %v1522_v23  ;;  %v1521_v30 = vld [vmem:[#allocation6 + $0x1280] sm:$0xff]  ;;  %v1562_v19 = vld [vmem:[#allocation6 + $0x13c8] sm:$0xff]  ;;  %v1596_v8 = vld [vmem:[#allocation6 + $0x14d8] sm:$0xff] }
 0x16e   :  { %7580 = vmatpush1.bf16.msra.mxu0 %v7579_v31  ;;  %v1525_v31 = vld [vmem:[#allocation6 + $0x12a0] sm:$0xff]  ;;  %v1566_v20 = vld [vmem:[#allocation6 + $0x13e8] sm:$0xff] }
 0x16f   :  { %7708 = vmatpush1.bf16.msra.mxu1 %v7707_v32  ;;  %7582 = vmatprep.subr.bf16.mxu0 %v7581_v33  ;;  %v1523_v32 = vld [vmem:[#allocation6 + $0x1290] sm:$0xff]  ;;  %v7729_v33 = vpack.c.bf16 %v1528_v26, %v1524_v25  ;;  %v7603_v39 = vpack.c.bf16 %v1525_v31, %v1521_v30  ;;  %v7621_v25 = vpack.c.bf16 %v1566_v20, %v1562_v19  ;;  %v1561_v26 = vld [vmem:[#allocation6 + $0x13c0] sm:$0xff]  ;;  %v1570_v31 = vld [vmem:[#allocation6 + $0x1408] sm:$0xff] }
 0x170   :  { %7710 = vmatprep.subr.bf16.mxu1 %v7709_v37  ;;  %v1532_v37 = vld [vmem:[#allocation6 + $0x12d8] sm:$0xff]  ;;  %v7731_v40 = vpack.c.bf16 %v1527_v34, %v1523_v32  ;;  %v1567_v30 = vld [vmem:[#allocation6 + $0x13f0] sm:$0xff]  ;;  %v1574_v32 = vld [vmem:[#allocation6 + $0x1428] sm:$0xff] }
 0x171   :  { %v1576_v34 = vld [vmem:[#allocation6 + $0x1438] sm:$0xff]  ;;  %v1424_v47 = vld [vmem:[#allocation3 + $0x100] sm:$0xff]  ;;  %v1599_v19 = vld [vmem:[#allocation6 + $0x14f0] sm:$0xff] }
 0x172   :  { %7584 = vmatpush1.bf16.msra.mxu0 %v7583_v43  ;;  %v1533_v43 = vld [vmem:[#allocation6 + $0x12e0] sm:$0xff]  ;;  %v1602_v20 = vld [vmem:[#allocation6 + $0x1508] sm:$0xff] }
 0x173   :  { %7712 = vmatpush1.bf16.msra.mxu1 %v7711_v44  ;;  %7586 = vmatprep.subr.bf16.mxu0 %v7585_v45  ;;  %v1531_v44 = vld [vmem:[#allocation6 + $0x12d0] sm:$0xff]  ;;  %v7733_v45 = vpack.c.bf16 %v1536_v38, %v1532_v37  ;;  %v7607_v51 = vpack.c.bf16 %v1533_v43, %v1529_v42  ;;  %v7625_v37 = vpack.c.bf16 %v1574_v32, %v1570_v31  ;;  %v1569_v38 = vld [vmem:[#allocation6 + $0x1400] sm:$0xff]  ;;  %v1578_v43 = vld [vmem:[#allocation6 + $0x1448] sm:$0xff] }
 0x174   :  { %7714 = vmatprep.subr.bf16.mxu1 %v7713_v49  ;;  %v1540_v49 = vld [vmem:[#allocation6 + $0x1318] sm:$0xff]  ;;  %v7735_v52 = vpack.c.bf16 %v1535_v46, %v1531_v44  ;;  %v1575_v42 = vld [vmem:[#allocation6 + $0x1430] sm:$0xff]  ;;  %v1582_v44 = vld [vmem:[#allocation6 + $0x1468] sm:$0xff] }
 0x175   :  { %v1584_v46 = vld [vmem:[#allocation6 + $0x1478] sm:$0xff]  ;;  %v1603_v31 = vld [vmem:[#allocation6 + $0x1510] sm:$0xff] }
 0x176   :  { %7588 = vmatpush1.bf16.msra.mxu0 %v7587_v55  ;;  %v1541_v55 = vld [vmem:[#allocation6 + $0x1320] sm:$0xff] }
 0x177   :  { %7716 = vmatpush1.bf16.msra.mxu1 %v7715_v56  ;;  %7590 = vmatprep.subr.bf16.mxu0 %v7589_v57  ;;  %v1539_v56 = vld [vmem:[#allocation6 + $0x1310] sm:$0xff]  ;;  %v7737_v57 = vpack.c.bf16 %v1544_v50, %v1540_v49  ;;  %v7611_v63 = vpack.c.bf16 %v1541_v55, %v1537_v54  ;;  %v7629_v50 = vpack.c.bf16 %v1582_v44, %v1578_v43  ;;  %v1613_v43 = vld [vmem:[#allocation6 + $0x1560] sm:$0xff] }
 0x178   :  { %7718 = vmatprep.subr.bf16.mxu1 %v7717_v61  ;;  %v1548_v61 = vld [vmem:[#allocation6 + $0x1358] sm:$0xff]  ;;  %v7739_v0 = vpack.c.bf16 %v1543_v58, %v1539_v56  ;;  %v1583_v55 = vld [vmem:[#allocation6 + $0x1470] sm:$0xff]  ;;  %v1586_v56 = vld [vmem:[#allocation6 + $0x1488] sm:$0xff] }
 0x179   :  { %v1588_v58 = vld [vmem:[#allocation6 + $0x1498] sm:$0xff]  ;;  %v1611_v44 = vld [vmem:[#allocation6 + $0x1550] sm:$0xff] }
 0x17a   :  { %7592 = vmatpush1.bf16.msra.mxu0 %v7591_v3  ;;  %v1549_v3 = vld [vmem:[#allocation6 + $0x1360] sm:$0xff] }
 0x17b   :  { %7720 = vmatpush1.bf16.msra.mxu1 %v7719_v4  ;;  %7594 = vmatprep.subr.bf16.mxu0 %v7593_v5  ;;  %v1547_v4 = vld [vmem:[#allocation6 + $0x1350] sm:$0xff]  ;;  %v7741_v5 = vpack.c.bf16 %v1552_v62, %v1548_v61  ;;  %v7615_v11 = vpack.c.bf16 %v1549_v3, %v1545_v2  ;;  %v1428_v62 = vld [vmem:[#allocation3 + $0x120] sm:$0xff] }
 0x17c   :  { %7722 = vmatprep.subr.bf16.mxu1 %v7721_v9  ;;  %v1556_v9 = vld [vmem:[#allocation6 + $0x1398] sm:$0xff]  ;;  %v7743_v12 = vpack.c.bf16 %v1551_v6, %v1547_v4  ;;  %v1589_v2 = vld [vmem:[#allocation6 + $0x14a0] sm:$0xff]  ;;  %v1587_v3 = vld [vmem:[#allocation6 + $0x1490] sm:$0xff]  ;;  %v7761_v4 = vpack.c.bf16 %v1592_v59, %v1588_v58 }
 0x17d   :  { %v1594_v6 = vld [vmem:[#allocation6 + $0x14c8] sm:$0xff]  ;;  %v1623_v58 = vld [vmem:[#allocation6 + $0x15b0] sm:$0xff] }
 0x17e   :  { %7596 = vmatpush1.bf16.msra.mxu0 %v7595_v15  ;;  %v1557_v15 = vld [vmem:[#allocation6 + $0x13a0] sm:$0xff]  ;;  %v1626_v59 = vld [vmem:[#allocation6 + $0x15c8] sm:$0xff] }
 0x17f   :  { %7724 = vmatpush1.bf16.msra.mxu1 %v7723_v16  ;;  %7598 = vmatprep.subr.bf16.mxu0 %v7597_v17  ;;  %v1555_v16 = vld [vmem:[#allocation6 + $0x1390] sm:$0xff]  ;;  %v7745_v17 = vpack.c.bf16 %v1560_v10, %v1556_v9  ;;  %v7619_v23 = vpack.c.bf16 %v1557_v15, %v1553_v14  ;;  %v1600_v9 = vld [vmem:[#allocation6 + $0x14f8] sm:$0xff]  ;;  %v1433_v10 = vld [vmem:[#allocation3 + $0x148] sm:$0xff]  ;;  %v7637_v14 = vpack.c.bf16 %v1598_v7, %v1594_v6 }
 0x180   :  { %7726 = vmatprep.subr.bf16.mxu1 %v7725_v21  ;;  %v1564_v21 = vld [vmem:[#allocation6 + $0x13d8] sm:$0xff]  ;;  %v7747_v24 = vpack.c.bf16 %v1559_v18, %v1555_v16  ;;  %v1593_v15 = vld [vmem:[#allocation6 + $0x14c0] sm:$0xff]  ;;  %v7765_v18 = vpack.c.bf16 %v1600_v9, %v1596_v8  ;;  %v1631_v6 = vld [vmem:[#allocation6 + $0x15f0] sm:$0xff] }
 0x181   :  { %v1597_v16 = vld [vmem:[#allocation6 + $0x14e0] sm:$0xff]  ;;  %v1634_v7 = vld [vmem:[#allocation6 + $0x1608] sm:$0xff]  ;;  %v1636_v9 = vld [vmem:[#allocation6 + $0x1618] sm:$0xff] }
 0x182   :  { %7600 = vmatpush1.bf16.msra.mxu0 %v7599_v27  ;;  %v1565_v27 = vld [vmem:[#allocation6 + $0x13e0] sm:$0xff]  ;;  %v1638_v8 = vld [vmem:[#allocation6 + $0x1628] sm:$0xff] }
 0x183   :  { %7728 = vmatpush1.bf16.msra.mxu1 %v7727_v28  ;;  %7602 = vmatprep.subr.bf16.mxu0 %v7601_v29  ;;  %v1563_v28 = vld [vmem:[#allocation6 + $0x13d0] sm:$0xff]  ;;  %v7749_v29 = vpack.c.bf16 %v1568_v22, %v1564_v21  ;;  %v7623_v35 = vpack.c.bf16 %v1565_v27, %v1561_v26  ;;  %v1606_v21 = vld [vmem:[#allocation6 + $0x1528] sm:$0xff]  ;;  %v1604_v22 = vld [vmem:[#allocation6 + $0x1518] sm:$0xff] }
 0x184   :  { %7730 = vmatprep.subr.bf16.mxu1 %v7729_v33  ;;  %v1572_v33 = vld [vmem:[#allocation6 + $0x1418] sm:$0xff]  ;;  %v7751_v36 = vpack.c.bf16 %v1567_v30, %v1563_v28  ;;  %v1436_v26 = vld [vmem:[#allocation3 + $0x160] sm:$0xff]  ;;  %v7641_v28 = vpack.c.bf16 %v1606_v21, %v1602_v20  ;;  %v1646_v20 = vld [vmem:[#allocation6 + $0x1668] sm:$0xff] }
 0x185   :  { %v1605_v30 = vld [vmem:[#allocation6 + $0x1520] sm:$0xff]  ;;  %v1644_v21 = vld [vmem:[#allocation6 + $0x1658] sm:$0xff] }
 0x186   :  { %7604 = vmatpush1.bf16.msra.mxu0 %v7603_v39  ;;  %v1573_v39 = vld [vmem:[#allocation6 + $0x1420] sm:$0xff] }
 0x187   :  { %7732 = vmatpush1.bf16.msra.mxu1 %v7731_v40  ;;  %7606 = vmatprep.subr.bf16.mxu0 %v7605_v41  ;;  %v1571_v40 = vld [vmem:[#allocation6 + $0x1410] sm:$0xff]  ;;  %v7753_v41 = vpack.c.bf16 %v1576_v34, %v1572_v33  ;;  %v7627_v48 = vpack.c.bf16 %v1573_v39, %v1569_v38  ;;  %v1610_v34 = vld [vmem:[#allocation6 + $0x1548] sm:$0xff]  ;;  %v1427_v38 = vld [vmem:[#allocation3 + $0x118] sm:$0xff] }
 0x188   :  { %7734 = vmatprep.subr.bf16.mxu1 %v7733_v45  ;;  %v1580_v45 = vld [vmem:[#allocation6 + $0x1458] sm:$0xff]  ;;  %v7755_v49 = vpack.c.bf16 %v1575_v42, %v1571_v40  ;;  %v1607_v33 = vld [vmem:[#allocation6 + $0x1530] sm:$0xff]  ;;  %v1609_v42 = vld [vmem:[#allocation6 + $0x1540] sm:$0xff] }
 0x189   :  { %v7757_v54 = vpack.c.bf16 %v1584_v46, %v1580_v45  ;;  %v7771_v40 = vpack.c.bf16 %v1607_v33, %v1603_v31  ;;  %v1615_v46 = vld [vmem:[#allocation6 + $0x1570] sm:$0xff]  ;;  %v1650_v31 = vld [vmem:[#allocation6 + $0x1688] sm:$0xff]  ;;  %v1652_v33 = vld [vmem:[#allocation6 + $0x1698] sm:$0xff] }
 0x18a   :  { %7608 = vmatpush1.bf16.msra.mxu0 %v7607_v51  ;;  %v1577_v51 = vld [vmem:[#allocation6 + $0x1440] sm:$0xff] }
 0x18b   :  { %7736 = vmatpush1.bf16.msra.mxu1 %v7735_v52  ;;  %7610 = vmatprep.subr.bf16.mxu0 %v7609_v53  ;;  %v1581_v52 = vld [vmem:[#allocation6 + $0x1460] sm:$0xff]  ;;  %v1579_v53 = vld [vmem:[#allocation6 + $0x1450] sm:$0xff] }
 0x18c   :  { %7738 = vmatprep.subr.bf16.mxu1 %v7737_v57  ;;  %v1590_v57 = vld [vmem:[#allocation6 + $0x14a8] sm:$0xff]  ;;  %v7631_v61 = vpack.c.bf16 %v1581_v52, %v1577_v51  ;;  %v7647_v51 = vpack.c.bf16 %v1613_v43, %v1609_v42  ;;  %v7775_v52 = vpack.c.bf16 %v1615_v46, %v1611_v44  ;;  %v1655_v42 = vld [vmem:[#allocation6 + $0x16b0] sm:$0xff]  ;;  %v1664_v46 = vld [vmem:[#allocation6 + $0x16f8] sm:$0xff] }
 0x18d   :  { %v1658_v43 = vld [vmem:[#allocation6 + $0x16c8] sm:$0xff] }
 0x18e   :  { %7612 = vmatpush1.bf16.msra.mxu0 %v7611_v63  ;;  %v7759_v63 = vpack.c.bf16 %v1583_v55, %v1579_v53  ;;  %v1621_v55 = vld [vmem:[#allocation6 + $0x15a0] sm:$0xff]  ;;  %v1662_v44 = vld [vmem:[#allocation6 + $0x16e8] sm:$0xff] }
 0x18f   :  { %7740 = vmatpush1.bf16.msra.mxu1 %v7739_v0  ;;  %7614 = vmatprep.subr.bf16.mxu0 %v7613_v1  ;;  %v7633_v0 = vpack.c.bf16 %v1590_v57, %v1586_v56  ;;  %v1585_v1 = vld [vmem:[#allocation6 + $0x1480] sm:$0xff]  ;;  %v1619_v56 = vld [vmem:[#allocation6 + $0x1590] sm:$0xff] }
 0x190   :  { %7742 = vmatprep.subr.bf16.mxu1 %v7741_v5  ;;  %v1591_v5 = vld [vmem:[#allocation6 + $0x14b0] sm:$0xff] }
 0x192   :  { %7616 = vmatpush1.bf16.msra.mxu0 %v7615_v11  ;;  %v7635_v11 = vpack.c.bf16 %v1589_v2, %v1585_v1  ;;  %v1625_v2 = vld [vmem:[#allocation6 + $0x15c0] sm:$0xff] }
 0x193   :  { %7744 = vmatpush1.bf16.msra.mxu1 %v7743_v12  ;;  %7618 = vmatprep.subr.bf16.mxu0 %v7617_v13  ;;  %v1432_v12 = vld [vmem:[#allocation3 + $0x140] sm:$0xff]  ;;  %v7763_v13 = vpack.c.bf16 %v1591_v5, %v1587_v3 }
 0x194   :  { %7746 = vmatprep.subr.bf16.mxu1 %v7745_v17  ;;  %v1595_v17 = vld [vmem:[#allocation6 + $0x14d0] sm:$0xff]  ;;  %v1629_v3 = vld [vmem:[#allocation6 + $0x15e0] sm:$0xff] }
 0x195   :  { %v7767_v27 = vpack.c.bf16 %v1599_v19, %v1595_v17  ;;  %v1642_v19 = vld [vmem:[#allocation6 + $0x1648] sm:$0xff] }
 0x196   :  { %7620 = vmatpush1.bf16.msra.mxu0 %v7619_v23  ;;  %v1608_v23 = vld [vmem:[#allocation6 + $0x1538] sm:$0xff] }
 0x197   :  { %7748 = vmatpush1.bf16.msra.mxu1 %v7747_v24  ;;  %7622 = vmatprep.subr.bf16.mxu0 %v7621_v25  ;;  %v1437_v24 = vld [vmem:[#allocation3 + $0x168] sm:$0xff]  ;;  %v7639_v25 = vpack.c.bf16 %v1597_v16, %v1593_v15  ;;  %v7769_v32 = vpack.c.bf16 %v1608_v23, %v1604_v22  ;;  %v1637_v15 = vld [vmem:[#allocation6 + $0x1620] sm:$0xff]  ;;  %v1635_v16 = vld [vmem:[#allocation6 + $0x1610] sm:$0xff] }
 0x198   :  { %7750 = vmatprep.subr.bf16.mxu1 %v7749_v29  ;;  %v1601_v29 = vld [vmem:[#allocation6 + $0x1500] sm:$0xff]  ;;  %v1648_v22 = vld [vmem:[#allocation6 + $0x1678] sm:$0xff] }
 0x199   :  { %v7643_v39 = vpack.c.bf16 %v1605_v30, %v1601_v29  ;;  %v7789_v29 = vpack.c.bf16 %v1648_v22, %v1644_v21  ;;  %v1647_v30 = vld [vmem:[#allocation6 + $0x1670] sm:$0xff]  ;;  %v1681_v22 = vld [vmem:[#allocation6 + $0x1780] sm:$0xff] }
 0x19a   :  { %7624 = vmatpush1.bf16.msra.mxu0 %v7623_v35  ;;  %v1614_v35 = vld [vmem:[#allocation6 + $0x1568] sm:$0xff] }
 0x19b   :  { %7752 = vmatpush1.bf16.msra.mxu1 %v7751_v36  ;;  %7626 = vmatprep.subr.bf16.mxu0 %v7625_v37  ;;  %v1612_v36 = vld [vmem:[#allocation6 + $0x1558] sm:$0xff] }
 0x19c   :  { %7754 = vmatprep.subr.bf16.mxu1 %v7753_v41  ;;  %v1616_v37 = vld [vmem:[#allocation6 + $0x1578] sm:$0xff]  ;;  %v7645_v41 = vpack.c.bf16 %v1614_v35, %v1610_v34 }
 0x19d   :  { %1762 = vmatmul.mubr.f32.vlgmr.msra.gmra.mrb[0].mxu0 %v1424_v47  ;;  %v7773_v45 = vpack.c.bf16 %v1616_v37, %v1612_v36  ;;  %v1656_v34 = vld [vmem:[#allocation6 + $0x16b8] sm:$0xff] }
 0x19e   :  { %7628 = vmatpush1.bf16.msra.mxu0 %v7627_v48  ;;  %1940 = vmatmul.mubr.f32.vlgmr.msra.gmra.mrb[0].mxu1 %v1424_v47  ;;  %v1618_v47 = vld [vmem:[#allocation6 + $0x1588] sm:$0xff] }
 0x19f   :  { %7756 = vmatpush1.bf16.msra.mxu1 %v7755_v49  ;;  %7630 = vmatprep.subr.bf16.mxu0 %v7629_v50  ;;  %v1622_v48 = vld [vmem:[#allocation6 + $0x15a8] sm:$0xff]  ;;  %v1620_v49 = vld [vmem:[#allocation6 + $0x1598] sm:$0xff] }
 0x1a0   :  { %7758 = vmatprep.subr.bf16.mxu1 %v7757_v54  ;;  %1767 = vmatprep.mubr.f32.mxu0 %v1429_v60  ;;  %v1624_v50 = vld [vmem:[#allocation6 + $0x15b8] sm:$0xff]  ;;  %v7649_v53 = vpack.c.bf16 %v1622_v48, %v1618_v47  ;;  %v1617_v54 = vld [vmem:[#allocation6 + $0x1580] sm:$0xff] }
 0x1a1   :  { %1945 = vmatprep.mubr.f32.mxu1 %v1429_v60  ;;  %1768 = vmatmul.mubr.f32.gmra.mrb[2].mxu0 %v1428_v62  ;;  %v7777_v57 = vpack.c.bf16 %v1624_v50, %v1620_v49  ;;  %v1630_v60 = vld [vmem:[#allocation6 + $0x15e8] sm:$0xff]  ;;  %v7669_v49 = vpack.c.bf16 %v1662_v44, %v1658_v43  ;;  %v1657_v50 = vld [vmem:[#allocation6 + $0x16c0] sm:$0xff] }
 0x1a2   :  { %7632 = vmatpush1.bf16.msra.mxu0 %v7631_v61  ;;  %1946 = vmatmul.mubr.f32.gmra.mrb[2].mxu1 %v1428_v62  ;;  %v1628_v61 = vld [vmem:[#allocation6 + $0x15d8] sm:$0xff]  ;;  %v7653_v1 = vpack.c.bf16 %v1630_v60, %v1626_v59 }
 0x1a3   :  { %7760 = vmatpush1.bf16.msra.mxu1 %v7759_v63  ;;  %7634 = vmatprep.subr.bf16.mxu0 %v7633_v0  ;;  %v1632_v62 = vld [vmem:[#allocation6 + $0x15f8] sm:$0xff]  ;;  %v7651_v63 = vpack.c.bf16 %v1621_v55, %v1617_v54  ;;  %v7779_v0 = vpack.c.bf16 %v1623_v58, %v1619_v56  ;;  %v1663_v54 = vld [vmem:[#allocation6 + $0x16f0] sm:$0xff]  ;;  %v1666_v55 = vld [vmem:[#allocation6 + $0x1708] sm:$0xff] }
 0x1a4   :  { %7762 = vmatprep.subr.bf16.mxu1 %v7761_v4  ;;  %1773 = vmatprep.mubr.f32.mxu0 %v1433_v10  ;;  %v1627_v4 = vld [vmem:[#allocation6 + $0x15d0] sm:$0xff]  ;;  %v7781_v5 = vpack.c.bf16 %v1632_v62, %v1628_v61  ;;  %v1670_v56 = vld [vmem:[#allocation6 + $0x1728] sm:$0xff]  ;;  %v1672_v58 = vld [vmem:[#allocation6 + $0x1738] sm:$0xff] }
 0x1a5   :  { %1951 = vmatprep.mubr.f32.mxu1 %v1433_v10  ;;  %1774 = vmatmul.mubr.f32.gmra.mrb[4].mxu0 %v1432_v12  ;;  %v1640_v10 = vld [vmem:[#allocation6 + $0x1638] sm:$0xff]  ;;  %v7673_v61 = vpack.c.bf16 %v1670_v56, %v1666_v55  ;;  %v1665_v62 = vld [vmem:[#allocation6 + $0x1700] sm:$0xff]  ;;  %v1426_v55 = vld [vmem:[#allocation3 + $0x110] sm:$0xff] }
 0x1a6   :  { %7636 = vmatpush1.bf16.msra.mxu0 %v7635_v11  ;;  %1952 = vmatmul.mubr.f32.gmra.mrb[4].mxu1 %v1432_v12  ;;  %v7655_v11 = vpack.c.bf16 %v1629_v3, %v1625_v2  ;;  %v7783_v12 = vpack.c.bf16 %v1631_v6, %v1627_v4  ;;  %v7785_v17 = vpack.c.bf16 %v1640_v10, %v1636_v9  ;;  %v1671_v2 = vld [vmem:[#allocation6 + $0x1730] sm:$0xff]  ;;  %v1674_v3 = vld [vmem:[#allocation6 + $0x1748] sm:$0xff]  ;;  %v1680_v6 = vld [vmem:[#allocation6 + $0x1778] sm:$0xff] }
 0x1a7   :  { %7764 = vmatpush1.bf16.msra.mxu1 %v7763_v13  ;;  %7638 = vmatprep.subr.bf16.mxu0 %v7637_v14  ;;  %v7657_v13 = vpack.c.bf16 %v1638_v8, %v1634_v7  ;;  %v1633_v14 = vld [vmem:[#allocation6 + $0x1600] sm:$0xff]  ;;  %v1678_v4 = vld [vmem:[#allocation6 + $0x1768] sm:$0xff] }
 0x1a8   :  { %7766 = vmatprep.subr.bf16.mxu1 %v7765_v18  ;;  %1779 = vmatprep.mubr.f32.mxu0 %v1437_v24  ;;  %v1639_v18 = vld [vmem:[#allocation6 + $0x1630] sm:$0xff]  ;;  %v7659_v23 = vpack.c.bf16 %v1637_v15, %v1633_v14  ;;  %v7677_v9 = vpack.c.bf16 %v1678_v4, %v1674_v3  ;;  %v1673_v10 = vld [vmem:[#allocation6 + $0x1740] sm:$0xff]  ;;  %v1682_v15 = vld [vmem:[#allocation6 + $0x1788] sm:$0xff] }
 0x1a9   :  { %1957 = vmatprep.mubr.f32.mxu1 %v1437_v24  ;;  %1780 = vmatmul.mubr.f32.gmra.mrb[6].mxu0 %v1436_v26  ;;  %v7787_v24 = vpack.c.bf16 %v1639_v18, %v1635_v16  ;;  %v1679_v14 = vld [vmem:[#allocation6 + $0x1770] sm:$0xff]  ;;  %v1686_v16 = vld [vmem:[#allocation6 + $0x17a8] sm:$0xff]  ;;  %v1688_v18 = vld [vmem:[#allocation6 + $0x17b8] sm:$0xff] }
 0x1aa   :  { %7640 = vmatpush1.bf16.msra.mxu0 %v7639_v25  ;;  %1958 = vmatmul.mubr.f32.gmra.mrb[6].mxu1 %v1436_v26  ;;  %v7661_v25 = vpack.c.bf16 %v1646_v20, %v1642_v19  ;;  %v1641_v26 = vld [vmem:[#allocation6 + $0x1640] sm:$0xff]  ;;  %v7681_v21 = vpack.c.bf16 %v1686_v16, %v1682_v15  ;;  %v2142_v3 = vld [vmem:[#allocation6 + $0x18b8] sm:$0xff]  ;;  %v2148_v15 = vld [vmem:[#allocation6 + $0x18e8] sm:$0xff] }
 0x1ab   :  { %7768 = vmatpush1.bf16.msra.mxu1 %v7767_v27  ;;  %7642 = vmatprep.subr.bf16.mxu0 %v7641_v28  ;;  %v1645_v27 = vld [vmem:[#allocation6 + $0x1660] sm:$0xff]  ;;  %v1643_v28 = vld [vmem:[#allocation6 + $0x1650] sm:$0xff]  ;;  %v1431_v4 = vld [vmem:[#allocation3 + $0x138] sm:$0xff] }
 0x1ac   :  { %7770 = vmatprep.subr.bf16.mxu1 %v7769_v32  ;;  %1850 = vmatprep.mubr.f32.mxu0 %v1427_v38  ;;  %v1654_v32 = vld [vmem:[#allocation6 + $0x16a8] sm:$0xff]  ;;  %v7663_v35 = vpack.c.bf16 %v1645_v27, %v1641_v26  ;;  %v7791_v36 = vpack.c.bf16 %v1647_v30, %v1643_v28  ;;  %v1687_v26 = vld [vmem:[#allocation6 + $0x17b0] sm:$0xff]  ;;  %v1696_v30 = vld [vmem:[#allocation6 + $0x17f8] sm:$0xff] }
 0x1ad   :  { %2028 = vmatprep.mubr.f32.mxu1 %v1427_v38  ;;  %v7665_v37 = vpack.c.bf16 %v1654_v32, %v1650_v31  ;;  %v1649_v38 = vld [vmem:[#allocation6 + $0x1680] sm:$0xff]  ;;  %v1690_v27 = vld [vmem:[#allocation6 + $0x17c8] sm:$0xff]  ;;  %v2146_v16 = vld [vmem:[#allocation6 + $0x18d8] sm:$0xff] }
 0x1ae   :  { %7644 = vmatpush1.bf16.msra.mxu0 %v7643_v39  ;;  %v1653_v39 = vld [vmem:[#allocation6 + $0x16a0] sm:$0xff]  ;;  %v1694_v28 = vld [vmem:[#allocation6 + $0x17e8] sm:$0xff] }
 0x1af   :  { %7772 = vmatpush1.bf16.msra.mxu1 %v7771_v40  ;;  %7646 = vmatprep.subr.bf16.mxu0 %v7645_v41  ;;  %v1651_v40 = vld [vmem:[#allocation6 + $0x1690] sm:$0xff]  ;;  %v7793_v41 = vpack.c.bf16 %v1656_v34, %v1652_v33  ;;  %v7667_v47 = vpack.c.bf16 %v1653_v39, %v1649_v38  ;;  %v7685_v33 = vpack.c.bf16 %v1694_v28, %v1690_v27  ;;  %v1689_v34 = vld [vmem:[#allocation6 + $0x17c0] sm:$0xff]  ;;  %v2120_v39 = vld [vmem:[#allocation6 + $0x1808] sm:$0xff] }
 0x1b0   :  { %7774 = vmatprep.subr.bf16.mxu1 %v7773_v45  ;;  %v1660_v45 = vld [vmem:[#allocation6 + $0x16d8] sm:$0xff]  ;;  %v7795_v48 = vpack.c.bf16 %v1655_v42, %v1651_v40  ;;  %v1695_v38 = vld [vmem:[#allocation6 + $0x17f0] sm:$0xff]  ;;  %v2124_v40 = vld [vmem:[#allocation6 + $0x1828] sm:$0xff] }
 0x1b1   :  { %v2126_v42 = vld [vmem:[#allocation6 + $0x1838] sm:$0xff]  ;;  %v2149_v27 = vld [vmem:[#allocation6 + $0x18f0] sm:$0xff]  ;;  %v2152_v28 = vld [vmem:[#allocation6 + $0x1908] sm:$0xff] }
 0x1b2   :  { %7648 = vmatpush1.bf16.msra.mxu0 %v7647_v51  ;;  %v1661_v51 = vld [vmem:[#allocation6 + $0x16e0] sm:$0xff] }
 0x1b3   :  { %7776 = vmatpush1.bf16.msra.mxu1 %v7775_v52  ;;  %7650 = vmatprep.subr.bf16.mxu0 %v7649_v53  ;;  %v1659_v52 = vld [vmem:[#allocation6 + $0x16d0] sm:$0xff]  ;;  %v7797_v53 = vpack.c.bf16 %v1664_v46, %v1660_v45  ;;  %v7671_v59 = vpack.c.bf16 %v1661_v51, %v1657_v50  ;;  %v7817_v45 = vpack.c.bf16 %v2124_v40, %v2120_v39  ;;  %v2119_v46 = vld [vmem:[#allocation6 + $0x1800] sm:$0xff]  ;;  %v2128_v51 = vld [vmem:[#allocation6 + $0x1848] sm:$0xff] }
 0x1b4   :  { %7778 = vmatprep.subr.bf16.mxu1 %v7777_v57  ;;  %v1668_v57 = vld [vmem:[#allocation6 + $0x1718] sm:$0xff]  ;;  %v7799_v60 = vpack.c.bf16 %v1663_v54, %v1659_v52  ;;  %v2125_v50 = vld [vmem:[#allocation6 + $0x1830] sm:$0xff]  ;;  %v2132_v52 = vld [vmem:[#allocation6 + $0x1868] sm:$0xff] }
 0x1b5   :  { %v2134_v54 = vld [vmem:[#allocation6 + $0x1878] sm:$0xff]  ;;  %v2153_v39 = vld [vmem:[#allocation6 + $0x1910] sm:$0xff] }
 0x1b6   :  { %7652 = vmatpush1.bf16.msra.mxu0 %v7651_v63  ;;  %v1669_v63 = vld [vmem:[#allocation6 + $0x1720] sm:$0xff] }
 0x1b7   :  { %7780 = vmatpush1.bf16.msra.mxu1 %v7779_v0  ;;  %7654 = vmatprep.subr.bf16.mxu0 %v7653_v1  ;;  %v1667_v0 = vld [vmem:[#allocation6 + $0x1710] sm:$0xff]  ;;  %v7801_v1 = vpack.c.bf16 %v1672_v58, %v1668_v57  ;;  %v7675_v7 = vpack.c.bf16 %v1669_v63, %v1665_v62  ;;  %v7821_v58 = vpack.c.bf16 %v2132_v52, %v2128_v51  ;;  %v2163_v51 = vld [vmem:[#allocation6 + $0x1960] sm:$0xff] }
 0x1b8   :  { %7782 = vmatprep.subr.bf16.mxu1 %v7781_v5  ;;  %v1676_v5 = vld [vmem:[#allocation6 + $0x1758] sm:$0xff]  ;;  %v7803_v8 = vpack.c.bf16 %v1671_v2, %v1667_v0  ;;  %v2133_v63 = vld [vmem:[#allocation6 + $0x1870] sm:$0xff]  ;;  %v2136_v0 = vld [vmem:[#allocation6 + $0x1888] sm:$0xff] }
 0x1b9   :  { %v2138_v2 = vld [vmem:[#allocation6 + $0x1898] sm:$0xff]  ;;  %v2161_v52 = vld [vmem:[#allocation6 + $0x1950] sm:$0xff] }
 0x1ba   :  { %7656 = vmatpush1.bf16.msra.mxu0 %v7655_v11  ;;  %v1677_v11 = vld [vmem:[#allocation6 + $0x1760] sm:$0xff] }
 0x1bb   :  { %7784 = vmatpush1.bf16.msra.mxu1 %v7783_v12  ;;  %7658 = vmatprep.subr.bf16.mxu0 %v7657_v13  ;;  %v1675_v12 = vld [vmem:[#allocation6 + $0x1750] sm:$0xff]  ;;  %v7805_v13 = vpack.c.bf16 %v1680_v6, %v1676_v5  ;;  %v7679_v19 = vpack.c.bf16 %v1677_v11, %v1673_v10  ;;  %v2139_v10 = vld [vmem:[#allocation6 + $0x18a0] sm:$0xff] }
 0x1bc   :  { %7786 = vmatprep.subr.bf16.mxu1 %v7785_v17  ;;  %v1684_v17 = vld [vmem:[#allocation6 + $0x1798] sm:$0xff]  ;;  %v7807_v20 = vpack.c.bf16 %v1679_v14, %v1675_v12  ;;  %v1430_v6 = vld [vmem:[#allocation3 + $0x130] sm:$0xff]  ;;  %v7953_v12 = vpack.c.bf16 %v2142_v3, %v2138_v2  ;;  %v2144_v14 = vld [vmem:[#allocation6 + $0x18c8] sm:$0xff] }
 0x1bd   :  { %v2137_v11 = vld [vmem:[#allocation6 + $0x1890] sm:$0xff]  ;;  %v2176_v3 = vld [vmem:[#allocation6 + $0x19c8] sm:$0xff] }
 0x1be   :  { %7660 = vmatpush1.bf16.msra.mxu0 %v7659_v23  ;;  %v1685_v23 = vld [vmem:[#allocation6 + $0x17a0] sm:$0xff]  ;;  %v2173_v2 = vld [vmem:[#allocation6 + $0x19b0] sm:$0xff] }
 0x1bf   :  { %7788 = vmatpush1.bf16.msra.mxu1 %v7787_v24  ;;  %7662 = vmatprep.subr.bf16.mxu0 %v7661_v25  ;;  %v1683_v24 = vld [vmem:[#allocation6 + $0x1790] sm:$0xff]  ;;  %v7809_v25 = vpack.c.bf16 %v1688_v18, %v1684_v17  ;;  %v7683_v31 = vpack.c.bf16 %v1685_v23, %v1681_v22  ;;  %v2150_v17 = vld [vmem:[#allocation6 + $0x18f8] sm:$0xff]  ;;  %v7829_v22 = vpack.c.bf16 %v2148_v15, %v2144_v14  ;;  %v2143_v23 = vld [vmem:[#allocation6 + $0x18c0] sm:$0xff] }
 0x1c0   :  { %7790 = vmatprep.subr.bf16.mxu1 %v7789_v29  ;;  %v1692_v29 = vld [vmem:[#allocation6 + $0x17d8] sm:$0xff]  ;;  %v7811_v32 = vpack.c.bf16 %v1687_v26, %v1683_v24  ;;  %v2147_v24 = vld [vmem:[#allocation6 + $0x18e0] sm:$0xff]  ;;  %v7957_v26 = vpack.c.bf16 %v2150_v17, %v2146_v16  ;;  %v2181_v14 = vld [vmem:[#allocation6 + $0x19f0] sm:$0xff] }
 0x1c1   :  { %v1435_v18 = vld [vmem:[#allocation3 + $0x158] sm:$0xff]  ;;  %v2184_v15 = vld [vmem:[#allocation6 + $0x1a08] sm:$0xff] }
 0x1c2   :  { %7664 = vmatpush1.bf16.msra.mxu0 %v7663_v35  ;;  %v1693_v35 = vld [vmem:[#allocation6 + $0x17e0] sm:$0xff]  ;;  %v2188_v16 = vld [vmem:[#allocation6 + $0x1a28] sm:$0xff]  ;;  %v2186_v17 = vld [vmem:[#allocation6 + $0x1a18] sm:$0xff] }
 0x1c3   :  { %7792 = vmatpush1.bf16.msra.mxu1 %v7791_v36  ;;  %7666 = vmatprep.subr.bf16.mxu0 %v7665_v37  ;;  %v1691_v36 = vld [vmem:[#allocation6 + $0x17d0] sm:$0xff]  ;;  %v7813_v37 = vpack.c.bf16 %v1696_v30, %v1692_v29  ;;  %v7687_v43 = vpack.c.bf16 %v1693_v35, %v1689_v34  ;;  %v2156_v29 = vld [vmem:[#allocation6 + $0x1928] sm:$0xff]  ;;  %v2154_v30 = vld [vmem:[#allocation6 + $0x1918] sm:$0xff] }
 0x1c4   :  { %7794 = vmatprep.subr.bf16.mxu1 %v7793_v41  ;;  %v2122_v41 = vld [vmem:[#allocation6 + $0x1818] sm:$0xff]  ;;  %v7815_v44 = vpack.c.bf16 %v1695_v38, %v1691_v36  ;;  %v1438_v34 = vld [vmem:[#allocation3 + $0x170] sm:$0xff]  ;;  %v7833_v36 = vpack.c.bf16 %v2156_v29, %v2152_v28  ;;  %v2155_v38 = vld [vmem:[#allocation6 + $0x1920] sm:$0xff] }
 0x1c5   :  { %v2196_v28 = vld [vmem:[#allocation6 + $0x1a68] sm:$0xff]  ;;  %v2194_v29 = vld [vmem:[#allocation6 + $0x1a58] sm:$0xff] }
 0x1c6   :  { %7668 = vmatpush1.bf16.msra.mxu0 %v7667_v47  ;;  %v2123_v47 = vld [vmem:[#allocation6 + $0x1820] sm:$0xff] }
 0x1c7   :  { %7796 = vmatpush1.bf16.msra.mxu1 %v7795_v48  ;;  %7670 = vmatprep.subr.bf16.mxu0 %v7669_v49  ;;  %v2121_v48 = vld [vmem:[#allocation6 + $0x1810] sm:$0xff]  ;;  %v7945_v49 = vpack.c.bf16 %v2126_v42, %v2122_v41  ;;  %v7819_v56 = vpack.c.bf16 %v2123_v47, %v2119_v46  ;;  %v2160_v42 = vld [vmem:[#allocation6 + $0x1948] sm:$0xff] }
 0x1c8   :  { %7798 = vmatprep.subr.bf16.mxu1 %v7797_v53  ;;  %v2130_v53 = vld [vmem:[#allocation6 + $0x1858] sm:$0xff]  ;;  %v7947_v57 = vpack.c.bf16 %v2125_v50, %v2121_v48  ;;  %v2157_v41 = vld [vmem:[#allocation6 + $0x1930] sm:$0xff]  ;;  %v2103_v46 = vld [vmem:[#allocation3 + $0x188] sm:$0xff] }
 0x1c9   :  { %v7949_v62 = vpack.c.bf16 %v2134_v54, %v2130_v53  ;;  %v7963_v48 = vpack.c.bf16 %v2157_v41, %v2153_v39  ;;  %v2159_v50 = vld [vmem:[#allocation6 + $0x1940] sm:$0xff]  ;;  %v2165_v54 = vld [vmem:[#allocation6 + $0x1970] sm:$0xff]  ;;  %v2200_v39 = vld [vmem:[#allocation6 + $0x1a88] sm:$0xff] }
 0x1ca   :  { %7672 = vmatpush1.bf16.msra.mxu0 %v7671_v59  ;;  %v2127_v59 = vld [vmem:[#allocation6 + $0x1840] sm:$0xff]  ;;  %v2202_v41 = vld [vmem:[#allocation6 + $0x1a98] sm:$0xff] }
 0x1cb   :  { %7800 = vmatpush1.bf16.msra.mxu1 %v7799_v60  ;;  %7674 = vmatprep.subr.bf16.mxu0 %v7673_v61  ;;  %v2131_v60 = vld [vmem:[#allocation6 + $0x1860] sm:$0xff]  ;;  %v2129_v61 = vld [vmem:[#allocation6 + $0x1850] sm:$0xff] }
 0x1cc   :  { %7802 = vmatprep.subr.bf16.mxu1 %v7801_v1  ;;  %v2140_v1 = vld [vmem:[#allocation6 + $0x18a8] sm:$0xff]  ;;  %v7823_v5 = vpack.c.bf16 %v2131_v60, %v2127_v59  ;;  %v7839_v59 = vpack.c.bf16 %v2163_v51, %v2159_v50  ;;  %v7967_v60 = vpack.c.bf16 %v2165_v54, %v2161_v52  ;;  %v2205_v50 = vld [vmem:[#allocation6 + $0x1ab0] sm:$0xff]  ;;  %v2214_v54 = vld [vmem:[#allocation6 + $0x1af8] sm:$0xff] }
 0x1cd   :  { %v2208_v51 = vld [vmem:[#allocation6 + $0x1ac8] sm:$0xff] }
 0x1ce   :  { %7676 = vmatpush1.bf16.msra.mxu0 %v7675_v7  ;;  %v7951_v7 = vpack.c.bf16 %v2133_v63, %v2129_v61  ;;  %v2171_v63 = vld [vmem:[#allocation6 + $0x19a0] sm:$0xff]  ;;  %v2212_v52 = vld [vmem:[#allocation6 + $0x1ae8] sm:$0xff] }
 0x1cf   :  { %7804 = vmatpush1.bf16.msra.mxu1 %v7803_v8  ;;  %7678 = vmatprep.subr.bf16.mxu0 %v7677_v9  ;;  %v7825_v8 = vpack.c.bf16 %v2140_v1, %v2136_v0  ;;  %v2135_v9 = vld [vmem:[#allocation6 + $0x1880] sm:$0xff]  ;;  %v2169_v0 = vld [vmem:[#allocation6 + $0x1990] sm:$0xff] }
 0x1d0   :  { %7806 = vmatprep.subr.bf16.mxu1 %v7805_v13  ;;  %v2141_v13 = vld [vmem:[#allocation6 + $0x18b0] sm:$0xff] }
 0x1d2   :  { %7680 = vmatpush1.bf16.msra.mxu0 %v7679_v19  ;;  %v7827_v19 = vpack.c.bf16 %v2139_v10, %v2135_v9  ;;  %v2175_v10 = vld [vmem:[#allocation6 + $0x19c0] sm:$0xff] }
 0x1d3   :  { %7808 = vmatpush1.bf16.msra.mxu1 %v7807_v20  ;;  %7682 = vmatprep.subr.bf16.mxu0 %v7681_v21  ;;  %v1434_v20 = vld [vmem:[#allocation3 + $0x150] sm:$0xff]  ;;  %v7955_v21 = vpack.c.bf16 %v2141_v13, %v2137_v11  ;;  %v2179_v11 = vld [vmem:[#allocation6 + $0x19e0] sm:$0xff] }
 0x1d4   :  { %7810 = vmatprep.subr.bf16.mxu1 %v7809_v25  ;;  %v2145_v25 = vld [vmem:[#allocation6 + $0x18d0] sm:$0xff] }
 0x1d5   :  { %v7959_v35 = vpack.c.bf16 %v2149_v27, %v2145_v25  ;;  %v2192_v27 = vld [vmem:[#allocation6 + $0x1a48] sm:$0xff] }
 0x1d6   :  { %7684 = vmatpush1.bf16.msra.mxu0 %v7683_v31  ;;  %v2158_v31 = vld [vmem:[#allocation6 + $0x1938] sm:$0xff] }
 0x1d7   :  { %7812 = vmatpush1.bf16.msra.mxu1 %v7811_v32  ;;  %7686 = vmatprep.subr.bf16.mxu0 %v7685_v33  ;;  %v1439_v32 = vld [vmem:[#allocation3 + $0x178] sm:$0xff]  ;;  %v7831_v33 = vpack.c.bf16 %v2147_v24, %v2143_v23  ;;  %v7961_v40 = vpack.c.bf16 %v2158_v31, %v2154_v30  ;;  %v2187_v23 = vld [vmem:[#allocation6 + $0x1a20] sm:$0xff]  ;;  %v2185_v24 = vld [vmem:[#allocation6 + $0x1a10] sm:$0xff] }
 0x1d8   :  { %7814 = vmatprep.subr.bf16.mxu1 %v7813_v37  ;;  %v2151_v37 = vld [vmem:[#allocation6 + $0x1900] sm:$0xff]  ;;  %v2198_v30 = vld [vmem:[#allocation6 + $0x1a78] sm:$0xff] }
 0x1d9   :  { %v7835_v47 = vpack.c.bf16 %v2155_v38, %v2151_v37  ;;  %v7981_v37 = vpack.c.bf16 %v2198_v30, %v2194_v29  ;;  %v2197_v38 = vld [vmem:[#allocation6 + $0x1a70] sm:$0xff]  ;;  %v2231_v30 = vld [vmem:[#allocation6 + $0x1b80] sm:$0xff] }
 0x1da   :  { %7688 = vmatpush1.bf16.msra.mxu0 %v7687_v43  ;;  %v2164_v43 = vld [vmem:[#allocation6 + $0x1968] sm:$0xff] }
 0x1db   :  { %7816 = vmatpush1.bf16.msra.mxu1 %v7815_v44  ;;  %7818 = vmatprep.subr.bf16.mxu0 %v7817_v45  ;;  %v2162_v44 = vld [vmem:[#allocation6 + $0x1958] sm:$0xff] }
 0x1dc   :  { %7946 = vmatprep.subr.bf16.mxu1 %v7945_v49  ;;  %v2166_v45 = vld [vmem:[#allocation6 + $0x1978] sm:$0xff]  ;;  %v7837_v49 = vpack.c.bf16 %v2164_v43, %v2160_v42 }
 0x1dd   :  { %1851 = vmatmul.mubr.f32.vlgmr.msra.gmra.mrb[0].mxu0 %v1426_v55  ;;  %v7965_v53 = vpack.c.bf16 %v2166_v45, %v2162_v44  ;;  %v2206_v42 = vld [vmem:[#allocation6 + $0x1ab8] sm:$0xff] }
 0x1de   :  { %2029 = vmatmul.mubr.f32.vlgmr.msra.gmra.mrb[0].mxu1 %v1426_v55  ;;  %7820 = vmatpush1.bf16.msra.mxu0 %v7819_v56  ;;  %v2168_v55 = vld [vmem:[#allocation6 + $0x1988] sm:$0xff] }
 0x1df   :  { %7948 = vmatpush1.bf16.msra.mxu1 %v7947_v57  ;;  %7822 = vmatprep.subr.bf16.mxu0 %v7821_v58  ;;  %v2172_v56 = vld [vmem:[#allocation6 + $0x19a8] sm:$0xff]  ;;  %v2170_v57 = vld [vmem:[#allocation6 + $0x1998] sm:$0xff] }
 0x1e0   :  { %7950 = vmatprep.subr.bf16.mxu1 %v7949_v62  ;;  %1856 = vmatprep.mubr.f32.mxu0 %v1431_v4  ;;  %v2174_v58 = vld [vmem:[#allocation6 + $0x19b8] sm:$0xff]  ;;  %v7841_v61 = vpack.c.bf16 %v2172_v56, %v2168_v55  ;;  %v2167_v62 = vld [vmem:[#allocation6 + $0x1980] sm:$0xff] }
 0x1e1   :  { %2034 = vmatprep.mubr.f32.mxu1 %v1431_v4  ;;  %1857 = vmatmul.mubr.f32.gmra.mrb[2].mxu0 %v1430_v6  ;;  %v7969_v1 = vpack.c.bf16 %v2174_v58, %v2170_v57  ;;  %v2180_v4 = vld [vmem:[#allocation6 + $0x19e8] sm:$0xff]  ;;  %v7861_v57 = vpack.c.bf16 %v2212_v52, %v2208_v51  ;;  %v2207_v58 = vld [vmem:[#allocation6 + $0x1ac0] sm:$0xff] }
 0x1e2   :  { %7824 = vmatpush1.bf16.msra.mxu0 %v7823_v5  ;;  %2035 = vmatmul.mubr.f32.gmra.mrb[2].mxu1 %v1430_v6  ;;  %v2178_v5 = vld [vmem:[#allocation6 + $0x19d8] sm:$0xff]  ;;  %v7845_v9 = vpack.c.bf16 %v2180_v4, %v2176_v3 }
 0x1e3   :  { %7952 = vmatpush1.bf16.msra.mxu1 %v7951_v7  ;;  %7826 = vmatprep.subr.bf16.mxu0 %v7825_v8  ;;  %v2182_v6 = vld [vmem:[#allocation6 + $0x19f8] sm:$0xff]  ;;  %v7843_v7 = vpack.c.bf16 %v2171_v63, %v2167_v62  ;;  %v7971_v8 = vpack.c.bf16 %v2173_v2, %v2169_v0  ;;  %v2213_v62 = vld [vmem:[#allocation6 + $0x1af0] sm:$0xff]  ;;  %v2216_v63 = vld [vmem:[#allocation6 + $0x1b08] sm:$0xff] }
 0x1e4   :  { %7954 = vmatprep.subr.bf16.mxu1 %v7953_v12  ;;  %1862 = vmatprep.mubr.f32.mxu0 %v1435_v18  ;;  %v2177_v12 = vld [vmem:[#allocation6 + $0x19d0] sm:$0xff]  ;;  %v7973_v13 = vpack.c.bf16 %v2182_v6, %v2178_v5  ;;  %v2220_v0 = vld [vmem:[#allocation6 + $0x1b28] sm:$0xff]  ;;  %v2222_v2 = vld [vmem:[#allocation6 + $0x1b38] sm:$0xff] }
 0x1e5   :  { %2040 = vmatprep.mubr.f32.mxu1 %v1435_v18  ;;  %1863 = vmatmul.mubr.f32.gmra.mrb[4].mxu0 %v1434_v20  ;;  %v2190_v18 = vld [vmem:[#allocation6 + $0x1a38] sm:$0xff]  ;;  %v7865_v5 = vpack.c.bf16 %v2220_v0, %v2216_v63  ;;  %v2215_v6 = vld [vmem:[#allocation6 + $0x1b00] sm:$0xff] }
 0x1e6   :  { %7828 = vmatpush1.bf16.msra.mxu0 %v7827_v19  ;;  %2041 = vmatmul.mubr.f32.gmra.mrb[4].mxu1 %v1434_v20  ;;  %v7847_v19 = vpack.c.bf16 %v2179_v11, %v2175_v10  ;;  %v7975_v20 = vpack.c.bf16 %v2181_v14, %v2177_v12  ;;  %v7977_v25 = vpack.c.bf16 %v2190_v18, %v2186_v17  ;;  %v2221_v10 = vld [vmem:[#allocation6 + $0x1b30] sm:$0xff]  ;;  %v2224_v11 = vld [vmem:[#allocation6 + $0x1b48] sm:$0xff]  ;;  %v2230_v14 = vld [vmem:[#allocation6 + $0x1b78] sm:$0xff] }
 0x1e7   :  { %7956 = vmatpush1.bf16.msra.mxu1 %v7955_v21  ;;  %7830 = vmatprep.subr.bf16.mxu0 %v7829_v22  ;;  %v7849_v21 = vpack.c.bf16 %v2188_v16, %v2184_v15  ;;  %v2183_v22 = vld [vmem:[#allocation6 + $0x1a00] sm:$0xff]  ;;  %v2228_v12 = vld [vmem:[#allocation6 + $0x1b68] sm:$0xff] }
 0x1e8   :  { %7958 = vmatprep.subr.bf16.mxu1 %v7957_v26  ;;  %1868 = vmatprep.mubr.f32.mxu0 %v1439_v32  ;;  %v2189_v26 = vld [vmem:[#allocation6 + $0x1a30] sm:$0xff]  ;;  %v7851_v31 = vpack.c.bf16 %v2187_v23, %v2183_v22  ;;  %v7869_v17 = vpack.c.bf16 %v2228_v12, %v2224_v11  ;;  %v2223_v18 = vld [vmem:[#allocation6 + $0x1b40] sm:$0xff]  ;;  %v2232_v23 = vld [vmem:[#allocation6 + $0x1b88] sm:$0xff] }
 0x1e9   :  { %2046 = vmatprep.mubr.f32.mxu1 %v1439_v32  ;;  %1869 = vmatmul.mubr.f32.gmra.mrb[6].mxu0 %v1438_v34  ;;  %v7979_v32 = vpack.c.bf16 %v2189_v26, %v2185_v24  ;;  %v2229_v22 = vld [vmem:[#allocation6 + $0x1b70] sm:$0xff]  ;;  %v2236_v24 = vld [vmem:[#allocation6 + $0x1ba8] sm:$0xff]  ;;  %v2238_v26 = vld [vmem:[#allocation6 + $0x1bb8] sm:$0xff] }
 0x1ea   :  { %7832 = vmatpush1.bf16.msra.mxu0 %v7831_v33  ;;  %2047 = vmatmul.mubr.f32.gmra.mrb[6].mxu1 %v1438_v34  ;;  %v7853_v33 = vpack.c.bf16 %v2196_v28, %v2192_v27  ;;  %v2191_v34 = vld [vmem:[#allocation6 + $0x1a40] sm:$0xff]  ;;  %v7873_v29 = vpack.c.bf16 %v2236_v24, %v2232_v23  ;;  %v2270_v11 = vld [vmem:[#allocation6 + $0x1cb8] sm:$0xff]  ;;  %v2107_v12 = vld [vmem:[#allocation3 + $0x1a8] sm:$0xff] }
 0x1eb   :  { %7960 = vmatpush1.bf16.msra.mxu1 %v7959_v35  ;;  %7834 = vmatprep.subr.bf16.mxu0 %v7833_v36  ;;  %v2195_v35 = vld [vmem:[#allocation6 + $0x1a60] sm:$0xff]  ;;  %v2193_v36 = vld [vmem:[#allocation6 + $0x1a50] sm:$0xff]  ;;  %v2276_v23 = vld [vmem:[#allocation6 + $0x1ce8] sm:$0xff] }
 0x1ec   :  { %7962 = vmatprep.subr.bf16.mxu1 %v7961_v40  ;;  %2439 = vmatprep.mubr.f32.mxu0 %v2103_v46  ;;  %v2204_v40 = vld [vmem:[#allocation6 + $0x1aa8] sm:$0xff]  ;;  %v7855_v43 = vpack.c.bf16 %v2195_v35, %v2191_v34  ;;  %v7983_v44 = vpack.c.bf16 %v2197_v38, %v2193_v36  ;;  %v2237_v34 = vld [vmem:[#allocation6 + $0x1bb0] sm:$0xff]  ;;  %v2246_v38 = vld [vmem:[#allocation6 + $0x1bf8] sm:$0xff] }
 0x1ed   :  { %2617 = vmatprep.mubr.f32.mxu1 %v2103_v46  ;;  %v7857_v45 = vpack.c.bf16 %v2204_v40, %v2200_v39  ;;  %v2199_v46 = vld [vmem:[#allocation6 + $0x1a80] sm:$0xff]  ;;  %v2240_v35 = vld [vmem:[#allocation6 + $0x1bc8] sm:$0xff]  ;;  %v2274_v24 = vld [vmem:[#allocation6 + $0x1cd8] sm:$0xff] }
 0x1ee   :  { %7836 = vmatpush1.bf16.msra.mxu0 %v7835_v47  ;;  %v2203_v47 = vld [vmem:[#allocation6 + $0x1aa0] sm:$0xff]  ;;  %v2244_v36 = vld [vmem:[#allocation6 + $0x1be8] sm:$0xff] }
 0x1ef   :  { %7964 = vmatpush1.bf16.msra.mxu1 %v7963_v48  ;;  %7838 = vmatprep.subr.bf16.mxu0 %v7837_v49  ;;  %v2201_v48 = vld [vmem:[#allocation6 + $0x1a90] sm:$0xff]  ;;  %v7985_v49 = vpack.c.bf16 %v2206_v42, %v2202_v41  ;;  %v7859_v55 = vpack.c.bf16 %v2203_v47, %v2199_v46  ;;  %v7877_v41 = vpack.c.bf16 %v2244_v36, %v2240_v35  ;;  %v2239_v42 = vld [vmem:[#allocation6 + $0x1bc0] sm:$0xff]  ;;  %v2248_v47 = vld [vmem:[#allocation6 + $0x1c08] sm:$0xff] }
 0x1f0   :  { %7966 = vmatprep.subr.bf16.mxu1 %v7965_v53  ;;  %v2210_v53 = vld [vmem:[#allocation6 + $0x1ad8] sm:$0xff]  ;;  %v7987_v56 = vpack.c.bf16 %v2205_v50, %v2201_v48  ;;  %v2245_v46 = vld [vmem:[#allocation6 + $0x1bf0] sm:$0xff]  ;;  %v2252_v48 = vld [vmem:[#allocation6 + $0x1c28] sm:$0xff] }
 0x1f1   :  { %v2254_v50 = vld [vmem:[#allocation6 + $0x1c38] sm:$0xff]  ;;  %v2102_v63 = vld [vmem:[#allocation3 + $0x180] sm:$0xff]  ;;  %v2277_v35 = vld [vmem:[#allocation6 + $0x1cf0] sm:$0xff] }
 0x1f2   :  { %7840 = vmatpush1.bf16.msra.mxu0 %v7839_v59  ;;  %v2211_v59 = vld [vmem:[#allocation6 + $0x1ae0] sm:$0xff]  ;;  %v2280_v36 = vld [vmem:[#allocation6 + $0x1d08] sm:$0xff] }
 0x1f3   :  { %7968 = vmatpush1.bf16.msra.mxu1 %v7967_v60  ;;  %7842 = vmatprep.subr.bf16.mxu0 %v7841_v61  ;;  %v2209_v60 = vld [vmem:[#allocation6 + $0x1ad0] sm:$0xff]  ;;  %v7989_v61 = vpack.c.bf16 %v2214_v54, %v2210_v53  ;;  %v7863_v3 = vpack.c.bf16 %v2211_v59, %v2207_v58  ;;  %v7881_v53 = vpack.c.bf16 %v2252_v48, %v2248_v47  ;;  %v2247_v54 = vld [vmem:[#allocation6 + $0x1c00] sm:$0xff]  ;;  %v2256_v59 = vld [vmem:[#allocation6 + $0x1c48] sm:$0xff] }
 0x1f4   :  { %7970 = vmatprep.subr.bf16.mxu1 %v7969_v1  ;;  %v2218_v1 = vld [vmem:[#allocation6 + $0x1b18] sm:$0xff]  ;;  %v7991_v4 = vpack.c.bf16 %v2213_v62, %v2209_v60  ;;  %v2253_v58 = vld [vmem:[#allocation6 + $0x1c30] sm:$0xff]  ;;  %v2260_v60 = vld [vmem:[#allocation6 + $0x1c68] sm:$0xff] }
 0x1f5   :  { %v2262_v62 = vld [vmem:[#allocation6 + $0x1c78] sm:$0xff]  ;;  %v2281_v47 = vld [vmem:[#allocation6 + $0x1d10] sm:$0xff] }
 0x1f6   :  { %7844 = vmatpush1.bf16.msra.mxu0 %v7843_v7  ;;  %v2219_v7 = vld [vmem:[#allocation6 + $0x1b20] sm:$0xff] }
 0x1f7   :  { %7972 = vmatpush1.bf16.msra.mxu1 %v7971_v8  ;;  %7846 = vmatprep.subr.bf16.mxu0 %v7845_v9  ;;  %v2217_v8 = vld [vmem:[#allocation6 + $0x1b10] sm:$0xff]  ;;  %v7993_v9 = vpack.c.bf16 %v2222_v2, %v2218_v1  ;;  %v7867_v15 = vpack.c.bf16 %v2219_v7, %v2215_v6  ;;  %v7885_v2 = vpack.c.bf16 %v2260_v60, %v2256_v59  ;;  %v2291_v59 = vld [vmem:[#allocation6 + $0x1d60] sm:$0xff] }
 0x1f8   :  { %7974 = vmatprep.subr.bf16.mxu1 %v7973_v13  ;;  %v2226_v13 = vld [vmem:[#allocation6 + $0x1b58] sm:$0xff]  ;;  %v7995_v16 = vpack.c.bf16 %v2221_v10, %v2217_v8  ;;  %v2261_v7 = vld [vmem:[#allocation6 + $0x1c70] sm:$0xff]  ;;  %v2264_v8 = vld [vmem:[#allocation6 + $0x1c88] sm:$0xff] }
 0x1f9   :  { %v2266_v10 = vld [vmem:[#allocation6 + $0x1c98] sm:$0xff]  ;;  %v2289_v60 = vld [vmem:[#allocation6 + $0x1d50] sm:$0xff] }
 0x1fa   :  { %7848 = vmatpush1.bf16.msra.mxu0 %v7847_v19  ;;  %v2227_v19 = vld [vmem:[#allocation6 + $0x1b60] sm:$0xff] }
 0x1fb   :  { %7976 = vmatpush1.bf16.msra.mxu1 %v7975_v20  ;;  %7850 = vmatprep.subr.bf16.mxu0 %v7849_v21  ;;  %v2225_v20 = vld [vmem:[#allocation6 + $0x1b50] sm:$0xff]  ;;  %v7997_v21 = vpack.c.bf16 %v2230_v14, %v2226_v13  ;;  %v7871_v27 = vpack.c.bf16 %v2227_v19, %v2223_v18  ;;  %v2106_v14 = vld [vmem:[#allocation3 + $0x1a0] sm:$0xff] }
 0x1fc   :  { %7978 = vmatprep.subr.bf16.mxu1 %v7977_v25  ;;  %v2234_v25 = vld [vmem:[#allocation6 + $0x1b98] sm:$0xff]  ;;  %v7999_v28 = vpack.c.bf16 %v2229_v22, %v2225_v20  ;;  %v2267_v18 = vld [vmem:[#allocation6 + $0x1ca0] sm:$0xff]  ;;  %v2265_v19 = vld [vmem:[#allocation6 + $0x1c90] sm:$0xff]  ;;  %v8017_v20 = vpack.c.bf16 %v2270_v11, %v2266_v10 }
 0x1fd   :  { %v2272_v22 = vld [vmem:[#allocation6 + $0x1cc8] sm:$0xff]  ;;  %v2301_v10 = vld [vmem:[#allocation6 + $0x1db0] sm:$0xff] }
 0x1fe   :  { %7852 = vmatpush1.bf16.msra.mxu0 %v7851_v31  ;;  %v2235_v31 = vld [vmem:[#allocation6 + $0x1ba0] sm:$0xff]  ;;  %v2304_v11 = vld [vmem:[#allocation6 + $0x1dc8] sm:$0xff] }
 0x1ff   :  { %7980 = vmatpush1.bf16.msra.mxu1 %v7979_v32  ;;  %7854 = vmatprep.subr.bf16.mxu0 %v7853_v33  ;;  %v2233_v32 = vld [vmem:[#allocation6 + $0x1b90] sm:$0xff]  ;;  %v8001_v33 = vpack.c.bf16 %v2238_v26, %v2234_v25  ;;  %v7875_v39 = vpack.c.bf16 %v2235_v31, %v2231_v30  ;;  %v2278_v25 = vld [vmem:[#allocation6 + $0x1cf8] sm:$0xff]  ;;  %v2111_v26 = vld [vmem:[#allocation3 + $0x1c8] sm:$0xff]  ;;  %v7893_v30 = vpack.c.bf16 %v2276_v23, %v2272_v22 }
 0x200   :  { %7982 = vmatprep.subr.bf16.mxu1 %v7981_v37  ;;  %v2242_v37 = vld [vmem:[#allocation6 + $0x1bd8] sm:$0xff]  ;;  %v8003_v40 = vpack.c.bf16 %v2237_v34, %v2233_v32  ;;  %v2271_v31 = vld [vmem:[#allocation6 + $0x1cc0] sm:$0xff]  ;;  %v8021_v34 = vpack.c.bf16 %v2278_v25, %v2274_v24  ;;  %v2309_v22 = vld [vmem:[#allocation6 + $0x1df0] sm:$0xff] }
 0x201   :  { %v2275_v32 = vld [vmem:[#allocation6 + $0x1ce0] sm:$0xff]  ;;  %v2312_v23 = vld [vmem:[#allocation6 + $0x1e08] sm:$0xff]  ;;  %v2314_v25 = vld [vmem:[#allocation6 + $0x1e18] sm:$0xff] }
 0x202   :  { %7856 = vmatpush1.bf16.msra.mxu0 %v7855_v43  ;;  %v2243_v43 = vld [vmem:[#allocation6 + $0x1be0] sm:$0xff]  ;;  %v2316_v24 = vld [vmem:[#allocation6 + $0x1e28] sm:$0xff] }
 0x203   :  { %7984 = vmatpush1.bf16.msra.mxu1 %v7983_v44  ;;  %7858 = vmatprep.subr.bf16.mxu0 %v7857_v45  ;;  %v2241_v44 = vld [vmem:[#allocation6 + $0x1bd0] sm:$0xff]  ;;  %v8005_v45 = vpack.c.bf16 %v2246_v38, %v2242_v37  ;;  %v7879_v51 = vpack.c.bf16 %v2243_v43, %v2239_v42  ;;  %v2284_v37 = vld [vmem:[#allocation6 + $0x1d28] sm:$0xff]  ;;  %v2282_v38 = vld [vmem:[#allocation6 + $0x1d18] sm:$0xff] }
 0x204   :  { %7986 = vmatprep.subr.bf16.mxu1 %v7985_v49  ;;  %v2250_v49 = vld [vmem:[#allocation6 + $0x1c18] sm:$0xff]  ;;  %v8007_v52 = vpack.c.bf16 %v2245_v46, %v2241_v44  ;;  %v2114_v42 = vld [vmem:[#allocation3 + $0x1e0] sm:$0xff]  ;;  %v7897_v44 = vpack.c.bf16 %v2284_v37, %v2280_v36  ;;  %v2324_v36 = vld [vmem:[#allocation6 + $0x1e68] sm:$0xff] }
 0x205   :  { %v2283_v46 = vld [vmem:[#allocation6 + $0x1d20] sm:$0xff]  ;;  %v2322_v37 = vld [vmem:[#allocation6 + $0x1e58] sm:$0xff] }
 0x206   :  { %7860 = vmatpush1.bf16.msra.mxu0 %v7859_v55  ;;  %v2251_v55 = vld [vmem:[#allocation6 + $0x1c20] sm:$0xff] }
 0x207   :  { %7988 = vmatpush1.bf16.msra.mxu1 %v7987_v56  ;;  %7862 = vmatprep.subr.bf16.mxu0 %v7861_v57  ;;  %v2249_v56 = vld [vmem:[#allocation6 + $0x1c10] sm:$0xff]  ;;  %v8009_v57 = vpack.c.bf16 %v2254_v50, %v2250_v49  ;;  %v7883_v0 = vpack.c.bf16 %v2251_v55, %v2247_v54  ;;  %v2288_v50 = vld [vmem:[#allocation6 + $0x1d48] sm:$0xff]  ;;  %v2105_v54 = vld [vmem:[#allocation3 + $0x198] sm:$0xff] }
 0x208   :  { %7990 = vmatprep.subr.bf16.mxu1 %v7989_v61  ;;  %v2258_v61 = vld [vmem:[#allocation6 + $0x1c58] sm:$0xff]  ;;  %v8011_v1 = vpack.c.bf16 %v2253_v58, %v2249_v56  ;;  %v2285_v49 = vld [vmem:[#allocation6 + $0x1d30] sm:$0xff]  ;;  %v2287_v58 = vld [vmem:[#allocation6 + $0x1d40] sm:$0xff] }
 0x209   :  { %v8013_v6 = vpack.c.bf16 %v2262_v62, %v2258_v61  ;;  %v8027_v56 = vpack.c.bf16 %v2285_v49, %v2281_v47  ;;  %v2293_v62 = vld [vmem:[#allocation6 + $0x1d70] sm:$0xff]  ;;  %v2328_v47 = vld [vmem:[#allocation6 + $0x1e88] sm:$0xff]  ;;  %v2330_v49 = vld [vmem:[#allocation6 + $0x1e98] sm:$0xff] }
 0x20a   :  { %7864 = vmatpush1.bf16.msra.mxu0 %v7863_v3  ;;  %v2255_v3 = vld [vmem:[#allocation6 + $0x1c40] sm:$0xff] }
 0x20b   :  { %7992 = vmatpush1.bf16.msra.mxu1 %v7991_v4  ;;  %7866 = vmatprep.subr.bf16.mxu0 %v7865_v5  ;;  %v2259_v4 = vld [vmem:[#allocation6 + $0x1c60] sm:$0xff]  ;;  %v2257_v5 = vld [vmem:[#allocation6 + $0x1c50] sm:$0xff] }
 0x20c   :  { %7994 = vmatprep.subr.bf16.mxu1 %v7993_v9  ;;  %v2268_v9 = vld [vmem:[#allocation6 + $0x1ca8] sm:$0xff]  ;;  %v7887_v13 = vpack.c.bf16 %v2259_v4, %v2255_v3  ;;  %v7903_v3 = vpack.c.bf16 %v2291_v59, %v2287_v58  ;;  %v8031_v4 = vpack.c.bf16 %v2293_v62, %v2289_v60  ;;  %v2333_v58 = vld [vmem:[#allocation6 + $0x1eb0] sm:$0xff]  ;;  %v2342_v62 = vld [vmem:[#allocation6 + $0x1ef8] sm:$0xff] }
 0x20d   :  { %v2336_v59 = vld [vmem:[#allocation6 + $0x1ec8] sm:$0xff] }
 0x20e   :  { %7868 = vmatpush1.bf16.msra.mxu0 %v7867_v15  ;;  %v8015_v15 = vpack.c.bf16 %v2261_v7, %v2257_v5  ;;  %v2299_v7 = vld [vmem:[#allocation6 + $0x1da0] sm:$0xff]  ;;  %v2340_v60 = vld [vmem:[#allocation6 + $0x1ee8] sm:$0xff] }
 0x20f   :  { %7996 = vmatpush1.bf16.msra.mxu1 %v7995_v16  ;;  %7870 = vmatprep.subr.bf16.mxu0 %v7869_v17  ;;  %v7889_v16 = vpack.c.bf16 %v2268_v9, %v2264_v8  ;;  %v2263_v17 = vld [vmem:[#allocation6 + $0x1c80] sm:$0xff]  ;;  %v2297_v8 = vld [vmem:[#allocation6 + $0x1d90] sm:$0xff] }
 0x210   :  { %7998 = vmatprep.subr.bf16.mxu1 %v7997_v21  ;;  %v2269_v21 = vld [vmem:[#allocation6 + $0x1cb0] sm:$0xff] }
 0x212   :  { %7872 = vmatpush1.bf16.msra.mxu0 %v7871_v27  ;;  %v7891_v27 = vpack.c.bf16 %v2267_v18, %v2263_v17  ;;  %v2303_v18 = vld [vmem:[#allocation6 + $0x1dc0] sm:$0xff] }
 0x213   :  { %8000 = vmatpush1.bf16.msra.mxu1 %v7999_v28  ;;  %7874 = vmatprep.subr.bf16.mxu0 %v7873_v29  ;;  %v2110_v28 = vld [vmem:[#allocation3 + $0x1c0] sm:$0xff]  ;;  %v8019_v29 = vpack.c.bf16 %v2269_v21, %v2265_v19 }
 0x214   :  { %8002 = vmatprep.subr.bf16.mxu1 %v8001_v33  ;;  %v2273_v33 = vld [vmem:[#allocation6 + $0x1cd0] sm:$0xff]  ;;  %v2307_v19 = vld [vmem:[#allocation6 + $0x1de0] sm:$0xff] }
 0x215   :  { %v8023_v43 = vpack.c.bf16 %v2277_v35, %v2273_v33  ;;  %v2320_v35 = vld [vmem:[#allocation6 + $0x1e48] sm:$0xff] }
 0x216   :  { %7876 = vmatpush1.bf16.msra.mxu0 %v7875_v39  ;;  %v2286_v39 = vld [vmem:[#allocation6 + $0x1d38] sm:$0xff] }
 0x217   :  { %8004 = vmatpush1.bf16.msra.mxu1 %v8003_v40  ;;  %7878 = vmatprep.subr.bf16.mxu0 %v7877_v41  ;;  %v2115_v40 = vld [vmem:[#allocation3 + $0x1e8] sm:$0xff]  ;;  %v7895_v41 = vpack.c.bf16 %v2275_v32, %v2271_v31  ;;  %v8025_v48 = vpack.c.bf16 %v2286_v39, %v2282_v38  ;;  %v2315_v31 = vld [vmem:[#allocation6 + $0x1e20] sm:$0xff]  ;;  %v2313_v32 = vld [vmem:[#allocation6 + $0x1e10] sm:$0xff] }
 0x218   :  { %8006 = vmatprep.subr.bf16.mxu1 %v8005_v45  ;;  %v2279_v45 = vld [vmem:[#allocation6 + $0x1d00] sm:$0xff]  ;;  %v2326_v38 = vld [vmem:[#allocation6 + $0x1e78] sm:$0xff] }
 0x219   :  { %v7899_v55 = vpack.c.bf16 %v2283_v46, %v2279_v45  ;;  %v8045_v45 = vpack.c.bf16 %v2326_v38, %v2322_v37  ;;  %v2325_v46 = vld [vmem:[#allocation6 + $0x1e70] sm:$0xff]  ;;  %v2359_v38 = vld [vmem:[#allocation6 + $0x1f80] sm:$0xff] }
 0x21a   :  { %7880 = vmatpush1.bf16.msra.mxu0 %v7879_v51  ;;  %v2292_v51 = vld [vmem:[#allocation6 + $0x1d68] sm:$0xff] }
 0x21b   :  { %8008 = vmatpush1.bf16.msra.mxu1 %v8007_v52  ;;  %7882 = vmatprep.subr.bf16.mxu0 %v7881_v53  ;;  %v2290_v52 = vld [vmem:[#allocation6 + $0x1d58] sm:$0xff] }
 0x21c   :  { %8010 = vmatprep.subr.bf16.mxu1 %v8009_v57  ;;  %v2294_v53 = vld [vmem:[#allocation6 + $0x1d78] sm:$0xff]  ;;  %v7901_v57 = vpack.c.bf16 %v2292_v51, %v2288_v50 }
 0x21d   :  { %2440 = vmatmul.mubr.f32.vlgmr.msra.gmra.mrb[0].mxu0 %v2102_v63  ;;  %v8029_v61 = vpack.c.bf16 %v2294_v53, %v2290_v52  ;;  %v2334_v50 = vld [vmem:[#allocation6 + $0x1eb8] sm:$0xff] }
 0x21e   :  { %7884 = vmatpush1.bf16.msra.mxu0 %v7883_v0  ;;  %2618 = vmatmul.mubr.f32.vlgmr.msra.gmra.mrb[0].mxu1 %v2102_v63  ;;  %v2296_v63 = vld [vmem:[#allocation6 + $0x1d88] sm:$0xff] }
 0x21f   :  { %8012 = vmatpush1.bf16.msra.mxu1 %v8011_v1  ;;  %7886 = vmatprep.subr.bf16.mxu0 %v7885_v2  ;;  %v2300_v0 = vld [vmem:[#allocation6 + $0x1da8] sm:$0xff]  ;;  %v2298_v1 = vld [vmem:[#allocation6 + $0x1d98] sm:$0xff] }
 0x220   :  { %8014 = vmatprep.subr.bf16.mxu1 %v8013_v6  ;;  %2445 = vmatprep.mubr.f32.mxu0 %v2107_v12  ;;  %v2302_v2 = vld [vmem:[#allocation6 + $0x1db8] sm:$0xff]  ;;  %v7905_v5 = vpack.c.bf16 %v2300_v0, %v2296_v63  ;;  %v2295_v6 = vld [vmem:[#allocation6 + $0x1d80] sm:$0xff] }
 0x221   :  { %2623 = vmatprep.mubr.f32.mxu1 %v2107_v12  ;;  %2446 = vmatmul.mubr.f32.gmra.mrb[2].mxu0 %v2106_v14  ;;  %v8033_v9 = vpack.c.bf16 %v2302_v2, %v2298_v1  ;;  %v2308_v12 = vld [vmem:[#allocation6 + $0x1de8] sm:$0xff]  ;;  %v7925_v1 = vpack.c.bf16 %v2340_v60, %v2336_v59  ;;  %v2335_v2 = vld [vmem:[#allocation6 + $0x1ec0] sm:$0xff] }
 0x222   :  { %7888 = vmatpush1.bf16.msra.mxu0 %v7887_v13  ;;  %2624 = vmatmul.mubr.f32.gmra.mrb[2].mxu1 %v2106_v14  ;;  %v2306_v13 = vld [vmem:[#allocation6 + $0x1dd8] sm:$0xff]  ;;  %v7909_v17 = vpack.c.bf16 %v2308_v12, %v2304_v11 }
 0x223   :  { %8016 = vmatpush1.bf16.msra.mxu1 %v8015_v15  ;;  %7890 = vmatprep.subr.bf16.mxu0 %v7889_v16  ;;  %v2310_v14 = vld [vmem:[#allocation6 + $0x1df8] sm:$0xff]  ;;  %v7907_v15 = vpack.c.bf16 %v2299_v7, %v2295_v6  ;;  %v8035_v16 = vpack.c.bf16 %v2301_v10, %v2297_v8  ;;  %v2341_v6 = vld [vmem:[#allocation6 + $0x1ef0] sm:$0xff]  ;;  %v2344_v7 = vld [vmem:[#allocation6 + $0x1f08] sm:$0xff] }
 0x224   :  { %8018 = vmatprep.subr.bf16.mxu1 %v8017_v20  ;;  %2451 = vmatprep.mubr.f32.mxu0 %v2111_v26  ;;  %v2305_v20 = vld [vmem:[#allocation6 + $0x1dd0] sm:$0xff]  ;;  %v8037_v21 = vpack.c.bf16 %v2310_v14, %v2306_v13  ;;  %v2348_v8 = vld [vmem:[#allocation6 + $0x1f28] sm:$0xff]  ;;  %v2350_v10 = vld [vmem:[#allocation6 + $0x1f38] sm:$0xff] }
 0x225   :  { %2629 = vmatprep.mubr.f32.mxu1 %v2111_v26  ;;  %2452 = vmatmul.mubr.f32.gmra.mrb[4].mxu0 %v2110_v28  ;;  %v2318_v26 = vld [vmem:[#allocation6 + $0x1e38] sm:$0xff]  ;;  %v7929_v13 = vpack.c.bf16 %v2348_v8, %v2344_v7  ;;  %v2343_v14 = vld [vmem:[#allocation6 + $0x1f00] sm:$0xff]  ;;  %v2104_v7 = vld [vmem:[#allocation3 + $0x190] sm:$0xff] }
 0x226   :  { %7892 = vmatpush1.bf16.msra.mxu0 %v7891_v27  ;;  %2630 = vmatmul.mubr.f32.gmra.mrb[4].mxu1 %v2110_v28  ;;  %v7911_v27 = vpack.c.bf16 %v2307_v19, %v2303_v18  ;;  %v8039_v28 = vpack.c.bf16 %v2309_v22, %v2305_v20  ;;  %v8041_v33 = vpack.c.bf16 %v2318_v26, %v2314_v25  ;;  %v2349_v18 = vld [vmem:[#allocation6 + $0x1f30] sm:$0xff]  ;;  %v2352_v19 = vld [vmem:[#allocation6 + $0x1f48] sm:$0xff]  ;;  %v2358_v22 = vld [vmem:[#allocation6 + $0x1f78] sm:$0xff] }
 0x227   :  { %8020 = vmatpush1.bf16.msra.mxu1 %v8019_v29  ;;  %7894 = vmatprep.subr.bf16.mxu0 %v7893_v30  ;;  %v7913_v29 = vpack.c.bf16 %v2316_v24, %v2312_v23  ;;  %v2311_v30 = vld [vmem:[#allocation6 + $0x1e00] sm:$0xff]  ;;  %v2356_v20 = vld [vmem:[#allocation6 + $0x1f68] sm:$0xff] }
 0x228   :  { %8022 = vmatprep.subr.bf16.mxu1 %v8021_v34  ;;  %2457 = vmatprep.mubr.f32.mxu0 %v2115_v40  ;;  %v2317_v34 = vld [vmem:[#allocation6 + $0x1e30] sm:$0xff]  ;;  %v7915_v39 = vpack.c.bf16 %v2315_v31, %v2311_v30  ;;  %v7933_v25 = vpack.c.bf16 %v2356_v20, %v2352_v19  ;;  %v2351_v26 = vld [vmem:[#allocation6 + $0x1f40] sm:$0xff]  ;;  %v2360_v31 = vld [vmem:[#allocation6 + $0x1f88] sm:$0xff] }
 0x229   :  { %2635 = vmatprep.mubr.f32.mxu1 %v2115_v40  ;;  %2458 = vmatmul.mubr.f32.gmra.mrb[6].mxu0 %v2114_v42  ;;  %v8043_v40 = vpack.c.bf16 %v2317_v34, %v2313_v32  ;;  %v2357_v30 = vld [vmem:[#allocation6 + $0x1f70] sm:$0xff]  ;;  %v2364_v32 = vld [vmem:[#allocation6 + $0x1fa8] sm:$0xff]  ;;  %v2366_v34 = vld [vmem:[#allocation6 + $0x1fb8] sm:$0xff] }
 0x22a   :  { %7896 = vmatpush1.bf16.msra.mxu0 %v7895_v41  ;;  %2636 = vmatmul.mubr.f32.gmra.mrb[6].mxu1 %v2114_v42  ;;  %v7917_v41 = vpack.c.bf16 %v2324_v36, %v2320_v35  ;;  %v2319_v42 = vld [vmem:[#allocation6 + $0x1e40] sm:$0xff]  ;;  %v7937_v37 = vpack.c.bf16 %v2364_v32, %v2360_v31  ;;  %v2820_v19 = vld [vmem:[#allocation6 + $0x20b8] sm:$0xff]  ;;  %v2826_v31 = vld [vmem:[#allocation6 + $0x20e8] sm:$0xff] }
 0x22b   :  { %8024 = vmatpush1.bf16.msra.mxu1 %v8023_v43  ;;  %7898 = vmatprep.subr.bf16.mxu0 %v7897_v44  ;;  %v2323_v43 = vld [vmem:[#allocation6 + $0x1e60] sm:$0xff]  ;;  %v2321_v44 = vld [vmem:[#allocation6 + $0x1e50] sm:$0xff]  ;;  %v2109_v20 = vld [vmem:[#allocation3 + $0x1b8] sm:$0xff] }
 0x22c   :  { %8026 = vmatprep.subr.bf16.mxu1 %v8025_v48  ;;  %2528 = vmatprep.mubr.f32.mxu0 %v2105_v54  ;;  %v2332_v48 = vld [vmem:[#allocation6 + $0x1ea8] sm:$0xff]  ;;  %v7919_v51 = vpack.c.bf16 %v2323_v43, %v2319_v42  ;;  %v8047_v52 = vpack.c.bf16 %v2325_v46, %v2321_v44  ;;  %v2365_v42 = vld [vmem:[#allocation6 + $0x1fb0] sm:$0xff]  ;;  %v2374_v46 = vld [vmem:[#allocation6 + $0x1ff8] sm:$0xff] }
 0x22d   :  { %2706 = vmatprep.mubr.f32.mxu1 %v2105_v54  ;;  %v7921_v53 = vpack.c.bf16 %v2332_v48, %v2328_v47  ;;  %v2327_v54 = vld [vmem:[#allocation6 + $0x1e80] sm:$0xff]  ;;  %v2368_v43 = vld [vmem:[#allocation6 + $0x1fc8] sm:$0xff]  ;;  %v2824_v32 = vld [vmem:[#allocation6 + $0x20d8] sm:$0xff] }
 0x22e   :  { %7900 = vmatpush1.bf16.msra.mxu0 %v7899_v55  ;;  %v2331_v55 = vld [vmem:[#allocation6 + $0x1ea0] sm:$0xff]  ;;  %v2372_v44 = vld [vmem:[#allocation6 + $0x1fe8] sm:$0xff] }
 0x22f   :  { %8028 = vmatpush1.bf16.msra.mxu1 %v8027_v56  ;;  %7902 = vmatprep.subr.bf16.mxu0 %v7901_v57  ;;  %v2329_v56 = vld [vmem:[#allocation6 + $0x1e90] sm:$0xff]  ;;  %v8049_v57 = vpack.c.bf16 %v2334_v50, %v2330_v49  ;;  %v7923_v63 = vpack.c.bf16 %v2331_v55, %v2327_v54  ;;  %v7941_v49 = vpack.c.bf16 %v2372_v44, %v2368_v43  ;;  %v2367_v50 = vld [vmem:[#allocation6 + $0x1fc0] sm:$0xff]  ;;  %v2798_v55 = vld [vmem:[#allocation6 + $0x2008] sm:$0xff] }
 0x230   :  { %8030 = vmatprep.subr.bf16.mxu1 %v8029_v61  ;;  %v2338_v61 = vld [vmem:[#allocation6 + $0x1ed8] sm:$0xff]  ;;  %v8051_v0 = vpack.c.bf16 %v2333_v58, %v2329_v56  ;;  %v2373_v54 = vld [vmem:[#allocation6 + $0x1ff0] sm:$0xff]  ;;  %v2802_v56 = vld [vmem:[#allocation6 + $0x2028] sm:$0xff] }
 0x231   :  { %v2804_v58 = vld [vmem:[#allocation6 + $0x2038] sm:$0xff]  ;;  %v2827_v43 = vld [vmem:[#allocation6 + $0x20f0] sm:$0xff]  ;;  %v2830_v44 = vld [vmem:[#allocation6 + $0x2108] sm:$0xff] }
 0x232   :  { %7904 = vmatpush1.bf16.msra.mxu0 %v7903_v3  ;;  %v2339_v3 = vld [vmem:[#allocation6 + $0x1ee0] sm:$0xff] }
 0x233   :  { %8032 = vmatpush1.bf16.msra.mxu1 %v8031_v4  ;;  %7906 = vmatprep.subr.bf16.mxu0 %v7905_v5  ;;  %v2337_v4 = vld [vmem:[#allocation6 + $0x1ed0] sm:$0xff]  ;;  %v8053_v5 = vpack.c.bf16 %v2342_v62, %v2338_v61  ;;  %v7927_v11 = vpack.c.bf16 %v2339_v3, %v2335_v2  ;;  %v8073_v61 = vpack.c.bf16 %v2802_v56, %v2798_v55  ;;  %v2797_v62 = vld [vmem:[#allocation6 + $0x2000] sm:$0xff]  ;;  %v2806_v3 = vld [vmem:[#allocation6 + $0x2048] sm:$0xff] }
 0x234   :  { %8034 = vmatprep.subr.bf16.mxu1 %v8033_v9  ;;  %v2346_v9 = vld [vmem:[#allocation6 + $0x1f18] sm:$0xff]  ;;  %v8055_v12 = vpack.c.bf16 %v2341_v6, %v2337_v4  ;;  %v2803_v2 = vld [vmem:[#allocation6 + $0x2030] sm:$0xff]  ;;  %v2810_v4 = vld [vmem:[#allocation6 + $0x2068] sm:$0xff] }
 0x235   :  { %v2812_v6 = vld [vmem:[#allocation6 + $0x2078] sm:$0xff]  ;;  %v2831_v55 = vld [vmem:[#allocation6 + $0x2110] sm:$0xff] }
 0x236   :  { %7908 = vmatpush1.bf16.msra.mxu0 %v7907_v15  ;;  %v2347_v15 = vld [vmem:[#allocation6 + $0x1f20] sm:$0xff] }
 0x237   :  { %8036 = vmatpush1.bf16.msra.mxu1 %v8035_v16  ;;  %7910 = vmatprep.subr.bf16.mxu0 %v7909_v17  ;;  %v2345_v16 = vld [vmem:[#allocation6 + $0x1f10] sm:$0xff]  ;;  %v8057_v17 = vpack.c.bf16 %v2350_v10, %v2346_v9  ;;  %v7931_v23 = vpack.c.bf16 %v2347_v15, %v2343_v14  ;;  %v8077_v10 = vpack.c.bf16 %v2810_v4, %v2806_v3  ;;  %v2841_v3 = vld [vmem:[#allocation6 + $0x2160] sm:$0xff] }
 0x238   :  { %8038 = vmatprep.subr.bf16.mxu1 %v8037_v21  ;;  %v2354_v21 = vld [vmem:[#allocation6 + $0x1f58] sm:$0xff]  ;;  %v8059_v24 = vpack.c.bf16 %v2349_v18, %v2345_v16  ;;  %v2811_v15 = vld [vmem:[#allocation6 + $0x2070] sm:$0xff]  ;;  %v2814_v16 = vld [vmem:[#allocation6 + $0x2088] sm:$0xff] }
 0x239   :  { %v2816_v18 = vld [vmem:[#allocation6 + $0x2098] sm:$0xff]  ;;  %v2839_v4 = vld [vmem:[#allocation6 + $0x2150] sm:$0xff] }
 0x23a   :  { %7912 = vmatpush1.bf16.msra.mxu0 %v7911_v27  ;;  %v2355_v27 = vld [vmem:[#allocation6 + $0x1f60] sm:$0xff] }
 0x23b   :  { %8040 = vmatpush1.bf16.msra.mxu1 %v8039_v28  ;;  %7914 = vmatprep.subr.bf16.mxu0 %v7913_v29  ;;  %v2353_v28 = vld [vmem:[#allocation6 + $0x1f50] sm:$0xff]  ;;  %v8061_v29 = vpack.c.bf16 %v2358_v22, %v2354_v21  ;;  %v7935_v35 = vpack.c.bf16 %v2355_v27, %v2351_v26  ;;  %v2817_v26 = vld [vmem:[#allocation6 + $0x20a0] sm:$0xff] }
 0x23c   :  { %8042 = vmatprep.subr.bf16.mxu1 %v8041_v33  ;;  %v2362_v33 = vld [vmem:[#allocation6 + $0x1f98] sm:$0xff]  ;;  %v8063_v36 = vpack.c.bf16 %v2357_v30, %v2353_v28  ;;  %v2108_v22 = vld [vmem:[#allocation3 + $0x1b0] sm:$0xff]  ;;  %v8209_v28 = vpack.c.bf16 %v2820_v19, %v2816_v18  ;;  %v2822_v30 = vld [vmem:[#allocation6 + $0x20c8] sm:$0xff] }
 0x23d   :  { %v2815_v27 = vld [vmem:[#allocation6 + $0x2090] sm:$0xff]  ;;  %v2854_v19 = vld [vmem:[#allocation6 + $0x21c8] sm:$0xff] }
 0x23e   :  { %7916 = vmatpush1.bf16.msra.mxu0 %v7915_v39  ;;  %v2363_v39 = vld [vmem:[#allocation6 + $0x1fa0] sm:$0xff]  ;;  %v2851_v18 = vld [vmem:[#allocation6 + $0x21b0] sm:$0xff] }
 0x23f   :  { %8044 = vmatpush1.bf16.msra.mxu1 %v8043_v40  ;;  %7918 = vmatprep.subr.bf16.mxu0 %v7917_v41  ;;  %v2361_v40 = vld [vmem:[#allocation6 + $0x1f90] sm:$0xff]  ;;  %v8065_v41 = vpack.c.bf16 %v2366_v34, %v2362_v33  ;;  %v7939_v47 = vpack.c.bf16 %v2363_v39, %v2359_v38  ;;  %v2828_v33 = vld [vmem:[#allocation6 + $0x20f8] sm:$0xff]  ;;  %v8085_v38 = vpack.c.bf16 %v2826_v31, %v2822_v30  ;;  %v2821_v39 = vld [vmem:[#allocation6 + $0x20c0] sm:$0xff] }
 0x240   :  { %8046 = vmatprep.subr.bf16.mxu1 %v8045_v45  ;;  %v2370_v45 = vld [vmem:[#allocation6 + $0x1fd8] sm:$0xff]  ;;  %v8067_v48 = vpack.c.bf16 %v2365_v42, %v2361_v40  ;;  %v2825_v40 = vld [vmem:[#allocation6 + $0x20e0] sm:$0xff]  ;;  %v8213_v42 = vpack.c.bf16 %v2828_v33, %v2824_v32  ;;  %v2859_v30 = vld [vmem:[#allocation6 + $0x21f0] sm:$0xff] }
 0x241   :  { %v2113_v34 = vld [vmem:[#allocation3 + $0x1d8] sm:$0xff]  ;;  %v2862_v31 = vld [vmem:[#allocation6 + $0x2208] sm:$0xff] }
 0x242   :  { %7920 = vmatpush1.bf16.msra.mxu0 %v7919_v51  ;;  %v2371_v51 = vld [vmem:[#allocation6 + $0x1fe0] sm:$0xff]  ;;  %v2866_v32 = vld [vmem:[#allocation6 + $0x2228] sm:$0xff]  ;;  %v2864_v33 = vld [vmem:[#allocation6 + $0x2218] sm:$0xff] }
 0x243   :  { %8048 = vmatpush1.bf16.msra.mxu1 %v8047_v52  ;;  %7922 = vmatprep.subr.bf16.mxu0 %v7921_v53  ;;  %v2369_v52 = vld [vmem:[#allocation6 + $0x1fd0] sm:$0xff]  ;;  %v8069_v53 = vpack.c.bf16 %v2374_v46, %v2370_v45  ;;  %v7943_v59 = vpack.c.bf16 %v2371_v51, %v2367_v50  ;;  %v2834_v45 = vld [vmem:[#allocation6 + $0x2128] sm:$0xff]  ;;  %v2832_v46 = vld [vmem:[#allocation6 + $0x2118] sm:$0xff] }
 0x244   :  { %8050 = vmatprep.subr.bf16.mxu1 %v8049_v57  ;;  %v2800_v57 = vld [vmem:[#allocation6 + $0x2018] sm:$0xff]  ;;  %v8071_v60 = vpack.c.bf16 %v2373_v54, %v2369_v52  ;;  %v2116_v50 = vld [vmem:[#allocation3 + $0x1f0] sm:$0xff]  ;;  %v8089_v52 = vpack.c.bf16 %v2834_v45, %v2830_v44  ;;  %v2833_v54 = vld [vmem:[#allocation6 + $0x2120] sm:$0xff] }
 0x245   :  { %v2874_v44 = vld [vmem:[#allocation6 + $0x2268] sm:$0xff]  ;;  %v2872_v45 = vld [vmem:[#allocation6 + $0x2258] sm:$0xff] }
 0x246   :  { %7924 = vmatpush1.bf16.msra.mxu0 %v7923_v63  ;;  %v2801_v63 = vld [vmem:[#allocation6 + $0x2020] sm:$0xff] }
 0x247   :  { %8052 = vmatpush1.bf16.msra.mxu1 %v8051_v0  ;;  %7926 = vmatprep.subr.bf16.mxu0 %v7925_v1  ;;  %v2799_v0 = vld [vmem:[#allocation6 + $0x2010] sm:$0xff]  ;;  %v8201_v1 = vpack.c.bf16 %v2804_v58, %v2800_v57  ;;  %v8075_v8 = vpack.c.bf16 %v2801_v63, %v2797_v62  ;;  %v2838_v58 = vld [vmem:[#allocation6 + $0x2148] sm:$0xff] }
 0x248   :  { %8054 = vmatprep.subr.bf16.mxu1 %v8053_v5  ;;  %v2808_v5 = vld [vmem:[#allocation6 + $0x2058] sm:$0xff]  ;;  %v8203_v9 = vpack.c.bf16 %v2803_v2, %v2799_v0  ;;  %v2835_v57 = vld [vmem:[#allocation6 + $0x2130] sm:$0xff]  ;;  %v2781_v62 = vld [vmem:[#allocation3 + $0x208] sm:$0xff] }
 0x249   :  { %v8205_v14 = vpack.c.bf16 %v2812_v6, %v2808_v5  ;;  %v8219_v0 = vpack.c.bf16 %v2835_v57, %v2831_v55  ;;  %v2837_v2 = vld [vmem:[#allocation6 + $0x2140] sm:$0xff]  ;;  %v2843_v6 = vld [vmem:[#allocation6 + $0x2170] sm:$0xff]  ;;  %v2878_v55 = vld [vmem:[#allocation6 + $0x2288] sm:$0xff] }
 0x24a   :  { %7928 = vmatpush1.bf16.msra.mxu0 %v7927_v11  ;;  %v2805_v11 = vld [vmem:[#allocation6 + $0x2040] sm:$0xff]  ;;  %v2880_v57 = vld [vmem:[#allocation6 + $0x2298] sm:$0xff] }
 0x24b   :  { %8056 = vmatpush1.bf16.msra.mxu1 %v8055_v12  ;;  %7930 = vmatprep.subr.bf16.mxu0 %v7929_v13  ;;  %v2809_v12 = vld [vmem:[#allocation6 + $0x2060] sm:$0xff]  ;;  %v2807_v13 = vld [vmem:[#allocation6 + $0x2050] sm:$0xff] }
 0x24c   :  { %8058 = vmatprep.subr.bf16.mxu1 %v8057_v17  ;;  %v2818_v17 = vld [vmem:[#allocation6 + $0x20a8] sm:$0xff]  ;;  %v8079_v21 = vpack.c.bf16 %v2809_v12, %v2805_v11  ;;  %v8095_v11 = vpack.c.bf16 %v2841_v3, %v2837_v2  ;;  %v8223_v12 = vpack.c.bf16 %v2843_v6, %v2839_v4  ;;  %v2883_v2 = vld [vmem:[#allocation6 + $0x22b0] sm:$0xff]  ;;  %v2892_v6 = vld [vmem:[#allocation6 + $0x22f8] sm:$0xff] }
 0x24d   :  { %v2886_v3 = vld [vmem:[#allocation6 + $0x22c8] sm:$0xff] }
 0x24e   :  { %7932 = vmatpush1.bf16.msra.mxu0 %v7931_v23  ;;  %v8207_v23 = vpack.c.bf16 %v2811_v15, %v2807_v13  ;;  %v2849_v15 = vld [vmem:[#allocation6 + $0x21a0] sm:$0xff]  ;;  %v2890_v4 = vld [vmem:[#allocation6 + $0x22e8] sm:$0xff] }
 0x24f   :  { %8060 = vmatpush1.bf16.msra.mxu1 %v8059_v24  ;;  %7934 = vmatprep.subr.bf16.mxu0 %v7933_v25  ;;  %v8081_v24 = vpack.c.bf16 %v2818_v17, %v2814_v16  ;;  %v2813_v25 = vld [vmem:[#allocation6 + $0x2080] sm:$0xff]  ;;  %v2847_v16 = vld [vmem:[#allocation6 + $0x2190] sm:$0xff] }
 0x250   :  { %8062 = vmatprep.subr.bf16.mxu1 %v8061_v29  ;;  %v2819_v29 = vld [vmem:[#allocation6 + $0x20b0] sm:$0xff] }
 0x252   :  { %7936 = vmatpush1.bf16.msra.mxu0 %v7935_v35  ;;  %v8083_v35 = vpack.c.bf16 %v2817_v26, %v2813_v25  ;;  %v2853_v26 = vld [vmem:[#allocation6 + $0x21c0] sm:$0xff] }
 0x253   :  { %8064 = vmatpush1.bf16.msra.mxu1 %v8063_v36  ;;  %7938 = vmatprep.subr.bf16.mxu0 %v7937_v37  ;;  %v2112_v36 = vld [vmem:[#allocation3 + $0x1d0] sm:$0xff]  ;;  %v8211_v37 = vpack.c.bf16 %v2819_v29, %v2815_v27  ;;  %v2857_v27 = vld [vmem:[#allocation6 + $0x21e0] sm:$0xff] }
 0x254   :  { %8066 = vmatprep.subr.bf16.mxu1 %v8065_v41  ;;  %v2823_v41 = vld [vmem:[#allocation6 + $0x20d0] sm:$0xff] }
 0x255   :  { %v8215_v51 = vpack.c.bf16 %v2827_v43, %v2823_v41  ;;  %v2870_v43 = vld [vmem:[#allocation6 + $0x2248] sm:$0xff] }
 0x256   :  { %7940 = vmatpush1.bf16.msra.mxu0 %v7939_v47  ;;  %v2836_v47 = vld [vmem:[#allocation6 + $0x2138] sm:$0xff] }
 0x257   :  { %8068 = vmatpush1.bf16.msra.mxu1 %v8067_v48  ;;  %7942 = vmatprep.subr.bf16.mxu0 %v7941_v49  ;;  %v2117_v48 = vld [vmem:[#allocation3 + $0x1f8] sm:$0xff]  ;;  %v8087_v49 = vpack.c.bf16 %v2825_v40, %v2821_v39  ;;  %v8217_v56 = vpack.c.bf16 %v2836_v47, %v2832_v46  ;;  %v2865_v39 = vld [vmem:[#allocation6 + $0x2220] sm:$0xff]  ;;  %v2863_v40 = vld [vmem:[#allocation6 + $0x2210] sm:$0xff] }
 0x258   :  { %8070 = vmatprep.subr.bf16.mxu1 %v8069_v53  ;;  %v2829_v53 = vld [vmem:[#allocation6 + $0x2100] sm:$0xff]  ;;  %v2876_v46 = vld [vmem:[#allocation6 + $0x2278] sm:$0xff] }
 0x259   :  { %v8091_v63 = vpack.c.bf16 %v2833_v54, %v2829_v53  ;;  %v8237_v53 = vpack.c.bf16 %v2876_v46, %v2872_v45  ;;  %v2875_v54 = vld [vmem:[#allocation6 + $0x2270] sm:$0xff]  ;;  %v2909_v46 = vld [vmem:[#allocation6 + $0x2380] sm:$0xff] }
 0x25a   :  { %7944 = vmatpush1.bf16.msra.mxu0 %v7943_v59  ;;  %v2842_v59 = vld [vmem:[#allocation6 + $0x2168] sm:$0xff] }
 0x25b   :  { %8072 = vmatpush1.bf16.msra.mxu1 %v8071_v60  ;;  %8074 = vmatprep.subr.bf16.mxu0 %v8073_v61  ;;  %v2840_v60 = vld [vmem:[#allocation6 + $0x2158] sm:$0xff] }
 0x25c   :  { %8202 = vmatprep.subr.bf16.mxu1 %v8201_v1  ;;  %v2844_v61 = vld [vmem:[#allocation6 + $0x2178] sm:$0xff]  ;;  %v8093_v1 = vpack.c.bf16 %v2842_v59, %v2838_v58 }
 0x25d   :  { %2529 = vmatmul.mubr.f32.vlgmr.msra.gmra.mrb[0].mxu0 %v2104_v7  ;;  %v8221_v5 = vpack.c.bf16 %v2844_v61, %v2840_v60  ;;  %v2884_v58 = vld [vmem:[#allocation6 + $0x22b8] sm:$0xff] }
 0x25e   :  { %2707 = vmatmul.mubr.f32.vlgmr.msra.gmra.mrb[0].mxu1 %v2104_v7  ;;  %8076 = vmatpush1.bf16.msra.mxu0 %v8075_v8  ;;  %v2846_v7 = vld [vmem:[#allocation6 + $0x2188] sm:$0xff] }
 0x25f   :  { %8204 = vmatpush1.bf16.msra.mxu1 %v8203_v9  ;;  %8078 = vmatprep.subr.bf16.mxu0 %v8077_v10  ;;  %v2850_v8 = vld [vmem:[#allocation6 + $0x21a8] sm:$0xff]  ;;  %v2848_v9 = vld [vmem:[#allocation6 + $0x2198] sm:$0xff] }
 0x260   :  { %8206 = vmatprep.subr.bf16.mxu1 %v8205_v14  ;;  %2534 = vmatprep.mubr.f32.mxu0 %v2109_v20  ;;  %v2852_v10 = vld [vmem:[#allocation6 + $0x21b8] sm:$0xff]  ;;  %v8097_v13 = vpack.c.bf16 %v2850_v8, %v2846_v7  ;;  %v2845_v14 = vld [vmem:[#allocation6 + $0x2180] sm:$0xff] }
 0x261   :  { %2712 = vmatprep.mubr.f32.mxu1 %v2109_v20  ;;  %2535 = vmatmul.mubr.f32.gmra.mrb[2].mxu0 %v2108_v22  ;;  %v8225_v17 = vpack.c.bf16 %v2852_v10, %v2848_v9  ;;  %v2858_v20 = vld [vmem:[#allocation6 + $0x21e8] sm:$0xff]  ;;  %v8117_v9 = vpack.c.bf16 %v2890_v4, %v2886_v3  ;;  %v2885_v10 = vld [vmem:[#allocation6 + $0x22c0] sm:$0xff] }
 0x262   :  { %8080 = vmatpush1.bf16.msra.mxu0 %v8079_v21  ;;  %2713 = vmatmul.mubr.f32.gmra.mrb[2].mxu1 %v2108_v22  ;;  %v2856_v21 = vld [vmem:[#allocation6 + $0x21d8] sm:$0xff]  ;;  %v8101_v25 = vpack.c.bf16 %v2858_v20, %v2854_v19 }
 0x263   :  { %8208 = vmatpush1.bf16.msra.mxu1 %v8207_v23  ;;  %8082 = vmatprep.subr.bf16.mxu0 %v8081_v24  ;;  %v2860_v22 = vld [vmem:[#allocation6 + $0x21f8] sm:$0xff]  ;;  %v8099_v23 = vpack.c.bf16 %v2849_v15, %v2845_v14  ;;  %v8227_v24 = vpack.c.bf16 %v2851_v18, %v2847_v16  ;;  %v2891_v14 = vld [vmem:[#allocation6 + $0x22f0] sm:$0xff]  ;;  %v2894_v15 = vld [vmem:[#allocation6 + $0x2308] sm:$0xff] }
 0x264   :  { %8210 = vmatprep.subr.bf16.mxu1 %v8209_v28  ;;  %2540 = vmatprep.mubr.f32.mxu0 %v2113_v34  ;;  %v2855_v28 = vld [vmem:[#allocation6 + $0x21d0] sm:$0xff]  ;;  %v8229_v29 = vpack.c.bf16 %v2860_v22, %v2856_v21  ;;  %v2898_v16 = vld [vmem:[#allocation6 + $0x2328] sm:$0xff]  ;;  %v2900_v18 = vld [vmem:[#allocation6 + $0x2338] sm:$0xff] }
 0x265   :  { %2718 = vmatprep.mubr.f32.mxu1 %v2113_v34  ;;  %2541 = vmatmul.mubr.f32.gmra.mrb[4].mxu0 %v2112_v36  ;;  %v2868_v34 = vld [vmem:[#allocation6 + $0x2238] sm:$0xff]  ;;  %v8121_v21 = vpack.c.bf16 %v2898_v16, %v2894_v15  ;;  %v2893_v22 = vld [vmem:[#allocation6 + $0x2300] sm:$0xff] }
 0x266   :  { %8084 = vmatpush1.bf16.msra.mxu0 %v8083_v35  ;;  %2719 = vmatmul.mubr.f32.gmra.mrb[4].mxu1 %v2112_v36  ;;  %v8103_v35 = vpack.c.bf16 %v2857_v27, %v2853_v26  ;;  %v8231_v36 = vpack.c.bf16 %v2859_v30, %v2855_v28  ;;  %v8233_v41 = vpack.c.bf16 %v2868_v34, %v2864_v33  ;;  %v2899_v26 = vld [vmem:[#allocation6 + $0x2330] sm:$0xff]  ;;  %v2902_v27 = vld [vmem:[#allocation6 + $0x2348] sm:$0xff]  ;;  %v2908_v30 = vld [vmem:[#allocation6 + $0x2378] sm:$0xff] }
 0x267   :  { %8212 = vmatpush1.bf16.msra.mxu1 %v8211_v37  ;;  %8086 = vmatprep.subr.bf16.mxu0 %v8085_v38  ;;  %v8105_v37 = vpack.c.bf16 %v2866_v32, %v2862_v31  ;;  %v2861_v38 = vld [vmem:[#allocation6 + $0x2200] sm:$0xff]  ;;  %v2906_v28 = vld [vmem:[#allocation6 + $0x2368] sm:$0xff] }
 0x268   :  { %8214 = vmatprep.subr.bf16.mxu1 %v8213_v42  ;;  %2546 = vmatprep.mubr.f32.mxu0 %v2117_v48  ;;  %v2867_v42 = vld [vmem:[#allocation6 + $0x2230] sm:$0xff]  ;;  %v8107_v47 = vpack.c.bf16 %v2865_v39, %v2861_v38  ;;  %v8125_v33 = vpack.c.bf16 %v2906_v28, %v2902_v27  ;;  %v2901_v34 = vld [vmem:[#allocation6 + $0x2340] sm:$0xff]  ;;  %v2910_v39 = vld [vmem:[#allocation6 + $0x2388] sm:$0xff] }
 0x269   :  { %2724 = vmatprep.mubr.f32.mxu1 %v2117_v48  ;;  %2547 = vmatmul.mubr.f32.gmra.mrb[6].mxu0 %v2116_v50  ;;  %v8235_v48 = vpack.c.bf16 %v2867_v42, %v2863_v40  ;;  %v2907_v38 = vld [vmem:[#allocation6 + $0x2370] sm:$0xff]  ;;  %v2914_v40 = vld [vmem:[#allocation6 + $0x23a8] sm:$0xff]  ;;  %v2916_v42 = vld [vmem:[#allocation6 + $0x23b8] sm:$0xff] }
 0x26a   :  { %8088 = vmatpush1.bf16.msra.mxu0 %v8087_v49  ;;  %2725 = vmatmul.mubr.f32.gmra.mrb[6].mxu1 %v2116_v50  ;;  %v8109_v49 = vpack.c.bf16 %v2874_v44, %v2870_v43  ;;  %v2869_v50 = vld [vmem:[#allocation6 + $0x2240] sm:$0xff]  ;;  %v8129_v45 = vpack.c.bf16 %v2914_v40, %v2910_v39  ;;  %v2948_v27 = vld [vmem:[#allocation6 + $0x24b8] sm:$0xff]  ;;  %v2785_v28 = vld [vmem:[#allocation3 + $0x228] sm:$0xff] }
 0x26b   :  { %8216 = vmatpush1.bf16.msra.mxu1 %v8215_v51  ;;  %8090 = vmatprep.subr.bf16.mxu0 %v8089_v52  ;;  %v2873_v51 = vld [vmem:[#allocation6 + $0x2260] sm:$0xff]  ;;  %v2871_v52 = vld [vmem:[#allocation6 + $0x2250] sm:$0xff]  ;;  %v2954_v39 = vld [vmem:[#allocation6 + $0x24e8] sm:$0xff] }
 0x26c   :  { %8218 = vmatprep.subr.bf16.mxu1 %v8217_v56  ;;  %3117 = vmatprep.mubr.f32.mxu0 %v2781_v62  ;;  %v2882_v56 = vld [vmem:[#allocation6 + $0x22a8] sm:$0xff]  ;;  %v8111_v59 = vpack.c.bf16 %v2873_v51, %v2869_v50  ;;  %v8239_v60 = vpack.c.bf16 %v2875_v54, %v2871_v52  ;;  %v2915_v50 = vld [vmem:[#allocation6 + $0x23b0] sm:$0xff]  ;;  %v2924_v54 = vld [vmem:[#allocation6 + $0x23f8] sm:$0xff] }
 0x26d   :  { %3295 = vmatprep.mubr.f32.mxu1 %v2781_v62  ;;  %v8113_v61 = vpack.c.bf16 %v2882_v56, %v2878_v55  ;;  %v2877_v62 = vld [vmem:[#allocation6 + $0x2280] sm:$0xff]  ;;  %v2918_v51 = vld [vmem:[#allocation6 + $0x23c8] sm:$0xff]  ;;  %v2952_v40 = vld [vmem:[#allocation6 + $0x24d8] sm:$0xff] }
 0x26e   :  { %8092 = vmatpush1.bf16.msra.mxu0 %v8091_v63  ;;  %v2881_v63 = vld [vmem:[#allocation6 + $0x22a0] sm:$0xff]  ;;  %v2922_v52 = vld [vmem:[#allocation6 + $0x23e8] sm:$0xff] }
 0x26f   :  { %8220 = vmatpush1.bf16.msra.mxu1 %v8219_v0  ;;  %8094 = vmatprep.subr.bf16.mxu0 %v8093_v1  ;;  %v2879_v0 = vld [vmem:[#allocation6 + $0x2290] sm:$0xff]  ;;  %v8241_v1 = vpack.c.bf16 %v2884_v58, %v2880_v57  ;;  %v8115_v7 = vpack.c.bf16 %v2881_v63, %v2877_v62  ;;  %v8133_v57 = vpack.c.bf16 %v2922_v52, %v2918_v51  ;;  %v2917_v58 = vld [vmem:[#allocation6 + $0x23c0] sm:$0xff]  ;;  %v2926_v63 = vld [vmem:[#allocation6 + $0x2408] sm:$0xff] }
 0x270   :  { %8222 = vmatprep.subr.bf16.mxu1 %v8221_v5  ;;  %v2888_v5 = vld [vmem:[#allocation6 + $0x22d8] sm:$0xff]  ;;  %v8243_v8 = vpack.c.bf16 %v2883_v2, %v2879_v0  ;;  %v2923_v62 = vld [vmem:[#allocation6 + $0x23f0] sm:$0xff]  ;;  %v2930_v0 = vld [vmem:[#allocation6 + $0x2428] sm:$0xff] }
 0x271   :  { %v2932_v2 = vld [vmem:[#allocation6 + $0x2438] sm:$0xff]  ;;  %v2780_v15 = vld [vmem:[#allocation3 + $0x200] sm:$0xff]  ;;  %v2955_v51 = vld [vmem:[#allocation6 + $0x24f0] sm:$0xff] }
 0x272   :  { %8096 = vmatpush1.bf16.msra.mxu0 %v8095_v11  ;;  %v2889_v11 = vld [vmem:[#allocation6 + $0x22e0] sm:$0xff]  ;;  %v2958_v52 = vld [vmem:[#allocation6 + $0x2508] sm:$0xff] }
 0x273   :  { %8224 = vmatpush1.bf16.msra.mxu1 %v8223_v12  ;;  %8098 = vmatprep.subr.bf16.mxu0 %v8097_v13  ;;  %v2887_v12 = vld [vmem:[#allocation6 + $0x22d0] sm:$0xff]  ;;  %v8245_v13 = vpack.c.bf16 %v2892_v6, %v2888_v5  ;;  %v8119_v19 = vpack.c.bf16 %v2889_v11, %v2885_v10  ;;  %v8137_v5 = vpack.c.bf16 %v2930_v0, %v2926_v63  ;;  %v2925_v6 = vld [vmem:[#allocation6 + $0x2400] sm:$0xff]  ;;  %v2934_v11 = vld [vmem:[#allocation6 + $0x2448] sm:$0xff] }
 0x274   :  { %8226 = vmatprep.subr.bf16.mxu1 %v8225_v17  ;;  %v2896_v17 = vld [vmem:[#allocation6 + $0x2318] sm:$0xff]  ;;  %v8247_v20 = vpack.c.bf16 %v2891_v14, %v2887_v12  ;;  %v2931_v10 = vld [vmem:[#allocation6 + $0x2430] sm:$0xff]  ;;  %v2938_v12 = vld [vmem:[#allocation6 + $0x2468] sm:$0xff] }
 0x275   :  { %v2940_v14 = vld [vmem:[#allocation6 + $0x2478] sm:$0xff]  ;;  %v2959_v63 = vld [vmem:[#allocation6 + $0x2510] sm:$0xff] }
 0x276   :  { %8100 = vmatpush1.bf16.msra.mxu0 %v8099_v23  ;;  %v2897_v23 = vld [vmem:[#allocation6 + $0x2320] sm:$0xff] }
 0x277   :  { %8228 = vmatpush1.bf16.msra.mxu1 %v8227_v24  ;;  %8102 = vmatprep.subr.bf16.mxu0 %v8101_v25  ;;  %v2895_v24 = vld [vmem:[#allocation6 + $0x2310] sm:$0xff]  ;;  %v8249_v25 = vpack.c.bf16 %v2900_v18, %v2896_v17  ;;  %v8123_v31 = vpack.c.bf16 %v2897_v23, %v2893_v22  ;;  %v8141_v18 = vpack.c.bf16 %v2938_v12, %v2934_v11  ;;  %v2969_v11 = vld [vmem:[#allocation6 + $0x2560] sm:$0xff] }
 0x278   :  { %8230 = vmatprep.subr.bf16.mxu1 %v8229_v29  ;;  %v2904_v29 = vld [vmem:[#allocation6 + $0x2358] sm:$0xff]  ;;  %v8251_v32 = vpack.c.bf16 %v2899_v26, %v2895_v24  ;;  %v2939_v23 = vld [vmem:[#allocation6 + $0x2470] sm:$0xff]  ;;  %v2942_v24 = vld [vmem:[#allocation6 + $0x2488] sm:$0xff] }
 0x279   :  { %v2944_v26 = vld [vmem:[#allocation6 + $0x2498] sm:$0xff]  ;;  %v2967_v12 = vld [vmem:[#allocation6 + $0x2550] sm:$0xff] }
 0x27a   :  { %8104 = vmatpush1.bf16.msra.mxu0 %v8103_v35  ;;  %v2905_v35 = vld [vmem:[#allocation6 + $0x2360] sm:$0xff] }
 0x27b   :  { %8232 = vmatpush1.bf16.msra.mxu1 %v8231_v36  ;;  %8106 = vmatprep.subr.bf16.mxu0 %v8105_v37  ;;  %v2903_v36 = vld [vmem:[#allocation6 + $0x2350] sm:$0xff]  ;;  %v8253_v37 = vpack.c.bf16 %v2908_v30, %v2904_v29  ;;  %v8127_v43 = vpack.c.bf16 %v2905_v35, %v2901_v34  ;;  %v2784_v30 = vld [vmem:[#allocation3 + $0x220] sm:$0xff] }
 0x27c   :  { %8234 = vmatprep.subr.bf16.mxu1 %v8233_v41  ;;  %v2912_v41 = vld [vmem:[#allocation6 + $0x2398] sm:$0xff]  ;;  %v8255_v44 = vpack.c.bf16 %v2907_v38, %v2903_v36  ;;  %v2945_v34 = vld [vmem:[#allocation6 + $0x24a0] sm:$0xff]  ;;  %v2943_v35 = vld [vmem:[#allocation6 + $0x2490] sm:$0xff]  ;;  %v8273_v36 = vpack.c.bf16 %v2948_v27, %v2944_v26 }
 0x27d   :  { %v2950_v38 = vld [vmem:[#allocation6 + $0x24c8] sm:$0xff]  ;;  %v2979_v26 = vld [vmem:[#allocation6 + $0x25b0] sm:$0xff] }
 0x27e   :  { %8108 = vmatpush1.bf16.msra.mxu0 %v8107_v47  ;;  %v2913_v47 = vld [vmem:[#allocation6 + $0x23a0] sm:$0xff]  ;;  %v2982_v27 = vld [vmem:[#allocation6 + $0x25c8] sm:$0xff] }
 0x27f   :  { %8236 = vmatpush1.bf16.msra.mxu1 %v8235_v48  ;;  %8110 = vmatprep.subr.bf16.mxu0 %v8109_v49  ;;  %v2911_v48 = vld [vmem:[#allocation6 + $0x2390] sm:$0xff]  ;;  %v8257_v49 = vpack.c.bf16 %v2916_v42, %v2912_v41  ;;  %v8131_v55 = vpack.c.bf16 %v2913_v47, %v2909_v46  ;;  %v2956_v41 = vld [vmem:[#allocation6 + $0x24f8] sm:$0xff]  ;;  %v2789_v42 = vld [vmem:[#allocation3 + $0x248] sm:$0xff]  ;;  %v8149_v46 = vpack.c.bf16 %v2954_v39, %v2950_v38 }
 0x280   :  { %8238 = vmatprep.subr.bf16.mxu1 %v8237_v53  ;;  %v2920_v53 = vld [vmem:[#allocation6 + $0x23d8] sm:$0xff]  ;;  %v8259_v56 = vpack.c.bf16 %v2915_v50, %v2911_v48  ;;  %v2949_v47 = vld [vmem:[#allocation6 + $0x24c0] sm:$0xff]  ;;  %v8277_v50 = vpack.c.bf16 %v2956_v41, %v2952_v40  ;;  %v2987_v38 = vld [vmem:[#allocation6 + $0x25f0] sm:$0xff] }
 0x281   :  { %v2953_v48 = vld [vmem:[#allocation6 + $0x24e0] sm:$0xff]  ;;  %v2990_v39 = vld [vmem:[#allocation6 + $0x2608] sm:$0xff]  ;;  %v2992_v41 = vld [vmem:[#allocation6 + $0x2618] sm:$0xff] }
 0x282   :  { %8112 = vmatpush1.bf16.msra.mxu0 %v8111_v59  ;;  %v2921_v59 = vld [vmem:[#allocation6 + $0x23e0] sm:$0xff]  ;;  %v2994_v40 = vld [vmem:[#allocation6 + $0x2628] sm:$0xff] }
 0x283   :  { %8240 = vmatpush1.bf16.msra.mxu1 %v8239_v60  ;;  %8114 = vmatprep.subr.bf16.mxu0 %v8113_v61  ;;  %v2919_v60 = vld [vmem:[#allocation6 + $0x23d0] sm:$0xff]  ;;  %v8261_v61 = vpack.c.bf16 %v2924_v54, %v2920_v53  ;;  %v8135_v3 = vpack.c.bf16 %v2921_v59, %v2917_v58  ;;  %v2962_v53 = vld [vmem:[#allocation6 + $0x2528] sm:$0xff]  ;;  %v2960_v54 = vld [vmem:[#allocation6 + $0x2518] sm:$0xff] }
 0x284   :  { %8242 = vmatprep.subr.bf16.mxu1 %v8241_v1  ;;  %v2928_v1 = vld [vmem:[#allocation6 + $0x2418] sm:$0xff]  ;;  %v8263_v4 = vpack.c.bf16 %v2923_v62, %v2919_v60  ;;  %v2792_v58 = vld [vmem:[#allocation3 + $0x260] sm:$0xff]  ;;  %v8153_v60 = vpack.c.bf16 %v2962_v53, %v2958_v52  ;;  %v3002_v52 = vld [vmem:[#allocation6 + $0x2668] sm:$0xff] }
 0x285   :  { %v2961_v62 = vld [vmem:[#allocation6 + $0x2520] sm:$0xff]  ;;  %v3000_v53 = vld [vmem:[#allocation6 + $0x2658] sm:$0xff] }
 0x286   :  { %8116 = vmatpush1.bf16.msra.mxu0 %v8115_v7  ;;  %v2929_v7 = vld [vmem:[#allocation6 + $0x2420] sm:$0xff] }
 0x287   :  { %8244 = vmatpush1.bf16.msra.mxu1 %v8243_v8  ;;  %8118 = vmatprep.subr.bf16.mxu0 %v8117_v9  ;;  %v2927_v8 = vld [vmem:[#allocation6 + $0x2410] sm:$0xff]  ;;  %v8265_v9 = vpack.c.bf16 %v2932_v2, %v2928_v1  ;;  %v8139_v16 = vpack.c.bf16 %v2929_v7, %v2925_v6  ;;  %v2966_v2 = vld [vmem:[#allocation6 + $0x2548] sm:$0xff]  ;;  %v2783_v6 = vld [vmem:[#allocation3 + $0x218] sm:$0xff] }
 0x288   :  { %8246 = vmatprep.subr.bf16.mxu1 %v8245_v13  ;;  %v2936_v13 = vld [vmem:[#allocation6 + $0x2458] sm:$0xff]  ;;  %v8267_v17 = vpack.c.bf16 %v2931_v10, %v2927_v8  ;;  %v2963_v1 = vld [vmem:[#allocation6 + $0x2530] sm:$0xff]  ;;  %v2965_v10 = vld [vmem:[#allocation6 + $0x2540] sm:$0xff] }
 0x289   :  { %v8269_v22 = vpack.c.bf16 %v2940_v14, %v2936_v13  ;;  %v8283_v8 = vpack.c.bf16 %v2963_v1, %v2959_v63  ;;  %v2971_v14 = vld [vmem:[#allocation6 + $0x2570] sm:$0xff]  ;;  %v3006_v63 = vld [vmem:[#allocation6 + $0x2688] sm:$0xff]  ;;  %v3008_v1 = vld [vmem:[#allocation6 + $0x2698] sm:$0xff] }
 0x28a   :  { %8120 = vmatpush1.bf16.msra.mxu0 %v8119_v19  ;;  %v2933_v19 = vld [vmem:[#allocation6 + $0x2440] sm:$0xff] }
 0x28b   :  { %8248 = vmatpush1.bf16.msra.mxu1 %v8247_v20  ;;  %8122 = vmatprep.subr.bf16.mxu0 %v8121_v21  ;;  %v2937_v20 = vld [vmem:[#allocation6 + $0x2460] sm:$0xff]  ;;  %v2935_v21 = vld [vmem:[#allocation6 + $0x2450] sm:$0xff] }
 0x28c   :  { %8250 = vmatprep.subr.bf16.mxu1 %v8249_v25  ;;  %v2946_v25 = vld [vmem:[#allocation6 + $0x24a8] sm:$0xff]  ;;  %v8143_v29 = vpack.c.bf16 %v2937_v20, %v2933_v19  ;;  %v8159_v19 = vpack.c.bf16 %v2969_v11, %v2965_v10  ;;  %v8287_v20 = vpack.c.bf16 %v2971_v14, %v2967_v12  ;;  %v3011_v10 = vld [vmem:[#allocation6 + $0x26b0] sm:$0xff]  ;;  %v3020_v14 = vld [vmem:[#allocation6 + $0x26f8] sm:$0xff] }
 0x28d   :  { %v3014_v11 = vld [vmem:[#allocation6 + $0x26c8] sm:$0xff] }
 0x28e   :  { %8124 = vmatpush1.bf16.msra.mxu0 %v8123_v31  ;;  %v8271_v31 = vpack.c.bf16 %v2939_v23, %v2935_v21  ;;  %v2977_v23 = vld [vmem:[#allocation6 + $0x25a0] sm:$0xff]  ;;  %v3018_v12 = vld [vmem:[#allocation6 + $0x26e8] sm:$0xff] }
 0x28f   :  { %8252 = vmatpush1.bf16.msra.mxu1 %v8251_v32  ;;  %8126 = vmatprep.subr.bf16.mxu0 %v8125_v33  ;;  %v8145_v32 = vpack.c.bf16 %v2946_v25, %v2942_v24  ;;  %v2941_v33 = vld [vmem:[#allocation6 + $0x2480] sm:$0xff]  ;;  %v2975_v24 = vld [vmem:[#allocation6 + $0x2590] sm:$0xff] }
 0x290   :  { %8254 = vmatprep.subr.bf16.mxu1 %v8253_v37  ;;  %v2947_v37 = vld [vmem:[#allocation6 + $0x24b0] sm:$0xff] }
 0x292   :  { %8128 = vmatpush1.bf16.msra.mxu0 %v8127_v43  ;;  %v8147_v43 = vpack.c.bf16 %v2945_v34, %v2941_v33  ;;  %v2981_v34 = vld [vmem:[#allocation6 + $0x25c0] sm:$0xff] }
 0x293   :  { %8256 = vmatpush1.bf16.msra.mxu1 %v8255_v44  ;;  %8130 = vmatprep.subr.bf16.mxu0 %v8129_v45  ;;  %v2788_v44 = vld [vmem:[#allocation3 + $0x240] sm:$0xff]  ;;  %v8275_v45 = vpack.c.bf16 %v2947_v37, %v2943_v35 }
 0x294   :  { %8258 = vmatprep.subr.bf16.mxu1 %v8257_v49  ;;  %v2951_v49 = vld [vmem:[#allocation6 + $0x24d0] sm:$0xff]  ;;  %v2985_v35 = vld [vmem:[#allocation6 + $0x25e0] sm:$0xff] }
 0x295   :  { %v8279_v59 = vpack.c.bf16 %v2955_v51, %v2951_v49  ;;  %v2998_v51 = vld [vmem:[#allocation6 + $0x2648] sm:$0xff] }
 0x296   :  { %8132 = vmatpush1.bf16.msra.mxu0 %v8131_v55  ;;  %v2964_v55 = vld [vmem:[#allocation6 + $0x2538] sm:$0xff] }
 0x297   :  { %8260 = vmatpush1.bf16.msra.mxu1 %v8259_v56  ;;  %8134 = vmatprep.subr.bf16.mxu0 %v8133_v57  ;;  %v2793_v56 = vld [vmem:[#allocation3 + $0x268] sm:$0xff]  ;;  %v8151_v57 = vpack.c.bf16 %v2953_v48, %v2949_v47  ;;  %v8281_v0 = vpack.c.bf16 %v2964_v55, %v2960_v54  ;;  %v2993_v47 = vld [vmem:[#allocation6 + $0x2620] sm:$0xff]  ;;  %v2991_v48 = vld [vmem:[#allocation6 + $0x2610] sm:$0xff] }
 0x298   :  { %8262 = vmatprep.subr.bf16.mxu1 %v8261_v61  ;;  %v2957_v61 = vld [vmem:[#allocation6 + $0x2500] sm:$0xff]  ;;  %v3004_v54 = vld [vmem:[#allocation6 + $0x2678] sm:$0xff] }
 0x299   :  { %v8155_v7 = vpack.c.bf16 %v2961_v62, %v2957_v61  ;;  %v8301_v61 = vpack.c.bf16 %v3004_v54, %v3000_v53  ;;  %v3003_v62 = vld [vmem:[#allocation6 + $0x2670] sm:$0xff]  ;;  %v3037_v54 = vld [vmem:[#allocation6 + $0x2780] sm:$0xff] }
 0x29a   :  { %8136 = vmatpush1.bf16.msra.mxu0 %v8135_v3  ;;  %v2970_v3 = vld [vmem:[#allocation6 + $0x2568] sm:$0xff] }
 0x29b   :  { %8264 = vmatpush1.bf16.msra.mxu1 %v8263_v4  ;;  %8138 = vmatprep.subr.bf16.mxu0 %v8137_v5  ;;  %v2968_v4 = vld [vmem:[#allocation6 + $0x2558] sm:$0xff] }
 0x29c   :  { %8266 = vmatprep.subr.bf16.mxu1 %v8265_v9  ;;  %v2972_v5 = vld [vmem:[#allocation6 + $0x2578] sm:$0xff]  ;;  %v8157_v9 = vpack.c.bf16 %v2970_v3, %v2966_v2 }
 0x29d   :  { %3118 = vmatmul.mubr.f32.vlgmr.msra.gmra.mrb[0].mxu0 %v2780_v15  ;;  %v8285_v13 = vpack.c.bf16 %v2972_v5, %v2968_v4  ;;  %v3012_v2 = vld [vmem:[#allocation6 + $0x26b8] sm:$0xff] }
 0x29e   :  { %8140 = vmatpush1.bf16.msra.mxu0 %v8139_v16  ;;  %3296 = vmatmul.mubr.f32.vlgmr.msra.gmra.mrb[0].mxu1 %v2780_v15  ;;  %v2974_v15 = vld [vmem:[#allocation6 + $0x2588] sm:$0xff] }
 0x29f   :  { %8268 = vmatpush1.bf16.msra.mxu1 %v8267_v17  ;;  %8142 = vmatprep.subr.bf16.mxu0 %v8141_v18  ;;  %v2978_v16 = vld [vmem:[#allocation6 + $0x25a8] sm:$0xff]  ;;  %v2976_v17 = vld [vmem:[#allocation6 + $0x2598] sm:$0xff] }
 0x2a0   :  { %8270 = vmatprep.subr.bf16.mxu1 %v8269_v22  ;;  %3123 = vmatprep.mubr.f32.mxu0 %v2785_v28  ;;  %v2980_v18 = vld [vmem:[#allocation6 + $0x25b8] sm:$0xff]  ;;  %v8161_v21 = vpack.c.bf16 %v2978_v16, %v2974_v15  ;;  %v2973_v22 = vld [vmem:[#allocation6 + $0x2580] sm:$0xff] }
 0x2a1   :  { %3301 = vmatprep.mubr.f32.mxu1 %v2785_v28  ;;  %3124 = vmatmul.mubr.f32.gmra.mrb[2].mxu0 %v2784_v30  ;;  %v8289_v25 = vpack.c.bf16 %v2980_v18, %v2976_v17  ;;  %v2986_v28 = vld [vmem:[#allocation6 + $0x25e8] sm:$0xff]  ;;  %v8181_v17 = vpack.c.bf16 %v3018_v12, %v3014_v11  ;;  %v3013_v18 = vld [vmem:[#allocation6 + $0x26c0] sm:$0xff] }
 0x2a2   :  { %8144 = vmatpush1.bf16.msra.mxu0 %v8143_v29  ;;  %3302 = vmatmul.mubr.f32.gmra.mrb[2].mxu1 %v2784_v30  ;;  %v2984_v29 = vld [vmem:[#allocation6 + $0x25d8] sm:$0xff]  ;;  %v8165_v33 = vpack.c.bf16 %v2986_v28, %v2982_v27 }
 0x2a3   :  { %8272 = vmatpush1.bf16.msra.mxu1 %v8271_v31  ;;  %8146 = vmatprep.subr.bf16.mxu0 %v8145_v32  ;;  %v2988_v30 = vld [vmem:[#allocation6 + $0x25f8] sm:$0xff]  ;;  %v8163_v31 = vpack.c.bf16 %v2977_v23, %v2973_v22  ;;  %v8291_v32 = vpack.c.bf16 %v2979_v26, %v2975_v24  ;;  %v3019_v22 = vld [vmem:[#allocation6 + $0x26f0] sm:$0xff]  ;;  %v3022_v23 = vld [vmem:[#allocation6 + $0x2708] sm:$0xff] }
 0x2a4   :  { %8274 = vmatprep.subr.bf16.mxu1 %v8273_v36  ;;  %3129 = vmatprep.mubr.f32.mxu0 %v2789_v42  ;;  %v2983_v36 = vld [vmem:[#allocation6 + $0x25d0] sm:$0xff]  ;;  %v8293_v37 = vpack.c.bf16 %v2988_v30, %v2984_v29  ;;  %v3026_v24 = vld [vmem:[#allocation6 + $0x2728] sm:$0xff]  ;;  %v3028_v26 = vld [vmem:[#allocation6 + $0x2738] sm:$0xff] }
 0x2a5   :  { %3307 = vmatprep.mubr.f32.mxu1 %v2789_v42  ;;  %3130 = vmatmul.mubr.f32.gmra.mrb[4].mxu0 %v2788_v44  ;;  %v2996_v42 = vld [vmem:[#allocation6 + $0x2638] sm:$0xff]  ;;  %v8185_v29 = vpack.c.bf16 %v3026_v24, %v3022_v23  ;;  %v3021_v30 = vld [vmem:[#allocation6 + $0x2700] sm:$0xff]  ;;  %v2782_v23 = vld [vmem:[#allocation3 + $0x210] sm:$0xff] }
 0x2a6   :  { %8148 = vmatpush1.bf16.msra.mxu0 %v8147_v43  ;;  %3308 = vmatmul.mubr.f32.gmra.mrb[4].mxu1 %v2788_v44  ;;  %v8167_v43 = vpack.c.bf16 %v2985_v35, %v2981_v34  ;;  %v8295_v44 = vpack.c.bf16 %v2987_v38, %v2983_v36  ;;  %v8297_v49 = vpack.c.bf16 %v2996_v42, %v2992_v41  ;;  %v3027_v34 = vld [vmem:[#allocation6 + $0x2730] sm:$0xff]  ;;  %v3030_v35 = vld [vmem:[#allocation6 + $0x2748] sm:$0xff]  ;;  %v3036_v38 = vld [vmem:[#allocation6 + $0x2778] sm:$0xff] }
 0x2a7   :  { %8276 = vmatpush1.bf16.msra.mxu1 %v8275_v45  ;;  %8150 = vmatprep.subr.bf16.mxu0 %v8149_v46  ;;  %v8169_v45 = vpack.c.bf16 %v2994_v40, %v2990_v39  ;;  %v2989_v46 = vld [vmem:[#allocation6 + $0x2600] sm:$0xff]  ;;  %v3034_v36 = vld [vmem:[#allocation6 + $0x2768] sm:$0xff] }
 0x2a8   :  { %8278 = vmatprep.subr.bf16.mxu1 %v8277_v50  ;;  %3135 = vmatprep.mubr.f32.mxu0 %v2793_v56  ;;  %v2995_v50 = vld [vmem:[#allocation6 + $0x2630] sm:$0xff]  ;;  %v8171_v55 = vpack.c.bf16 %v2993_v47, %v2989_v46  ;;  %v8189_v41 = vpack.c.bf16 %v3034_v36, %v3030_v35  ;;  %v3029_v42 = vld [vmem:[#allocation6 + $0x2740] sm:$0xff]  ;;  %v3038_v47 = vld [vmem:[#allocation6 + $0x2788] sm:$0xff] }
 0x2a9   :  { %3313 = vmatprep.mubr.f32.mxu1 %v2793_v56  ;;  %3136 = vmatmul.mubr.f32.gmra.mrb[6].mxu0 %v2792_v58  ;;  %v8299_v56 = vpack.c.bf16 %v2995_v50, %v2991_v48  ;;  %v3035_v46 = vld [vmem:[#allocation6 + $0x2770] sm:$0xff]  ;;  %v3042_v48 = vld [vmem:[#allocation6 + $0x27a8] sm:$0xff]  ;;  %v3044_v50 = vld [vmem:[#allocation6 + $0x27b8] sm:$0xff] }
 0x2aa   :  { %8152 = vmatpush1.bf16.msra.mxu0 %v8151_v57  ;;  %3314 = vmatmul.mubr.f32.gmra.mrb[6].mxu1 %v2792_v58  ;;  %v8173_v57 = vpack.c.bf16 %v3002_v52, %v2998_v51  ;;  %v2997_v58 = vld [vmem:[#allocation6 + $0x2640] sm:$0xff]  ;;  %v8193_v53 = vpack.c.bf16 %v3042_v48, %v3038_v47  ;;  %v3498_v35 = vld [vmem:[#allocation6 + $0x28b8] sm:$0xff]  ;;  %v3504_v47 = vld [vmem:[#allocation6 + $0x28e8] sm:$0xff] }
 0x2ab   :  { %8280 = vmatpush1.bf16.msra.mxu1 %v8279_v59  ;;  %8154 = vmatprep.subr.bf16.mxu0 %v8153_v60  ;;  %v3001_v59 = vld [vmem:[#allocation6 + $0x2660] sm:$0xff]  ;;  %v2999_v60 = vld [vmem:[#allocation6 + $0x2650] sm:$0xff]  ;;  %v2787_v36 = vld [vmem:[#allocation3 + $0x238] sm:$0xff] }
 0x2ac   :  { %8282 = vmatprep.subr.bf16.mxu1 %v8281_v0  ;;  %3206 = vmatprep.mubr.f32.mxu0 %v2783_v6  ;;  %v3010_v0 = vld [vmem:[#allocation6 + $0x26a8] sm:$0xff]  ;;  %v8175_v3 = vpack.c.bf16 %v3001_v59, %v2997_v58  ;;  %v8303_v4 = vpack.c.bf16 %v3003_v62, %v2999_v60  ;;  %v3043_v58 = vld [vmem:[#allocation6 + $0x27b0] sm:$0xff]  ;;  %v3052_v62 = vld [vmem:[#allocation6 + $0x27f8] sm:$0xff] }
 0x2ad   :  { %3384 = vmatprep.mubr.f32.mxu1 %v2783_v6  ;;  %v8177_v5 = vpack.c.bf16 %v3010_v0, %v3006_v63  ;;  %v3005_v6 = vld [vmem:[#allocation6 + $0x2680] sm:$0xff]  ;;  %v3046_v59 = vld [vmem:[#allocation6 + $0x27c8] sm:$0xff]  ;;  %v3502_v48 = vld [vmem:[#allocation6 + $0x28d8] sm:$0xff] }
 0x2ae   :  { %8156 = vmatpush1.bf16.msra.mxu0 %v8155_v7  ;;  %v3009_v7 = vld [vmem:[#allocation6 + $0x26a0] sm:$0xff]  ;;  %v3050_v60 = vld [vmem:[#allocation6 + $0x27e8] sm:$0xff] }
 0x2af   :  { %8284 = vmatpush1.bf16.msra.mxu1 %v8283_v8  ;;  %8158 = vmatprep.subr.bf16.mxu0 %v8157_v9  ;;  %v3007_v8 = vld [vmem:[#allocation6 + $0x2690] sm:$0xff]  ;;  %v8305_v9 = vpack.c.bf16 %v3012_v2, %v3008_v1  ;;  %v8179_v15 = vpack.c.bf16 %v3009_v7, %v3005_v6  ;;  %v8197_v1 = vpack.c.bf16 %v3050_v60, %v3046_v59  ;;  %v3045_v2 = vld [vmem:[#allocation6 + $0x27c0] sm:$0xff]  ;;  %v3476_v7 = vld [vmem:[#allocation6 + $0x2808] sm:$0xff] }
 0x2b0   :  { %8286 = vmatprep.subr.bf16.mxu1 %v8285_v13  ;;  %v3016_v13 = vld [vmem:[#allocation6 + $0x26d8] sm:$0xff]  ;;  %v8307_v16 = vpack.c.bf16 %v3011_v10, %v3007_v8  ;;  %v3051_v6 = vld [vmem:[#allocation6 + $0x27f0] sm:$0xff]  ;;  %v3480_v8 = vld [vmem:[#allocation6 + $0x2828] sm:$0xff] }
 0x2b1   :  { %v3482_v10 = vld [vmem:[#allocation6 + $0x2838] sm:$0xff]  ;;  %v3505_v59 = vld [vmem:[#allocation6 + $0x28f0] sm:$0xff]  ;;  %v3508_v60 = vld [vmem:[#allocation6 + $0x2908] sm:$0xff] }
 0x2b2   :  { %8160 = vmatpush1.bf16.msra.mxu0 %v8159_v19  ;;  %v3017_v19 = vld [vmem:[#allocation6 + $0x26e0] sm:$0xff] }
 0x2b3   :  { %8288 = vmatpush1.bf16.msra.mxu1 %v8287_v20  ;;  %8162 = vmatprep.subr.bf16.mxu0 %v8161_v21  ;;  %v3015_v20 = vld [vmem:[#allocation6 + $0x26d0] sm:$0xff]  ;;  %v8309_v21 = vpack.c.bf16 %v3020_v14, %v3016_v13  ;;  %v8183_v27 = vpack.c.bf16 %v3017_v19, %v3013_v18  ;;  %v8329_v13 = vpack.c.bf16 %v3480_v8, %v3476_v7  ;;  %v3475_v14 = vld [vmem:[#allocation6 + $0x2800] sm:$0xff]  ;;  %v3484_v19 = vld [vmem:[#allocation6 + $0x2848] sm:$0xff] }
 0x2b4   :  { %8290 = vmatprep.subr.bf16.mxu1 %v8289_v25  ;;  %v3024_v25 = vld [vmem:[#allocation6 + $0x2718] sm:$0xff]  ;;  %v8311_v28 = vpack.c.bf16 %v3019_v22, %v3015_v20  ;;  %v3481_v18 = vld [vmem:[#allocation6 + $0x2830] sm:$0xff]  ;;  %v3488_v20 = vld [vmem:[#allocation6 + $0x2868] sm:$0xff] }
 0x2b5   :  { %v3490_v22 = vld [vmem:[#allocation6 + $0x2878] sm:$0xff]  ;;  %v3509_v7 = vld [vmem:[#allocation6 + $0x2910] sm:$0xff] }
 0x2b6   :  { %8164 = vmatpush1.bf16.msra.mxu0 %v8163_v31  ;;  %v3025_v31 = vld [vmem:[#allocation6 + $0x2720] sm:$0xff] }
 0x2b7   :  { %8292 = vmatpush1.bf16.msra.mxu1 %v8291_v32  ;;  %8166 = vmatprep.subr.bf16.mxu0 %v8165_v33  ;;  %v3023_v32 = vld [vmem:[#allocation6 + $0x2710] sm:$0xff]  ;;  %v8313_v33 = vpack.c.bf16 %v3028_v26, %v3024_v25  ;;  %v8187_v39 = vpack.c.bf16 %v3025_v31, %v3021_v30  ;;  %v8333_v26 = vpack.c.bf16 %v3488_v20, %v3484_v19  ;;  %v3519_v19 = vld [vmem:[#allocation6 + $0x2960] sm:$0xff] }
 0x2b8   :  { %8294 = vmatprep.subr.bf16.mxu1 %v8293_v37  ;;  %v3032_v37 = vld [vmem:[#allocation6 + $0x2758] sm:$0xff]  ;;  %v8315_v40 = vpack.c.bf16 %v3027_v34, %v3023_v32  ;;  %v3489_v31 = vld [vmem:[#allocation6 + $0x2870] sm:$0xff]  ;;  %v3492_v32 = vld [vmem:[#allocation6 + $0x2888] sm:$0xff] }
 0x2b9   :  { %v3494_v34 = vld [vmem:[#allocation6 + $0x2898] sm:$0xff]  ;;  %v3517_v20 = vld [vmem:[#allocation6 + $0x2950] sm:$0xff] }
 0x2ba   :  { %8168 = vmatpush1.bf16.msra.mxu0 %v8167_v43  ;;  %v3033_v43 = vld [vmem:[#allocation6 + $0x2760] sm:$0xff] }
 0x2bb   :  { %8296 = vmatpush1.bf16.msra.mxu1 %v8295_v44  ;;  %8170 = vmatprep.subr.bf16.mxu0 %v8169_v45  ;;  %v3031_v44 = vld [vmem:[#allocation6 + $0x2750] sm:$0xff]  ;;  %v8317_v45 = vpack.c.bf16 %v3036_v38, %v3032_v37  ;;  %v8191_v51 = vpack.c.bf16 %v3033_v43, %v3029_v42  ;;  %v3495_v42 = vld [vmem:[#allocation6 + $0x28a0] sm:$0xff] }
 0x2bc   :  { %8298 = vmatprep.subr.bf16.mxu1 %v8297_v49  ;;  %v3040_v49 = vld [vmem:[#allocation6 + $0x2798] sm:$0xff]  ;;  %v8319_v52 = vpack.c.bf16 %v3035_v46, %v3031_v44  ;;  %v2786_v38 = vld [vmem:[#allocation3 + $0x230] sm:$0xff]  ;;  %v8465_v44 = vpack.c.bf16 %v3498_v35, %v3494_v34  ;;  %v3500_v46 = vld [vmem:[#allocation6 + $0x28c8] sm:$0xff] }
 0x2bd   :  { %v3493_v43 = vld [vmem:[#allocation6 + $0x2890] sm:$0xff]  ;;  %v3532_v35 = vld [vmem:[#allocation6 + $0x29c8] sm:$0xff] }
 0x2be   :  { %8172 = vmatpush1.bf16.msra.mxu0 %v8171_v55  ;;  %v3041_v55 = vld [vmem:[#allocation6 + $0x27a0] sm:$0xff]  ;;  %v3529_v34 = vld [vmem:[#allocation6 + $0x29b0] sm:$0xff] }
 0x2bf   :  { %8300 = vmatpush1.bf16.msra.mxu1 %v8299_v56  ;;  %8174 = vmatprep.subr.bf16.mxu0 %v8173_v57  ;;  %v3039_v56 = vld [vmem:[#allocation6 + $0x2790] sm:$0xff]  ;;  %v8321_v57 = vpack.c.bf16 %v3044_v50, %v3040_v49  ;;  %v8195_v63 = vpack.c.bf16 %v3041_v55, %v3037_v54  ;;  %v3506_v49 = vld [vmem:[#allocation6 + $0x28f8] sm:$0xff]  ;;  %v8341_v54 = vpack.c.bf16 %v3504_v47, %v3500_v46  ;;  %v3499_v55 = vld [vmem:[#allocation6 + $0x28c0] sm:$0xff] }
 0x2c0   :  { %8302 = vmatprep.subr.bf16.mxu1 %v8301_v61  ;;  %v3048_v61 = vld [vmem:[#allocation6 + $0x27d8] sm:$0xff]  ;;  %v8323_v0 = vpack.c.bf16 %v3043_v58, %v3039_v56  ;;  %v3503_v56 = vld [vmem:[#allocation6 + $0x28e0] sm:$0xff]  ;;  %v8469_v58 = vpack.c.bf16 %v3506_v49, %v3502_v48  ;;  %v3537_v46 = vld [vmem:[#allocation6 + $0x29f0] sm:$0xff] }
 0x2c1   :  { %v2791_v50 = vld [vmem:[#allocation3 + $0x258] sm:$0xff]  ;;  %v3540_v47 = vld [vmem:[#allocation6 + $0x2a08] sm:$0xff] }
 0x2c2   :  { %8176 = vmatpush1.bf16.msra.mxu0 %v8175_v3  ;;  %v3049_v3 = vld [vmem:[#allocation6 + $0x27e0] sm:$0xff]  ;;  %v3544_v48 = vld [vmem:[#allocation6 + $0x2a28] sm:$0xff]  ;;  %v3542_v49 = vld [vmem:[#allocation6 + $0x2a18] sm:$0xff] }
 0x2c3   :  { %8304 = vmatpush1.bf16.msra.mxu1 %v8303_v4  ;;  %8178 = vmatprep.subr.bf16.mxu0 %v8177_v5  ;;  %v3047_v4 = vld [vmem:[#allocation6 + $0x27d0] sm:$0xff]  ;;  %v8325_v5 = vpack.c.bf16 %v3052_v62, %v3048_v61  ;;  %v8199_v11 = vpack.c.bf16 %v3049_v3, %v3045_v2  ;;  %v3512_v61 = vld [vmem:[#allocation6 + $0x2928] sm:$0xff]  ;;  %v3510_v62 = vld [vmem:[#allocation6 + $0x2918] sm:$0xff] }
 0x2c4   :  { %8306 = vmatprep.subr.bf16.mxu1 %v8305_v9  ;;  %v3478_v9 = vld [vmem:[#allocation6 + $0x2818] sm:$0xff]  ;;  %v8327_v12 = vpack.c.bf16 %v3051_v6, %v3047_v4  ;;  %v2794_v2 = vld [vmem:[#allocation3 + $0x270] sm:$0xff]  ;;  %v8345_v4 = vpack.c.bf16 %v3512_v61, %v3508_v60  ;;  %v3511_v6 = vld [vmem:[#allocation6 + $0x2920] sm:$0xff] }
 0x2c5   :  { %v3552_v60 = vld [vmem:[#allocation6 + $0x2a68] sm:$0xff]  ;;  %v3550_v61 = vld [vmem:[#allocation6 + $0x2a58] sm:$0xff] }
 0x2c6   :  { %8180 = vmatpush1.bf16.msra.mxu0 %v8179_v15  ;;  %v3479_v15 = vld [vmem:[#allocation6 + $0x2820] sm:$0xff] }
 0x2c7   :  { %8308 = vmatpush1.bf16.msra.mxu1 %v8307_v16  ;;  %8182 = vmatprep.subr.bf16.mxu0 %v8181_v17  ;;  %v3477_v16 = vld [vmem:[#allocation6 + $0x2810] sm:$0xff]  ;;  %v8457_v17 = vpack.c.bf16 %v3482_v10, %v3478_v9  ;;  %v8331_v24 = vpack.c.bf16 %v3479_v15, %v3475_v14  ;;  %v3516_v10 = vld [vmem:[#allocation6 + $0x2948] sm:$0xff] }
 0x2c8   :  { %8310 = vmatprep.subr.bf16.mxu1 %v8309_v21  ;;  %v3486_v21 = vld [vmem:[#allocation6 + $0x2858] sm:$0xff]  ;;  %v8459_v25 = vpack.c.bf16 %v3481_v18, %v3477_v16  ;;  %v3513_v9 = vld [vmem:[#allocation6 + $0x2930] sm:$0xff]  ;;  %v3459_v14 = vld [vmem:[#allocation3 + $0x288] sm:$0xff] }
 0x2c9   :  { %v8461_v30 = vpack.c.bf16 %v3490_v22, %v3486_v21  ;;  %v8475_v16 = vpack.c.bf16 %v3513_v9, %v3509_v7  ;;  %v3515_v18 = vld [vmem:[#allocation6 + $0x2940] sm:$0xff]  ;;  %v3521_v22 = vld [vmem:[#allocation6 + $0x2970] sm:$0xff]  ;;  %v3556_v7 = vld [vmem:[#allocation6 + $0x2a88] sm:$0xff] }
 0x2ca   :  { %8184 = vmatpush1.bf16.msra.mxu0 %v8183_v27  ;;  %v3483_v27 = vld [vmem:[#allocation6 + $0x2840] sm:$0xff]  ;;  %v3558_v9 = vld [vmem:[#allocation6 + $0x2a98] sm:$0xff] }
 0x2cb   :  { %8312 = vmatpush1.bf16.msra.mxu1 %v8311_v28  ;;  %8186 = vmatprep.subr.bf16.mxu0 %v8185_v29  ;;  %v3487_v28 = vld [vmem:[#allocation6 + $0x2860] sm:$0xff]  ;;  %v3485_v29 = vld [vmem:[#allocation6 + $0x2850] sm:$0xff] }
 0x2cc   :  { %8314 = vmatprep.subr.bf16.mxu1 %v8313_v33  ;;  %v3496_v33 = vld [vmem:[#allocation6 + $0x28a8] sm:$0xff]  ;;  %v8335_v37 = vpack.c.bf16 %v3487_v28, %v3483_v27  ;;  %v8351_v27 = vpack.c.bf16 %v3519_v19, %v3515_v18  ;;  %v8479_v28 = vpack.c.bf16 %v3521_v22, %v3517_v20  ;;  %v3561_v18 = vld [vmem:[#allocation6 + $0x2ab0] sm:$0xff]  ;;  %v3570_v22 = vld [vmem:[#allocation6 + $0x2af8] sm:$0xff] }
 0x2cd   :  { %v3564_v19 = vld [vmem:[#allocation6 + $0x2ac8] sm:$0xff] }
 0x2ce   :  { %8188 = vmatpush1.bf16.msra.mxu0 %v8187_v39  ;;  %v8463_v39 = vpack.c.bf16 %v3489_v31, %v3485_v29  ;;  %v3527_v31 = vld [vmem:[#allocation6 + $0x29a0] sm:$0xff]  ;;  %v3568_v20 = vld [vmem:[#allocation6 + $0x2ae8] sm:$0xff] }
 0x2cf   :  { %8316 = vmatpush1.bf16.msra.mxu1 %v8315_v40  ;;  %8190 = vmatprep.subr.bf16.mxu0 %v8189_v41  ;;  %v8337_v40 = vpack.c.bf16 %v3496_v33, %v3492_v32  ;;  %v3491_v41 = vld [vmem:[#allocation6 + $0x2880] sm:$0xff]  ;;  %v3525_v32 = vld [vmem:[#allocation6 + $0x2990] sm:$0xff] }
 0x2d0   :  { %8318 = vmatprep.subr.bf16.mxu1 %v8317_v45  ;;  %v3497_v45 = vld [vmem:[#allocation6 + $0x28b0] sm:$0xff] }
 0x2d2   :  { %8192 = vmatpush1.bf16.msra.mxu0 %v8191_v51  ;;  %v8339_v51 = vpack.c.bf16 %v3495_v42, %v3491_v41  ;;  %v3531_v42 = vld [vmem:[#allocation6 + $0x29c0] sm:$0xff] }
 0x2d3   :  { %8320 = vmatpush1.bf16.msra.mxu1 %v8319_v52  ;;  %8194 = vmatprep.subr.bf16.mxu0 %v8193_v53  ;;  %v2790_v52 = vld [vmem:[#allocation3 + $0x250] sm:$0xff]  ;;  %v8467_v53 = vpack.c.bf16 %v3497_v45, %v3493_v43  ;;  %v3535_v43 = vld [vmem:[#allocation6 + $0x29e0] sm:$0xff] }
 0x2d4   :  { %8322 = vmatprep.subr.bf16.mxu1 %v8321_v57  ;;  %v3501_v57 = vld [vmem:[#allocation6 + $0x28d0] sm:$0xff] }
 0x2d5   :  { %v8471_v3 = vpack.c.bf16 %v3505_v59, %v3501_v57  ;;  %v3548_v59 = vld [vmem:[#allocation6 + $0x2a48] sm:$0xff] }
 0x2d6   :  { %8196 = vmatpush1.bf16.msra.mxu0 %v8195_v63  ;;  %v3514_v63 = vld [vmem:[#allocation6 + $0x2938] sm:$0xff] }
 0x2d7   :  { %8324 = vmatpush1.bf16.msra.mxu1 %v8323_v0  ;;  %8198 = vmatprep.subr.bf16.mxu0 %v8197_v1  ;;  %v2795_v0 = vld [vmem:[#allocation3 + $0x278] sm:$0xff]  ;;  %v8343_v1 = vpack.c.bf16 %v3503_v56, %v3499_v55  ;;  %v8473_v8 = vpack.c.bf16 %v3514_v63, %v3510_v62  ;;  %v3543_v55 = vld [vmem:[#allocation6 + $0x2a20] sm:$0xff]  ;;  %v3541_v56 = vld [vmem:[#allocation6 + $0x2a10] sm:$0xff] }
 0x2d8   :  { %8326 = vmatprep.subr.bf16.mxu1 %v8325_v5  ;;  %v3507_v5 = vld [vmem:[#allocation6 + $0x2900] sm:$0xff]  ;;  %v3554_v62 = vld [vmem:[#allocation6 + $0x2a78] sm:$0xff] }
 0x2d9   :  { %v8347_v15 = vpack.c.bf16 %v3511_v6, %v3507_v5  ;;  %v8493_v5 = vpack.c.bf16 %v3554_v62, %v3550_v61  ;;  %v3553_v6 = vld [vmem:[#allocation6 + $0x2a70] sm:$0xff]  ;;  %v3587_v62 = vld [vmem:[#allocation6 + $0x2b80] sm:$0xff] }
 0x2da   :  { %8200 = vmatpush1.bf16.msra.mxu0 %v8199_v11  ;;  %v3520_v11 = vld [vmem:[#allocation6 + $0x2968] sm:$0xff] }
 0x2db   :  { %8328 = vmatpush1.bf16.msra.mxu1 %v8327_v12  ;;  %8330 = vmatprep.subr.bf16.mxu0 %v8329_v13  ;;  %v3518_v12 = vld [vmem:[#allocation6 + $0x2958] sm:$0xff] }
 0x2dc   :  { %8458 = vmatprep.subr.bf16.mxu1 %v8457_v17  ;;  %v3522_v13 = vld [vmem:[#allocation6 + $0x2978] sm:$0xff]  ;;  %v8349_v17 = vpack.c.bf16 %v3520_v11, %v3516_v10 }
 0x2dd   :  { %3207 = vmatmul.mubr.f32.vlgmr.msra.gmra.mrb[0].mxu0 %v2782_v23  ;;  %v8477_v21 = vpack.c.bf16 %v3522_v13, %v3518_v12  ;;  %v3562_v10 = vld [vmem:[#allocation6 + $0x2ab8] sm:$0xff] }
 0x2de   :  { %3385 = vmatmul.mubr.f32.vlgmr.msra.gmra.mrb[0].mxu1 %v2782_v23  ;;  %8332 = vmatpush1.bf16.msra.mxu0 %v8331_v24  ;;  %v3524_v23 = vld [vmem:[#allocation6 + $0x2988] sm:$0xff] }
 0x2df   :  { %8460 = vmatpush1.bf16.msra.mxu1 %v8459_v25  ;;  %8334 = vmatprep.subr.bf16.mxu0 %v8333_v26  ;;  %v3528_v24 = vld [vmem:[#allocation6 + $0x29a8] sm:$0xff]  ;;  %v3526_v25 = vld [vmem:[#allocation6 + $0x2998] sm:$0xff] }
 0x2e0   :  { %8462 = vmatprep.subr.bf16.mxu1 %v8461_v30  ;;  %3212 = vmatprep.mubr.f32.mxu0 %v2787_v36  ;;  %v3530_v26 = vld [vmem:[#allocation6 + $0x29b8] sm:$0xff]  ;;  %v8353_v29 = vpack.c.bf16 %v3528_v24, %v3524_v23  ;;  %v3523_v30 = vld [vmem:[#allocation6 + $0x2980] sm:$0xff] }
 0x2e1   :  { %3390 = vmatprep.mubr.f32.mxu1 %v2787_v36  ;;  %3213 = vmatmul.mubr.f32.gmra.mrb[2].mxu0 %v2786_v38  ;;  %v8481_v33 = vpack.c.bf16 %v3530_v26, %v3526_v25  ;;  %v3536_v36 = vld [vmem:[#allocation6 + $0x29e8] sm:$0xff]  ;;  %v8373_v25 = vpack.c.bf16 %v3568_v20, %v3564_v19  ;;  %v3563_v26 = vld [vmem:[#allocation6 + $0x2ac0] sm:$0xff] }
 0x2e2   :  { %8336 = vmatpush1.bf16.msra.mxu0 %v8335_v37  ;;  %3391 = vmatmul.mubr.f32.gmra.mrb[2].mxu1 %v2786_v38  ;;  %v3534_v37 = vld [vmem:[#allocation6 + $0x29d8] sm:$0xff]  ;;  %v8357_v41 = vpack.c.bf16 %v3536_v36, %v3532_v35 }
 0x2e3   :  { %8464 = vmatpush1.bf16.msra.mxu1 %v8463_v39  ;;  %8338 = vmatprep.subr.bf16.mxu0 %v8337_v40  ;;  %v3538_v38 = vld [vmem:[#allocation6 + $0x29f8] sm:$0xff]  ;;  %v8355_v39 = vpack.c.bf16 %v3527_v31, %v3523_v30  ;;  %v8483_v40 = vpack.c.bf16 %v3529_v34, %v3525_v32  ;;  %v3569_v30 = vld [vmem:[#allocation6 + $0x2af0] sm:$0xff]  ;;  %v3572_v31 = vld [vmem:[#allocation6 + $0x2b08] sm:$0xff] }
 0x2e4   :  { %8466 = vmatprep.subr.bf16.mxu1 %v8465_v44  ;;  %3218 = vmatprep.mubr.f32.mxu0 %v2791_v50  ;;  %v3533_v44 = vld [vmem:[#allocation6 + $0x29d0] sm:$0xff]  ;;  %v8485_v45 = vpack.c.bf16 %v3538_v38, %v3534_v37  ;;  %v3576_v32 = vld [vmem:[#allocation6 + $0x2b28] sm:$0xff]  ;;  %v3578_v34 = vld [vmem:[#allocation6 + $0x2b38] sm:$0xff] }
 0x2e5   :  { %3396 = vmatprep.mubr.f32.mxu1 %v2791_v50  ;;  %3219 = vmatmul.mubr.f32.gmra.mrb[4].mxu0 %v2790_v52  ;;  %v3546_v50 = vld [vmem:[#allocation6 + $0x2a38] sm:$0xff]  ;;  %v8377_v37 = vpack.c.bf16 %v3576_v32, %v3572_v31  ;;  %v3571_v38 = vld [vmem:[#allocation6 + $0x2b00] sm:$0xff] }
 0x2e6   :  { %8340 = vmatpush1.bf16.msra.mxu0 %v8339_v51  ;;  %3397 = vmatmul.mubr.f32.gmra.mrb[4].mxu1 %v2790_v52  ;;  %v8359_v51 = vpack.c.bf16 %v3535_v43, %v3531_v42  ;;  %v8487_v52 = vpack.c.bf16 %v3537_v46, %v3533_v44  ;;  %v8489_v57 = vpack.c.bf16 %v3546_v50, %v3542_v49  ;;  %v3577_v42 = vld [vmem:[#allocation6 + $0x2b30] sm:$0xff]  ;;  %v3580_v43 = vld [vmem:[#allocation6 + $0x2b48] sm:$0xff]  ;;  %v3586_v46 = vld [vmem:[#allocation6 + $0x2b78] sm:$0xff] }
 0x2e7   :  { %8468 = vmatpush1.bf16.msra.mxu1 %v8467_v53  ;;  %8342 = vmatprep.subr.bf16.mxu0 %v8341_v54  ;;  %v8361_v53 = vpack.c.bf16 %v3544_v48, %v3540_v47  ;;  %v3539_v54 = vld [vmem:[#allocation6 + $0x2a00] sm:$0xff]  ;;  %v3584_v44 = vld [vmem:[#allocation6 + $0x2b68] sm:$0xff] }
 0x2e8   :  { %8470 = vmatprep.subr.bf16.mxu1 %v8469_v58  ;;  %3224 = vmatprep.mubr.f32.mxu0 %v2795_v0  ;;  %v3545_v58 = vld [vmem:[#allocation6 + $0x2a30] sm:$0xff]  ;;  %v8363_v63 = vpack.c.bf16 %v3543_v55, %v3539_v54  ;;  %v8381_v49 = vpack.c.bf16 %v3584_v44, %v3580_v43  ;;  %v3579_v50 = vld [vmem:[#allocation6 + $0x2b40] sm:$0xff]  ;;  %v3588_v55 = vld [vmem:[#allocation6 + $0x2b88] sm:$0xff] }
 0x2e9   :  { %3402 = vmatprep.mubr.f32.mxu1 %v2795_v0  ;;  %3225 = vmatmul.mubr.f32.gmra.mrb[6].mxu0 %v2794_v2  ;;  %v8491_v0 = vpack.c.bf16 %v3545_v58, %v3541_v56  ;;  %v3585_v54 = vld [vmem:[#allocation6 + $0x2b70] sm:$0xff]  ;;  %v3592_v56 = vld [vmem:[#allocation6 + $0x2ba8] sm:$0xff]  ;;  %v3594_v58 = vld [vmem:[#allocation6 + $0x2bb8] sm:$0xff] }
 0x2ea   :  { %8344 = vmatpush1.bf16.msra.mxu0 %v8343_v1  ;;  %3403 = vmatmul.mubr.f32.gmra.mrb[6].mxu1 %v2794_v2  ;;  %v8365_v1 = vpack.c.bf16 %v3552_v60, %v3548_v59  ;;  %v3547_v2 = vld [vmem:[#allocation6 + $0x2a40] sm:$0xff]  ;;  %v8385_v61 = vpack.c.bf16 %v3592_v56, %v3588_v55  ;;  %v3626_v43 = vld [vmem:[#allocation6 + $0x2cb8] sm:$0xff]  ;;  %v3463_v44 = vld [vmem:[#allocation3 + $0x2a8] sm:$0xff] }
 0x2eb   :  { %8472 = vmatpush1.bf16.msra.mxu1 %v8471_v3  ;;  %8346 = vmatprep.subr.bf16.mxu0 %v8345_v4  ;;  %v3551_v3 = vld [vmem:[#allocation6 + $0x2a60] sm:$0xff]  ;;  %v3549_v4 = vld [vmem:[#allocation6 + $0x2a50] sm:$0xff]  ;;  %v3632_v55 = vld [vmem:[#allocation6 + $0x2ce8] sm:$0xff] }
 0x2ec   :  { %8474 = vmatprep.subr.bf16.mxu1 %v8473_v8  ;;  %3795 = vmatprep.mubr.f32.mxu0 %v3459_v14  ;;  %v3560_v8 = vld [vmem:[#allocation6 + $0x2aa8] sm:$0xff]  ;;  %v8367_v11 = vpack.c.bf16 %v3551_v3, %v3547_v2  ;;  %v8495_v12 = vpack.c.bf16 %v3553_v6, %v3549_v4  ;;  %v3593_v2 = vld [vmem:[#allocation6 + $0x2bb0] sm:$0xff]  ;;  %v3602_v6 = vld [vmem:[#allocation6 + $0x2bf8] sm:$0xff] }
 0x2ed   :  { %3973 = vmatprep.mubr.f32.mxu1 %v3459_v14  ;;  %v8369_v13 = vpack.c.bf16 %v3560_v8, %v3556_v7  ;;  %v3555_v14 = vld [vmem:[#allocation6 + $0x2a80] sm:$0xff]  ;;  %v3596_v3 = vld [vmem:[#allocation6 + $0x2bc8] sm:$0xff]  ;;  %v3630_v56 = vld [vmem:[#allocation6 + $0x2cd8] sm:$0xff] }
 0x2ee   :  { %8348 = vmatpush1.bf16.msra.mxu0 %v8347_v15  ;;  %v3559_v15 = vld [vmem:[#allocation6 + $0x2aa0] sm:$0xff]  ;;  %v3600_v4 = vld [vmem:[#allocation6 + $0x2be8] sm:$0xff] }
 0x2ef   :  { %8476 = vmatpush1.bf16.msra.mxu1 %v8475_v16  ;;  %8350 = vmatprep.subr.bf16.mxu0 %v8349_v17  ;;  %v3557_v16 = vld [vmem:[#allocation6 + $0x2a90] sm:$0xff]  ;;  %v8497_v17 = vpack.c.bf16 %v3562_v10, %v3558_v9  ;;  %v8371_v23 = vpack.c.bf16 %v3559_v15, %v3555_v14  ;;  %v8389_v9 = vpack.c.bf16 %v3600_v4, %v3596_v3  ;;  %v3595_v10 = vld [vmem:[#allocation6 + $0x2bc0] sm:$0xff]  ;;  %v3604_v15 = vld [vmem:[#allocation6 + $0x2c08] sm:$0xff] }
 0x2f0   :  { %8478 = vmatprep.subr.bf16.mxu1 %v8477_v21  ;;  %v3566_v21 = vld [vmem:[#allocation6 + $0x2ad8] sm:$0xff]  ;;  %v8499_v24 = vpack.c.bf16 %v3561_v18, %v3557_v16  ;;  %v3601_v14 = vld [vmem:[#allocation6 + $0x2bf0] sm:$0xff]  ;;  %v3608_v16 = vld [vmem:[#allocation6 + $0x2c28] sm:$0xff] }
 0x2f1   :  { %v3610_v18 = vld [vmem:[#allocation6 + $0x2c38] sm:$0xff]  ;;  %v3458_v31 = vld [vmem:[#allocation3 + $0x280] sm:$0xff]  ;;  %v3633_v3 = vld [vmem:[#allocation6 + $0x2cf0] sm:$0xff] }
 0x2f2   :  { %8352 = vmatpush1.bf16.msra.mxu0 %v8351_v27  ;;  %v3567_v27 = vld [vmem:[#allocation6 + $0x2ae0] sm:$0xff]  ;;  %v3636_v4 = vld [vmem:[#allocation6 + $0x2d08] sm:$0xff] }
 0x2f3   :  { %8480 = vmatpush1.bf16.msra.mxu1 %v8479_v28  ;;  %8354 = vmatprep.subr.bf16.mxu0 %v8353_v29  ;;  %v3565_v28 = vld [vmem:[#allocation6 + $0x2ad0] sm:$0xff]  ;;  %v8501_v29 = vpack.c.bf16 %v3570_v22, %v3566_v21  ;;  %v8375_v35 = vpack.c.bf16 %v3567_v27, %v3563_v26  ;;  %v8393_v21 = vpack.c.bf16 %v3608_v16, %v3604_v15  ;;  %v3603_v22 = vld [vmem:[#allocation6 + $0x2c00] sm:$0xff]  ;;  %v3612_v27 = vld [vmem:[#allocation6 + $0x2c48] sm:$0xff] }
 0x2f4   :  { %8482 = vmatprep.subr.bf16.mxu1 %v8481_v33  ;;  %v3574_v33 = vld [vmem:[#allocation6 + $0x2b18] sm:$0xff]  ;;  %v8503_v36 = vpack.c.bf16 %v3569_v30, %v3565_v28  ;;  %v3609_v26 = vld [vmem:[#allocation6 + $0x2c30] sm:$0xff]  ;;  %v3616_v28 = vld [vmem:[#allocation6 + $0x2c68] sm:$0xff] }
 0x2f5   :  { %v3618_v30 = vld [vmem:[#allocation6 + $0x2c78] sm:$0xff]  ;;  %v3637_v15 = vld [vmem:[#allocation6 + $0x2d10] sm:$0xff] }
 0x2f6   :  { %8356 = vmatpush1.bf16.msra.mxu0 %v8355_v39  ;;  %v3575_v39 = vld [vmem:[#allocation6 + $0x2b20] sm:$0xff] }
 0x2f7   :  { %8484 = vmatpush1.bf16.msra.mxu1 %v8483_v40  ;;  %8358 = vmatprep.subr.bf16.mxu0 %v8357_v41  ;;  %v3573_v40 = vld [vmem:[#allocation6 + $0x2b10] sm:$0xff]  ;;  %v8505_v41 = vpack.c.bf16 %v3578_v34, %v3574_v33  ;;  %v8379_v47 = vpack.c.bf16 %v3575_v39, %v3571_v38  ;;  %v8397_v34 = vpack.c.bf16 %v3616_v28, %v3612_v27  ;;  %v3647_v27 = vld [vmem:[#allocation6 + $0x2d60] sm:$0xff] }
 0x2f8   :  { %8486 = vmatprep.subr.bf16.mxu1 %v8485_v45  ;;  %v3582_v45 = vld [vmem:[#allocation6 + $0x2b58] sm:$0xff]  ;;  %v8507_v48 = vpack.c.bf16 %v3577_v42, %v3573_v40  ;;  %v3617_v39 = vld [vmem:[#allocation6 + $0x2c70] sm:$0xff]  ;;  %v3620_v40 = vld [vmem:[#allocation6 + $0x2c88] sm:$0xff] }
 0x2f9   :  { %v3622_v42 = vld [vmem:[#allocation6 + $0x2c98] sm:$0xff]  ;;  %v3645_v28 = vld [vmem:[#allocation6 + $0x2d50] sm:$0xff] }
 0x2fa   :  { %8360 = vmatpush1.bf16.msra.mxu0 %v8359_v51  ;;  %v3583_v51 = vld [vmem:[#allocation6 + $0x2b60] sm:$0xff] }
 0x2fb   :  { %8488 = vmatpush1.bf16.msra.mxu1 %v8487_v52  ;;  %8362 = vmatprep.subr.bf16.mxu0 %v8361_v53  ;;  %v3581_v52 = vld [vmem:[#allocation6 + $0x2b50] sm:$0xff]  ;;  %v8509_v53 = vpack.c.bf16 %v3586_v46, %v3582_v45  ;;  %v8383_v59 = vpack.c.bf16 %v3583_v51, %v3579_v50  ;;  %v3462_v46 = vld [vmem:[#allocation3 + $0x2a0] sm:$0xff] }
 0x2fc   :  { %8490 = vmatprep.subr.bf16.mxu1 %v8489_v57  ;;  %v3590_v57 = vld [vmem:[#allocation6 + $0x2b98] sm:$0xff]  ;;  %v8511_v60 = vpack.c.bf16 %v3585_v54, %v3581_v52  ;;  %v3623_v50 = vld [vmem:[#allocation6 + $0x2ca0] sm:$0xff]  ;;  %v3621_v51 = vld [vmem:[#allocation6 + $0x2c90] sm:$0xff]  ;;  %v8529_v52 = vpack.c.bf16 %v3626_v43, %v3622_v42 }
 0x2fd   :  { %v3628_v54 = vld [vmem:[#allocation6 + $0x2cc8] sm:$0xff]  ;;  %v3657_v42 = vld [vmem:[#allocation6 + $0x2db0] sm:$0xff] }
 0x2fe   :  { %8364 = vmatpush1.bf16.msra.mxu0 %v8363_v63  ;;  %v3591_v63 = vld [vmem:[#allocation6 + $0x2ba0] sm:$0xff]  ;;  %v3660_v43 = vld [vmem:[#allocation6 + $0x2dc8] sm:$0xff] }
 0x2ff   :  { %8492 = vmatpush1.bf16.msra.mxu1 %v8491_v0  ;;  %8366 = vmatprep.subr.bf16.mxu0 %v8365_v1  ;;  %v3589_v0 = vld [vmem:[#allocation6 + $0x2b90] sm:$0xff]  ;;  %v8513_v1 = vpack.c.bf16 %v3594_v58, %v3590_v57  ;;  %v8387_v7 = vpack.c.bf16 %v3591_v63, %v3587_v62  ;;  %v3634_v57 = vld [vmem:[#allocation6 + $0x2cf8] sm:$0xff]  ;;  %v3467_v58 = vld [vmem:[#allocation3 + $0x2c8] sm:$0xff]  ;;  %v8405_v62 = vpack.c.bf16 %v3632_v55, %v3628_v54 }
 0x300   :  { %8494 = vmatprep.subr.bf16.mxu1 %v8493_v5  ;;  %v3598_v5 = vld [vmem:[#allocation6 + $0x2bd8] sm:$0xff]  ;;  %v8515_v8 = vpack.c.bf16 %v3593_v2, %v3589_v0  ;;  %v3627_v63 = vld [vmem:[#allocation6 + $0x2cc0] sm:$0xff]  ;;  %v8533_v2 = vpack.c.bf16 %v3634_v57, %v3630_v56  ;;  %v3665_v54 = vld [vmem:[#allocation6 + $0x2df0] sm:$0xff] }
 0x301   :  { %v3631_v0 = vld [vmem:[#allocation6 + $0x2ce0] sm:$0xff]  ;;  %v3668_v55 = vld [vmem:[#allocation6 + $0x2e08] sm:$0xff]  ;;  %v3670_v57 = vld [vmem:[#allocation6 + $0x2e18] sm:$0xff] }
 0x302   :  { %8368 = vmatpush1.bf16.msra.mxu0 %v8367_v11  ;;  %v3599_v11 = vld [vmem:[#allocation6 + $0x2be0] sm:$0xff]  ;;  %v3672_v56 = vld [vmem:[#allocation6 + $0x2e28] sm:$0xff] }
 0x303   :  { %8496 = vmatpush1.bf16.msra.mxu1 %v8495_v12  ;;  %8370 = vmatprep.subr.bf16.mxu0 %v8369_v13  ;;  %v3597_v12 = vld [vmem:[#allocation6 + $0x2bd0] sm:$0xff]  ;;  %v8517_v13 = vpack.c.bf16 %v3602_v6, %v3598_v5  ;;  %v8391_v19 = vpack.c.bf16 %v3599_v11, %v3595_v10  ;;  %v3640_v5 = vld [vmem:[#allocation6 + $0x2d28] sm:$0xff]  ;;  %v3638_v6 = vld [vmem:[#allocation6 + $0x2d18] sm:$0xff] }
 0x304   :  { %8498 = vmatprep.subr.bf16.mxu1 %v8497_v17  ;;  %v3606_v17 = vld [vmem:[#allocation6 + $0x2c18] sm:$0xff]  ;;  %v8519_v20 = vpack.c.bf16 %v3601_v14, %v3597_v12  ;;  %v3470_v10 = vld [vmem:[#allocation3 + $0x2e0] sm:$0xff]  ;;  %v8409_v12 = vpack.c.bf16 %v3640_v5, %v3636_v4  ;;  %v3680_v4 = vld [vmem:[#allocation6 + $0x2e68] sm:$0xff] }
 0x305   :  { %v3639_v14 = vld [vmem:[#allocation6 + $0x2d20] sm:$0xff]  ;;  %v3678_v5 = vld [vmem:[#allocation6 + $0x2e58] sm:$0xff] }
 0x306   :  { %8372 = vmatpush1.bf16.msra.mxu0 %v8371_v23  ;;  %v3607_v23 = vld [vmem:[#allocation6 + $0x2c20] sm:$0xff] }
 0x307   :  { %8500 = vmatpush1.bf16.msra.mxu1 %v8499_v24  ;;  %8374 = vmatprep.subr.bf16.mxu0 %v8373_v25  ;;  %v3605_v24 = vld [vmem:[#allocation6 + $0x2c10] sm:$0xff]  ;;  %v8521_v25 = vpack.c.bf16 %v3610_v18, %v3606_v17  ;;  %v8395_v32 = vpack.c.bf16 %v3607_v23, %v3603_v22  ;;  %v3644_v18 = vld [vmem:[#allocation6 + $0x2d48] sm:$0xff]  ;;  %v3461_v22 = vld [vmem:[#allocation3 + $0x298] sm:$0xff] }
 0x308   :  { %8502 = vmatprep.subr.bf16.mxu1 %v8501_v29  ;;  %v3614_v29 = vld [vmem:[#allocation6 + $0x2c58] sm:$0xff]  ;;  %v8523_v33 = vpack.c.bf16 %v3609_v26, %v3605_v24  ;;  %v3641_v17 = vld [vmem:[#allocation6 + $0x2d30] sm:$0xff]  ;;  %v3643_v26 = vld [vmem:[#allocation6 + $0x2d40] sm:$0xff] }
 0x309   :  { %v8525_v38 = vpack.c.bf16 %v3618_v30, %v3614_v29  ;;  %v8539_v24 = vpack.c.bf16 %v3641_v17, %v3637_v15  ;;  %v3649_v30 = vld [vmem:[#allocation6 + $0x2d70] sm:$0xff]  ;;  %v3684_v15 = vld [vmem:[#allocation6 + $0x2e88] sm:$0xff]  ;;  %v3686_v17 = vld [vmem:[#allocation6 + $0x2e98] sm:$0xff] }
 0x30a   :  { %8376 = vmatpush1.bf16.msra.mxu0 %v8375_v35  ;;  %v3611_v35 = vld [vmem:[#allocation6 + $0x2c40] sm:$0xff] }
 0x30b   :  { %8504 = vmatpush1.bf16.msra.mxu1 %v8503_v36  ;;  %8378 = vmatprep.subr.bf16.mxu0 %v8377_v37  ;;  %v3615_v36 = vld [vmem:[#allocation6 + $0x2c60] sm:$0xff]  ;;  %v3613_v37 = vld [vmem:[#allocation6 + $0x2c50] sm:$0xff] }
 0x30c   :  { %8506 = vmatprep.subr.bf16.mxu1 %v8505_v41  ;;  %v3624_v41 = vld [vmem:[#allocation6 + $0x2ca8] sm:$0xff]  ;;  %v8399_v45 = vpack.c.bf16 %v3615_v36, %v3611_v35  ;;  %v8415_v35 = vpack.c.bf16 %v3647_v27, %v3643_v26  ;;  %v8543_v36 = vpack.c.bf16 %v3649_v30, %v3645_v28  ;;  %v3689_v26 = vld [vmem:[#allocation6 + $0x2eb0] sm:$0xff]  ;;  %v3698_v30 = vld [vmem:[#allocation6 + $0x2ef8] sm:$0xff] }
 0x30d   :  { %v3692_v27 = vld [vmem:[#allocation6 + $0x2ec8] sm:$0xff] }
 0x30e   :  { %8380 = vmatpush1.bf16.msra.mxu0 %v8379_v47  ;;  %v8527_v47 = vpack.c.bf16 %v3617_v39, %v3613_v37  ;;  %v3655_v39 = vld [vmem:[#allocation6 + $0x2da0] sm:$0xff]  ;;  %v3696_v28 = vld [vmem:[#allocation6 + $0x2ee8] sm:$0xff] }
 0x30f   :  { %8508 = vmatpush1.bf16.msra.mxu1 %v8507_v48  ;;  %8382 = vmatprep.subr.bf16.mxu0 %v8381_v49  ;;  %v8401_v48 = vpack.c.bf16 %v3624_v41, %v3620_v40  ;;  %v3619_v49 = vld [vmem:[#allocation6 + $0x2c80] sm:$0xff]  ;;  %v3653_v40 = vld [vmem:[#allocation6 + $0x2d90] sm:$0xff] }
 0x310   :  { %8510 = vmatprep.subr.bf16.mxu1 %v8509_v53  ;;  %v3625_v53 = vld [vmem:[#allocation6 + $0x2cb0] sm:$0xff] }
 0x312   :  { %8384 = vmatpush1.bf16.msra.mxu0 %v8383_v59  ;;  %v8403_v59 = vpack.c.bf16 %v3623_v50, %v3619_v49  ;;  %v3659_v50 = vld [vmem:[#allocation6 + $0x2dc0] sm:$0xff] }
 0x313   :  { %8512 = vmatpush1.bf16.msra.mxu1 %v8511_v60  ;;  %8386 = vmatprep.subr.bf16.mxu0 %v8385_v61  ;;  %v3466_v60 = vld [vmem:[#allocation3 + $0x2c0] sm:$0xff]  ;;  %v8531_v61 = vpack.c.bf16 %v3625_v53, %v3621_v51 }
 0x314   :  { %8514 = vmatprep.subr.bf16.mxu1 %v8513_v1  ;;  %v3629_v1 = vld [vmem:[#allocation6 + $0x2cd0] sm:$0xff]  ;;  %v3663_v51 = vld [vmem:[#allocation6 + $0x2de0] sm:$0xff] }
 0x315   :  { %v8535_v11 = vpack.c.bf16 %v3633_v3, %v3629_v1  ;;  %v3676_v3 = vld [vmem:[#allocation6 + $0x2e48] sm:$0xff] }
 0x316   :  { %8388 = vmatpush1.bf16.msra.mxu0 %v8387_v7  ;;  %v3642_v7 = vld [vmem:[#allocation6 + $0x2d38] sm:$0xff] }
 0x317   :  { %8516 = vmatpush1.bf16.msra.mxu1 %v8515_v8  ;;  %8390 = vmatprep.subr.bf16.mxu0 %v8389_v9  ;;  %v3471_v8 = vld [vmem:[#allocation3 + $0x2e8] sm:$0xff]  ;;  %v8407_v9 = vpack.c.bf16 %v3631_v0, %v3627_v63  ;;  %v8537_v16 = vpack.c.bf16 %v3642_v7, %v3638_v6  ;;  %v3671_v63 = vld [vmem:[#allocation6 + $0x2e20] sm:$0xff]  ;;  %v3669_v0 = vld [vmem:[#allocation6 + $0x2e10] sm:$0xff] }
 0x318   :  { %8518 = vmatprep.subr.bf16.mxu1 %v8517_v13  ;;  %v3635_v13 = vld [vmem:[#allocation6 + $0x2d00] sm:$0xff]  ;;  %v3682_v6 = vld [vmem:[#allocation6 + $0x2e78] sm:$0xff] }
 0x319   :  { %v8411_v23 = vpack.c.bf16 %v3639_v14, %v3635_v13  ;;  %v8557_v13 = vpack.c.bf16 %v3682_v6, %v3678_v5  ;;  %v3681_v14 = vld [vmem:[#allocation6 + $0x2e70] sm:$0xff]  ;;  %v3715_v6 = vld [vmem:[#allocation6 + $0x2f80] sm:$0xff] }
 0x31a   :  { %8392 = vmatpush1.bf16.msra.mxu0 %v8391_v19  ;;  %v3648_v19 = vld [vmem:[#allocation6 + $0x2d68] sm:$0xff] }
 0x31b   :  { %8520 = vmatpush1.bf16.msra.mxu1 %v8519_v20  ;;  %8394 = vmatprep.subr.bf16.mxu0 %v8393_v21  ;;  %v3646_v20 = vld [vmem:[#allocation6 + $0x2d58] sm:$0xff] }
 0x31c   :  { %8522 = vmatprep.subr.bf16.mxu1 %v8521_v25  ;;  %v3650_v21 = vld [vmem:[#allocation6 + $0x2d78] sm:$0xff]  ;;  %v8413_v25 = vpack.c.bf16 %v3648_v19, %v3644_v18 }
 0x31d   :  { %3796 = vmatmul.mubr.f32.vlgmr.msra.gmra.mrb[0].mxu0 %v3458_v31  ;;  %v8541_v29 = vpack.c.bf16 %v3650_v21, %v3646_v20  ;;  %v3690_v18 = vld [vmem:[#allocation6 + $0x2eb8] sm:$0xff] }
 0x31e   :  { %8396 = vmatpush1.bf16.msra.mxu0 %v8395_v32  ;;  %3974 = vmatmul.mubr.f32.vlgmr.msra.gmra.mrb[0].mxu1 %v3458_v31  ;;  %v3652_v31 = vld [vmem:[#allocation6 + $0x2d88] sm:$0xff] }
 0x31f   :  { %8524 = vmatpush1.bf16.msra.mxu1 %v8523_v33  ;;  %8398 = vmatprep.subr.bf16.mxu0 %v8397_v34  ;;  %v3656_v32 = vld [vmem:[#allocation6 + $0x2da8] sm:$0xff]  ;;  %v3654_v33 = vld [vmem:[#allocation6 + $0x2d98] sm:$0xff] }
 0x320   :  { %8526 = vmatprep.subr.bf16.mxu1 %v8525_v38  ;;  %3801 = vmatprep.mubr.f32.mxu0 %v3463_v44  ;;  %v3658_v34 = vld [vmem:[#allocation6 + $0x2db8] sm:$0xff]  ;;  %v8417_v37 = vpack.c.bf16 %v3656_v32, %v3652_v31  ;;  %v3651_v38 = vld [vmem:[#allocation6 + $0x2d80] sm:$0xff] }
 0x321   :  { %3979 = vmatprep.mubr.f32.mxu1 %v3463_v44  ;;  %3802 = vmatmul.mubr.f32.gmra.mrb[2].mxu0 %v3462_v46  ;;  %v8545_v41 = vpack.c.bf16 %v3658_v34, %v3654_v33  ;;  %v3664_v44 = vld [vmem:[#allocation6 + $0x2de8] sm:$0xff]  ;;  %v8437_v33 = vpack.c.bf16 %v3696_v28, %v3692_v27  ;;  %v3691_v34 = vld [vmem:[#allocation6 + $0x2ec0] sm:$0xff] }
 0x322   :  { %8400 = vmatpush1.bf16.msra.mxu0 %v8399_v45  ;;  %3980 = vmatmul.mubr.f32.gmra.mrb[2].mxu1 %v3462_v46  ;;  %v3662_v45 = vld [vmem:[#allocation6 + $0x2dd8] sm:$0xff]  ;;  %v8421_v49 = vpack.c.bf16 %v3664_v44, %v3660_v43 }
 0x323   :  { %8528 = vmatpush1.bf16.msra.mxu1 %v8527_v47  ;;  %8402 = vmatprep.subr.bf16.mxu0 %v8401_v48  ;;  %v3666_v46 = vld [vmem:[#allocation6 + $0x2df8] sm:$0xff]  ;;  %v8419_v47 = vpack.c.bf16 %v3655_v39, %v3651_v38  ;;  %v8547_v48 = vpack.c.bf16 %v3657_v42, %v3653_v40  ;;  %v3697_v38 = vld [vmem:[#allocation6 + $0x2ef0] sm:$0xff]  ;;  %v3700_v39 = vld [vmem:[#allocation6 + $0x2f08] sm:$0xff] }
 0x324   :  { %8530 = vmatprep.subr.bf16.mxu1 %v8529_v52  ;;  %3807 = vmatprep.mubr.f32.mxu0 %v3467_v58  ;;  %v3661_v52 = vld [vmem:[#allocation6 + $0x2dd0] sm:$0xff]  ;;  %v8549_v53 = vpack.c.bf16 %v3666_v46, %v3662_v45  ;;  %v3704_v40 = vld [vmem:[#allocation6 + $0x2f28] sm:$0xff]  ;;  %v3706_v42 = vld [vmem:[#allocation6 + $0x2f38] sm:$0xff] }
 0x325   :  { %3985 = vmatprep.mubr.f32.mxu1 %v3467_v58  ;;  %3808 = vmatmul.mubr.f32.gmra.mrb[4].mxu0 %v3466_v60  ;;  %v3674_v58 = vld [vmem:[#allocation6 + $0x2e38] sm:$0xff]  ;;  %v8441_v45 = vpack.c.bf16 %v3704_v40, %v3700_v39  ;;  %v3699_v46 = vld [vmem:[#allocation6 + $0x2f00] sm:$0xff]  ;;  %v3460_v39 = vld [vmem:[#allocation3 + $0x290] sm:$0xff] }
 0x326   :  { %8404 = vmatpush1.bf16.msra.mxu0 %v8403_v59  ;;  %3986 = vmatmul.mubr.f32.gmra.mrb[4].mxu1 %v3466_v60  ;;  %v8423_v59 = vpack.c.bf16 %v3663_v51, %v3659_v50  ;;  %v8551_v60 = vpack.c.bf16 %v3665_v54, %v3661_v52  ;;  %v8553_v1 = vpack.c.bf16 %v3674_v58, %v3670_v57  ;;  %v3705_v50 = vld [vmem:[#allocation6 + $0x2f30] sm:$0xff]  ;;  %v3708_v51 = vld [vmem:[#allocation6 + $0x2f48] sm:$0xff]  ;;  %v3714_v54 = vld [vmem:[#allocation6 + $0x2f78] sm:$0xff] }
 0x327   :  { %8532 = vmatpush1.bf16.msra.mxu1 %v8531_v61  ;;  %8406 = vmatprep.subr.bf16.mxu0 %v8405_v62  ;;  %v8425_v61 = vpack.c.bf16 %v3672_v56, %v3668_v55  ;;  %v3667_v62 = vld [vmem:[#allocation6 + $0x2e00] sm:$0xff]  ;;  %v3712_v52 = vld [vmem:[#allocation6 + $0x2f68] sm:$0xff] }
 0x328   :  { %8534 = vmatprep.subr.bf16.mxu1 %v8533_v2  ;;  %3813 = vmatprep.mubr.f32.mxu0 %v3471_v8  ;;  %v3673_v2 = vld [vmem:[#allocation6 + $0x2e30] sm:$0xff]  ;;  %v8427_v7 = vpack.c.bf16 %v3671_v63, %v3667_v62  ;;  %v8445_v57 = vpack.c.bf16 %v3712_v52, %v3708_v51  ;;  %v3707_v58 = vld [vmem:[#allocation6 + $0x2f40] sm:$0xff]  ;;  %v3716_v63 = vld [vmem:[#allocation6 + $0x2f88] sm:$0xff] }
 0x329   :  { %3991 = vmatprep.mubr.f32.mxu1 %v3471_v8  ;;  %3814 = vmatmul.mubr.f32.gmra.mrb[6].mxu0 %v3470_v10  ;;  %v8555_v8 = vpack.c.bf16 %v3673_v2, %v3669_v0  ;;  %v3713_v62 = vld [vmem:[#allocation6 + $0x2f70] sm:$0xff]  ;;  %v3720_v0 = vld [vmem:[#allocation6 + $0x2fa8] sm:$0xff]  ;;  %v3722_v2 = vld [vmem:[#allocation6 + $0x2fb8] sm:$0xff] }
 0x32a   :  { %8408 = vmatpush1.bf16.msra.mxu0 %v8407_v9  ;;  %3992 = vmatmul.mubr.f32.gmra.mrb[6].mxu1 %v3470_v10  ;;  %v8429_v9 = vpack.c.bf16 %v3680_v4, %v3676_v3  ;;  %v3675_v10 = vld [vmem:[#allocation6 + $0x2e40] sm:$0xff]  ;;  %v8449_v5 = vpack.c.bf16 %v3720_v0, %v3716_v63  ;;  %v4176_v51 = vld [vmem:[#allocation6 + $0x30b8] sm:$0xff]  ;;  %v4182_v63 = vld [vmem:[#allocation6 + $0x30e8] sm:$0xff] }
 0x32b   :  { %8536 = vmatpush1.bf16.msra.mxu1 %v8535_v11  ;;  %8410 = vmatprep.subr.bf16.mxu0 %v8409_v12  ;;  %v3679_v11 = vld [vmem:[#allocation6 + $0x2e60] sm:$0xff]  ;;  %v3677_v12 = vld [vmem:[#allocation6 + $0x2e50] sm:$0xff]  ;;  %v3465_v52 = vld [vmem:[#allocation3 + $0x2b8] sm:$0xff] }
 0x32c   :  { %8538 = vmatprep.subr.bf16.mxu1 %v8537_v16  ;;  %3884 = vmatprep.mubr.f32.mxu0 %v3461_v22  ;;  %v3688_v16 = vld [vmem:[#allocation6 + $0x2ea8] sm:$0xff]  ;;  %v8431_v19 = vpack.c.bf16 %v3679_v11, %v3675_v10  ;;  %v8559_v20 = vpack.c.bf16 %v3681_v14, %v3677_v12  ;;  %v3721_v10 = vld [vmem:[#allocation6 + $0x2fb0] sm:$0xff]  ;;  %v3730_v14 = vld [vmem:[#allocation6 + $0x2ff8] sm:$0xff] }
 0x32d   :  { %4062 = vmatprep.mubr.f32.mxu1 %v3461_v22  ;;  %v8433_v21 = vpack.c.bf16 %v3688_v16, %v3684_v15  ;;  %v3683_v22 = vld [vmem:[#allocation6 + $0x2e80] sm:$0xff]  ;;  %v3724_v11 = vld [vmem:[#allocation6 + $0x2fc8] sm:$0xff]  ;;  %v4180_v0 = vld [vmem:[#allocation6 + $0x30d8] sm:$0xff] }
 0x32e   :  { %8412 = vmatpush1.bf16.msra.mxu0 %v8411_v23  ;;  %v3687_v23 = vld [vmem:[#allocation6 + $0x2ea0] sm:$0xff]  ;;  %v3728_v12 = vld [vmem:[#allocation6 + $0x2fe8] sm:$0xff] }
 0x32f   :  { %8540 = vmatpush1.bf16.msra.mxu1 %v8539_v24  ;;  %8414 = vmatprep.subr.bf16.mxu0 %v8413_v25  ;;  %v3685_v24 = vld [vmem:[#allocation6 + $0x2e90] sm:$0xff]  ;;  %v8561_v25 = vpack.c.bf16 %v3690_v18, %v3686_v17  ;;  %v8435_v31 = vpack.c.bf16 %v3687_v23, %v3683_v22  ;;  %v8453_v17 = vpack.c.bf16 %v3728_v12, %v3724_v11  ;;  %v3723_v18 = vld [vmem:[#allocation6 + $0x2fc0] sm:$0xff]  ;;  %v4154_v23 = vld [vmem:[#allocation6 + $0x3008] sm:$0xff] }
 0x330   :  { %8542 = vmatprep.subr.bf16.mxu1 %v8541_v29  ;;  %v3694_v29 = vld [vmem:[#allocation6 + $0x2ed8] sm:$0xff]  ;;  %v8563_v32 = vpack.c.bf16 %v3689_v26, %v3685_v24  ;;  %v3729_v22 = vld [vmem:[#allocation6 + $0x2ff0] sm:$0xff]  ;;  %v4158_v24 = vld [vmem:[#allocation6 + $0x3028] sm:$0xff] }
 0x331   :  { %v4160_v26 = vld [vmem:[#allocation6 + $0x3038] sm:$0xff]  ;;  %v4183_v11 = vld [vmem:[#allocation6 + $0x30f0] sm:$0xff]  ;;  %v4186_v12 = vld [vmem:[#allocation6 + $0x3108] sm:$0xff] }
 0x332   :  { %8416 = vmatpush1.bf16.msra.mxu0 %v8415_v35  ;;  %v3695_v35 = vld [vmem:[#allocation6 + $0x2ee0] sm:$0xff] }
 0x333   :  { %8544 = vmatpush1.bf16.msra.mxu1 %v8543_v36  ;;  %8418 = vmatprep.subr.bf16.mxu0 %v8417_v37  ;;  %v3693_v36 = vld [vmem:[#allocation6 + $0x2ed0] sm:$0xff]  ;;  %v8565_v37 = vpack.c.bf16 %v3698_v30, %v3694_v29  ;;  %v8439_v43 = vpack.c.bf16 %v3695_v35, %v3691_v34  ;;  %v8585_v29 = vpack.c.bf16 %v4158_v24, %v4154_v23  ;;  %v4153_v30 = vld [vmem:[#allocation6 + $0x3000] sm:$0xff]  ;;  %v4162_v35 = vld [vmem:[#allocation6 + $0x3048] sm:$0xff] }
 0x334   :  { %8546 = vmatprep.subr.bf16.mxu1 %v8545_v41  ;;  %v3702_v41 = vld [vmem:[#allocation6 + $0x2f18] sm:$0xff]  ;;  %v8567_v44 = vpack.c.bf16 %v3697_v38, %v3693_v36  ;;  %v4159_v34 = vld [vmem:[#allocation6 + $0x3030] sm:$0xff]  ;;  %v4166_v36 = vld [vmem:[#allocation6 + $0x3068] sm:$0xff] }
 0x335   :  { %v4168_v38 = vld [vmem:[#allocation6 + $0x3078] sm:$0xff]  ;;  %v4187_v23 = vld [vmem:[#allocation6 + $0x3110] sm:$0xff] }
 0x336   :  { %8420 = vmatpush1.bf16.msra.mxu0 %v8419_v47  ;;  %v3703_v47 = vld [vmem:[#allocation6 + $0x2f20] sm:$0xff] }
 0x337   :  { %8548 = vmatpush1.bf16.msra.mxu1 %v8547_v48  ;;  %8422 = vmatprep.subr.bf16.mxu0 %v8421_v49  ;;  %v3701_v48 = vld [vmem:[#allocation6 + $0x2f10] sm:$0xff]  ;;  %v8569_v49 = vpack.c.bf16 %v3706_v42, %v3702_v41  ;;  %v8443_v55 = vpack.c.bf16 %v3703_v47, %v3699_v46  ;;  %v8589_v42 = vpack.c.bf16 %v4166_v36, %v4162_v35  ;;  %v4197_v35 = vld [vmem:[#allocation6 + $0x3160] sm:$0xff] }
 0x338   :  { %8550 = vmatprep.subr.bf16.mxu1 %v8549_v53  ;;  %v3710_v53 = vld [vmem:[#allocation6 + $0x2f58] sm:$0xff]  ;;  %v8571_v56 = vpack.c.bf16 %v3705_v50, %v3701_v48  ;;  %v4167_v47 = vld [vmem:[#allocation6 + $0x3070] sm:$0xff]  ;;  %v4170_v48 = vld [vmem:[#allocation6 + $0x3088] sm:$0xff] }
 0x339   :  { %v4172_v50 = vld [vmem:[#allocation6 + $0x3098] sm:$0xff]  ;;  %v4195_v36 = vld [vmem:[#allocation6 + $0x3150] sm:$0xff] }
 0x33a   :  { %8424 = vmatpush1.bf16.msra.mxu0 %v8423_v59  ;;  %v3711_v59 = vld [vmem:[#allocation6 + $0x2f60] sm:$0xff] }
 0x33b   :  { %8552 = vmatpush1.bf16.msra.mxu1 %v8551_v60  ;;  %8426 = vmatprep.subr.bf16.mxu0 %v8425_v61  ;;  %v3709_v60 = vld [vmem:[#allocation6 + $0x2f50] sm:$0xff]  ;;  %v8573_v61 = vpack.c.bf16 %v3714_v54, %v3710_v53  ;;  %v8447_v3 = vpack.c.bf16 %v3711_v59, %v3707_v58  ;;  %v4173_v58 = vld [vmem:[#allocation6 + $0x30a0] sm:$0xff] }
 0x33c   :  { %8554 = vmatprep.subr.bf16.mxu1 %v8553_v1  ;;  %v3718_v1 = vld [vmem:[#allocation6 + $0x2f98] sm:$0xff]  ;;  %v8575_v4 = vpack.c.bf16 %v3713_v62, %v3709_v60  ;;  %v3464_v54 = vld [vmem:[#allocation3 + $0x2b0] sm:$0xff]  ;;  %v8721_v60 = vpack.c.bf16 %v4176_v51, %v4172_v50  ;;  %v4178_v62 = vld [vmem:[#allocation6 + $0x30c8] sm:$0xff] }
 0x33d   :  { %v4171_v59 = vld [vmem:[#allocation6 + $0x3090] sm:$0xff]  ;;  %v4210_v51 = vld [vmem:[#allocation6 + $0x31c8] sm:$0xff] }
 0x33e   :  { %8428 = vmatpush1.bf16.msra.mxu0 %v8427_v7  ;;  %v3719_v7 = vld [vmem:[#allocation6 + $0x2fa0] sm:$0xff]  ;;  %v4207_v50 = vld [vmem:[#allocation6 + $0x31b0] sm:$0xff] }
 0x33f   :  { %8556 = vmatpush1.bf16.msra.mxu1 %v8555_v8  ;;  %8430 = vmatprep.subr.bf16.mxu0 %v8429_v9  ;;  %v3717_v8 = vld [vmem:[#allocation6 + $0x2f90] sm:$0xff]  ;;  %v8577_v9 = vpack.c.bf16 %v3722_v2, %v3718_v1  ;;  %v8451_v15 = vpack.c.bf16 %v3719_v7, %v3715_v6  ;;  %v4184_v1 = vld [vmem:[#allocation6 + $0x30f8] sm:$0xff]  ;;  %v8597_v6 = vpack.c.bf16 %v4182_v63, %v4178_v62  ;;  %v4177_v7 = vld [vmem:[#allocation6 + $0x30c0] sm:$0xff] }
 0x340   :  { %8558 = vmatprep.subr.bf16.mxu1 %v8557_v13  ;;  %v3726_v13 = vld [vmem:[#allocation6 + $0x2fd8] sm:$0xff]  ;;  %v8579_v16 = vpack.c.bf16 %v3721_v10, %v3717_v8  ;;  %v4181_v8 = vld [vmem:[#allocation6 + $0x30e0] sm:$0xff]  ;;  %v8725_v10 = vpack.c.bf16 %v4184_v1, %v4180_v0  ;;  %v4215_v62 = vld [vmem:[#allocation6 + $0x31f0] sm:$0xff] }
 0x341   :  { %v3469_v2 = vld [vmem:[#allocation3 + $0x2d8] sm:$0xff]  ;;  %v4218_v63 = vld [vmem:[#allocation6 + $0x3208] sm:$0xff] }
 0x342   :  { %8432 = vmatpush1.bf16.msra.mxu0 %v8431_v19  ;;  %v3727_v19 = vld [vmem:[#allocation6 + $0x2fe0] sm:$0xff]  ;;  %v4222_v0 = vld [vmem:[#allocation6 + $0x3228] sm:$0xff]  ;;  %v4220_v1 = vld [vmem:[#allocation6 + $0x3218] sm:$0xff] }
 0x343   :  { %8560 = vmatpush1.bf16.msra.mxu1 %v8559_v20  ;;  %8434 = vmatprep.subr.bf16.mxu0 %v8433_v21  ;;  %v3725_v20 = vld [vmem:[#allocation6 + $0x2fd0] sm:$0xff]  ;;  %v8581_v21 = vpack.c.bf16 %v3730_v14, %v3726_v13  ;;  %v8455_v27 = vpack.c.bf16 %v3727_v19, %v3723_v18  ;;  %v4190_v13 = vld [vmem:[#allocation6 + $0x3128] sm:$0xff]  ;;  %v4188_v14 = vld [vmem:[#allocation6 + $0x3118] sm:$0xff] }
 0x344   :  { %8562 = vmatprep.subr.bf16.mxu1 %v8561_v25  ;;  %v4156_v25 = vld [vmem:[#allocation6 + $0x3018] sm:$0xff]  ;;  %v8583_v28 = vpack.c.bf16 %v3729_v22, %v3725_v20  ;;  %v3472_v18 = vld [vmem:[#allocation3 + $0x2f0] sm:$0xff]  ;;  %v8601_v20 = vpack.c.bf16 %v4190_v13, %v4186_v12  ;;  %v4189_v22 = vld [vmem:[#allocation6 + $0x3120] sm:$0xff] }
 0x345   :  { %v4230_v12 = vld [vmem:[#allocation6 + $0x3268] sm:$0xff]  ;;  %v4228_v13 = vld [vmem:[#allocation6 + $0x3258] sm:$0xff] }
 0x346   :  { %8436 = vmatpush1.bf16.msra.mxu0 %v8435_v31  ;;  %v4157_v31 = vld [vmem:[#allocation6 + $0x3020] sm:$0xff] }
 0x347   :  { %8564 = vmatpush1.bf16.msra.mxu1 %v8563_v32  ;;  %8438 = vmatprep.subr.bf16.mxu0 %v8437_v33  ;;  %v4155_v32 = vld [vmem:[#allocation6 + $0x3010] sm:$0xff]  ;;  %v8713_v33 = vpack.c.bf16 %v4160_v26, %v4156_v25  ;;  %v8587_v40 = vpack.c.bf16 %v4157_v31, %v4153_v30  ;;  %v4194_v26 = vld [vmem:[#allocation6 + $0x3148] sm:$0xff] }
 0x348   :  { %8566 = vmatprep.subr.bf16.mxu1 %v8565_v37  ;;  %v4164_v37 = vld [vmem:[#allocation6 + $0x3058] sm:$0xff]  ;;  %v8715_v41 = vpack.c.bf16 %v4159_v34, %v4155_v32  ;;  %v4191_v25 = vld [vmem:[#allocation6 + $0x3130] sm:$0xff]  ;;  %v4137_v30 = vld [vmem:[#allocation3 + $0x308] sm:$0xff] }
 0x349   :  { %v8717_v46 = vpack.c.bf16 %v4168_v38, %v4164_v37  ;;  %v8731_v32 = vpack.c.bf16 %v4191_v25, %v4187_v23  ;;  %v4193_v34 = vld [vmem:[#allocation6 + $0x3140] sm:$0xff]  ;;  %v4199_v38 = vld [vmem:[#allocation6 + $0x3170] sm:$0xff]  ;;  %v4234_v23 = vld [vmem:[#allocation6 + $0x3288] sm:$0xff] }
 0x34a   :  { %8440 = vmatpush1.bf16.msra.mxu0 %v8439_v43  ;;  %v4161_v43 = vld [vmem:[#allocation6 + $0x3040] sm:$0xff]  ;;  %v4236_v25 = vld [vmem:[#allocation6 + $0x3298] sm:$0xff] }
 0x34b   :  { %8568 = vmatpush1.bf16.msra.mxu1 %v8567_v44  ;;  %8442 = vmatprep.subr.bf16.mxu0 %v8441_v45  ;;  %v4165_v44 = vld [vmem:[#allocation6 + $0x3060] sm:$0xff]  ;;  %v4163_v45 = vld [vmem:[#allocation6 + $0x3050] sm:$0xff] }
 0x34c   :  { %8570 = vmatprep.subr.bf16.mxu1 %v8569_v49  ;;  %v4174_v49 = vld [vmem:[#allocation6 + $0x30a8] sm:$0xff]  ;;  %v8591_v53 = vpack.c.bf16 %v4165_v44, %v4161_v43  ;;  %v8607_v43 = vpack.c.bf16 %v4197_v35, %v4193_v34  ;;  %v8735_v44 = vpack.c.bf16 %v4199_v38, %v4195_v36  ;;  %v4239_v34 = vld [vmem:[#allocation6 + $0x32b0] sm:$0xff]  ;;  %v4248_v38 = vld [vmem:[#allocation6 + $0x32f8] sm:$0xff] }
 0x34d   :  { %v4242_v35 = vld [vmem:[#allocation6 + $0x32c8] sm:$0xff] }
 0x34e   :  { %8444 = vmatpush1.bf16.msra.mxu0 %v8443_v55  ;;  %v8719_v55 = vpack.c.bf16 %v4167_v47, %v4163_v45  ;;  %v4205_v47 = vld [vmem:[#allocation6 + $0x31a0] sm:$0xff]  ;;  %v4246_v36 = vld [vmem:[#allocation6 + $0x32e8] sm:$0xff] }
 0x34f   :  { %8572 = vmatpush1.bf16.msra.mxu1 %v8571_v56  ;;  %8446 = vmatprep.subr.bf16.mxu0 %v8445_v57  ;;  %v8593_v56 = vpack.c.bf16 %v4174_v49, %v4170_v48  ;;  %v4169_v57 = vld [vmem:[#allocation6 + $0x3080] sm:$0xff]  ;;  %v4203_v48 = vld [vmem:[#allocation6 + $0x3190] sm:$0xff] }
 0x350   :  { %8574 = vmatprep.subr.bf16.mxu1 %v8573_v61  ;;  %v4175_v61 = vld [vmem:[#allocation6 + $0x30b0] sm:$0xff] }
 0x352   :  { %8448 = vmatpush1.bf16.msra.mxu0 %v8447_v3  ;;  %v8595_v3 = vpack.c.bf16 %v4173_v58, %v4169_v57  ;;  %v4209_v58 = vld [vmem:[#allocation6 + $0x31c0] sm:$0xff] }
 0x353   :  { %8576 = vmatpush1.bf16.msra.mxu1 %v8575_v4  ;;  %8450 = vmatprep.subr.bf16.mxu0 %v8449_v5  ;;  %v3468_v4 = vld [vmem:[#allocation3 + $0x2d0] sm:$0xff]  ;;  %v8723_v5 = vpack.c.bf16 %v4175_v61, %v4171_v59  ;;  %v4213_v59 = vld [vmem:[#allocation6 + $0x31e0] sm:$0xff] }
 0x354   :  { %8578 = vmatprep.subr.bf16.mxu1 %v8577_v9  ;;  %v4179_v9 = vld [vmem:[#allocation6 + $0x30d0] sm:$0xff] }
 0x355   :  { %v8727_v19 = vpack.c.bf16 %v4183_v11, %v4179_v9  ;;  %v4226_v11 = vld [vmem:[#allocation6 + $0x3248] sm:$0xff] }
 0x356   :  { %8452 = vmatpush1.bf16.msra.mxu0 %v8451_v15  ;;  %v4192_v15 = vld [vmem:[#allocation6 + $0x3138] sm:$0xff] }
 0x357   :  { %8580 = vmatpush1.bf16.msra.mxu1 %v8579_v16  ;;  %8454 = vmatprep.subr.bf16.mxu0 %v8453_v17  ;;  %v3473_v16 = vld [vmem:[#allocation3 + $0x2f8] sm:$0xff]  ;;  %v8599_v17 = vpack.c.bf16 %v4181_v8, %v4177_v7  ;;  %v8729_v24 = vpack.c.bf16 %v4192_v15, %v4188_v14  ;;  %v4221_v7 = vld [vmem:[#allocation6 + $0x3220] sm:$0xff]  ;;  %v4219_v8 = vld [vmem:[#allocation6 + $0x3210] sm:$0xff] }
 0x358   :  { %8582 = vmatprep.subr.bf16.mxu1 %v8581_v21  ;;  %v4185_v21 = vld [vmem:[#allocation6 + $0x3100] sm:$0xff]  ;;  %v4232_v14 = vld [vmem:[#allocation6 + $0x3278] sm:$0xff] }
 0x359   :  { %v8603_v31 = vpack.c.bf16 %v4189_v22, %v4185_v21  ;;  %v8749_v21 = vpack.c.bf16 %v4232_v14, %v4228_v13  ;;  %v4231_v22 = vld [vmem:[#allocation6 + $0x3270] sm:$0xff]  ;;  %v4265_v14 = vld [vmem:[#allocation6 + $0x3380] sm:$0xff] }
 0x35a   :  { %8456 = vmatpush1.bf16.msra.mxu0 %v8455_v27  ;;  %v4198_v27 = vld [vmem:[#allocation6 + $0x3168] sm:$0xff] }
 0x35b   :  { %8584 = vmatpush1.bf16.msra.mxu1 %v8583_v28  ;;  %8586 = vmatprep.subr.bf16.mxu0 %v8585_v29  ;;  %v4196_v28 = vld [vmem:[#allocation6 + $0x3158] sm:$0xff] }
 0x35c   :  { %8714 = vmatprep.subr.bf16.mxu1 %v8713_v33  ;;  %v4200_v29 = vld [vmem:[#allocation6 + $0x3178] sm:$0xff]  ;;  %v8605_v33 = vpack.c.bf16 %v4198_v27, %v4194_v26 }
 0x35d   :  { %3885 = vmatmul.mubr.f32.vlgmr.msra.gmra.mrb[0].mxu0 %v3460_v39  ;;  %v8733_v37 = vpack.c.bf16 %v4200_v29, %v4196_v28  ;;  %v4240_v26 = vld [vmem:[#allocation6 + $0x32b8] sm:$0xff] }
 0x35e   :  { %4063 = vmatmul.mubr.f32.vlgmr.msra.gmra.mrb[0].mxu1 %v3460_v39  ;;  %8588 = vmatpush1.bf16.msra.mxu0 %v8587_v40  ;;  %v4202_v39 = vld [vmem:[#allocation6 + $0x3188] sm:$0xff] }
 0x35f   :  { %8716 = vmatpush1.bf16.msra.mxu1 %v8715_v41  ;;  %8590 = vmatprep.subr.bf16.mxu0 %v8589_v42  ;;  %v4206_v40 = vld [vmem:[#allocation6 + $0x31a8] sm:$0xff]  ;;  %v4204_v41 = vld [vmem:[#allocation6 + $0x3198] sm:$0xff] }
 0x360   :  { %8718 = vmatprep.subr.bf16.mxu1 %v8717_v46  ;;  %3890 = vmatprep.mubr.f32.mxu0 %v3465_v52  ;;  %v4208_v42 = vld [vmem:[#allocation6 + $0x31b8] sm:$0xff]  ;;  %v8609_v45 = vpack.c.bf16 %v4206_v40, %v4202_v39  ;;  %v4201_v46 = vld [vmem:[#allocation6 + $0x3180] sm:$0xff] }
 0x361   :  { %4068 = vmatprep.mubr.f32.mxu1 %v3465_v52  ;;  %3891 = vmatmul.mubr.f32.gmra.mrb[2].mxu0 %v3464_v54  ;;  %v8737_v49 = vpack.c.bf16 %v4208_v42, %v4204_v41  ;;  %v4214_v52 = vld [vmem:[#allocation6 + $0x31e8] sm:$0xff]  ;;  %v8629_v41 = vpack.c.bf16 %v4246_v36, %v4242_v35  ;;  %v4241_v42 = vld [vmem:[#allocation6 + $0x32c0] sm:$0xff] }
 0x362   :  { %8592 = vmatpush1.bf16.msra.mxu0 %v8591_v53  ;;  %4069 = vmatmul.mubr.f32.gmra.mrb[2].mxu1 %v3464_v54  ;;  %v4212_v53 = vld [vmem:[#allocation6 + $0x31d8] sm:$0xff]  ;;  %v8613_v57 = vpack.c.bf16 %v4214_v52, %v4210_v51 }
 0x363   :  { %8720 = vmatpush1.bf16.msra.mxu1 %v8719_v55  ;;  %8594 = vmatprep.subr.bf16.mxu0 %v8593_v56  ;;  %v4216_v54 = vld [vmem:[#allocation6 + $0x31f8] sm:$0xff]  ;;  %v8611_v55 = vpack.c.bf16 %v4205_v47, %v4201_v46  ;;  %v8739_v56 = vpack.c.bf16 %v4207_v50, %v4203_v48  ;;  %v4247_v46 = vld [vmem:[#allocation6 + $0x32f0] sm:$0xff]  ;;  %v4250_v47 = vld [vmem:[#allocation6 + $0x3308] sm:$0xff] }
 0x364   :  { %8722 = vmatprep.subr.bf16.mxu1 %v8721_v60  ;;  %3896 = vmatprep.mubr.f32.mxu0 %v3469_v2  ;;  %v4211_v60 = vld [vmem:[#allocation6 + $0x31d0] sm:$0xff]  ;;  %v8741_v61 = vpack.c.bf16 %v4216_v54, %v4212_v53  ;;  %v4254_v48 = vld [vmem:[#allocation6 + $0x3328] sm:$0xff]  ;;  %v4256_v50 = vld [vmem:[#allocation6 + $0x3338] sm:$0xff] }
 0x365   :  { %4074 = vmatprep.mubr.f32.mxu1 %v3469_v2  ;;  %3897 = vmatmul.mubr.f32.gmra.mrb[4].mxu0 %v3468_v4  ;;  %v4224_v2 = vld [vmem:[#allocation6 + $0x3238] sm:$0xff]  ;;  %v8633_v53 = vpack.c.bf16 %v4254_v48, %v4250_v47  ;;  %v4249_v54 = vld [vmem:[#allocation6 + $0x3300] sm:$0xff] }
 0x366   :  { %8596 = vmatpush1.bf16.msra.mxu0 %v8595_v3  ;;  %4075 = vmatmul.mubr.f32.gmra.mrb[4].mxu1 %v3468_v4  ;;  %v8615_v3 = vpack.c.bf16 %v4213_v59, %v4209_v58  ;;  %v8743_v4 = vpack.c.bf16 %v4215_v62, %v4211_v60  ;;  %v8745_v9 = vpack.c.bf16 %v4224_v2, %v4220_v1  ;;  %v4255_v58 = vld [vmem:[#allocation6 + $0x3330] sm:$0xff]  ;;  %v4258_v59 = vld [vmem:[#allocation6 + $0x3348] sm:$0xff]  ;;  %v4264_v62 = vld [vmem:[#allocation6 + $0x3378] sm:$0xff] }
 0x367   :  { %8724 = vmatpush1.bf16.msra.mxu1 %v8723_v5  ;;  %8598 = vmatprep.subr.bf16.mxu0 %v8597_v6  ;;  %v8617_v5 = vpack.c.bf16 %v4222_v0, %v4218_v63  ;;  %v4217_v6 = vld [vmem:[#allocation6 + $0x3200] sm:$0xff]  ;;  %v4262_v60 = vld [vmem:[#allocation6 + $0x3368] sm:$0xff] }
 0x368   :  { %8726 = vmatprep.subr.bf16.mxu1 %v8725_v10  ;;  %3902 = vmatprep.mubr.f32.mxu0 %v3473_v16  ;;  %v4223_v10 = vld [vmem:[#allocation6 + $0x3230] sm:$0xff]  ;;  %v8619_v15 = vpack.c.bf16 %v4221_v7, %v4217_v6  ;;  %v8637_v1 = vpack.c.bf16 %v4262_v60, %v4258_v59  ;;  %v4257_v2 = vld [vmem:[#allocation6 + $0x3340] sm:$0xff]  ;;  %v4266_v7 = vld [vmem:[#allocation6 + $0x3388] sm:$0xff] }
 0x369   :  { %4080 = vmatprep.mubr.f32.mxu1 %v3473_v16  ;;  %3903 = vmatmul.mubr.f32.gmra.mrb[6].mxu0 %v3472_v18  ;;  %v8747_v16 = vpack.c.bf16 %v4223_v10, %v4219_v8  ;;  %v4263_v6 = vld [vmem:[#allocation6 + $0x3370] sm:$0xff]  ;;  %v4270_v8 = vld [vmem:[#allocation6 + $0x33a8] sm:$0xff]  ;;  %v4272_v10 = vld [vmem:[#allocation6 + $0x33b8] sm:$0xff] }
 0x36a   :  { %8600 = vmatpush1.bf16.msra.mxu0 %v8599_v17  ;;  %4081 = vmatmul.mubr.f32.gmra.mrb[6].mxu1 %v3472_v18  ;;  %v8621_v17 = vpack.c.bf16 %v4230_v12, %v4226_v11  ;;  %v4225_v18 = vld [vmem:[#allocation6 + $0x3240] sm:$0xff]  ;;  %v8641_v13 = vpack.c.bf16 %v4270_v8, %v4266_v7  ;;  %v4304_v59 = vld [vmem:[#allocation6 + $0x34b8] sm:$0xff]  ;;  %v4141_v60 = vld [vmem:[#allocation3 + $0x328] sm:$0xff] }
 0x36b   :  { %8728 = vmatpush1.bf16.msra.mxu1 %v8727_v19  ;;  %8602 = vmatprep.subr.bf16.mxu0 %v8601_v20  ;;  %v4229_v19 = vld [vmem:[#allocation6 + $0x3260] sm:$0xff]  ;;  %v4227_v20 = vld [vmem:[#allocation6 + $0x3250] sm:$0xff]  ;;  %v4310_v7 = vld [vmem:[#allocation6 + $0x34e8] sm:$0xff] }
 0x36c   :  { %8730 = vmatprep.subr.bf16.mxu1 %v8729_v24  ;;  %4473 = vmatprep.mubr.f32.mxu0 %v4137_v30  ;;  %v4238_v24 = vld [vmem:[#allocation6 + $0x32a8] sm:$0xff]  ;;  %v8623_v27 = vpack.c.bf16 %v4229_v19, %v4225_v18  ;;  %v8751_v28 = vpack.c.bf16 %v4231_v22, %v4227_v20  ;;  %v4271_v18 = vld [vmem:[#allocation6 + $0x33b0] sm:$0xff]  ;;  %v4280_v22 = vld [vmem:[#allocation6 + $0x33f8] sm:$0xff] }
 0x36d   :  { %4651 = vmatprep.mubr.f32.mxu1 %v4137_v30  ;;  %v8625_v29 = vpack.c.bf16 %v4238_v24, %v4234_v23  ;;  %v4233_v30 = vld [vmem:[#allocation6 + $0x3280] sm:$0xff]  ;;  %v4274_v19 = vld [vmem:[#allocation6 + $0x33c8] sm:$0xff]  ;;  %v4308_v8 = vld [vmem:[#allocation6 + $0x34d8] sm:$0xff] }
 0x36e   :  { %8604 = vmatpush1.bf16.msra.mxu0 %v8603_v31  ;;  %v4237_v31 = vld [vmem:[#allocation6 + $0x32a0] sm:$0xff]  ;;  %v4278_v20 = vld [vmem:[#allocation6 + $0x33e8] sm:$0xff] }
 0x36f   :  { %8732 = vmatpush1.bf16.msra.mxu1 %v8731_v32  ;;  %8606 = vmatprep.subr.bf16.mxu0 %v8605_v33  ;;  %v4235_v32 = vld [vmem:[#allocation6 + $0x3290] sm:$0xff]  ;;  %v8753_v33 = vpack.c.bf16 %v4240_v26, %v4236_v25  ;;  %v8627_v39 = vpack.c.bf16 %v4237_v31, %v4233_v30  ;;  %v8645_v25 = vpack.c.bf16 %v4278_v20, %v4274_v19  ;;  %v4273_v26 = vld [vmem:[#allocation6 + $0x33c0] sm:$0xff]  ;;  %v4282_v31 = vld [vmem:[#allocation6 + $0x3408] sm:$0xff] }
 0x370   :  { %8734 = vmatprep.subr.bf16.mxu1 %v8733_v37  ;;  %v4244_v37 = vld [vmem:[#allocation6 + $0x32d8] sm:$0xff]  ;;  %v8755_v40 = vpack.c.bf16 %v4239_v34, %v4235_v32  ;;  %v4279_v30 = vld [vmem:[#allocation6 + $0x33f0] sm:$0xff]  ;;  %v4286_v32 = vld [vmem:[#allocation6 + $0x3428] sm:$0xff] }
 0x371   :  { %v4288_v34 = vld [vmem:[#allocation6 + $0x3438] sm:$0xff]  ;;  %v4136_v47 = vld [vmem:[#allocation3 + $0x300] sm:$0xff]  ;;  %v4311_v19 = vld [vmem:[#allocation6 + $0x34f0] sm:$0xff] }
 0x372   :  { %8608 = vmatpush1.bf16.msra.mxu0 %v8607_v43  ;;  %v4245_v43 = vld [vmem:[#allocation6 + $0x32e0] sm:$0xff]  ;;  %v4314_v20 = vld [vmem:[#allocation6 + $0x3508] sm:$0xff] }
 0x373   :  { %8736 = vmatpush1.bf16.msra.mxu1 %v8735_v44  ;;  %8610 = vmatprep.subr.bf16.mxu0 %v8609_v45  ;;  %v4243_v44 = vld [vmem:[#allocation6 + $0x32d0] sm:$0xff]  ;;  %v8757_v45 = vpack.c.bf16 %v4248_v38, %v4244_v37  ;;  %v8631_v51 = vpack.c.bf16 %v4245_v43, %v4241_v42  ;;  %v8649_v37 = vpack.c.bf16 %v4286_v32, %v4282_v31  ;;  %v4281_v38 = vld [vmem:[#allocation6 + $0x3400] sm:$0xff]  ;;  %v4290_v43 = vld [vmem:[#allocation6 + $0x3448] sm:$0xff] }
 0x374   :  { %8738 = vmatprep.subr.bf16.mxu1 %v8737_v49  ;;  %v4252_v49 = vld [vmem:[#allocation6 + $0x3318] sm:$0xff]  ;;  %v8759_v52 = vpack.c.bf16 %v4247_v46, %v4243_v44  ;;  %v4287_v42 = vld [vmem:[#allocation6 + $0x3430] sm:$0xff]  ;;  %v4294_v44 = vld [vmem:[#allocation6 + $0x3468] sm:$0xff] }
 0x375   :  { %v4296_v46 = vld [vmem:[#allocation6 + $0x3478] sm:$0xff]  ;;  %v4315_v31 = vld [vmem:[#allocation6 + $0x3510] sm:$0xff] }
 0x376   :  { %8612 = vmatpush1.bf16.msra.mxu0 %v8611_v55  ;;  %v4253_v55 = vld [vmem:[#allocation6 + $0x3320] sm:$0xff] }
 0x377   :  { %8740 = vmatpush1.bf16.msra.mxu1 %v8739_v56  ;;  %8614 = vmatprep.subr.bf16.mxu0 %v8613_v57  ;;  %v4251_v56 = vld [vmem:[#allocation6 + $0x3310] sm:$0xff]  ;;  %v8761_v57 = vpack.c.bf16 %v4256_v50, %v4252_v49  ;;  %v8635_v63 = vpack.c.bf16 %v4253_v55, %v4249_v54  ;;  %v8653_v50 = vpack.c.bf16 %v4294_v44, %v4290_v43  ;;  %v4325_v43 = vld [vmem:[#allocation6 + $0x3560] sm:$0xff] }
 0x378   :  { %8742 = vmatprep.subr.bf16.mxu1 %v8741_v61  ;;  %v4260_v61 = vld [vmem:[#allocation6 + $0x3358] sm:$0xff]  ;;  %v8763_v0 = vpack.c.bf16 %v4255_v58, %v4251_v56  ;;  %v4295_v55 = vld [vmem:[#allocation6 + $0x3470] sm:$0xff]  ;;  %v4298_v56 = vld [vmem:[#allocation6 + $0x3488] sm:$0xff] }
 0x379   :  { %v4300_v58 = vld [vmem:[#allocation6 + $0x3498] sm:$0xff]  ;;  %v4323_v44 = vld [vmem:[#allocation6 + $0x3550] sm:$0xff] }
 0x37a   :  { %8616 = vmatpush1.bf16.msra.mxu0 %v8615_v3  ;;  %v4261_v3 = vld [vmem:[#allocation6 + $0x3360] sm:$0xff] }
 0x37b   :  { %8744 = vmatpush1.bf16.msra.mxu1 %v8743_v4  ;;  %8618 = vmatprep.subr.bf16.mxu0 %v8617_v5  ;;  %v4259_v4 = vld [vmem:[#allocation6 + $0x3350] sm:$0xff]  ;;  %v8765_v5 = vpack.c.bf16 %v4264_v62, %v4260_v61  ;;  %v8639_v11 = vpack.c.bf16 %v4261_v3, %v4257_v2  ;;  %v4140_v62 = vld [vmem:[#allocation3 + $0x320] sm:$0xff] }
 0x37c   :  { %8746 = vmatprep.subr.bf16.mxu1 %v8745_v9  ;;  %v4268_v9 = vld [vmem:[#allocation6 + $0x3398] sm:$0xff]  ;;  %v8767_v12 = vpack.c.bf16 %v4263_v6, %v4259_v4  ;;  %v4301_v2 = vld [vmem:[#allocation6 + $0x34a0] sm:$0xff]  ;;  %v4299_v3 = vld [vmem:[#allocation6 + $0x3490] sm:$0xff]  ;;  %v8785_v4 = vpack.c.bf16 %v4304_v59, %v4300_v58 }
 0x37d   :  { %v4306_v6 = vld [vmem:[#allocation6 + $0x34c8] sm:$0xff]  ;;  %v4335_v58 = vld [vmem:[#allocation6 + $0x35b0] sm:$0xff] }
 0x37e   :  { %8620 = vmatpush1.bf16.msra.mxu0 %v8619_v15  ;;  %v4269_v15 = vld [vmem:[#allocation6 + $0x33a0] sm:$0xff]  ;;  %v4338_v59 = vld [vmem:[#allocation6 + $0x35c8] sm:$0xff] }
 0x37f   :  { %8748 = vmatpush1.bf16.msra.mxu1 %v8747_v16  ;;  %8622 = vmatprep.subr.bf16.mxu0 %v8621_v17  ;;  %v4267_v16 = vld [vmem:[#allocation6 + $0x3390] sm:$0xff]  ;;  %v8769_v17 = vpack.c.bf16 %v4272_v10, %v4268_v9  ;;  %v8643_v23 = vpack.c.bf16 %v4269_v15, %v4265_v14  ;;  %v4312_v9 = vld [vmem:[#allocation6 + $0x34f8] sm:$0xff]  ;;  %v4145_v10 = vld [vmem:[#allocation3 + $0x348] sm:$0xff]  ;;  %v8661_v14 = vpack.c.bf16 %v4310_v7, %v4306_v6 }
 0x380   :  { %8750 = vmatprep.subr.bf16.mxu1 %v8749_v21  ;;  %v4276_v21 = vld [vmem:[#allocation6 + $0x33d8] sm:$0xff]  ;;  %v8771_v24 = vpack.c.bf16 %v4271_v18, %v4267_v16  ;;  %v4305_v15 = vld [vmem:[#allocation6 + $0x34c0] sm:$0xff]  ;;  %v8789_v18 = vpack.c.bf16 %v4312_v9, %v4308_v8  ;;  %v4343_v6 = vld [vmem:[#allocation6 + $0x35f0] sm:$0xff] }
 0x381   :  { %v4309_v16 = vld [vmem:[#allocation6 + $0x34e0] sm:$0xff]  ;;  %v4346_v7 = vld [vmem:[#allocation6 + $0x3608] sm:$0xff]  ;;  %v4348_v9 = vld [vmem:[#allocation6 + $0x3618] sm:$0xff] }
 0x382   :  { %8624 = vmatpush1.bf16.msra.mxu0 %v8623_v27  ;;  %v4277_v27 = vld [vmem:[#allocation6 + $0x33e0] sm:$0xff]  ;;  %v4350_v8 = vld [vmem:[#allocation6 + $0x3628] sm:$0xff] }
 0x383   :  { %8752 = vmatpush1.bf16.msra.mxu1 %v8751_v28  ;;  %8626 = vmatprep.subr.bf16.mxu0 %v8625_v29  ;;  %v4275_v28 = vld [vmem:[#allocation6 + $0x33d0] sm:$0xff]  ;;  %v8773_v29 = vpack.c.bf16 %v4280_v22, %v4276_v21  ;;  %v8647_v35 = vpack.c.bf16 %v4277_v27, %v4273_v26  ;;  %v4318_v21 = vld [vmem:[#allocation6 + $0x3528] sm:$0xff]  ;;  %v4316_v22 = vld [vmem:[#allocation6 + $0x3518] sm:$0xff] }
 0x384   :  { %8754 = vmatprep.subr.bf16.mxu1 %v8753_v33  ;;  %v4284_v33 = vld [vmem:[#allocation6 + $0x3418] sm:$0xff]  ;;  %v8775_v36 = vpack.c.bf16 %v4279_v30, %v4275_v28  ;;  %v4148_v26 = vld [vmem:[#allocation3 + $0x360] sm:$0xff]  ;;  %v8665_v28 = vpack.c.bf16 %v4318_v21, %v4314_v20  ;;  %v4358_v20 = vld [vmem:[#allocation6 + $0x3668] sm:$0xff] }
 0x385   :  { %v4317_v30 = vld [vmem:[#allocation6 + $0x3520] sm:$0xff]  ;;  %v4356_v21 = vld [vmem:[#allocation6 + $0x3658] sm:$0xff] }
 0x386   :  { %8628 = vmatpush1.bf16.msra.mxu0 %v8627_v39  ;;  %v4285_v39 = vld [vmem:[#allocation6 + $0x3420] sm:$0xff] }
 0x387   :  { %8756 = vmatpush1.bf16.msra.mxu1 %v8755_v40  ;;  %8630 = vmatprep.subr.bf16.mxu0 %v8629_v41  ;;  %v4283_v40 = vld [vmem:[#allocation6 + $0x3410] sm:$0xff]  ;;  %v8777_v41 = vpack.c.bf16 %v4288_v34, %v4284_v33  ;;  %v8651_v48 = vpack.c.bf16 %v4285_v39, %v4281_v38  ;;  %v4322_v34 = vld [vmem:[#allocation6 + $0x3548] sm:$0xff]  ;;  %v4139_v38 = vld [vmem:[#allocation3 + $0x318] sm:$0xff] }
 0x388   :  { %8758 = vmatprep.subr.bf16.mxu1 %v8757_v45  ;;  %v4292_v45 = vld [vmem:[#allocation6 + $0x3458] sm:$0xff]  ;;  %v8779_v49 = vpack.c.bf16 %v4287_v42, %v4283_v40  ;;  %v4319_v33 = vld [vmem:[#allocation6 + $0x3530] sm:$0xff]  ;;  %v4321_v42 = vld [vmem:[#allocation6 + $0x3540] sm:$0xff] }
 0x389   :  { %v8781_v54 = vpack.c.bf16 %v4296_v46, %v4292_v45  ;;  %v8795_v40 = vpack.c.bf16 %v4319_v33, %v4315_v31  ;;  %v4327_v46 = vld [vmem:[#allocation6 + $0x3570] sm:$0xff]  ;;  %v4362_v31 = vld [vmem:[#allocation6 + $0x3688] sm:$0xff]  ;;  %v4364_v33 = vld [vmem:[#allocation6 + $0x3698] sm:$0xff] }
 0x38a   :  { %8632 = vmatpush1.bf16.msra.mxu0 %v8631_v51  ;;  %v4289_v51 = vld [vmem:[#allocation6 + $0x3440] sm:$0xff] }
 0x38b   :  { %8760 = vmatpush1.bf16.msra.mxu1 %v8759_v52  ;;  %8634 = vmatprep.subr.bf16.mxu0 %v8633_v53  ;;  %v4293_v52 = vld [vmem:[#allocation6 + $0x3460] sm:$0xff]  ;;  %v4291_v53 = vld [vmem:[#allocation6 + $0x3450] sm:$0xff] }
 0x38c   :  { %8762 = vmatprep.subr.bf16.mxu1 %v8761_v57  ;;  %v4302_v57 = vld [vmem:[#allocation6 + $0x34a8] sm:$0xff]  ;;  %v8655_v61 = vpack.c.bf16 %v4293_v52, %v4289_v51  ;;  %v8671_v51 = vpack.c.bf16 %v4325_v43, %v4321_v42  ;;  %v8799_v52 = vpack.c.bf16 %v4327_v46, %v4323_v44  ;;  %v4367_v42 = vld [vmem:[#allocation6 + $0x36b0] sm:$0xff]  ;;  %v4376_v46 = vld [vmem:[#allocation6 + $0x36f8] sm:$0xff] }
 0x38d   :  { %v4370_v43 = vld [vmem:[#allocation6 + $0x36c8] sm:$0xff] }
 0x38e   :  { %8636 = vmatpush1.bf16.msra.mxu0 %v8635_v63  ;;  %v8783_v63 = vpack.c.bf16 %v4295_v55, %v4291_v53  ;;  %v4333_v55 = vld [vmem:[#allocation6 + $0x35a0] sm:$0xff]  ;;  %v4374_v44 = vld [vmem:[#allocation6 + $0x36e8] sm:$0xff] }
 0x38f   :  { %8764 = vmatpush1.bf16.msra.mxu1 %v8763_v0  ;;  %8638 = vmatprep.subr.bf16.mxu0 %v8637_v1  ;;  %v8657_v0 = vpack.c.bf16 %v4302_v57, %v4298_v56  ;;  %v4297_v1 = vld [vmem:[#allocation6 + $0x3480] sm:$0xff]  ;;  %v4331_v56 = vld [vmem:[#allocation6 + $0x3590] sm:$0xff] }
 0x390   :  { %8766 = vmatprep.subr.bf16.mxu1 %v8765_v5  ;;  %v4303_v5 = vld [vmem:[#allocation6 + $0x34b0] sm:$0xff] }
 0x392   :  { %8640 = vmatpush1.bf16.msra.mxu0 %v8639_v11  ;;  %v8659_v11 = vpack.c.bf16 %v4301_v2, %v4297_v1  ;;  %v4337_v2 = vld [vmem:[#allocation6 + $0x35c0] sm:$0xff] }
 0x393   :  { %8768 = vmatpush1.bf16.msra.mxu1 %v8767_v12  ;;  %8642 = vmatprep.subr.bf16.mxu0 %v8641_v13  ;;  %v4144_v12 = vld [vmem:[#allocation3 + $0x340] sm:$0xff]  ;;  %v8787_v13 = vpack.c.bf16 %v4303_v5, %v4299_v3 }
 0x394   :  { %8770 = vmatprep.subr.bf16.mxu1 %v8769_v17  ;;  %v4307_v17 = vld [vmem:[#allocation6 + $0x34d0] sm:$0xff]  ;;  %v4341_v3 = vld [vmem:[#allocation6 + $0x35e0] sm:$0xff] }
 0x395   :  { %v8791_v27 = vpack.c.bf16 %v4311_v19, %v4307_v17  ;;  %v4354_v19 = vld [vmem:[#allocation6 + $0x3648] sm:$0xff] }
 0x396   :  { %8644 = vmatpush1.bf16.msra.mxu0 %v8643_v23  ;;  %v4320_v23 = vld [vmem:[#allocation6 + $0x3538] sm:$0xff] }
 0x397   :  { %8772 = vmatpush1.bf16.msra.mxu1 %v8771_v24  ;;  %8646 = vmatprep.subr.bf16.mxu0 %v8645_v25  ;;  %v4149_v24 = vld [vmem:[#allocation3 + $0x368] sm:$0xff]  ;;  %v8663_v25 = vpack.c.bf16 %v4309_v16, %v4305_v15  ;;  %v8793_v32 = vpack.c.bf16 %v4320_v23, %v4316_v22  ;;  %v4349_v15 = vld [vmem:[#allocation6 + $0x3620] sm:$0xff]  ;;  %v4347_v16 = vld [vmem:[#allocation6 + $0x3610] sm:$0xff] }
 0x398   :  { %8774 = vmatprep.subr.bf16.mxu1 %v8773_v29  ;;  %v4313_v29 = vld [vmem:[#allocation6 + $0x3500] sm:$0xff]  ;;  %v4360_v22 = vld [vmem:[#allocation6 + $0x3678] sm:$0xff] }
 0x399   :  { %v8667_v39 = vpack.c.bf16 %v4317_v30, %v4313_v29  ;;  %v8813_v29 = vpack.c.bf16 %v4360_v22, %v4356_v21  ;;  %v4359_v30 = vld [vmem:[#allocation6 + $0x3670] sm:$0xff]  ;;  %v4393_v22 = vld [vmem:[#allocation6 + $0x3780] sm:$0xff] }
 0x39a   :  { %8648 = vmatpush1.bf16.msra.mxu0 %v8647_v35  ;;  %v4326_v35 = vld [vmem:[#allocation6 + $0x3568] sm:$0xff] }
 0x39b   :  { %8776 = vmatpush1.bf16.msra.mxu1 %v8775_v36  ;;  %8650 = vmatprep.subr.bf16.mxu0 %v8649_v37  ;;  %v4324_v36 = vld [vmem:[#allocation6 + $0x3558] sm:$0xff] }
 0x39c   :  { %8778 = vmatprep.subr.bf16.mxu1 %v8777_v41  ;;  %v4328_v37 = vld [vmem:[#allocation6 + $0x3578] sm:$0xff]  ;;  %v8669_v41 = vpack.c.bf16 %v4326_v35, %v4322_v34 }
 0x39d   :  { %4474 = vmatmul.mubr.f32.vlgmr.msra.gmra.mrb[0].mxu0 %v4136_v47  ;;  %v8797_v45 = vpack.c.bf16 %v4328_v37, %v4324_v36  ;;  %v4368_v34 = vld [vmem:[#allocation6 + $0x36b8] sm:$0xff] }
 0x39e   :  { %8652 = vmatpush1.bf16.msra.mxu0 %v8651_v48  ;;  %4652 = vmatmul.mubr.f32.vlgmr.msra.gmra.mrb[0].mxu1 %v4136_v47  ;;  %v4330_v47 = vld [vmem:[#allocation6 + $0x3588] sm:$0xff] }
 0x39f   :  { %8780 = vmatpush1.bf16.msra.mxu1 %v8779_v49  ;;  %8654 = vmatprep.subr.bf16.mxu0 %v8653_v50  ;;  %v4334_v48 = vld [vmem:[#allocation6 + $0x35a8] sm:$0xff]  ;;  %v4332_v49 = vld [vmem:[#allocation6 + $0x3598] sm:$0xff] }
 0x3a0   :  { %8782 = vmatprep.subr.bf16.mxu1 %v8781_v54  ;;  %4479 = vmatprep.mubr.f32.mxu0 %v4141_v60  ;;  %v4336_v50 = vld [vmem:[#allocation6 + $0x35b8] sm:$0xff]  ;;  %v8673_v53 = vpack.c.bf16 %v4334_v48, %v4330_v47  ;;  %v4329_v54 = vld [vmem:[#allocation6 + $0x3580] sm:$0xff] }
 0x3a1   :  { %4657 = vmatprep.mubr.f32.mxu1 %v4141_v60  ;;  %4480 = vmatmul.mubr.f32.gmra.mrb[2].mxu0 %v4140_v62  ;;  %v8801_v57 = vpack.c.bf16 %v4336_v50, %v4332_v49  ;;  %v4342_v60 = vld [vmem:[#allocation6 + $0x35e8] sm:$0xff]  ;;  %v8693_v49 = vpack.c.bf16 %v4374_v44, %v4370_v43  ;;  %v4369_v50 = vld [vmem:[#allocation6 + $0x36c0] sm:$0xff] }
 0x3a2   :  { %8656 = vmatpush1.bf16.msra.mxu0 %v8655_v61  ;;  %4658 = vmatmul.mubr.f32.gmra.mrb[2].mxu1 %v4140_v62  ;;  %v4340_v61 = vld [vmem:[#allocation6 + $0x35d8] sm:$0xff]  ;;  %v8677_v1 = vpack.c.bf16 %v4342_v60, %v4338_v59 }
 0x3a3   :  { %8784 = vmatpush1.bf16.msra.mxu1 %v8783_v63  ;;  %8658 = vmatprep.subr.bf16.mxu0 %v8657_v0  ;;  %v4344_v62 = vld [vmem:[#allocation6 + $0x35f8] sm:$0xff]  ;;  %v8675_v63 = vpack.c.bf16 %v4333_v55, %v4329_v54  ;;  %v8803_v0 = vpack.c.bf16 %v4335_v58, %v4331_v56  ;;  %v4375_v54 = vld [vmem:[#allocation6 + $0x36f0] sm:$0xff]  ;;  %v4378_v55 = vld [vmem:[#allocation6 + $0x3708] sm:$0xff] }
 0x3a4   :  { %8786 = vmatprep.subr.bf16.mxu1 %v8785_v4  ;;  %4485 = vmatprep.mubr.f32.mxu0 %v4145_v10  ;;  %v4339_v4 = vld [vmem:[#allocation6 + $0x35d0] sm:$0xff]  ;;  %v8805_v5 = vpack.c.bf16 %v4344_v62, %v4340_v61  ;;  %v4382_v56 = vld [vmem:[#allocation6 + $0x3728] sm:$0xff]  ;;  %v4384_v58 = vld [vmem:[#allocation6 + $0x3738] sm:$0xff] }
 0x3a5   :  { %4663 = vmatprep.mubr.f32.mxu1 %v4145_v10  ;;  %4486 = vmatmul.mubr.f32.gmra.mrb[4].mxu0 %v4144_v12  ;;  %v4352_v10 = vld [vmem:[#allocation6 + $0x3638] sm:$0xff]  ;;  %v8697_v61 = vpack.c.bf16 %v4382_v56, %v4378_v55  ;;  %v4377_v62 = vld [vmem:[#allocation6 + $0x3700] sm:$0xff]  ;;  %v4138_v55 = vld [vmem:[#allocation3 + $0x310] sm:$0xff] }
 0x3a6   :  { %8660 = vmatpush1.bf16.msra.mxu0 %v8659_v11  ;;  %4664 = vmatmul.mubr.f32.gmra.mrb[4].mxu1 %v4144_v12  ;;  %v8679_v11 = vpack.c.bf16 %v4341_v3, %v4337_v2  ;;  %v8807_v12 = vpack.c.bf16 %v4343_v6, %v4339_v4  ;;  %v8809_v17 = vpack.c.bf16 %v4352_v10, %v4348_v9  ;;  %v4383_v2 = vld [vmem:[#allocation6 + $0x3730] sm:$0xff]  ;;  %v4386_v3 = vld [vmem:[#allocation6 + $0x3748] sm:$0xff]  ;;  %v4392_v6 = vld [vmem:[#allocation6 + $0x3778] sm:$0xff] }
 0x3a7   :  { %8788 = vmatpush1.bf16.msra.mxu1 %v8787_v13  ;;  %8662 = vmatprep.subr.bf16.mxu0 %v8661_v14  ;;  %v8681_v13 = vpack.c.bf16 %v4350_v8, %v4346_v7  ;;  %v4345_v14 = vld [vmem:[#allocation6 + $0x3600] sm:$0xff]  ;;  %v4390_v4 = vld [vmem:[#allocation6 + $0x3768] sm:$0xff] }
 0x3a8   :  { %8790 = vmatprep.subr.bf16.mxu1 %v8789_v18  ;;  %4491 = vmatprep.mubr.f32.mxu0 %v4149_v24  ;;  %v4351_v18 = vld [vmem:[#allocation6 + $0x3630] sm:$0xff]  ;;  %v8683_v23 = vpack.c.bf16 %v4349_v15, %v4345_v14  ;;  %v8701_v9 = vpack.c.bf16 %v4390_v4, %v4386_v3  ;;  %v4385_v10 = vld [vmem:[#allocation6 + $0x3740] sm:$0xff]  ;;  %v4394_v15 = vld [vmem:[#allocation6 + $0x3788] sm:$0xff] }
 0x3a9   :  { %4669 = vmatprep.mubr.f32.mxu1 %v4149_v24  ;;  %4492 = vmatmul.mubr.f32.gmra.mrb[6].mxu0 %v4148_v26  ;;  %v8811_v24 = vpack.c.bf16 %v4351_v18, %v4347_v16  ;;  %v4391_v14 = vld [vmem:[#allocation6 + $0x3770] sm:$0xff]  ;;  %v4398_v16 = vld [vmem:[#allocation6 + $0x37a8] sm:$0xff]  ;;  %v4400_v18 = vld [vmem:[#allocation6 + $0x37b8] sm:$0xff] }
 0x3aa   :  { %8664 = vmatpush1.bf16.msra.mxu0 %v8663_v25  ;;  %4670 = vmatmul.mubr.f32.gmra.mrb[6].mxu1 %v4148_v26  ;;  %v8685_v25 = vpack.c.bf16 %v4358_v20, %v4354_v19  ;;  %v4353_v26 = vld [vmem:[#allocation6 + $0x3640] sm:$0xff]  ;;  %v8705_v21 = vpack.c.bf16 %v4398_v16, %v4394_v15  ;;  %v4854_v3 = vld [vmem:[#allocation6 + $0x38b8] sm:$0xff]  ;;  %v4860_v15 = vld [vmem:[#allocation6 + $0x38e8] sm:$0xff] }
 0x3ab   :  { %8792 = vmatpush1.bf16.msra.mxu1 %v8791_v27  ;;  %8666 = vmatprep.subr.bf16.mxu0 %v8665_v28  ;;  %v4357_v27 = vld [vmem:[#allocation6 + $0x3660] sm:$0xff]  ;;  %v4355_v28 = vld [vmem:[#allocation6 + $0x3650] sm:$0xff]  ;;  %v4143_v4 = vld [vmem:[#allocation3 + $0x338] sm:$0xff] }
 0x3ac   :  { %8794 = vmatprep.subr.bf16.mxu1 %v8793_v32  ;;  %4562 = vmatprep.mubr.f32.mxu0 %v4139_v38  ;;  %v4366_v32 = vld [vmem:[#allocation6 + $0x36a8] sm:$0xff]  ;;  %v8687_v35 = vpack.c.bf16 %v4357_v27, %v4353_v26  ;;  %v8815_v36 = vpack.c.bf16 %v4359_v30, %v4355_v28  ;;  %v4399_v26 = vld [vmem:[#allocation6 + $0x37b0] sm:$0xff]  ;;  %v4408_v30 = vld [vmem:[#allocation6 + $0x37f8] sm:$0xff] }
 0x3ad   :  { %4740 = vmatprep.mubr.f32.mxu1 %v4139_v38  ;;  %v8689_v37 = vpack.c.bf16 %v4366_v32, %v4362_v31  ;;  %v4361_v38 = vld [vmem:[#allocation6 + $0x3680] sm:$0xff]  ;;  %v4402_v27 = vld [vmem:[#allocation6 + $0x37c8] sm:$0xff]  ;;  %v4858_v16 = vld [vmem:[#allocation6 + $0x38d8] sm:$0xff] }
 0x3ae   :  { %8668 = vmatpush1.bf16.msra.mxu0 %v8667_v39  ;;  %v4365_v39 = vld [vmem:[#allocation6 + $0x36a0] sm:$0xff]  ;;  %v4406_v28 = vld [vmem:[#allocation6 + $0x37e8] sm:$0xff] }
 0x3af   :  { %8796 = vmatpush1.bf16.msra.mxu1 %v8795_v40  ;;  %8670 = vmatprep.subr.bf16.mxu0 %v8669_v41  ;;  %v4363_v40 = vld [vmem:[#allocation6 + $0x3690] sm:$0xff]  ;;  %v8817_v41 = vpack.c.bf16 %v4368_v34, %v4364_v33  ;;  %v8691_v47 = vpack.c.bf16 %v4365_v39, %v4361_v38  ;;  %v8709_v33 = vpack.c.bf16 %v4406_v28, %v4402_v27  ;;  %v4401_v34 = vld [vmem:[#allocation6 + $0x37c0] sm:$0xff]  ;;  %v4832_v39 = vld [vmem:[#allocation6 + $0x3808] sm:$0xff] }
 0x3b0   :  { %8798 = vmatprep.subr.bf16.mxu1 %v8797_v45  ;;  %v4372_v45 = vld [vmem:[#allocation6 + $0x36d8] sm:$0xff]  ;;  %v8819_v48 = vpack.c.bf16 %v4367_v42, %v4363_v40  ;;  %v4407_v38 = vld [vmem:[#allocation6 + $0x37f0] sm:$0xff]  ;;  %v4836_v40 = vld [vmem:[#allocation6 + $0x3828] sm:$0xff] }
 0x3b1   :  { %v4838_v42 = vld [vmem:[#allocation6 + $0x3838] sm:$0xff]  ;;  %v4861_v27 = vld [vmem:[#allocation6 + $0x38f0] sm:$0xff]  ;;  %v4864_v28 = vld [vmem:[#allocation6 + $0x3908] sm:$0xff] }
 0x3b2   :  { %8672 = vmatpush1.bf16.msra.mxu0 %v8671_v51  ;;  %v4373_v51 = vld [vmem:[#allocation6 + $0x36e0] sm:$0xff] }
 0x3b3   :  { %8800 = vmatpush1.bf16.msra.mxu1 %v8799_v52  ;;  %8674 = vmatprep.subr.bf16.mxu0 %v8673_v53  ;;  %v4371_v52 = vld [vmem:[#allocation6 + $0x36d0] sm:$0xff]  ;;  %v8821_v53 = vpack.c.bf16 %v4376_v46, %v4372_v45  ;;  %v8695_v59 = vpack.c.bf16 %v4373_v51, %v4369_v50  ;;  %v8841_v45 = vpack.c.bf16 %v4836_v40, %v4832_v39  ;;  %v4831_v46 = vld [vmem:[#allocation6 + $0x3800] sm:$0xff]  ;;  %v4840_v51 = vld [vmem:[#allocation6 + $0x3848] sm:$0xff] }
 0x3b4   :  { %8802 = vmatprep.subr.bf16.mxu1 %v8801_v57  ;;  %v4380_v57 = vld [vmem:[#allocation6 + $0x3718] sm:$0xff]  ;;  %v8823_v60 = vpack.c.bf16 %v4375_v54, %v4371_v52  ;;  %v4837_v50 = vld [vmem:[#allocation6 + $0x3830] sm:$0xff]  ;;  %v4844_v52 = vld [vmem:[#allocation6 + $0x3868] sm:$0xff] }
 0x3b5   :  { %v4846_v54 = vld [vmem:[#allocation6 + $0x3878] sm:$0xff]  ;;  %v4865_v39 = vld [vmem:[#allocation6 + $0x3910] sm:$0xff] }
 0x3b6   :  { %8676 = vmatpush1.bf16.msra.mxu0 %v8675_v63  ;;  %v4381_v63 = vld [vmem:[#allocation6 + $0x3720] sm:$0xff] }
 0x3b7   :  { %8804 = vmatpush1.bf16.msra.mxu1 %v8803_v0  ;;  %8678 = vmatprep.subr.bf16.mxu0 %v8677_v1  ;;  %v4379_v0 = vld [vmem:[#allocation6 + $0x3710] sm:$0xff]  ;;  %v8825_v1 = vpack.c.bf16 %v4384_v58, %v4380_v57  ;;  %v8699_v7 = vpack.c.bf16 %v4381_v63, %v4377_v62  ;;  %v8845_v58 = vpack.c.bf16 %v4844_v52, %v4840_v51  ;;  %v4875_v51 = vld [vmem:[#allocation6 + $0x3960] sm:$0xff] }
 0x3b8   :  { %8806 = vmatprep.subr.bf16.mxu1 %v8805_v5  ;;  %v4388_v5 = vld [vmem:[#allocation6 + $0x3758] sm:$0xff]  ;;  %v8827_v8 = vpack.c.bf16 %v4383_v2, %v4379_v0  ;;  %v4845_v63 = vld [vmem:[#allocation6 + $0x3870] sm:$0xff]  ;;  %v4848_v0 = vld [vmem:[#allocation6 + $0x3888] sm:$0xff] }
 0x3b9   :  { %v4850_v2 = vld [vmem:[#allocation6 + $0x3898] sm:$0xff]  ;;  %v4873_v52 = vld [vmem:[#allocation6 + $0x3950] sm:$0xff] }
 0x3ba   :  { %8680 = vmatpush1.bf16.msra.mxu0 %v8679_v11  ;;  %v4389_v11 = vld [vmem:[#allocation6 + $0x3760] sm:$0xff] }
 0x3bb   :  { %8808 = vmatpush1.bf16.msra.mxu1 %v8807_v12  ;;  %8682 = vmatprep.subr.bf16.mxu0 %v8681_v13  ;;  %v4387_v12 = vld [vmem:[#allocation6 + $0x3750] sm:$0xff]  ;;  %v8829_v13 = vpack.c.bf16 %v4392_v6, %v4388_v5  ;;  %v8703_v19 = vpack.c.bf16 %v4389_v11, %v4385_v10  ;;  %v4851_v10 = vld [vmem:[#allocation6 + $0x38a0] sm:$0xff] }
 0x3bc   :  { %8810 = vmatprep.subr.bf16.mxu1 %v8809_v17  ;;  %v4396_v17 = vld [vmem:[#allocation6 + $0x3798] sm:$0xff]  ;;  %v8831_v20 = vpack.c.bf16 %v4391_v14, %v4387_v12  ;;  %v4142_v6 = vld [vmem:[#allocation3 + $0x330] sm:$0xff]  ;;  %v8977_v12 = vpack.c.bf16 %v4854_v3, %v4850_v2  ;;  %v4856_v14 = vld [vmem:[#allocation6 + $0x38c8] sm:$0xff] }
 0x3bd   :  { %v4849_v11 = vld [vmem:[#allocation6 + $0x3890] sm:$0xff]  ;;  %v4888_v3 = vld [vmem:[#allocation6 + $0x39c8] sm:$0xff] }
 0x3be   :  { %8684 = vmatpush1.bf16.msra.mxu0 %v8683_v23  ;;  %v4397_v23 = vld [vmem:[#allocation6 + $0x37a0] sm:$0xff]  ;;  %v4885_v2 = vld [vmem:[#allocation6 + $0x39b0] sm:$0xff] }
 0x3bf   :  { %8812 = vmatpush1.bf16.msra.mxu1 %v8811_v24  ;;  %8686 = vmatprep.subr.bf16.mxu0 %v8685_v25  ;;  %v4395_v24 = vld [vmem:[#allocation6 + $0x3790] sm:$0xff]  ;;  %v8833_v25 = vpack.c.bf16 %v4400_v18, %v4396_v17  ;;  %v8707_v31 = vpack.c.bf16 %v4397_v23, %v4393_v22  ;;  %v4862_v17 = vld [vmem:[#allocation6 + $0x38f8] sm:$0xff]  ;;  %v8853_v22 = vpack.c.bf16 %v4860_v15, %v4856_v14  ;;  %v4855_v23 = vld [vmem:[#allocation6 + $0x38c0] sm:$0xff] }
 0x3c0   :  { %8814 = vmatprep.subr.bf16.mxu1 %v8813_v29  ;;  %v4404_v29 = vld [vmem:[#allocation6 + $0x37d8] sm:$0xff]  ;;  %v8835_v32 = vpack.c.bf16 %v4399_v26, %v4395_v24  ;;  %v4859_v24 = vld [vmem:[#allocation6 + $0x38e0] sm:$0xff]  ;;  %v8981_v26 = vpack.c.bf16 %v4862_v17, %v4858_v16  ;;  %v4893_v14 = vld [vmem:[#allocation6 + $0x39f0] sm:$0xff] }
 0x3c1   :  { %v4147_v18 = vld [vmem:[#allocation3 + $0x358] sm:$0xff]  ;;  %v4896_v15 = vld [vmem:[#allocation6 + $0x3a08] sm:$0xff] }
 0x3c2   :  { %8688 = vmatpush1.bf16.msra.mxu0 %v8687_v35  ;;  %v4405_v35 = vld [vmem:[#allocation6 + $0x37e0] sm:$0xff]  ;;  %v4900_v16 = vld [vmem:[#allocation6 + $0x3a28] sm:$0xff]  ;;  %v4898_v17 = vld [vmem:[#allocation6 + $0x3a18] sm:$0xff] }
 0x3c3   :  { %8816 = vmatpush1.bf16.msra.mxu1 %v8815_v36  ;;  %8690 = vmatprep.subr.bf16.mxu0 %v8689_v37  ;;  %v4403_v36 = vld [vmem:[#allocation6 + $0x37d0] sm:$0xff]  ;;  %v8837_v37 = vpack.c.bf16 %v4408_v30, %v4404_v29  ;;  %v8711_v43 = vpack.c.bf16 %v4405_v35, %v4401_v34  ;;  %v4868_v29 = vld [vmem:[#allocation6 + $0x3928] sm:$0xff]  ;;  %v4866_v30 = vld [vmem:[#allocation6 + $0x3918] sm:$0xff] }
 0x3c4   :  { %8818 = vmatprep.subr.bf16.mxu1 %v8817_v41  ;;  %v4834_v41 = vld [vmem:[#allocation6 + $0x3818] sm:$0xff]  ;;  %v8839_v44 = vpack.c.bf16 %v4407_v38, %v4403_v36  ;;  %v4150_v34 = vld [vmem:[#allocation3 + $0x370] sm:$0xff]  ;;  %v8857_v36 = vpack.c.bf16 %v4868_v29, %v4864_v28  ;;  %v4867_v38 = vld [vmem:[#allocation6 + $0x3920] sm:$0xff] }
 0x3c5   :  { %v4908_v28 = vld [vmem:[#allocation6 + $0x3a68] sm:$0xff]  ;;  %v4906_v29 = vld [vmem:[#allocation6 + $0x3a58] sm:$0xff] }
 0x3c6   :  { %8692 = vmatpush1.bf16.msra.mxu0 %v8691_v47  ;;  %v4835_v47 = vld [vmem:[#allocation6 + $0x3820] sm:$0xff] }
 0x3c7   :  { %8820 = vmatpush1.bf16.msra.mxu1 %v8819_v48  ;;  %8694 = vmatprep.subr.bf16.mxu0 %v8693_v49  ;;  %v4833_v48 = vld [vmem:[#allocation6 + $0x3810] sm:$0xff]  ;;  %v8969_v49 = vpack.c.bf16 %v4838_v42, %v4834_v41  ;;  %v8843_v56 = vpack.c.bf16 %v4835_v47, %v4831_v46  ;;  %v4872_v42 = vld [vmem:[#allocation6 + $0x3948] sm:$0xff] }
 0x3c8   :  { %8822 = vmatprep.subr.bf16.mxu1 %v8821_v53  ;;  %v4842_v53 = vld [vmem:[#allocation6 + $0x3858] sm:$0xff]  ;;  %v8971_v57 = vpack.c.bf16 %v4837_v50, %v4833_v48  ;;  %v4869_v41 = vld [vmem:[#allocation6 + $0x3930] sm:$0xff]  ;;  %v4815_v46 = vld [vmem:[#allocation3 + $0x388] sm:$0xff] }
 0x3c9   :  { %v8973_v62 = vpack.c.bf16 %v4846_v54, %v4842_v53  ;;  %v8987_v48 = vpack.c.bf16 %v4869_v41, %v4865_v39  ;;  %v4871_v50 = vld [vmem:[#allocation6 + $0x3940] sm:$0xff]  ;;  %v4877_v54 = vld [vmem:[#allocation6 + $0x3970] sm:$0xff]  ;;  %v4912_v39 = vld [vmem:[#allocation6 + $0x3a88] sm:$0xff] }
 0x3ca   :  { %8696 = vmatpush1.bf16.msra.mxu0 %v8695_v59  ;;  %v4839_v59 = vld [vmem:[#allocation6 + $0x3840] sm:$0xff]  ;;  %v4914_v41 = vld [vmem:[#allocation6 + $0x3a98] sm:$0xff] }
 0x3cb   :  { %8824 = vmatpush1.bf16.msra.mxu1 %v8823_v60  ;;  %8698 = vmatprep.subr.bf16.mxu0 %v8697_v61  ;;  %v4843_v60 = vld [vmem:[#allocation6 + $0x3860] sm:$0xff]  ;;  %v4841_v61 = vld [vmem:[#allocation6 + $0x3850] sm:$0xff] }
 0x3cc   :  { %8826 = vmatprep.subr.bf16.mxu1 %v8825_v1  ;;  %v4852_v1 = vld [vmem:[#allocation6 + $0x38a8] sm:$0xff]  ;;  %v8847_v5 = vpack.c.bf16 %v4843_v60, %v4839_v59  ;;  %v8863_v59 = vpack.c.bf16 %v4875_v51, %v4871_v50  ;;  %v8991_v60 = vpack.c.bf16 %v4877_v54, %v4873_v52  ;;  %v4917_v50 = vld [vmem:[#allocation6 + $0x3ab0] sm:$0xff]  ;;  %v4926_v54 = vld [vmem:[#allocation6 + $0x3af8] sm:$0xff] }
 0x3cd   :  { %v4920_v51 = vld [vmem:[#allocation6 + $0x3ac8] sm:$0xff] }
 0x3ce   :  { %8700 = vmatpush1.bf16.msra.mxu0 %v8699_v7  ;;  %v8975_v7 = vpack.c.bf16 %v4845_v63, %v4841_v61  ;;  %v4883_v63 = vld [vmem:[#allocation6 + $0x39a0] sm:$0xff]  ;;  %v4924_v52 = vld [vmem:[#allocation6 + $0x3ae8] sm:$0xff] }
 0x3cf   :  { %8828 = vmatpush1.bf16.msra.mxu1 %v8827_v8  ;;  %8702 = vmatprep.subr.bf16.mxu0 %v8701_v9  ;;  %v8849_v8 = vpack.c.bf16 %v4852_v1, %v4848_v0  ;;  %v4847_v9 = vld [vmem:[#allocation6 + $0x3880] sm:$0xff]  ;;  %v4881_v0 = vld [vmem:[#allocation6 + $0x3990] sm:$0xff] }
 0x3d0   :  { %8830 = vmatprep.subr.bf16.mxu1 %v8829_v13  ;;  %v4853_v13 = vld [vmem:[#allocation6 + $0x38b0] sm:$0xff] }
 0x3d2   :  { %8704 = vmatpush1.bf16.msra.mxu0 %v8703_v19  ;;  %v8851_v19 = vpack.c.bf16 %v4851_v10, %v4847_v9  ;;  %v4887_v10 = vld [vmem:[#allocation6 + $0x39c0] sm:$0xff] }
 0x3d3   :  { %8832 = vmatpush1.bf16.msra.mxu1 %v8831_v20  ;;  %8706 = vmatprep.subr.bf16.mxu0 %v8705_v21  ;;  %v4146_v20 = vld [vmem:[#allocation3 + $0x350] sm:$0xff]  ;;  %v8979_v21 = vpack.c.bf16 %v4853_v13, %v4849_v11  ;;  %v4891_v11 = vld [vmem:[#allocation6 + $0x39e0] sm:$0xff] }
 0x3d4   :  { %8834 = vmatprep.subr.bf16.mxu1 %v8833_v25  ;;  %v4857_v25 = vld [vmem:[#allocation6 + $0x38d0] sm:$0xff] }
 0x3d5   :  { %v8983_v35 = vpack.c.bf16 %v4861_v27, %v4857_v25  ;;  %v4904_v27 = vld [vmem:[#allocation6 + $0x3a48] sm:$0xff] }
 0x3d6   :  { %8708 = vmatpush1.bf16.msra.mxu0 %v8707_v31  ;;  %v4870_v31 = vld [vmem:[#allocation6 + $0x3938] sm:$0xff] }
 0x3d7   :  { %8836 = vmatpush1.bf16.msra.mxu1 %v8835_v32  ;;  %8710 = vmatprep.subr.bf16.mxu0 %v8709_v33  ;;  %v4151_v32 = vld [vmem:[#allocation3 + $0x378] sm:$0xff]  ;;  %v8855_v33 = vpack.c.bf16 %v4859_v24, %v4855_v23  ;;  %v8985_v40 = vpack.c.bf16 %v4870_v31, %v4866_v30  ;;  %v4899_v23 = vld [vmem:[#allocation6 + $0x3a20] sm:$0xff]  ;;  %v4897_v24 = vld [vmem:[#allocation6 + $0x3a10] sm:$0xff] }
 0x3d8   :  { %8838 = vmatprep.subr.bf16.mxu1 %v8837_v37  ;;  %v4863_v37 = vld [vmem:[#allocation6 + $0x3900] sm:$0xff]  ;;  %v4910_v30 = vld [vmem:[#allocation6 + $0x3a78] sm:$0xff] }
 0x3d9   :  { %v8859_v47 = vpack.c.bf16 %v4867_v38, %v4863_v37  ;;  %v9005_v37 = vpack.c.bf16 %v4910_v30, %v4906_v29  ;;  %v4909_v38 = vld [vmem:[#allocation6 + $0x3a70] sm:$0xff]  ;;  %v4943_v30 = vld [vmem:[#allocation6 + $0x3b80] sm:$0xff] }
 0x3da   :  { %8712 = vmatpush1.bf16.msra.mxu0 %v8711_v43  ;;  %v4876_v43 = vld [vmem:[#allocation6 + $0x3968] sm:$0xff] }
 0x3db   :  { %8840 = vmatpush1.bf16.msra.mxu1 %v8839_v44  ;;  %8842 = vmatprep.subr.bf16.mxu0 %v8841_v45  ;;  %v4874_v44 = vld [vmem:[#allocation6 + $0x3958] sm:$0xff] }
 0x3dc   :  { %8970 = vmatprep.subr.bf16.mxu1 %v8969_v49  ;;  %v4878_v45 = vld [vmem:[#allocation6 + $0x3978] sm:$0xff]  ;;  %v8861_v49 = vpack.c.bf16 %v4876_v43, %v4872_v42 }
 0x3dd   :  { %4563 = vmatmul.mubr.f32.vlgmr.msra.gmra.mrb[0].mxu0 %v4138_v55  ;;  %v8989_v53 = vpack.c.bf16 %v4878_v45, %v4874_v44  ;;  %v4918_v42 = vld [vmem:[#allocation6 + $0x3ab8] sm:$0xff] }
 0x3de   :  { %4741 = vmatmul.mubr.f32.vlgmr.msra.gmra.mrb[0].mxu1 %v4138_v55  ;;  %8844 = vmatpush1.bf16.msra.mxu0 %v8843_v56  ;;  %v4880_v55 = vld [vmem:[#allocation6 + $0x3988] sm:$0xff] }
 0x3df   :  { %8972 = vmatpush1.bf16.msra.mxu1 %v8971_v57  ;;  %8846 = vmatprep.subr.bf16.mxu0 %v8845_v58  ;;  %v4884_v56 = vld [vmem:[#allocation6 + $0x39a8] sm:$0xff]  ;;  %v4882_v57 = vld [vmem:[#allocation6 + $0x3998] sm:$0xff] }
 0x3e0   :  { %8974 = vmatprep.subr.bf16.mxu1 %v8973_v62  ;;  %4568 = vmatprep.mubr.f32.mxu0 %v4143_v4  ;;  %v4886_v58 = vld [vmem:[#allocation6 + $0x39b8] sm:$0xff]  ;;  %v8865_v61 = vpack.c.bf16 %v4884_v56, %v4880_v55  ;;  %v4879_v62 = vld [vmem:[#allocation6 + $0x3980] sm:$0xff] }
 0x3e1   :  { %4746 = vmatprep.mubr.f32.mxu1 %v4143_v4  ;;  %4569 = vmatmul.mubr.f32.gmra.mrb[2].mxu0 %v4142_v6  ;;  %v8993_v1 = vpack.c.bf16 %v4886_v58, %v4882_v57  ;;  %v4892_v4 = vld [vmem:[#allocation6 + $0x39e8] sm:$0xff]  ;;  %v8885_v57 = vpack.c.bf16 %v4924_v52, %v4920_v51  ;;  %v4919_v58 = vld [vmem:[#allocation6 + $0x3ac0] sm:$0xff] }
 0x3e2   :  { %8848 = vmatpush1.bf16.msra.mxu0 %v8847_v5  ;;  %4747 = vmatmul.mubr.f32.gmra.mrb[2].mxu1 %v4142_v6  ;;  %v4890_v5 = vld [vmem:[#allocation6 + $0x39d8] sm:$0xff]  ;;  %v8869_v9 = vpack.c.bf16 %v4892_v4, %v4888_v3 }
 0x3e3   :  { %8976 = vmatpush1.bf16.msra.mxu1 %v8975_v7  ;;  %8850 = vmatprep.subr.bf16.mxu0 %v8849_v8  ;;  %v4894_v6 = vld [vmem:[#allocation6 + $0x39f8] sm:$0xff]  ;;  %v8867_v7 = vpack.c.bf16 %v4883_v63, %v4879_v62  ;;  %v8995_v8 = vpack.c.bf16 %v4885_v2, %v4881_v0  ;;  %v4925_v62 = vld [vmem:[#allocation6 + $0x3af0] sm:$0xff]  ;;  %v4928_v63 = vld [vmem:[#allocation6 + $0x3b08] sm:$0xff] }
 0x3e4   :  { %8978 = vmatprep.subr.bf16.mxu1 %v8977_v12  ;;  %4574 = vmatprep.mubr.f32.mxu0 %v4147_v18  ;;  %v4889_v12 = vld [vmem:[#allocation6 + $0x39d0] sm:$0xff]  ;;  %v8997_v13 = vpack.c.bf16 %v4894_v6, %v4890_v5  ;;  %v4932_v0 = vld [vmem:[#allocation6 + $0x3b28] sm:$0xff]  ;;  %v4934_v2 = vld [vmem:[#allocation6 + $0x3b38] sm:$0xff] }
 0x3e5   :  { %4752 = vmatprep.mubr.f32.mxu1 %v4147_v18  ;;  %4575 = vmatmul.mubr.f32.gmra.mrb[4].mxu0 %v4146_v20  ;;  %v4902_v18 = vld [vmem:[#allocation6 + $0x3a38] sm:$0xff]  ;;  %v8889_v5 = vpack.c.bf16 %v4932_v0, %v4928_v63  ;;  %v4927_v6 = vld [vmem:[#allocation6 + $0x3b00] sm:$0xff] }
 0x3e6   :  { %8852 = vmatpush1.bf16.msra.mxu0 %v8851_v19  ;;  %4753 = vmatmul.mubr.f32.gmra.mrb[4].mxu1 %v4146_v20  ;;  %v8871_v19 = vpack.c.bf16 %v4891_v11, %v4887_v10  ;;  %v8999_v20 = vpack.c.bf16 %v4893_v14, %v4889_v12  ;;  %v9001_v25 = vpack.c.bf16 %v4902_v18, %v4898_v17  ;;  %v4933_v10 = vld [vmem:[#allocation6 + $0x3b30] sm:$0xff]  ;;  %v4936_v11 = vld [vmem:[#allocation6 + $0x3b48] sm:$0xff]  ;;  %v4942_v14 = vld [vmem:[#allocation6 + $0x3b78] sm:$0xff] }
 0x3e7   :  { %8980 = vmatpush1.bf16.msra.mxu1 %v8979_v21  ;;  %8854 = vmatprep.subr.bf16.mxu0 %v8853_v22  ;;  %v8873_v21 = vpack.c.bf16 %v4900_v16, %v4896_v15  ;;  %v4895_v22 = vld [vmem:[#allocation6 + $0x3a00] sm:$0xff]  ;;  %v4940_v12 = vld [vmem:[#allocation6 + $0x3b68] sm:$0xff] }
 0x3e8   :  { %8982 = vmatprep.subr.bf16.mxu1 %v8981_v26  ;;  %4580 = vmatprep.mubr.f32.mxu0 %v4151_v32  ;;  %v4901_v26 = vld [vmem:[#allocation6 + $0x3a30] sm:$0xff]  ;;  %v8875_v31 = vpack.c.bf16 %v4899_v23, %v4895_v22  ;;  %v8893_v17 = vpack.c.bf16 %v4940_v12, %v4936_v11  ;;  %v4935_v18 = vld [vmem:[#allocation6 + $0x3b40] sm:$0xff]  ;;  %v4944_v23 = vld [vmem:[#allocation6 + $0x3b88] sm:$0xff] }
 0x3e9   :  { %4758 = vmatprep.mubr.f32.mxu1 %v4151_v32  ;;  %4581 = vmatmul.mubr.f32.gmra.mrb[6].mxu0 %v4150_v34  ;;  %v9003_v32 = vpack.c.bf16 %v4901_v26, %v4897_v24  ;;  %v4941_v22 = vld [vmem:[#allocation6 + $0x3b70] sm:$0xff]  ;;  %v4948_v24 = vld [vmem:[#allocation6 + $0x3ba8] sm:$0xff]  ;;  %v4950_v26 = vld [vmem:[#allocation6 + $0x3bb8] sm:$0xff] }
 0x3ea   :  { %8856 = vmatpush1.bf16.msra.mxu0 %v8855_v33  ;;  %4759 = vmatmul.mubr.f32.gmra.mrb[6].mxu1 %v4150_v34  ;;  %v8877_v33 = vpack.c.bf16 %v4908_v28, %v4904_v27  ;;  %v4903_v34 = vld [vmem:[#allocation6 + $0x3a40] sm:$0xff]  ;;  %v8897_v29 = vpack.c.bf16 %v4948_v24, %v4944_v23  ;;  %v4982_v11 = vld [vmem:[#allocation6 + $0x3cb8] sm:$0xff]  ;;  %v4819_v12 = vld [vmem:[#allocation3 + $0x3a8] sm:$0xff] }
 0x3eb   :  { %8984 = vmatpush1.bf16.msra.mxu1 %v8983_v35  ;;  %8858 = vmatprep.subr.bf16.mxu0 %v8857_v36  ;;  %v4907_v35 = vld [vmem:[#allocation6 + $0x3a60] sm:$0xff]  ;;  %v4905_v36 = vld [vmem:[#allocation6 + $0x3a50] sm:$0xff]  ;;  %v4988_v23 = vld [vmem:[#allocation6 + $0x3ce8] sm:$0xff] }
 0x3ec   :  { %8986 = vmatprep.subr.bf16.mxu1 %v8985_v40  ;;  %5151 = vmatprep.mubr.f32.mxu0 %v4815_v46  ;;  %v4916_v40 = vld [vmem:[#allocation6 + $0x3aa8] sm:$0xff]  ;;  %v8879_v43 = vpack.c.bf16 %v4907_v35, %v4903_v34  ;;  %v9007_v44 = vpack.c.bf16 %v4909_v38, %v4905_v36  ;;  %v4949_v34 = vld [vmem:[#allocation6 + $0x3bb0] sm:$0xff]  ;;  %v4958_v38 = vld [vmem:[#allocation6 + $0x3bf8] sm:$0xff] }
 0x3ed   :  { %5329 = vmatprep.mubr.f32.mxu1 %v4815_v46  ;;  %v8881_v45 = vpack.c.bf16 %v4916_v40, %v4912_v39  ;;  %v4911_v46 = vld [vmem:[#allocation6 + $0x3a80] sm:$0xff]  ;;  %v4952_v35 = vld [vmem:[#allocation6 + $0x3bc8] sm:$0xff]  ;;  %v4986_v24 = vld [vmem:[#allocation6 + $0x3cd8] sm:$0xff] }
 0x3ee   :  { %8860 = vmatpush1.bf16.msra.mxu0 %v8859_v47  ;;  %v4915_v47 = vld [vmem:[#allocation6 + $0x3aa0] sm:$0xff]  ;;  %v4956_v36 = vld [vmem:[#allocation6 + $0x3be8] sm:$0xff] }
 0x3ef   :  { %8988 = vmatpush1.bf16.msra.mxu1 %v8987_v48  ;;  %8862 = vmatprep.subr.bf16.mxu0 %v8861_v49  ;;  %v4913_v48 = vld [vmem:[#allocation6 + $0x3a90] sm:$0xff]  ;;  %v9009_v49 = vpack.c.bf16 %v4918_v42, %v4914_v41  ;;  %v8883_v55 = vpack.c.bf16 %v4915_v47, %v4911_v46  ;;  %v8901_v41 = vpack.c.bf16 %v4956_v36, %v4952_v35  ;;  %v4951_v42 = vld [vmem:[#allocation6 + $0x3bc0] sm:$0xff]  ;;  %v4960_v47 = vld [vmem:[#allocation6 + $0x3c08] sm:$0xff] }
 0x3f0   :  { %8990 = vmatprep.subr.bf16.mxu1 %v8989_v53  ;;  %v4922_v53 = vld [vmem:[#allocation6 + $0x3ad8] sm:$0xff]  ;;  %v9011_v56 = vpack.c.bf16 %v4917_v50, %v4913_v48  ;;  %v4957_v46 = vld [vmem:[#allocation6 + $0x3bf0] sm:$0xff]  ;;  %v4964_v48 = vld [vmem:[#allocation6 + $0x3c28] sm:$0xff] }
 0x3f1   :  { %v4966_v50 = vld [vmem:[#allocation6 + $0x3c38] sm:$0xff]  ;;  %v4814_v63 = vld [vmem:[#allocation3 + $0x380] sm:$0xff]  ;;  %v4989_v35 = vld [vmem:[#allocation6 + $0x3cf0] sm:$0xff] }
 0x3f2   :  { %8864 = vmatpush1.bf16.msra.mxu0 %v8863_v59  ;;  %v4923_v59 = vld [vmem:[#allocation6 + $0x3ae0] sm:$0xff]  ;;  %v4992_v36 = vld [vmem:[#allocation6 + $0x3d08] sm:$0xff] }
 0x3f3   :  { %8992 = vmatpush1.bf16.msra.mxu1 %v8991_v60  ;;  %8866 = vmatprep.subr.bf16.mxu0 %v8865_v61  ;;  %v4921_v60 = vld [vmem:[#allocation6 + $0x3ad0] sm:$0xff]  ;;  %v9013_v61 = vpack.c.bf16 %v4926_v54, %v4922_v53  ;;  %v8887_v3 = vpack.c.bf16 %v4923_v59, %v4919_v58  ;;  %v8905_v53 = vpack.c.bf16 %v4964_v48, %v4960_v47  ;;  %v4959_v54 = vld [vmem:[#allocation6 + $0x3c00] sm:$0xff]  ;;  %v4968_v59 = vld [vmem:[#allocation6 + $0x3c48] sm:$0xff] }
 0x3f4   :  { %8994 = vmatprep.subr.bf16.mxu1 %v8993_v1  ;;  %v4930_v1 = vld [vmem:[#allocation6 + $0x3b18] sm:$0xff]  ;;  %v9015_v4 = vpack.c.bf16 %v4925_v62, %v4921_v60  ;;  %v4965_v58 = vld [vmem:[#allocation6 + $0x3c30] sm:$0xff]  ;;  %v4972_v60 = vld [vmem:[#allocation6 + $0x3c68] sm:$0xff] }
 0x3f5   :  { %v4974_v62 = vld [vmem:[#allocation6 + $0x3c78] sm:$0xff]  ;;  %v4993_v47 = vld [vmem:[#allocation6 + $0x3d10] sm:$0xff] }
 0x3f6   :  { %8868 = vmatpush1.bf16.msra.mxu0 %v8867_v7  ;;  %v4931_v7 = vld [vmem:[#allocation6 + $0x3b20] sm:$0xff] }
 0x3f7   :  { %8996 = vmatpush1.bf16.msra.mxu1 %v8995_v8  ;;  %8870 = vmatprep.subr.bf16.mxu0 %v8869_v9  ;;  %v4929_v8 = vld [vmem:[#allocation6 + $0x3b10] sm:$0xff]  ;;  %v9017_v9 = vpack.c.bf16 %v4934_v2, %v4930_v1  ;;  %v8891_v15 = vpack.c.bf16 %v4931_v7, %v4927_v6  ;;  %v8909_v2 = vpack.c.bf16 %v4972_v60, %v4968_v59  ;;  %v5003_v59 = vld [vmem:[#allocation6 + $0x3d60] sm:$0xff] }
 0x3f8   :  { %8998 = vmatprep.subr.bf16.mxu1 %v8997_v13  ;;  %v4938_v13 = vld [vmem:[#allocation6 + $0x3b58] sm:$0xff]  ;;  %v9019_v16 = vpack.c.bf16 %v4933_v10, %v4929_v8  ;;  %v4973_v7 = vld [vmem:[#allocation6 + $0x3c70] sm:$0xff]  ;;  %v4976_v8 = vld [vmem:[#allocation6 + $0x3c88] sm:$0xff] }
 0x3f9   :  { %v4978_v10 = vld [vmem:[#allocation6 + $0x3c98] sm:$0xff]  ;;  %v5001_v60 = vld [vmem:[#allocation6 + $0x3d50] sm:$0xff] }
 0x3fa   :  { %8872 = vmatpush1.bf16.msra.mxu0 %v8871_v19  ;;  %v4939_v19 = vld [vmem:[#allocation6 + $0x3b60] sm:$0xff] }
 0x3fb   :  { %9000 = vmatpush1.bf16.msra.mxu1 %v8999_v20  ;;  %8874 = vmatprep.subr.bf16.mxu0 %v8873_v21  ;;  %v4937_v20 = vld [vmem:[#allocation6 + $0x3b50] sm:$0xff]  ;;  %v9021_v21 = vpack.c.bf16 %v4942_v14, %v4938_v13  ;;  %v8895_v27 = vpack.c.bf16 %v4939_v19, %v4935_v18  ;;  %v4818_v14 = vld [vmem:[#allocation3 + $0x3a0] sm:$0xff] }
 0x3fc   :  { %9002 = vmatprep.subr.bf16.mxu1 %v9001_v25  ;;  %v4946_v25 = vld [vmem:[#allocation6 + $0x3b98] sm:$0xff]  ;;  %v9023_v28 = vpack.c.bf16 %v4941_v22, %v4937_v20  ;;  %v4979_v18 = vld [vmem:[#allocation6 + $0x3ca0] sm:$0xff]  ;;  %v4977_v19 = vld [vmem:[#allocation6 + $0x3c90] sm:$0xff]  ;;  %v9041_v20 = vpack.c.bf16 %v4982_v11, %v4978_v10 }
 0x3fd   :  { %v4984_v22 = vld [vmem:[#allocation6 + $0x3cc8] sm:$0xff]  ;;  %v5013_v10 = vld [vmem:[#allocation6 + $0x3db0] sm:$0xff] }
 0x3fe   :  { %8876 = vmatpush1.bf16.msra.mxu0 %v8875_v31  ;;  %v4947_v31 = vld [vmem:[#allocation6 + $0x3ba0] sm:$0xff]  ;;  %v5016_v11 = vld [vmem:[#allocation6 + $0x3dc8] sm:$0xff] }
 0x3ff   :  { %9004 = vmatpush1.bf16.msra.mxu1 %v9003_v32  ;;  %8878 = vmatprep.subr.bf16.mxu0 %v8877_v33  ;;  %v4945_v32 = vld [vmem:[#allocation6 + $0x3b90] sm:$0xff]  ;;  %v9025_v33 = vpack.c.bf16 %v4950_v26, %v4946_v25  ;;  %v8899_v39 = vpack.c.bf16 %v4947_v31, %v4943_v30  ;;  %v4990_v25 = vld [vmem:[#allocation6 + $0x3cf8] sm:$0xff]  ;;  %v4823_v26 = vld [vmem:[#allocation3 + $0x3c8] sm:$0xff]  ;;  %v8917_v30 = vpack.c.bf16 %v4988_v23, %v4984_v22 }
 0x400   :  { %9006 = vmatprep.subr.bf16.mxu1 %v9005_v37  ;;  %v4954_v37 = vld [vmem:[#allocation6 + $0x3bd8] sm:$0xff]  ;;  %v9027_v40 = vpack.c.bf16 %v4949_v34, %v4945_v32  ;;  %v4983_v31 = vld [vmem:[#allocation6 + $0x3cc0] sm:$0xff]  ;;  %v9045_v34 = vpack.c.bf16 %v4990_v25, %v4986_v24  ;;  %v5021_v22 = vld [vmem:[#allocation6 + $0x3df0] sm:$0xff] }
 0x401   :  { %v4987_v32 = vld [vmem:[#allocation6 + $0x3ce0] sm:$0xff]  ;;  %v5024_v23 = vld [vmem:[#allocation6 + $0x3e08] sm:$0xff]  ;;  %v5026_v25 = vld [vmem:[#allocation6 + $0x3e18] sm:$0xff] }
 0x402   :  { %8880 = vmatpush1.bf16.msra.mxu0 %v8879_v43  ;;  %v4955_v43 = vld [vmem:[#allocation6 + $0x3be0] sm:$0xff]  ;;  %v5028_v24 = vld [vmem:[#allocation6 + $0x3e28] sm:$0xff] }
 0x403   :  { %9008 = vmatpush1.bf16.msra.mxu1 %v9007_v44  ;;  %8882 = vmatprep.subr.bf16.mxu0 %v8881_v45  ;;  %v4953_v44 = vld [vmem:[#allocation6 + $0x3bd0] sm:$0xff]  ;;  %v9029_v45 = vpack.c.bf16 %v4958_v38, %v4954_v37  ;;  %v8903_v51 = vpack.c.bf16 %v4955_v43, %v4951_v42  ;;  %v4996_v37 = vld [vmem:[#allocation6 + $0x3d28] sm:$0xff]  ;;  %v4994_v38 = vld [vmem:[#allocation6 + $0x3d18] sm:$0xff] }
 0x404   :  { %9010 = vmatprep.subr.bf16.mxu1 %v9009_v49  ;;  %v4962_v49 = vld [vmem:[#allocation6 + $0x3c18] sm:$0xff]  ;;  %v9031_v52 = vpack.c.bf16 %v4957_v46, %v4953_v44  ;;  %v4826_v42 = vld [vmem:[#allocation3 + $0x3e0] sm:$0xff]  ;;  %v8921_v44 = vpack.c.bf16 %v4996_v37, %v4992_v36  ;;  %v5036_v36 = vld [vmem:[#allocation6 + $0x3e68] sm:$0xff] }
 0x405   :  { %v4995_v46 = vld [vmem:[#allocation6 + $0x3d20] sm:$0xff]  ;;  %v5034_v37 = vld [vmem:[#allocation6 + $0x3e58] sm:$0xff] }
 0x406   :  { %8884 = vmatpush1.bf16.msra.mxu0 %v8883_v55  ;;  %v4963_v55 = vld [vmem:[#allocation6 + $0x3c20] sm:$0xff] }
 0x407   :  { %9012 = vmatpush1.bf16.msra.mxu1 %v9011_v56  ;;  %8886 = vmatprep.subr.bf16.mxu0 %v8885_v57  ;;  %v4961_v56 = vld [vmem:[#allocation6 + $0x3c10] sm:$0xff]  ;;  %v9033_v57 = vpack.c.bf16 %v4966_v50, %v4962_v49  ;;  %v8907_v0 = vpack.c.bf16 %v4963_v55, %v4959_v54  ;;  %v5000_v50 = vld [vmem:[#allocation6 + $0x3d48] sm:$0xff]  ;;  %v4817_v54 = vld [vmem:[#allocation3 + $0x398] sm:$0xff] }
 0x408   :  { %9014 = vmatprep.subr.bf16.mxu1 %v9013_v61  ;;  %v4970_v61 = vld [vmem:[#allocation6 + $0x3c58] sm:$0xff]  ;;  %v9035_v1 = vpack.c.bf16 %v4965_v58, %v4961_v56  ;;  %v4997_v49 = vld [vmem:[#allocation6 + $0x3d30] sm:$0xff]  ;;  %v4999_v58 = vld [vmem:[#allocation6 + $0x3d40] sm:$0xff] }
 0x409   :  { %v9037_v6 = vpack.c.bf16 %v4974_v62, %v4970_v61  ;;  %v9051_v56 = vpack.c.bf16 %v4997_v49, %v4993_v47  ;;  %v5005_v62 = vld [vmem:[#allocation6 + $0x3d70] sm:$0xff]  ;;  %v5040_v47 = vld [vmem:[#allocation6 + $0x3e88] sm:$0xff]  ;;  %v5042_v49 = vld [vmem:[#allocation6 + $0x3e98] sm:$0xff] }
 0x40a   :  { %8888 = vmatpush1.bf16.msra.mxu0 %v8887_v3  ;;  %v4967_v3 = vld [vmem:[#allocation6 + $0x3c40] sm:$0xff] }
 0x40b   :  { %9016 = vmatpush1.bf16.msra.mxu1 %v9015_v4  ;;  %8890 = vmatprep.subr.bf16.mxu0 %v8889_v5  ;;  %v4971_v4 = vld [vmem:[#allocation6 + $0x3c60] sm:$0xff]  ;;  %v4969_v5 = vld [vmem:[#allocation6 + $0x3c50] sm:$0xff] }
 0x40c   :  { %9018 = vmatprep.subr.bf16.mxu1 %v9017_v9  ;;  %v4980_v9 = vld [vmem:[#allocation6 + $0x3ca8] sm:$0xff]  ;;  %v8911_v13 = vpack.c.bf16 %v4971_v4, %v4967_v3  ;;  %v8927_v3 = vpack.c.bf16 %v5003_v59, %v4999_v58  ;;  %v9055_v4 = vpack.c.bf16 %v5005_v62, %v5001_v60  ;;  %v5045_v58 = vld [vmem:[#allocation6 + $0x3eb0] sm:$0xff]  ;;  %v5054_v62 = vld [vmem:[#allocation6 + $0x3ef8] sm:$0xff] }
 0x40d   :  { %v5048_v59 = vld [vmem:[#allocation6 + $0x3ec8] sm:$0xff] }
 0x40e   :  { %8892 = vmatpush1.bf16.msra.mxu0 %v8891_v15  ;;  %v9039_v15 = vpack.c.bf16 %v4973_v7, %v4969_v5  ;;  %v5011_v7 = vld [vmem:[#allocation6 + $0x3da0] sm:$0xff]  ;;  %v5052_v60 = vld [vmem:[#allocation6 + $0x3ee8] sm:$0xff] }
 0x40f   :  { %9020 = vmatpush1.bf16.msra.mxu1 %v9019_v16  ;;  %8894 = vmatprep.subr.bf16.mxu0 %v8893_v17  ;;  %v8913_v16 = vpack.c.bf16 %v4980_v9, %v4976_v8  ;;  %v4975_v17 = vld [vmem:[#allocation6 + $0x3c80] sm:$0xff]  ;;  %v5009_v8 = vld [vmem:[#allocation6 + $0x3d90] sm:$0xff] }
 0x410   :  { %9022 = vmatprep.subr.bf16.mxu1 %v9021_v21  ;;  %v4981_v21 = vld [vmem:[#allocation6 + $0x3cb0] sm:$0xff] }
 0x412   :  { %8896 = vmatpush1.bf16.msra.mxu0 %v8895_v27  ;;  %v8915_v27 = vpack.c.bf16 %v4979_v18, %v4975_v17  ;;  %v5015_v18 = vld [vmem:[#allocation6 + $0x3dc0] sm:$0xff] }
 0x413   :  { %9024 = vmatpush1.bf16.msra.mxu1 %v9023_v28  ;;  %8898 = vmatprep.subr.bf16.mxu0 %v8897_v29  ;;  %v4822_v28 = vld [vmem:[#allocation3 + $0x3c0] sm:$0xff]  ;;  %v9043_v29 = vpack.c.bf16 %v4981_v21, %v4977_v19 }
 0x414   :  { %9026 = vmatprep.subr.bf16.mxu1 %v9025_v33  ;;  %v4985_v33 = vld [vmem:[#allocation6 + $0x3cd0] sm:$0xff]  ;;  %v5019_v19 = vld [vmem:[#allocation6 + $0x3de0] sm:$0xff] }
 0x415   :  { %v9047_v43 = vpack.c.bf16 %v4989_v35, %v4985_v33  ;;  %v5032_v35 = vld [vmem:[#allocation6 + $0x3e48] sm:$0xff] }
 0x416   :  { %8900 = vmatpush1.bf16.msra.mxu0 %v8899_v39  ;;  %v4998_v39 = vld [vmem:[#allocation6 + $0x3d38] sm:$0xff] }
 0x417   :  { %9028 = vmatpush1.bf16.msra.mxu1 %v9027_v40  ;;  %8902 = vmatprep.subr.bf16.mxu0 %v8901_v41  ;;  %v4827_v40 = vld [vmem:[#allocation3 + $0x3e8] sm:$0xff]  ;;  %v8919_v41 = vpack.c.bf16 %v4987_v32, %v4983_v31  ;;  %v9049_v48 = vpack.c.bf16 %v4998_v39, %v4994_v38  ;;  %v5027_v31 = vld [vmem:[#allocation6 + $0x3e20] sm:$0xff]  ;;  %v5025_v32 = vld [vmem:[#allocation6 + $0x3e10] sm:$0xff] }
 0x418   :  { %9030 = vmatprep.subr.bf16.mxu1 %v9029_v45  ;;  %v4991_v45 = vld [vmem:[#allocation6 + $0x3d00] sm:$0xff]  ;;  %v5038_v38 = vld [vmem:[#allocation6 + $0x3e78] sm:$0xff] }
 0x419   :  { %v8923_v55 = vpack.c.bf16 %v4995_v46, %v4991_v45  ;;  %v9069_v45 = vpack.c.bf16 %v5038_v38, %v5034_v37  ;;  %v5037_v46 = vld [vmem:[#allocation6 + $0x3e70] sm:$0xff]  ;;  %v5071_v38 = vld [vmem:[#allocation6 + $0x3f80] sm:$0xff] }
 0x41a   :  { %8904 = vmatpush1.bf16.msra.mxu0 %v8903_v51  ;;  %v5004_v51 = vld [vmem:[#allocation6 + $0x3d68] sm:$0xff] }
 0x41b   :  { %9032 = vmatpush1.bf16.msra.mxu1 %v9031_v52  ;;  %8906 = vmatprep.subr.bf16.mxu0 %v8905_v53  ;;  %v5002_v52 = vld [vmem:[#allocation6 + $0x3d58] sm:$0xff] }
 0x41c   :  { %9034 = vmatprep.subr.bf16.mxu1 %v9033_v57  ;;  %v5006_v53 = vld [vmem:[#allocation6 + $0x3d78] sm:$0xff]  ;;  %v8925_v57 = vpack.c.bf16 %v5004_v51, %v5000_v50 }
 0x41d   :  { %5152 = vmatmul.mubr.f32.vlgmr.msra.gmra.mrb[0].mxu0 %v4814_v63  ;;  %v9053_v61 = vpack.c.bf16 %v5006_v53, %v5002_v52  ;;  %v5046_v50 = vld [vmem:[#allocation6 + $0x3eb8] sm:$0xff] }
 0x41e   :  { %8908 = vmatpush1.bf16.msra.mxu0 %v8907_v0  ;;  %5330 = vmatmul.mubr.f32.vlgmr.msra.gmra.mrb[0].mxu1 %v4814_v63  ;;  %v5008_v63 = vld [vmem:[#allocation6 + $0x3d88] sm:$0xff] }
 0x41f   :  { %9036 = vmatpush1.bf16.msra.mxu1 %v9035_v1  ;;  %8910 = vmatprep.subr.bf16.mxu0 %v8909_v2  ;;  %v5012_v0 = vld [vmem:[#allocation6 + $0x3da8] sm:$0xff]  ;;  %v5010_v1 = vld [vmem:[#allocation6 + $0x3d98] sm:$0xff] }
 0x420   :  { %9038 = vmatprep.subr.bf16.mxu1 %v9037_v6  ;;  %5157 = vmatprep.mubr.f32.mxu0 %v4819_v12  ;;  %v5014_v2 = vld [vmem:[#allocation6 + $0x3db8] sm:$0xff]  ;;  %v8929_v5 = vpack.c.bf16 %v5012_v0, %v5008_v63  ;;  %v5007_v6 = vld [vmem:[#allocation6 + $0x3d80] sm:$0xff] }
 0x421   :  { %5335 = vmatprep.mubr.f32.mxu1 %v4819_v12  ;;  %5158 = vmatmul.mubr.f32.gmra.mrb[2].mxu0 %v4818_v14  ;;  %v9057_v9 = vpack.c.bf16 %v5014_v2, %v5010_v1  ;;  %v5020_v12 = vld [vmem:[#allocation6 + $0x3de8] sm:$0xff]  ;;  %v8949_v1 = vpack.c.bf16 %v5052_v60, %v5048_v59  ;;  %v5047_v2 = vld [vmem:[#allocation6 + $0x3ec0] sm:$0xff] }
 0x422   :  { %8912 = vmatpush1.bf16.msra.mxu0 %v8911_v13  ;;  %5336 = vmatmul.mubr.f32.gmra.mrb[2].mxu1 %v4818_v14  ;;  %v5018_v13 = vld [vmem:[#allocation6 + $0x3dd8] sm:$0xff]  ;;  %v8933_v17 = vpack.c.bf16 %v5020_v12, %v5016_v11 }
 0x423   :  { %9040 = vmatpush1.bf16.msra.mxu1 %v9039_v15  ;;  %8914 = vmatprep.subr.bf16.mxu0 %v8913_v16  ;;  %v5022_v14 = vld [vmem:[#allocation6 + $0x3df8] sm:$0xff]  ;;  %v8931_v15 = vpack.c.bf16 %v5011_v7, %v5007_v6  ;;  %v9059_v16 = vpack.c.bf16 %v5013_v10, %v5009_v8  ;;  %v5053_v6 = vld [vmem:[#allocation6 + $0x3ef0] sm:$0xff]  ;;  %v5056_v7 = vld [vmem:[#allocation6 + $0x3f08] sm:$0xff] }
 0x424   :  { %9042 = vmatprep.subr.bf16.mxu1 %v9041_v20  ;;  %5163 = vmatprep.mubr.f32.mxu0 %v4823_v26  ;;  %v5017_v20 = vld [vmem:[#allocation6 + $0x3dd0] sm:$0xff]  ;;  %v9061_v21 = vpack.c.bf16 %v5022_v14, %v5018_v13  ;;  %v5060_v8 = vld [vmem:[#allocation6 + $0x3f28] sm:$0xff]  ;;  %v5062_v10 = vld [vmem:[#allocation6 + $0x3f38] sm:$0xff] }
 0x425   :  { %5341 = vmatprep.mubr.f32.mxu1 %v4823_v26  ;;  %5164 = vmatmul.mubr.f32.gmra.mrb[4].mxu0 %v4822_v28  ;;  %v5030_v26 = vld [vmem:[#allocation6 + $0x3e38] sm:$0xff]  ;;  %v8953_v13 = vpack.c.bf16 %v5060_v8, %v5056_v7  ;;  %v5055_v14 = vld [vmem:[#allocation6 + $0x3f00] sm:$0xff]  ;;  %v4816_v7 = vld [vmem:[#allocation3 + $0x390] sm:$0xff] }
 0x426   :  { %8916 = vmatpush1.bf16.msra.mxu0 %v8915_v27  ;;  %5342 = vmatmul.mubr.f32.gmra.mrb[4].mxu1 %v4822_v28  ;;  %v8935_v27 = vpack.c.bf16 %v5019_v19, %v5015_v18  ;;  %v9063_v28 = vpack.c.bf16 %v5021_v22, %v5017_v20  ;;  %v9065_v33 = vpack.c.bf16 %v5030_v26, %v5026_v25  ;;  %v5061_v18 = vld [vmem:[#allocation6 + $0x3f30] sm:$0xff]  ;;  %v5064_v19 = vld [vmem:[#allocation6 + $0x3f48] sm:$0xff]  ;;  %v5070_v22 = vld [vmem:[#allocation6 + $0x3f78] sm:$0xff] }
 0x427   :  { %9044 = vmatpush1.bf16.msra.mxu1 %v9043_v29  ;;  %8918 = vmatprep.subr.bf16.mxu0 %v8917_v30  ;;  %v8937_v29 = vpack.c.bf16 %v5028_v24, %v5024_v23  ;;  %v5023_v30 = vld [vmem:[#allocation6 + $0x3e00] sm:$0xff]  ;;  %v5068_v20 = vld [vmem:[#allocation6 + $0x3f68] sm:$0xff] }
 0x428   :  { %9046 = vmatprep.subr.bf16.mxu1 %v9045_v34  ;;  %5169 = vmatprep.mubr.f32.mxu0 %v4827_v40  ;;  %v5029_v34 = vld [vmem:[#allocation6 + $0x3e30] sm:$0xff]  ;;  %v8939_v39 = vpack.c.bf16 %v5027_v31, %v5023_v30  ;;  %v8957_v25 = vpack.c.bf16 %v5068_v20, %v5064_v19  ;;  %v5063_v26 = vld [vmem:[#allocation6 + $0x3f40] sm:$0xff]  ;;  %v5072_v31 = vld [vmem:[#allocation6 + $0x3f88] sm:$0xff] }
 0x429   :  { %5347 = vmatprep.mubr.f32.mxu1 %v4827_v40  ;;  %5170 = vmatmul.mubr.f32.gmra.mrb[6].mxu0 %v4826_v42  ;;  %v9067_v40 = vpack.c.bf16 %v5029_v34, %v5025_v32  ;;  %v5069_v30 = vld [vmem:[#allocation6 + $0x3f70] sm:$0xff]  ;;  %v5076_v32 = vld [vmem:[#allocation6 + $0x3fa8] sm:$0xff]  ;;  %v5078_v34 = vld [vmem:[#allocation6 + $0x3fb8] sm:$0xff] }
 0x42a   :  { %8920 = vmatpush1.bf16.msra.mxu0 %v8919_v41  ;;  %5348 = vmatmul.mubr.f32.gmra.mrb[6].mxu1 %v4826_v42  ;;  %v8941_v41 = vpack.c.bf16 %v5036_v36, %v5032_v35  ;;  %v5031_v42 = vld [vmem:[#allocation6 + $0x3e40] sm:$0xff]  ;;  %v8961_v37 = vpack.c.bf16 %v5076_v32, %v5072_v31  ;;  %v5532_v19 = vld [vmem:[#allocation6 + $0x40b8] sm:$0xff]  ;;  %v5538_v31 = vld [vmem:[#allocation6 + $0x40e8] sm:$0xff] }
 0x42b   :  { %9048 = vmatpush1.bf16.msra.mxu1 %v9047_v43  ;;  %8922 = vmatprep.subr.bf16.mxu0 %v8921_v44  ;;  %v5035_v43 = vld [vmem:[#allocation6 + $0x3e60] sm:$0xff]  ;;  %v5033_v44 = vld [vmem:[#allocation6 + $0x3e50] sm:$0xff]  ;;  %v4821_v20 = vld [vmem:[#allocation3 + $0x3b8] sm:$0xff] }
 0x42c   :  { %9050 = vmatprep.subr.bf16.mxu1 %v9049_v48  ;;  %5240 = vmatprep.mubr.f32.mxu0 %v4817_v54  ;;  %v5044_v48 = vld [vmem:[#allocation6 + $0x3ea8] sm:$0xff]  ;;  %v8943_v51 = vpack.c.bf16 %v5035_v43, %v5031_v42  ;;  %v9071_v52 = vpack.c.bf16 %v5037_v46, %v5033_v44  ;;  %v5077_v42 = vld [vmem:[#allocation6 + $0x3fb0] sm:$0xff]  ;;  %v5086_v46 = vld [vmem:[#allocation6 + $0x3ff8] sm:$0xff] }
 0x42d   :  { %5418 = vmatprep.mubr.f32.mxu1 %v4817_v54  ;;  %v8945_v53 = vpack.c.bf16 %v5044_v48, %v5040_v47  ;;  %v5039_v54 = vld [vmem:[#allocation6 + $0x3e80] sm:$0xff]  ;;  %v5080_v43 = vld [vmem:[#allocation6 + $0x3fc8] sm:$0xff]  ;;  %v5536_v32 = vld [vmem:[#allocation6 + $0x40d8] sm:$0xff] }
 0x42e   :  { %8924 = vmatpush1.bf16.msra.mxu0 %v8923_v55  ;;  %v5043_v55 = vld [vmem:[#allocation6 + $0x3ea0] sm:$0xff]  ;;  %v5084_v44 = vld [vmem:[#allocation6 + $0x3fe8] sm:$0xff] }
 0x42f   :  { %9052 = vmatpush1.bf16.msra.mxu1 %v9051_v56  ;;  %8926 = vmatprep.subr.bf16.mxu0 %v8925_v57  ;;  %v5041_v56 = vld [vmem:[#allocation6 + $0x3e90] sm:$0xff]  ;;  %v9073_v57 = vpack.c.bf16 %v5046_v50, %v5042_v49  ;;  %v8947_v63 = vpack.c.bf16 %v5043_v55, %v5039_v54  ;;  %v8965_v49 = vpack.c.bf16 %v5084_v44, %v5080_v43  ;;  %v5079_v50 = vld [vmem:[#allocation6 + $0x3fc0] sm:$0xff]  ;;  %v5510_v55 = vld [vmem:[#allocation6 + $0x4008] sm:$0xff] }
 0x430   :  { %9054 = vmatprep.subr.bf16.mxu1 %v9053_v61  ;;  %v5050_v61 = vld [vmem:[#allocation6 + $0x3ed8] sm:$0xff]  ;;  %v9075_v0 = vpack.c.bf16 %v5045_v58, %v5041_v56  ;;  %v5085_v54 = vld [vmem:[#allocation6 + $0x3ff0] sm:$0xff]  ;;  %v5514_v56 = vld [vmem:[#allocation6 + $0x4028] sm:$0xff] }
 0x431   :  { %v5516_v58 = vld [vmem:[#allocation6 + $0x4038] sm:$0xff]  ;;  %v5539_v43 = vld [vmem:[#allocation6 + $0x40f0] sm:$0xff]  ;;  %v5542_v44 = vld [vmem:[#allocation6 + $0x4108] sm:$0xff] }
 0x432   :  { %8928 = vmatpush1.bf16.msra.mxu0 %v8927_v3  ;;  %v5051_v3 = vld [vmem:[#allocation6 + $0x3ee0] sm:$0xff] }
 0x433   :  { %9056 = vmatpush1.bf16.msra.mxu1 %v9055_v4  ;;  %8930 = vmatprep.subr.bf16.mxu0 %v8929_v5  ;;  %v5049_v4 = vld [vmem:[#allocation6 + $0x3ed0] sm:$0xff]  ;;  %v9077_v5 = vpack.c.bf16 %v5054_v62, %v5050_v61  ;;  %v8951_v11 = vpack.c.bf16 %v5051_v3, %v5047_v2  ;;  %v9097_v61 = vpack.c.bf16 %v5514_v56, %v5510_v55  ;;  %v5509_v62 = vld [vmem:[#allocation6 + $0x4000] sm:$0xff]  ;;  %v5518_v3 = vld [vmem:[#allocation6 + $0x4048] sm:$0xff] }
 0x434   :  { %9058 = vmatprep.subr.bf16.mxu1 %v9057_v9  ;;  %v5058_v9 = vld [vmem:[#allocation6 + $0x3f18] sm:$0xff]  ;;  %v9079_v12 = vpack.c.bf16 %v5053_v6, %v5049_v4  ;;  %v5515_v2 = vld [vmem:[#allocation6 + $0x4030] sm:$0xff]  ;;  %v5522_v4 = vld [vmem:[#allocation6 + $0x4068] sm:$0xff] }
 0x435   :  { %v5524_v6 = vld [vmem:[#allocation6 + $0x4078] sm:$0xff]  ;;  %v5543_v55 = vld [vmem:[#allocation6 + $0x4110] sm:$0xff] }
 0x436   :  { %8932 = vmatpush1.bf16.msra.mxu0 %v8931_v15  ;;  %v5059_v15 = vld [vmem:[#allocation6 + $0x3f20] sm:$0xff] }
 0x437   :  { %9060 = vmatpush1.bf16.msra.mxu1 %v9059_v16  ;;  %8934 = vmatprep.subr.bf16.mxu0 %v8933_v17  ;;  %v5057_v16 = vld [vmem:[#allocation6 + $0x3f10] sm:$0xff]  ;;  %v9081_v17 = vpack.c.bf16 %v5062_v10, %v5058_v9  ;;  %v8955_v23 = vpack.c.bf16 %v5059_v15, %v5055_v14  ;;  %v9101_v10 = vpack.c.bf16 %v5522_v4, %v5518_v3  ;;  %v5553_v3 = vld [vmem:[#allocation6 + $0x4160] sm:$0xff] }
 0x438   :  { %9062 = vmatprep.subr.bf16.mxu1 %v9061_v21  ;;  %v5066_v21 = vld [vmem:[#allocation6 + $0x3f58] sm:$0xff]  ;;  %v9083_v24 = vpack.c.bf16 %v5061_v18, %v5057_v16  ;;  %v5523_v15 = vld [vmem:[#allocation6 + $0x4070] sm:$0xff]  ;;  %v5526_v16 = vld [vmem:[#allocation6 + $0x4088] sm:$0xff] }
 0x439   :  { %v5528_v18 = vld [vmem:[#allocation6 + $0x4098] sm:$0xff]  ;;  %v5551_v4 = vld [vmem:[#allocation6 + $0x4150] sm:$0xff] }
 0x43a   :  { %8936 = vmatpush1.bf16.msra.mxu0 %v8935_v27  ;;  %v5067_v27 = vld [vmem:[#allocation6 + $0x3f60] sm:$0xff] }
 0x43b   :  { %9064 = vmatpush1.bf16.msra.mxu1 %v9063_v28  ;;  %8938 = vmatprep.subr.bf16.mxu0 %v8937_v29  ;;  %v5065_v28 = vld [vmem:[#allocation6 + $0x3f50] sm:$0xff]  ;;  %v9085_v29 = vpack.c.bf16 %v5070_v22, %v5066_v21  ;;  %v8959_v35 = vpack.c.bf16 %v5067_v27, %v5063_v26  ;;  %v5529_v26 = vld [vmem:[#allocation6 + $0x40a0] sm:$0xff] }
 0x43c   :  { %9066 = vmatprep.subr.bf16.mxu1 %v9065_v33  ;;  %v5074_v33 = vld [vmem:[#allocation6 + $0x3f98] sm:$0xff]  ;;  %v9087_v36 = vpack.c.bf16 %v5069_v30, %v5065_v28  ;;  %v4820_v22 = vld [vmem:[#allocation3 + $0x3b0] sm:$0xff]  ;;  %v9233_v28 = vpack.c.bf16 %v5532_v19, %v5528_v18  ;;  %v5534_v30 = vld [vmem:[#allocation6 + $0x40c8] sm:$0xff] }
 0x43d   :  { %v5527_v27 = vld [vmem:[#allocation6 + $0x4090] sm:$0xff]  ;;  %v5566_v19 = vld [vmem:[#allocation6 + $0x41c8] sm:$0xff] }
 0x43e   :  { %8940 = vmatpush1.bf16.msra.mxu0 %v8939_v39  ;;  %v5075_v39 = vld [vmem:[#allocation6 + $0x3fa0] sm:$0xff]  ;;  %v5563_v18 = vld [vmem:[#allocation6 + $0x41b0] sm:$0xff] }
 0x43f   :  { %9068 = vmatpush1.bf16.msra.mxu1 %v9067_v40  ;;  %8942 = vmatprep.subr.bf16.mxu0 %v8941_v41  ;;  %v5073_v40 = vld [vmem:[#allocation6 + $0x3f90] sm:$0xff]  ;;  %v9089_v41 = vpack.c.bf16 %v5078_v34, %v5074_v33  ;;  %v8963_v47 = vpack.c.bf16 %v5075_v39, %v5071_v38  ;;  %v5540_v33 = vld [vmem:[#allocation6 + $0x40f8] sm:$0xff]  ;;  %v9109_v38 = vpack.c.bf16 %v5538_v31, %v5534_v30  ;;  %v5533_v39 = vld [vmem:[#allocation6 + $0x40c0] sm:$0xff] }
 0x440   :  { %9070 = vmatprep.subr.bf16.mxu1 %v9069_v45  ;;  %v5082_v45 = vld [vmem:[#allocation6 + $0x3fd8] sm:$0xff]  ;;  %v9091_v48 = vpack.c.bf16 %v5077_v42, %v5073_v40  ;;  %v5537_v40 = vld [vmem:[#allocation6 + $0x40e0] sm:$0xff]  ;;  %v9237_v42 = vpack.c.bf16 %v5540_v33, %v5536_v32  ;;  %v5571_v30 = vld [vmem:[#allocation6 + $0x41f0] sm:$0xff] }
 0x441   :  { %v4825_v34 = vld [vmem:[#allocation3 + $0x3d8] sm:$0xff]  ;;  %v5574_v31 = vld [vmem:[#allocation6 + $0x4208] sm:$0xff] }
 0x442   :  { %8944 = vmatpush1.bf16.msra.mxu0 %v8943_v51  ;;  %v5083_v51 = vld [vmem:[#allocation6 + $0x3fe0] sm:$0xff]  ;;  %v5578_v32 = vld [vmem:[#allocation6 + $0x4228] sm:$0xff]  ;;  %v5576_v33 = vld [vmem:[#allocation6 + $0x4218] sm:$0xff] }
 0x443   :  { %9072 = vmatpush1.bf16.msra.mxu1 %v9071_v52  ;;  %8946 = vmatprep.subr.bf16.mxu0 %v8945_v53  ;;  %v5081_v52 = vld [vmem:[#allocation6 + $0x3fd0] sm:$0xff]  ;;  %v9093_v53 = vpack.c.bf16 %v5086_v46, %v5082_v45  ;;  %v8967_v59 = vpack.c.bf16 %v5083_v51, %v5079_v50  ;;  %v5546_v45 = vld [vmem:[#allocation6 + $0x4128] sm:$0xff]  ;;  %v5544_v46 = vld [vmem:[#allocation6 + $0x4118] sm:$0xff] }
 0x444   :  { %9074 = vmatprep.subr.bf16.mxu1 %v9073_v57  ;;  %v5512_v57 = vld [vmem:[#allocation6 + $0x4018] sm:$0xff]  ;;  %v9095_v60 = vpack.c.bf16 %v5085_v54, %v5081_v52  ;;  %v4828_v50 = vld [vmem:[#allocation3 + $0x3f0] sm:$0xff]  ;;  %v9113_v52 = vpack.c.bf16 %v5546_v45, %v5542_v44  ;;  %v5545_v54 = vld [vmem:[#allocation6 + $0x4120] sm:$0xff] }
 0x445   :  { %v5586_v44 = vld [vmem:[#allocation6 + $0x4268] sm:$0xff]  ;;  %v5584_v45 = vld [vmem:[#allocation6 + $0x4258] sm:$0xff] }
 0x446   :  { %8948 = vmatpush1.bf16.msra.mxu0 %v8947_v63  ;;  %v5513_v63 = vld [vmem:[#allocation6 + $0x4020] sm:$0xff] }
 0x447   :  { %9076 = vmatpush1.bf16.msra.mxu1 %v9075_v0  ;;  %8950 = vmatprep.subr.bf16.mxu0 %v8949_v1  ;;  %v5511_v0 = vld [vmem:[#allocation6 + $0x4010] sm:$0xff]  ;;  %v9225_v1 = vpack.c.bf16 %v5516_v58, %v5512_v57  ;;  %v9099_v8 = vpack.c.bf16 %v5513_v63, %v5509_v62  ;;  %v5550_v58 = vld [vmem:[#allocation6 + $0x4148] sm:$0xff] }
 0x448   :  { %9078 = vmatprep.subr.bf16.mxu1 %v9077_v5  ;;  %v5520_v5 = vld [vmem:[#allocation6 + $0x4058] sm:$0xff]  ;;  %v9227_v9 = vpack.c.bf16 %v5515_v2, %v5511_v0  ;;  %v5547_v57 = vld [vmem:[#allocation6 + $0x4130] sm:$0xff]  ;;  %v5493_v62 = vld [vmem:[#allocation3 + $0x408] sm:$0xff] }
 0x449   :  { %v9229_v14 = vpack.c.bf16 %v5524_v6, %v5520_v5  ;;  %v9243_v0 = vpack.c.bf16 %v5547_v57, %v5543_v55  ;;  %v5549_v2 = vld [vmem:[#allocation6 + $0x4140] sm:$0xff]  ;;  %v5555_v6 = vld [vmem:[#allocation6 + $0x4170] sm:$0xff]  ;;  %v5590_v55 = vld [vmem:[#allocation6 + $0x4288] sm:$0xff] }
 0x44a   :  { %8952 = vmatpush1.bf16.msra.mxu0 %v8951_v11  ;;  %v5517_v11 = vld [vmem:[#allocation6 + $0x4040] sm:$0xff]  ;;  %v5592_v57 = vld [vmem:[#allocation6 + $0x4298] sm:$0xff] }
 0x44b   :  { %9080 = vmatpush1.bf16.msra.mxu1 %v9079_v12  ;;  %8954 = vmatprep.subr.bf16.mxu0 %v8953_v13  ;;  %v5521_v12 = vld [vmem:[#allocation6 + $0x4060] sm:$0xff]  ;;  %v5519_v13 = vld [vmem:[#allocation6 + $0x4050] sm:$0xff] }
 0x44c   :  { %9082 = vmatprep.subr.bf16.mxu1 %v9081_v17  ;;  %v5530_v17 = vld [vmem:[#allocation6 + $0x40a8] sm:$0xff]  ;;  %v9103_v21 = vpack.c.bf16 %v5521_v12, %v5517_v11  ;;  %v9119_v11 = vpack.c.bf16 %v5553_v3, %v5549_v2  ;;  %v9247_v12 = vpack.c.bf16 %v5555_v6, %v5551_v4  ;;  %v5595_v2 = vld [vmem:[#allocation6 + $0x42b0] sm:$0xff]  ;;  %v5604_v6 = vld [vmem:[#allocation6 + $0x42f8] sm:$0xff] }
 0x44d   :  { %v5598_v3 = vld [vmem:[#allocation6 + $0x42c8] sm:$0xff] }
 0x44e   :  { %8956 = vmatpush1.bf16.msra.mxu0 %v8955_v23  ;;  %v9231_v23 = vpack.c.bf16 %v5523_v15, %v5519_v13  ;;  %v5561_v15 = vld [vmem:[#allocation6 + $0x41a0] sm:$0xff]  ;;  %v5602_v4 = vld [vmem:[#allocation6 + $0x42e8] sm:$0xff] }
 0x44f   :  { %9084 = vmatpush1.bf16.msra.mxu1 %v9083_v24  ;;  %8958 = vmatprep.subr.bf16.mxu0 %v8957_v25  ;;  %v9105_v24 = vpack.c.bf16 %v5530_v17, %v5526_v16  ;;  %v5525_v25 = vld [vmem:[#allocation6 + $0x4080] sm:$0xff]  ;;  %v5559_v16 = vld [vmem:[#allocation6 + $0x4190] sm:$0xff] }
 0x450   :  { %9086 = vmatprep.subr.bf16.mxu1 %v9085_v29  ;;  %v5531_v29 = vld [vmem:[#allocation6 + $0x40b0] sm:$0xff] }
 0x452   :  { %8960 = vmatpush1.bf16.msra.mxu0 %v8959_v35  ;;  %v9107_v35 = vpack.c.bf16 %v5529_v26, %v5525_v25  ;;  %v5565_v26 = vld [vmem:[#allocation6 + $0x41c0] sm:$0xff] }
 0x453   :  { %9088 = vmatpush1.bf16.msra.mxu1 %v9087_v36  ;;  %8962 = vmatprep.subr.bf16.mxu0 %v8961_v37  ;;  %v4824_v36 = vld [vmem:[#allocation3 + $0x3d0] sm:$0xff]  ;;  %v9235_v37 = vpack.c.bf16 %v5531_v29, %v5527_v27  ;;  %v5569_v27 = vld [vmem:[#allocation6 + $0x41e0] sm:$0xff] }
 0x454   :  { %9090 = vmatprep.subr.bf16.mxu1 %v9089_v41  ;;  %v5535_v41 = vld [vmem:[#allocation6 + $0x40d0] sm:$0xff] }
 0x455   :  { %v9239_v51 = vpack.c.bf16 %v5539_v43, %v5535_v41  ;;  %v5582_v43 = vld [vmem:[#allocation6 + $0x4248] sm:$0xff] }
 0x456   :  { %8964 = vmatpush1.bf16.msra.mxu0 %v8963_v47  ;;  %v5548_v47 = vld [vmem:[#allocation6 + $0x4138] sm:$0xff] }
 0x457   :  { %9092 = vmatpush1.bf16.msra.mxu1 %v9091_v48  ;;  %8966 = vmatprep.subr.bf16.mxu0 %v8965_v49  ;;  %v4829_v48 = vld [vmem:[#allocation3 + $0x3f8] sm:$0xff]  ;;  %v9111_v49 = vpack.c.bf16 %v5537_v40, %v5533_v39  ;;  %v9241_v56 = vpack.c.bf16 %v5548_v47, %v5544_v46  ;;  %v5577_v39 = vld [vmem:[#allocation6 + $0x4220] sm:$0xff]  ;;  %v5575_v40 = vld [vmem:[#allocation6 + $0x4210] sm:$0xff] }
 0x458   :  { %9094 = vmatprep.subr.bf16.mxu1 %v9093_v53  ;;  %v5541_v53 = vld [vmem:[#allocation6 + $0x4100] sm:$0xff]  ;;  %v5588_v46 = vld [vmem:[#allocation6 + $0x4278] sm:$0xff] }
 0x459   :  { %v9115_v63 = vpack.c.bf16 %v5545_v54, %v5541_v53  ;;  %v9261_v53 = vpack.c.bf16 %v5588_v46, %v5584_v45  ;;  %v5587_v54 = vld [vmem:[#allocation6 + $0x4270] sm:$0xff]  ;;  %v5621_v46 = vld [vmem:[#allocation6 + $0x4380] sm:$0xff] }
 0x45a   :  { %8968 = vmatpush1.bf16.msra.mxu0 %v8967_v59  ;;  %v5554_v59 = vld [vmem:[#allocation6 + $0x4168] sm:$0xff] }
 0x45b   :  { %9096 = vmatpush1.bf16.msra.mxu1 %v9095_v60  ;;  %9098 = vmatprep.subr.bf16.mxu0 %v9097_v61  ;;  %v5552_v60 = vld [vmem:[#allocation6 + $0x4158] sm:$0xff] }
 0x45c   :  { %9226 = vmatprep.subr.bf16.mxu1 %v9225_v1  ;;  %v5556_v61 = vld [vmem:[#allocation6 + $0x4178] sm:$0xff]  ;;  %v9117_v1 = vpack.c.bf16 %v5554_v59, %v5550_v58 }
 0x45d   :  { %5241 = vmatmul.mubr.f32.vlgmr.msra.gmra.mrb[0].mxu0 %v4816_v7  ;;  %v9245_v5 = vpack.c.bf16 %v5556_v61, %v5552_v60  ;;  %v5596_v58 = vld [vmem:[#allocation6 + $0x42b8] sm:$0xff] }
 0x45e   :  { %5419 = vmatmul.mubr.f32.vlgmr.msra.gmra.mrb[0].mxu1 %v4816_v7  ;;  %9100 = vmatpush1.bf16.msra.mxu0 %v9099_v8  ;;  %v5558_v7 = vld [vmem:[#allocation6 + $0x4188] sm:$0xff] }
 0x45f   :  { %9228 = vmatpush1.bf16.msra.mxu1 %v9227_v9  ;;  %9102 = vmatprep.subr.bf16.mxu0 %v9101_v10  ;;  %v5562_v8 = vld [vmem:[#allocation6 + $0x41a8] sm:$0xff]  ;;  %v5560_v9 = vld [vmem:[#allocation6 + $0x4198] sm:$0xff] }
 0x460   :  { %9230 = vmatprep.subr.bf16.mxu1 %v9229_v14  ;;  %5246 = vmatprep.mubr.f32.mxu0 %v4821_v20  ;;  %v5564_v10 = vld [vmem:[#allocation6 + $0x41b8] sm:$0xff]  ;;  %v9121_v13 = vpack.c.bf16 %v5562_v8, %v5558_v7  ;;  %v5557_v14 = vld [vmem:[#allocation6 + $0x4180] sm:$0xff] }
 0x461   :  { %5424 = vmatprep.mubr.f32.mxu1 %v4821_v20  ;;  %5247 = vmatmul.mubr.f32.gmra.mrb[2].mxu0 %v4820_v22  ;;  %v9249_v17 = vpack.c.bf16 %v5564_v10, %v5560_v9  ;;  %v5570_v20 = vld [vmem:[#allocation6 + $0x41e8] sm:$0xff]  ;;  %v9141_v9 = vpack.c.bf16 %v5602_v4, %v5598_v3  ;;  %v5597_v10 = vld [vmem:[#allocation6 + $0x42c0] sm:$0xff] }
 0x462   :  { %9104 = vmatpush1.bf16.msra.mxu0 %v9103_v21  ;;  %5425 = vmatmul.mubr.f32.gmra.mrb[2].mxu1 %v4820_v22  ;;  %v5568_v21 = vld [vmem:[#allocation6 + $0x41d8] sm:$0xff]  ;;  %v9125_v25 = vpack.c.bf16 %v5570_v20, %v5566_v19 }
 0x463   :  { %9232 = vmatpush1.bf16.msra.mxu1 %v9231_v23  ;;  %9106 = vmatprep.subr.bf16.mxu0 %v9105_v24  ;;  %v5572_v22 = vld [vmem:[#allocation6 + $0x41f8] sm:$0xff]  ;;  %v9123_v23 = vpack.c.bf16 %v5561_v15, %v5557_v14  ;;  %v9251_v24 = vpack.c.bf16 %v5563_v18, %v5559_v16  ;;  %v5603_v14 = vld [vmem:[#allocation6 + $0x42f0] sm:$0xff]  ;;  %v5606_v15 = vld [vmem:[#allocation6 + $0x4308] sm:$0xff] }
 0x464   :  { %9234 = vmatprep.subr.bf16.mxu1 %v9233_v28  ;;  %5252 = vmatprep.mubr.f32.mxu0 %v4825_v34  ;;  %v5567_v28 = vld [vmem:[#allocation6 + $0x41d0] sm:$0xff]  ;;  %v9253_v29 = vpack.c.bf16 %v5572_v22, %v5568_v21  ;;  %v5610_v16 = vld [vmem:[#allocation6 + $0x4328] sm:$0xff]  ;;  %v5612_v18 = vld [vmem:[#allocation6 + $0x4338] sm:$0xff] }
 0x465   :  { %5430 = vmatprep.mubr.f32.mxu1 %v4825_v34  ;;  %5253 = vmatmul.mubr.f32.gmra.mrb[4].mxu0 %v4824_v36  ;;  %v5580_v34 = vld [vmem:[#allocation6 + $0x4238] sm:$0xff]  ;;  %v9145_v21 = vpack.c.bf16 %v5610_v16, %v5606_v15  ;;  %v5605_v22 = vld [vmem:[#allocation6 + $0x4300] sm:$0xff] }
 0x466   :  { %9108 = vmatpush1.bf16.msra.mxu0 %v9107_v35  ;;  %5431 = vmatmul.mubr.f32.gmra.mrb[4].mxu1 %v4824_v36  ;;  %v9127_v35 = vpack.c.bf16 %v5569_v27, %v5565_v26  ;;  %v9255_v36 = vpack.c.bf16 %v5571_v30, %v5567_v28  ;;  %v9257_v41 = vpack.c.bf16 %v5580_v34, %v5576_v33  ;;  %v5611_v26 = vld [vmem:[#allocation6 + $0x4330] sm:$0xff]  ;;  %v5614_v27 = vld [vmem:[#allocation6 + $0x4348] sm:$0xff]  ;;  %v5620_v30 = vld [vmem:[#allocation6 + $0x4378] sm:$0xff] }
 0x467   :  { %9236 = vmatpush1.bf16.msra.mxu1 %v9235_v37  ;;  %9110 = vmatprep.subr.bf16.mxu0 %v9109_v38  ;;  %v9129_v37 = vpack.c.bf16 %v5578_v32, %v5574_v31  ;;  %v5573_v38 = vld [vmem:[#allocation6 + $0x4200] sm:$0xff]  ;;  %v5618_v28 = vld [vmem:[#allocation6 + $0x4368] sm:$0xff] }
 0x468   :  { %9238 = vmatprep.subr.bf16.mxu1 %v9237_v42  ;;  %5258 = vmatprep.mubr.f32.mxu0 %v4829_v48  ;;  %v5579_v42 = vld [vmem:[#allocation6 + $0x4230] sm:$0xff]  ;;  %v9131_v47 = vpack.c.bf16 %v5577_v39, %v5573_v38  ;;  %v9149_v33 = vpack.c.bf16 %v5618_v28, %v5614_v27  ;;  %v5613_v34 = vld [vmem:[#allocation6 + $0x4340] sm:$0xff]  ;;  %v5622_v39 = vld [vmem:[#allocation6 + $0x4388] sm:$0xff] }
 0x469   :  { %5436 = vmatprep.mubr.f32.mxu1 %v4829_v48  ;;  %5259 = vmatmul.mubr.f32.gmra.mrb[6].mxu0 %v4828_v50  ;;  %v9259_v48 = vpack.c.bf16 %v5579_v42, %v5575_v40  ;;  %v5619_v38 = vld [vmem:[#allocation6 + $0x4370] sm:$0xff]  ;;  %v5626_v40 = vld [vmem:[#allocation6 + $0x43a8] sm:$0xff]  ;;  %v5628_v42 = vld [vmem:[#allocation6 + $0x43b8] sm:$0xff] }
 0x46a   :  { %9112 = vmatpush1.bf16.msra.mxu0 %v9111_v49  ;;  %5437 = vmatmul.mubr.f32.gmra.mrb[6].mxu1 %v4828_v50  ;;  %v9133_v49 = vpack.c.bf16 %v5586_v44, %v5582_v43  ;;  %v5581_v50 = vld [vmem:[#allocation6 + $0x4240] sm:$0xff]  ;;  %v9153_v45 = vpack.c.bf16 %v5626_v40, %v5622_v39  ;;  %v5660_v27 = vld [vmem:[#allocation6 + $0x44b8] sm:$0xff]  ;;  %v5497_v28 = vld [vmem:[#allocation3 + $0x428] sm:$0xff] }
 0x46b   :  { %9240 = vmatpush1.bf16.msra.mxu1 %v9239_v51  ;;  %9114 = vmatprep.subr.bf16.mxu0 %v9113_v52  ;;  %v5585_v51 = vld [vmem:[#allocation6 + $0x4260] sm:$0xff]  ;;  %v5583_v52 = vld [vmem:[#allocation6 + $0x4250] sm:$0xff]  ;;  %v5666_v39 = vld [vmem:[#allocation6 + $0x44e8] sm:$0xff] }
 0x46c   :  { %9242 = vmatprep.subr.bf16.mxu1 %v9241_v56  ;;  %5829 = vmatprep.mubr.f32.mxu0 %v5493_v62  ;;  %v5594_v56 = vld [vmem:[#allocation6 + $0x42a8] sm:$0xff]  ;;  %v9135_v59 = vpack.c.bf16 %v5585_v51, %v5581_v50  ;;  %v9263_v60 = vpack.c.bf16 %v5587_v54, %v5583_v52  ;;  %v5627_v50 = vld [vmem:[#allocation6 + $0x43b0] sm:$0xff]  ;;  %v5636_v54 = vld [vmem:[#allocation6 + $0x43f8] sm:$0xff] }
 0x46d   :  { %6007 = vmatprep.mubr.f32.mxu1 %v5493_v62  ;;  %v9137_v61 = vpack.c.bf16 %v5594_v56, %v5590_v55  ;;  %v5589_v62 = vld [vmem:[#allocation6 + $0x4280] sm:$0xff]  ;;  %v5630_v51 = vld [vmem:[#allocation6 + $0x43c8] sm:$0xff]  ;;  %v5664_v40 = vld [vmem:[#allocation6 + $0x44d8] sm:$0xff] }
 0x46e   :  { %9116 = vmatpush1.bf16.msra.mxu0 %v9115_v63  ;;  %v5593_v63 = vld [vmem:[#allocation6 + $0x42a0] sm:$0xff]  ;;  %v5634_v52 = vld [vmem:[#allocation6 + $0x43e8] sm:$0xff] }
 0x46f   :  { %9244 = vmatpush1.bf16.msra.mxu1 %v9243_v0  ;;  %9118 = vmatprep.subr.bf16.mxu0 %v9117_v1  ;;  %v5591_v0 = vld [vmem:[#allocation6 + $0x4290] sm:$0xff]  ;;  %v9265_v1 = vpack.c.bf16 %v5596_v58, %v5592_v57  ;;  %v9139_v7 = vpack.c.bf16 %v5593_v63, %v5589_v62  ;;  %v9157_v57 = vpack.c.bf16 %v5634_v52, %v5630_v51  ;;  %v5629_v58 = vld [vmem:[#allocation6 + $0x43c0] sm:$0xff]  ;;  %v5638_v63 = vld [vmem:[#allocation6 + $0x4408] sm:$0xff] }
 0x470   :  { %9246 = vmatprep.subr.bf16.mxu1 %v9245_v5  ;;  %v5600_v5 = vld [vmem:[#allocation6 + $0x42d8] sm:$0xff]  ;;  %v9267_v8 = vpack.c.bf16 %v5595_v2, %v5591_v0  ;;  %v5635_v62 = vld [vmem:[#allocation6 + $0x43f0] sm:$0xff]  ;;  %v5642_v0 = vld [vmem:[#allocation6 + $0x4428] sm:$0xff] }
 0x471   :  { %v5644_v2 = vld [vmem:[#allocation6 + $0x4438] sm:$0xff]  ;;  %v5492_v15 = vld [vmem:[#allocation3 + $0x400] sm:$0xff]  ;;  %v5667_v51 = vld [vmem:[#allocation6 + $0x44f0] sm:$0xff] }
 0x472   :  { %9120 = vmatpush1.bf16.msra.mxu0 %v9119_v11  ;;  %v5601_v11 = vld [vmem:[#allocation6 + $0x42e0] sm:$0xff]  ;;  %v5670_v52 = vld [vmem:[#allocation6 + $0x4508] sm:$0xff] }
 0x473   :  { %9248 = vmatpush1.bf16.msra.mxu1 %v9247_v12  ;;  %9122 = vmatprep.subr.bf16.mxu0 %v9121_v13  ;;  %v5599_v12 = vld [vmem:[#allocation6 + $0x42d0] sm:$0xff]  ;;  %v9269_v13 = vpack.c.bf16 %v5604_v6, %v5600_v5  ;;  %v9143_v19 = vpack.c.bf16 %v5601_v11, %v5597_v10  ;;  %v9161_v5 = vpack.c.bf16 %v5642_v0, %v5638_v63  ;;  %v5637_v6 = vld [vmem:[#allocation6 + $0x4400] sm:$0xff]  ;;  %v5646_v11 = vld [vmem:[#allocation6 + $0x4448] sm:$0xff] }
 0x474   :  { %9250 = vmatprep.subr.bf16.mxu1 %v9249_v17  ;;  %v5608_v17 = vld [vmem:[#allocation6 + $0x4318] sm:$0xff]  ;;  %v9271_v20 = vpack.c.bf16 %v5603_v14, %v5599_v12  ;;  %v5643_v10 = vld [vmem:[#allocation6 + $0x4430] sm:$0xff]  ;;  %v5650_v12 = vld [vmem:[#allocation6 + $0x4468] sm:$0xff] }
 0x475   :  { %v5652_v14 = vld [vmem:[#allocation6 + $0x4478] sm:$0xff]  ;;  %v5671_v63 = vld [vmem:[#allocation6 + $0x4510] sm:$0xff] }
 0x476   :  { %9124 = vmatpush1.bf16.msra.mxu0 %v9123_v23  ;;  %v5609_v23 = vld [vmem:[#allocation6 + $0x4320] sm:$0xff] }
 0x477   :  { %9252 = vmatpush1.bf16.msra.mxu1 %v9251_v24  ;;  %9126 = vmatprep.subr.bf16.mxu0 %v9125_v25  ;;  %v5607_v24 = vld [vmem:[#allocation6 + $0x4310] sm:$0xff]  ;;  %v9273_v25 = vpack.c.bf16 %v5612_v18, %v5608_v17  ;;  %v9147_v31 = vpack.c.bf16 %v5609_v23, %v5605_v22  ;;  %v9165_v18 = vpack.c.bf16 %v5650_v12, %v5646_v11  ;;  %v5681_v11 = vld [vmem:[#allocation6 + $0x4560] sm:$0xff] }
 0x478   :  { %9254 = vmatprep.subr.bf16.mxu1 %v9253_v29  ;;  %v5616_v29 = vld [vmem:[#allocation6 + $0x4358] sm:$0xff]  ;;  %v9275_v32 = vpack.c.bf16 %v5611_v26, %v5607_v24  ;;  %v5651_v23 = vld [vmem:[#allocation6 + $0x4470] sm:$0xff]  ;;  %v5654_v24 = vld [vmem:[#allocation6 + $0x4488] sm:$0xff] }
 0x479   :  { %v5656_v26 = vld [vmem:[#allocation6 + $0x4498] sm:$0xff]  ;;  %v5679_v12 = vld [vmem:[#allocation6 + $0x4550] sm:$0xff] }
 0x47a   :  { %9128 = vmatpush1.bf16.msra.mxu0 %v9127_v35  ;;  %v5617_v35 = vld [vmem:[#allocation6 + $0x4360] sm:$0xff] }
 0x47b   :  { %9256 = vmatpush1.bf16.msra.mxu1 %v9255_v36  ;;  %9130 = vmatprep.subr.bf16.mxu0 %v9129_v37  ;;  %v5615_v36 = vld [vmem:[#allocation6 + $0x4350] sm:$0xff]  ;;  %v9277_v37 = vpack.c.bf16 %v5620_v30, %v5616_v29  ;;  %v9151_v43 = vpack.c.bf16 %v5617_v35, %v5613_v34  ;;  %v5496_v30 = vld [vmem:[#allocation3 + $0x420] sm:$0xff] }
 0x47c   :  { %9258 = vmatprep.subr.bf16.mxu1 %v9257_v41  ;;  %v5624_v41 = vld [vmem:[#allocation6 + $0x4398] sm:$0xff]  ;;  %v9279_v44 = vpack.c.bf16 %v5619_v38, %v5615_v36  ;;  %v5657_v34 = vld [vmem:[#allocation6 + $0x44a0] sm:$0xff]  ;;  %v5655_v35 = vld [vmem:[#allocation6 + $0x4490] sm:$0xff]  ;;  %v9297_v36 = vpack.c.bf16 %v5660_v27, %v5656_v26 }
 0x47d   :  { %v5662_v38 = vld [vmem:[#allocation6 + $0x44c8] sm:$0xff]  ;;  %v5691_v26 = vld [vmem:[#allocation6 + $0x45b0] sm:$0xff] }
 0x47e   :  { %9132 = vmatpush1.bf16.msra.mxu0 %v9131_v47  ;;  %v5625_v47 = vld [vmem:[#allocation6 + $0x43a0] sm:$0xff]  ;;  %v5694_v27 = vld [vmem:[#allocation6 + $0x45c8] sm:$0xff] }
 0x47f   :  { %9260 = vmatpush1.bf16.msra.mxu1 %v9259_v48  ;;  %9134 = vmatprep.subr.bf16.mxu0 %v9133_v49  ;;  %v5623_v48 = vld [vmem:[#allocation6 + $0x4390] sm:$0xff]  ;;  %v9281_v49 = vpack.c.bf16 %v5628_v42, %v5624_v41  ;;  %v9155_v55 = vpack.c.bf16 %v5625_v47, %v5621_v46  ;;  %v5668_v41 = vld [vmem:[#allocation6 + $0x44f8] sm:$0xff]  ;;  %v5501_v42 = vld [vmem:[#allocation3 + $0x448] sm:$0xff]  ;;  %v9173_v46 = vpack.c.bf16 %v5666_v39, %v5662_v38 }
 0x480   :  { %9262 = vmatprep.subr.bf16.mxu1 %v9261_v53  ;;  %v5632_v53 = vld [vmem:[#allocation6 + $0x43d8] sm:$0xff]  ;;  %v9283_v56 = vpack.c.bf16 %v5627_v50, %v5623_v48  ;;  %v5661_v47 = vld [vmem:[#allocation6 + $0x44c0] sm:$0xff]  ;;  %v9301_v50 = vpack.c.bf16 %v5668_v41, %v5664_v40  ;;  %v5699_v38 = vld [vmem:[#allocation6 + $0x45f0] sm:$0xff] }
 0x481   :  { %v5665_v48 = vld [vmem:[#allocation6 + $0x44e0] sm:$0xff]  ;;  %v5702_v39 = vld [vmem:[#allocation6 + $0x4608] sm:$0xff]  ;;  %v5704_v41 = vld [vmem:[#allocation6 + $0x4618] sm:$0xff] }
 0x482   :  { %9136 = vmatpush1.bf16.msra.mxu0 %v9135_v59  ;;  %v5633_v59 = vld [vmem:[#allocation6 + $0x43e0] sm:$0xff]  ;;  %v5706_v40 = vld [vmem:[#allocation6 + $0x4628] sm:$0xff] }
 0x483   :  { %9264 = vmatpush1.bf16.msra.mxu1 %v9263_v60  ;;  %9138 = vmatprep.subr.bf16.mxu0 %v9137_v61  ;;  %v5631_v60 = vld [vmem:[#allocation6 + $0x43d0] sm:$0xff]  ;;  %v9285_v61 = vpack.c.bf16 %v5636_v54, %v5632_v53  ;;  %v9159_v3 = vpack.c.bf16 %v5633_v59, %v5629_v58  ;;  %v5674_v53 = vld [vmem:[#allocation6 + $0x4528] sm:$0xff]  ;;  %v5672_v54 = vld [vmem:[#allocation6 + $0x4518] sm:$0xff] }
 0x484   :  { %9266 = vmatprep.subr.bf16.mxu1 %v9265_v1  ;;  %v5640_v1 = vld [vmem:[#allocation6 + $0x4418] sm:$0xff]  ;;  %v9287_v4 = vpack.c.bf16 %v5635_v62, %v5631_v60  ;;  %v5504_v58 = vld [vmem:[#allocation3 + $0x460] sm:$0xff]  ;;  %v9177_v60 = vpack.c.bf16 %v5674_v53, %v5670_v52  ;;  %v5714_v52 = vld [vmem:[#allocation6 + $0x4668] sm:$0xff] }
 0x485   :  { %v5673_v62 = vld [vmem:[#allocation6 + $0x4520] sm:$0xff]  ;;  %v5712_v53 = vld [vmem:[#allocation6 + $0x4658] sm:$0xff] }
 0x486   :  { %9140 = vmatpush1.bf16.msra.mxu0 %v9139_v7  ;;  %v5641_v7 = vld [vmem:[#allocation6 + $0x4420] sm:$0xff] }
 0x487   :  { %9268 = vmatpush1.bf16.msra.mxu1 %v9267_v8  ;;  %9142 = vmatprep.subr.bf16.mxu0 %v9141_v9  ;;  %v5639_v8 = vld [vmem:[#allocation6 + $0x4410] sm:$0xff]  ;;  %v9289_v9 = vpack.c.bf16 %v5644_v2, %v5640_v1  ;;  %v9163_v16 = vpack.c.bf16 %v5641_v7, %v5637_v6  ;;  %v5678_v2 = vld [vmem:[#allocation6 + $0x4548] sm:$0xff]  ;;  %v5495_v6 = vld [vmem:[#allocation3 + $0x418] sm:$0xff] }
 0x488   :  { %9270 = vmatprep.subr.bf16.mxu1 %v9269_v13  ;;  %v5648_v13 = vld [vmem:[#allocation6 + $0x4458] sm:$0xff]  ;;  %v9291_v17 = vpack.c.bf16 %v5643_v10, %v5639_v8  ;;  %v5675_v1 = vld [vmem:[#allocation6 + $0x4530] sm:$0xff]  ;;  %v5677_v10 = vld [vmem:[#allocation6 + $0x4540] sm:$0xff] }
 0x489   :  { %v9293_v22 = vpack.c.bf16 %v5652_v14, %v5648_v13  ;;  %v9307_v8 = vpack.c.bf16 %v5675_v1, %v5671_v63  ;;  %v5683_v14 = vld [vmem:[#allocation6 + $0x4570] sm:$0xff]  ;;  %v5718_v63 = vld [vmem:[#allocation6 + $0x4688] sm:$0xff]  ;;  %v5720_v1 = vld [vmem:[#allocation6 + $0x4698] sm:$0xff] }
 0x48a   :  { %9144 = vmatpush1.bf16.msra.mxu0 %v9143_v19  ;;  %v5645_v19 = vld [vmem:[#allocation6 + $0x4440] sm:$0xff] }
 0x48b   :  { %9272 = vmatpush1.bf16.msra.mxu1 %v9271_v20  ;;  %9146 = vmatprep.subr.bf16.mxu0 %v9145_v21  ;;  %v5649_v20 = vld [vmem:[#allocation6 + $0x4460] sm:$0xff]  ;;  %v5647_v21 = vld [vmem:[#allocation6 + $0x4450] sm:$0xff] }
 0x48c   :  { %9274 = vmatprep.subr.bf16.mxu1 %v9273_v25  ;;  %v5658_v25 = vld [vmem:[#allocation6 + $0x44a8] sm:$0xff]  ;;  %v9167_v29 = vpack.c.bf16 %v5649_v20, %v5645_v19  ;;  %v9183_v19 = vpack.c.bf16 %v5681_v11, %v5677_v10  ;;  %v9311_v20 = vpack.c.bf16 %v5683_v14, %v5679_v12  ;;  %v5723_v10 = vld [vmem:[#allocation6 + $0x46b0] sm:$0xff]  ;;  %v5732_v14 = vld [vmem:[#allocation6 + $0x46f8] sm:$0xff] }
 0x48d   :  { %v5726_v11 = vld [vmem:[#allocation6 + $0x46c8] sm:$0xff] }
 0x48e   :  { %9148 = vmatpush1.bf16.msra.mxu0 %v9147_v31  ;;  %v9295_v31 = vpack.c.bf16 %v5651_v23, %v5647_v21  ;;  %v5689_v23 = vld [vmem:[#allocation6 + $0x45a0] sm:$0xff]  ;;  %v5730_v12 = vld [vmem:[#allocation6 + $0x46e8] sm:$0xff] }
 0x48f   :  { %9276 = vmatpush1.bf16.msra.mxu1 %v9275_v32  ;;  %9150 = vmatprep.subr.bf16.mxu0 %v9149_v33  ;;  %v9169_v32 = vpack.c.bf16 %v5658_v25, %v5654_v24  ;;  %v5653_v33 = vld [vmem:[#allocation6 + $0x4480] sm:$0xff]  ;;  %v5687_v24 = vld [vmem:[#allocation6 + $0x4590] sm:$0xff] }
 0x490   :  { %9278 = vmatprep.subr.bf16.mxu1 %v9277_v37  ;;  %v5659_v37 = vld [vmem:[#allocation6 + $0x44b0] sm:$0xff] }
 0x492   :  { %9152 = vmatpush1.bf16.msra.mxu0 %v9151_v43  ;;  %v9171_v43 = vpack.c.bf16 %v5657_v34, %v5653_v33  ;;  %v5693_v34 = vld [vmem:[#allocation6 + $0x45c0] sm:$0xff] }
 0x493   :  { %9280 = vmatpush1.bf16.msra.mxu1 %v9279_v44  ;;  %9154 = vmatprep.subr.bf16.mxu0 %v9153_v45  ;;  %v5500_v44 = vld [vmem:[#allocation3 + $0x440] sm:$0xff]  ;;  %v9299_v45 = vpack.c.bf16 %v5659_v37, %v5655_v35 }
 0x494   :  { %9282 = vmatprep.subr.bf16.mxu1 %v9281_v49  ;;  %v5663_v49 = vld [vmem:[#allocation6 + $0x44d0] sm:$0xff]  ;;  %v5697_v35 = vld [vmem:[#allocation6 + $0x45e0] sm:$0xff] }
 0x495   :  { %v9303_v59 = vpack.c.bf16 %v5667_v51, %v5663_v49  ;;  %v5710_v51 = vld [vmem:[#allocation6 + $0x4648] sm:$0xff] }
 0x496   :  { %9156 = vmatpush1.bf16.msra.mxu0 %v9155_v55  ;;  %v5676_v55 = vld [vmem:[#allocation6 + $0x4538] sm:$0xff] }
 0x497   :  { %9284 = vmatpush1.bf16.msra.mxu1 %v9283_v56  ;;  %9158 = vmatprep.subr.bf16.mxu0 %v9157_v57  ;;  %v5505_v56 = vld [vmem:[#allocation3 + $0x468] sm:$0xff]  ;;  %v9175_v57 = vpack.c.bf16 %v5665_v48, %v5661_v47  ;;  %v9305_v0 = vpack.c.bf16 %v5676_v55, %v5672_v54  ;;  %v5705_v47 = vld [vmem:[#allocation6 + $0x4620] sm:$0xff]  ;;  %v5703_v48 = vld [vmem:[#allocation6 + $0x4610] sm:$0xff] }
 0x498   :  { %9286 = vmatprep.subr.bf16.mxu1 %v9285_v61  ;;  %v5669_v61 = vld [vmem:[#allocation6 + $0x4500] sm:$0xff]  ;;  %v5716_v54 = vld [vmem:[#allocation6 + $0x4678] sm:$0xff] }
 0x499   :  { %v9179_v7 = vpack.c.bf16 %v5673_v62, %v5669_v61  ;;  %v9325_v61 = vpack.c.bf16 %v5716_v54, %v5712_v53  ;;  %v5715_v62 = vld [vmem:[#allocation6 + $0x4670] sm:$0xff]  ;;  %v5749_v54 = vld [vmem:[#allocation6 + $0x4780] sm:$0xff] }
 0x49a   :  { %9160 = vmatpush1.bf16.msra.mxu0 %v9159_v3  ;;  %v5682_v3 = vld [vmem:[#allocation6 + $0x4568] sm:$0xff] }
 0x49b   :  { %9288 = vmatpush1.bf16.msra.mxu1 %v9287_v4  ;;  %9162 = vmatprep.subr.bf16.mxu0 %v9161_v5  ;;  %v5680_v4 = vld [vmem:[#allocation6 + $0x4558] sm:$0xff] }
 0x49c   :  { %9290 = vmatprep.subr.bf16.mxu1 %v9289_v9  ;;  %v5684_v5 = vld [vmem:[#allocation6 + $0x4578] sm:$0xff]  ;;  %v9181_v9 = vpack.c.bf16 %v5682_v3, %v5678_v2 }
 0x49d   :  { %5830 = vmatmul.mubr.f32.vlgmr.msra.gmra.mrb[0].mxu0 %v5492_v15  ;;  %v9309_v13 = vpack.c.bf16 %v5684_v5, %v5680_v4  ;;  %v5724_v2 = vld [vmem:[#allocation6 + $0x46b8] sm:$0xff] }
 0x49e   :  { %9164 = vmatpush1.bf16.msra.mxu0 %v9163_v16  ;;  %6008 = vmatmul.mubr.f32.vlgmr.msra.gmra.mrb[0].mxu1 %v5492_v15  ;;  %v5686_v15 = vld [vmem:[#allocation6 + $0x4588] sm:$0xff] }
 0x49f   :  { %9292 = vmatpush1.bf16.msra.mxu1 %v9291_v17  ;;  %9166 = vmatprep.subr.bf16.mxu0 %v9165_v18  ;;  %v5690_v16 = vld [vmem:[#allocation6 + $0x45a8] sm:$0xff]  ;;  %v5688_v17 = vld [vmem:[#allocation6 + $0x4598] sm:$0xff] }
 0x4a0   :  { %9294 = vmatprep.subr.bf16.mxu1 %v9293_v22  ;;  %5835 = vmatprep.mubr.f32.mxu0 %v5497_v28  ;;  %v5692_v18 = vld [vmem:[#allocation6 + $0x45b8] sm:$0xff]  ;;  %v9185_v21 = vpack.c.bf16 %v5690_v16, %v5686_v15  ;;  %v5685_v22 = vld [vmem:[#allocation6 + $0x4580] sm:$0xff] }
 0x4a1   :  { %6013 = vmatprep.mubr.f32.mxu1 %v5497_v28  ;;  %5836 = vmatmul.mubr.f32.gmra.mrb[2].mxu0 %v5496_v30  ;;  %v9313_v25 = vpack.c.bf16 %v5692_v18, %v5688_v17  ;;  %v5698_v28 = vld [vmem:[#allocation6 + $0x45e8] sm:$0xff]  ;;  %v9205_v17 = vpack.c.bf16 %v5730_v12, %v5726_v11  ;;  %v5725_v18 = vld [vmem:[#allocation6 + $0x46c0] sm:$0xff] }
 0x4a2   :  { %9168 = vmatpush1.bf16.msra.mxu0 %v9167_v29  ;;  %6014 = vmatmul.mubr.f32.gmra.mrb[2].mxu1 %v5496_v30  ;;  %v5696_v29 = vld [vmem:[#allocation6 + $0x45d8] sm:$0xff]  ;;  %v9189_v33 = vpack.c.bf16 %v5698_v28, %v5694_v27 }
 0x4a3   :  { %9296 = vmatpush1.bf16.msra.mxu1 %v9295_v31  ;;  %9170 = vmatprep.subr.bf16.mxu0 %v9169_v32  ;;  %v5700_v30 = vld [vmem:[#allocation6 + $0x45f8] sm:$0xff]  ;;  %v9187_v31 = vpack.c.bf16 %v5689_v23, %v5685_v22  ;;  %v9315_v32 = vpack.c.bf16 %v5691_v26, %v5687_v24  ;;  %v5731_v22 = vld [vmem:[#allocation6 + $0x46f0] sm:$0xff]  ;;  %v5734_v23 = vld [vmem:[#allocation6 + $0x4708] sm:$0xff] }
 0x4a4   :  { %9298 = vmatprep.subr.bf16.mxu1 %v9297_v36  ;;  %5841 = vmatprep.mubr.f32.mxu0 %v5501_v42  ;;  %v5695_v36 = vld [vmem:[#allocation6 + $0x45d0] sm:$0xff]  ;;  %v9317_v37 = vpack.c.bf16 %v5700_v30, %v5696_v29  ;;  %v5738_v24 = vld [vmem:[#allocation6 + $0x4728] sm:$0xff]  ;;  %v5740_v26 = vld [vmem:[#allocation6 + $0x4738] sm:$0xff] }
 0x4a5   :  { %6019 = vmatprep.mubr.f32.mxu1 %v5501_v42  ;;  %5842 = vmatmul.mubr.f32.gmra.mrb[4].mxu0 %v5500_v44  ;;  %v5708_v42 = vld [vmem:[#allocation6 + $0x4638] sm:$0xff]  ;;  %v9209_v29 = vpack.c.bf16 %v5738_v24, %v5734_v23  ;;  %v5733_v30 = vld [vmem:[#allocation6 + $0x4700] sm:$0xff] }
 0x4a6   :  { %9172 = vmatpush1.bf16.msra.mxu0 %v9171_v43  ;;  %6020 = vmatmul.mubr.f32.gmra.mrb[4].mxu1 %v5500_v44  ;;  %v9191_v43 = vpack.c.bf16 %v5697_v35, %v5693_v34  ;;  %v9319_v44 = vpack.c.bf16 %v5699_v38, %v5695_v36  ;;  %v9321_v49 = vpack.c.bf16 %v5708_v42, %v5704_v41  ;;  %v5739_v34 = vld [vmem:[#allocation6 + $0x4730] sm:$0xff]  ;;  %v5742_v35 = vld [vmem:[#allocation6 + $0x4748] sm:$0xff]  ;;  %v5748_v38 = vld [vmem:[#allocation6 + $0x4778] sm:$0xff] }
 0x4a7   :  { %9300 = vmatpush1.bf16.msra.mxu1 %v9299_v45  ;;  %9174 = vmatprep.subr.bf16.mxu0 %v9173_v46  ;;  %v9193_v45 = vpack.c.bf16 %v5706_v40, %v5702_v39  ;;  %v5701_v46 = vld [vmem:[#allocation6 + $0x4600] sm:$0xff]  ;;  %v5746_v36 = vld [vmem:[#allocation6 + $0x4768] sm:$0xff]  ;;  %v5499_v24 = vld [vmem:[#allocation3 + $0x438] sm:$0xff] }
 0x4a8   :  { %9302 = vmatprep.subr.bf16.mxu1 %v9301_v50  ;;  %5847 = vmatprep.mubr.f32.mxu0 %v5505_v56  ;;  %v5707_v50 = vld [vmem:[#allocation6 + $0x4630] sm:$0xff]  ;;  %v9195_v55 = vpack.c.bf16 %v5705_v47, %v5701_v46  ;;  %v9213_v41 = vpack.c.bf16 %v5746_v36, %v5742_v35  ;;  %v5741_v42 = vld [vmem:[#allocation6 + $0x4740] sm:$0xff]  ;;  %v5750_v47 = vld [vmem:[#allocation6 + $0x4788] sm:$0xff] }
 0x4a9   :  { %6025 = vmatprep.mubr.f32.mxu1 %v5505_v56  ;;  %5848 = vmatmul.mubr.f32.gmra.mrb[6].mxu0 %v5504_v58  ;;  %v9323_v56 = vpack.c.bf16 %v5707_v50, %v5703_v48  ;;  %v5747_v46 = vld [vmem:[#allocation6 + $0x4770] sm:$0xff]  ;;  %v5754_v48 = vld [vmem:[#allocation6 + $0x47a8] sm:$0xff]  ;;  %v5756_v50 = vld [vmem:[#allocation6 + $0x47b8] sm:$0xff] }
 0x4aa   :  { %9176 = vmatpush1.bf16.msra.mxu0 %v9175_v57  ;;  %6026 = vmatmul.mubr.f32.gmra.mrb[6].mxu1 %v5504_v58  ;;  %v9197_v57 = vpack.c.bf16 %v5714_v52, %v5710_v51  ;;  %v5709_v58 = vld [vmem:[#allocation6 + $0x4640] sm:$0xff]  ;;  %v9217_v53 = vpack.c.bf16 %v5754_v48, %v5750_v47  ;;  %v5498_v35 = vld [vmem:[#allocation3 + $0x430] sm:$0xff] }
 0x4ab   :  { %9304 = vmatpush1.bf16.msra.mxu1 %v9303_v59  ;;  %9178 = vmatprep.subr.bf16.mxu0 %v9177_v60  ;;  %v5713_v59 = vld [vmem:[#allocation6 + $0x4660] sm:$0xff]  ;;  %v5711_v60 = vld [vmem:[#allocation6 + $0x4650] sm:$0xff] }
 0x4ac   :  { %9306 = vmatprep.subr.bf16.mxu1 %v9305_v0  ;;  %5918 = vmatprep.mubr.f32.mxu0 %v5495_v6  ;;  %v5722_v0 = vld [vmem:[#allocation6 + $0x46a8] sm:$0xff]  ;;  %v9199_v3 = vpack.c.bf16 %v5713_v59, %v5709_v58  ;;  %v9327_v4 = vpack.c.bf16 %v5715_v62, %v5711_v60  ;;  %v5755_v58 = vld [vmem:[#allocation6 + $0x47b0] sm:$0xff]  ;;  %v5764_v62 = vld [vmem:[#allocation6 + $0x47f8] sm:$0xff] }
 0x4ad   :  { %6096 = vmatprep.mubr.f32.mxu1 %v5495_v6  ;;  %v9201_v5 = vpack.c.bf16 %v5722_v0, %v5718_v63  ;;  %v5717_v6 = vld [vmem:[#allocation6 + $0x4680] sm:$0xff]  ;;  %v5758_v59 = vld [vmem:[#allocation6 + $0x47c8] sm:$0xff] }
 0x4ae   :  { %9180 = vmatpush1.bf16.msra.mxu0 %v9179_v7  ;;  %v5721_v7 = vld [vmem:[#allocation6 + $0x46a0] sm:$0xff]  ;;  %v5762_v60 = vld [vmem:[#allocation6 + $0x47e8] sm:$0xff] }
 0x4af   :  { %9308 = vmatpush1.bf16.msra.mxu1 %v9307_v8  ;;  %9182 = vmatprep.subr.bf16.mxu0 %v9181_v9  ;;  %v5719_v8 = vld [vmem:[#allocation6 + $0x4690] sm:$0xff]  ;;  %v9329_v9 = vpack.c.bf16 %v5724_v2, %v5720_v1  ;;  %v9203_v15 = vpack.c.bf16 %v5721_v7, %v5717_v6  ;;  %v9221_v1 = vpack.c.bf16 %v5762_v60, %v5758_v59  ;;  %v5757_v2 = vld [vmem:[#allocation6 + $0x47c0] sm:$0xff] }
 0x4b0   :  { %9310 = vmatprep.subr.bf16.mxu1 %v9309_v13  ;;  %v5728_v13 = vld [vmem:[#allocation6 + $0x46d8] sm:$0xff]  ;;  %v9331_v16 = vpack.c.bf16 %v5723_v10, %v5719_v8  ;;  %v5763_v6 = vld [vmem:[#allocation6 + $0x47f0] sm:$0xff] }
 0x4b1   :  { %v6208_v7 = vld [vmem:[#allocation9 + $0x8] sm:$0xff]  ;;  %v6214_v10 = vld [vmem:[#allocation9 + $0x38] sm:$0xff]  ;;  %v6237_v60 = vld [vmem:[#allocation9 + $0xf0] sm:$0xff] }
 0x4b2   :  { %9184 = vmatpush1.bf16.msra.mxu0 %v9183_v19  ;;  %v5729_v19 = vld [vmem:[#allocation6 + $0x46e0] sm:$0xff]  ;;  %v6212_v8 = vld [vmem:[#allocation9 + $0x28] sm:$0xff] }
 0x4b3   :  { %9312 = vmatpush1.bf16.msra.mxu1 %v9311_v20  ;;  %9186 = vmatprep.subr.bf16.mxu0 %v9185_v21  ;;  %v5727_v20 = vld [vmem:[#allocation6 + $0x46d0] sm:$0xff]  ;;  %v9333_v21 = vpack.c.bf16 %v5732_v14, %v5728_v13  ;;  %v9207_v27 = vpack.c.bf16 %v5729_v19, %v5725_v18  ;;  %v9353_v13 = vpack.c.bf16 %v6212_v8, %v6208_v7  ;;  %v6222_v23 = vld [vmem:[#allocation9 + $0x78] sm:$0xff] }
 0x4b4   :  { %9314 = vmatprep.subr.bf16.mxu1 %v9313_v25  ;;  %v5736_v25 = vld [vmem:[#allocation6 + $0x4718] sm:$0xff]  ;;  %v9335_v28 = vpack.c.bf16 %v5731_v22, %v5727_v20  ;;  %v6216_v19 = vld [vmem:[#allocation9 + $0x48] sm:$0xff] }
 0x4b5   :  { %v6213_v18 = vld [vmem:[#allocation9 + $0x30] sm:$0xff]  ;;  %v6220_v20 = vld [vmem:[#allocation9 + $0x68] sm:$0xff]  ;;  %v6218_v22 = vld [vmem:[#allocation9 + $0x58] sm:$0xff] }
 0x4b6   :  { %9188 = vmatpush1.bf16.msra.mxu0 %v9187_v31  ;;  %v5737_v31 = vld [vmem:[#allocation6 + $0x4720] sm:$0xff]  ;;  %v6232_v47 = vld [vmem:[#allocation9 + $0xc8] sm:$0xff]  ;;  %v6241_v7 = vld [vmem:[#allocation9 + $0x110] sm:$0xff] }
 0x4b7   :  { %9316 = vmatpush1.bf16.msra.mxu1 %v9315_v32  ;;  %9190 = vmatprep.subr.bf16.mxu0 %v9189_v33  ;;  %v5735_v32 = vld [vmem:[#allocation6 + $0x4710] sm:$0xff]  ;;  %v9337_v33 = vpack.c.bf16 %v5740_v26, %v5736_v25  ;;  %v9211_v39 = vpack.c.bf16 %v5737_v31, %v5733_v30  ;;  %v9485_v31 = vpack.c.bf16 %v6222_v23, %v6218_v22  ;;  %v6226_v36 = vld [vmem:[#allocation9 + $0x98] sm:$0xff] }
 0x4b8   :  { %9318 = vmatprep.subr.bf16.mxu1 %v9317_v37  ;;  %v5744_v37 = vld [vmem:[#allocation6 + $0x4758] sm:$0xff]  ;;  %v9339_v40 = vpack.c.bf16 %v5739_v34, %v5735_v32  ;;  %v6228_v34 = vld [vmem:[#allocation9 + $0xa8] sm:$0xff] }
 0x4b9   :  { %v6217_v30 = vld [vmem:[#allocation9 + $0x50] sm:$0xff]  ;;  %v6236_v48 = vld [vmem:[#allocation9 + $0xe8] sm:$0xff] }
 0x4ba   :  { %9192 = vmatpush1.bf16.msra.mxu0 %v9191_v43  ;;  %v5745_v43 = vld [vmem:[#allocation6 + $0x4760] sm:$0xff]  ;;  %v6221_v32 = vld [vmem:[#allocation9 + $0x70] sm:$0xff]  ;;  %v6256_v22 = vld [vmem:[#allocation9 + $0x188] sm:$0xff] }
 0x4bb   :  { %9320 = vmatpush1.bf16.msra.mxu1 %v9319_v44  ;;  %9194 = vmatprep.subr.bf16.mxu0 %v9193_v45  ;;  %v5743_v44 = vld [vmem:[#allocation6 + $0x4750] sm:$0xff]  ;;  %v9341_v45 = vpack.c.bf16 %v5748_v38, %v5744_v37  ;;  %v9215_v51 = vpack.c.bf16 %v5745_v43, %v5741_v42  ;;  %v6230_v37 = vld [vmem:[#allocation9 + $0xb8] sm:$0xff]  ;;  %v6223_v42 = vld [vmem:[#allocation9 + $0x80] sm:$0xff] }
 0x4bc   :  { %9322 = vmatprep.subr.bf16.mxu1 %v9321_v49  ;;  %v5752_v49 = vld [vmem:[#allocation6 + $0x4798] sm:$0xff]  ;;  %v9343_v52 = vpack.c.bf16 %v5747_v46, %v5743_v44  ;;  %v6227_v43 = vld [vmem:[#allocation9 + $0xa0] sm:$0xff]  ;;  %v6260_v23 = vld [vmem:[#allocation9 + $0x1a8] sm:$0xff] }
 0x4bd   :  { %v5503_v38 = vld [vmem:[#allocation3 + $0x458] sm:$0xff] }
 0x4be   :  { %9196 = vmatpush1.bf16.msra.mxu0 %v9195_v55  ;;  %v5753_v55 = vld [vmem:[#allocation6 + $0x47a0] sm:$0xff]  ;;  %v6225_v44 = vld [vmem:[#allocation9 + $0x90] sm:$0xff] }
 0x4bf   :  { %9324 = vmatpush1.bf16.msra.mxu1 %v9323_v56  ;;  %9198 = vmatprep.subr.bf16.mxu0 %v9197_v57  ;;  %v5751_v56 = vld [vmem:[#allocation6 + $0x4790] sm:$0xff]  ;;  %v9345_v57 = vpack.c.bf16 %v5756_v50, %v5752_v49  ;;  %v9219_v63 = vpack.c.bf16 %v5753_v55, %v5749_v54  ;;  %v6234_v50 = vld [vmem:[#allocation9 + $0xd8] sm:$0xff]  ;;  %v9365_v55 = vpack.c.bf16 %v6236_v48, %v6232_v47 }
 0x4c0   :  { %9326 = vmatprep.subr.bf16.mxu1 %v9325_v61  ;;  %v5760_v61 = vld [vmem:[#allocation6 + $0x47d8] sm:$0xff]  ;;  %v9347_v0 = vpack.c.bf16 %v5755_v58, %v5751_v56  ;;  %v5502_v49 = vld [vmem:[#allocation3 + $0x450] sm:$0xff]  ;;  %v6231_v56 = vld [vmem:[#allocation9 + $0xc0] sm:$0xff] }
 0x4c1   :  { %v6229_v46 = vld [vmem:[#allocation9 + $0xb0] sm:$0xff]  ;;  %v6276_v47 = vld [vmem:[#allocation9 + $0x228] sm:$0xff]  ;;  %v6274_v48 = vld [vmem:[#allocation9 + $0x218] sm:$0xff] }
 0x4c2   :  { %9200 = vmatpush1.bf16.msra.mxu0 %v9199_v3  ;;  %v5761_v3 = vld [vmem:[#allocation6 + $0x47e0] sm:$0xff]  ;;  %v9491_v54 = vpack.c.bf16 %v6229_v46, %v6225_v44  ;;  %v6233_v58 = vld [vmem:[#allocation9 + $0xd0] sm:$0xff]  ;;  %v6272_v46 = vld [vmem:[#allocation9 + $0x208] sm:$0xff] }
 0x4c3   :  { %9328 = vmatpush1.bf16.msra.mxu1 %v9327_v4  ;;  %9202 = vmatprep.subr.bf16.mxu0 %v9201_v5  ;;  %v5759_v4 = vld [vmem:[#allocation6 + $0x47d0] sm:$0xff]  ;;  %v9349_v5 = vpack.c.bf16 %v5764_v62, %v5760_v61  ;;  %v9223_v11 = vpack.c.bf16 %v5761_v3, %v5757_v2  ;;  %v9495_v3 = vpack.c.bf16 %v6237_v60, %v6233_v58  ;;  %v6282_v60 = vld [vmem:[#allocation9 + $0x258] sm:$0xff] }
 0x4c4   :  { %9330 = vmatprep.subr.bf16.mxu1 %v9329_v9  ;;  %v6210_v9 = vld [vmem:[#allocation9 + $0x18] sm:$0xff]  ;;  %v9351_v12 = vpack.c.bf16 %v5763_v6, %v5759_v4  ;;  %v6240_v61 = vld [vmem:[#allocation9 + $0x108] sm:$0xff]  ;;  %v6243_v6 = vld [vmem:[#allocation9 + $0x120] sm:$0xff] }
 0x4c5   :  { %v9481_v14 = vpack.c.bf16 %v6214_v10, %v6210_v9  ;;  %v6244_v62 = vld [vmem:[#allocation9 + $0x128] sm:$0xff]  ;;  %v6245_v9 = vld [vmem:[#allocation9 + $0x130] sm:$0xff] }
 0x4c6   :  { %9204 = vmatpush1.bf16.msra.mxu0 %v9203_v15  ;;  %v6207_v15 = vld [vmem:[#allocation9] sm:$0xff]  ;;  %v9369_v4 = vpack.c.bf16 %v6244_v62, %v6240_v61  ;;  %v6248_v10 = vld [vmem:[#allocation9 + $0x148] sm:$0xff]  ;;  %v6286_v61 = vld [vmem:[#allocation9 + $0x278] sm:$0xff] }
 0x4c7   :  { %9332 = vmatpush1.bf16.msra.mxu1 %v9331_v16  ;;  %9206 = vmatprep.subr.bf16.mxu0 %v9205_v17  ;;  %v6211_v16 = vld [vmem:[#allocation9 + $0x20] sm:$0xff]  ;;  %v6209_v17 = vld [vmem:[#allocation9 + $0x10] sm:$0xff]  ;;  %v6280_v58 = vld [vmem:[#allocation9 + $0x248] sm:$0xff] }
 0x4c8   :  { %9334 = vmatprep.subr.bf16.mxu1 %v9333_v21  ;;  %v5494_v21 = vld [vmem:[#allocation3 + $0x410] sm:$0xff]  ;;  %v9355_v25 = vpack.c.bf16 %v6211_v16, %v6207_v15  ;;  %v9483_v26 = vpack.c.bf16 %v6213_v18, %v6209_v17  ;;  %v9499_v15 = vpack.c.bf16 %v6245_v9, %v6241_v7  ;;  %v6247_v17 = vld [vmem:[#allocation9 + $0x140] sm:$0xff]  ;;  %v6294_v9 = vld [vmem:[#allocation9 + $0x2b8] sm:$0xff] }
 0x4c9   :  { %v6251_v18 = vld [vmem:[#allocation9 + $0x160] sm:$0xff]  ;;  %v6292_v7 = vld [vmem:[#allocation9 + $0x2a8] sm:$0xff] }
 0x4ca   :  { %9208 = vmatpush1.bf16.msra.mxu0 %v9207_v27  ;;  %v9357_v27 = vpack.c.bf16 %v6220_v20, %v6216_v19  ;;  %v6249_v19 = vld [vmem:[#allocation9 + $0x150] sm:$0xff] }
 0x4cb   :  { %9336 = vmatpush1.bf16.msra.mxu1 %v9335_v28  ;;  %9210 = vmatprep.subr.bf16.mxu0 %v9209_v29  ;;  %v6215_v28 = vld [vmem:[#allocation9 + $0x40] sm:$0xff] }
 0x4cc   :  { %9338 = vmatprep.subr.bf16.mxu1 %v9337_v33  ;;  %v6219_v29 = vld [vmem:[#allocation9 + $0x60] sm:$0xff]  ;;  %v6224_v33 = vld [vmem:[#allocation9 + $0x88] sm:$0xff] }
 0x4ce   :  { %9212 = vmatpush1.bf16.msra.mxu0 %v9211_v39  ;;  %v9359_v39 = vpack.c.bf16 %v6219_v29, %v6215_v28  ;;  %v9377_v28 = vpack.c.bf16 %v6260_v23, %v6256_v22  ;;  %v6255_v29 = vld [vmem:[#allocation9 + $0x180] sm:$0xff] }
 0x4cf   :  { %9340 = vmatpush1.bf16.msra.mxu1 %v9339_v40  ;;  %9214 = vmatprep.subr.bf16.mxu0 %v9213_v41  ;;  %v9487_v40 = vpack.c.bf16 %v6221_v32, %v6217_v30  ;;  %v9361_v41 = vpack.c.bf16 %v6228_v34, %v6224_v33  ;;  %v6259_v30 = vld [vmem:[#allocation9 + $0x1a0] sm:$0xff]  ;;  %v6261_v33 = vld [vmem:[#allocation9 + $0x1b0] sm:$0xff]  ;;  %v6264_v34 = vld [vmem:[#allocation9 + $0x1c8] sm:$0xff] }
 0x4d0   :  { %9342 = vmatprep.subr.bf16.mxu1 %v9341_v45  ;;  %v9489_v45 = vpack.c.bf16 %v6230_v37, %v6226_v36  ;;  %v6266_v36 = vld [vmem:[#allocation9 + $0x1d8] sm:$0xff] }
 0x4d1   :  { %v6270_v37 = vld [vmem:[#allocation9 + $0x1f8] sm:$0xff] }
 0x4d2   :  { %9216 = vmatpush1.bf16.msra.mxu0 %v9215_v51  ;;  %v6238_v51 = vld [vmem:[#allocation9 + $0xf8] sm:$0xff]  ;;  %v9509_v44 = vpack.c.bf16 %v6270_v37, %v6266_v36  ;;  %v6303_v37 = vld [vmem:[#allocation9 + $0x300] sm:$0xff] }
 0x4d3   :  { %9344 = vmatpush1.bf16.msra.mxu1 %v9343_v52  ;;  %9218 = vmatprep.subr.bf16.mxu0 %v9217_v53  ;;  %v5507_v52 = vld [vmem:[#allocation3 + $0x478] sm:$0xff]  ;;  %v9363_v53 = vpack.c.bf16 %v6227_v43, %v6223_v42  ;;  %v9493_v59 = vpack.c.bf16 %v6238_v51, %v6234_v50  ;;  %v6267_v42 = vld [vmem:[#allocation9 + $0x1e0] sm:$0xff] }
 0x4d4   :  { %9346 = vmatprep.subr.bf16.mxu1 %v9345_v57  ;;  %v6235_v57 = vld [vmem:[#allocation9 + $0xe0] sm:$0xff]  ;;  %v6265_v43 = vld [vmem:[#allocation9 + $0x1d0] sm:$0xff] }
 0x4d5   :  { %v9367_v2 = vpack.c.bf16 %v6235_v57, %v6231_v56  ;;  %v6277_v57 = vld [vmem:[#allocation9 + $0x230] sm:$0xff] }
 0x4d6   :  { %9220 = vmatpush1.bf16.msra.mxu0 %v9219_v63  ;;  %v5506_v63 = vld [vmem:[#allocation3 + $0x470] sm:$0xff] }
 0x4d7   :  { %9348 = vmatpush1.bf16.msra.mxu1 %v9347_v0  ;;  %9222 = vmatprep.subr.bf16.mxu0 %v9221_v1  ;;  %v6242_v0 = vld [vmem:[#allocation9 + $0x118] sm:$0xff] }
 0x4d8   :  { %9350 = vmatprep.subr.bf16.mxu1 %v9349_v5  ;;  %v6246_v1 = vld [vmem:[#allocation9 + $0x138] sm:$0xff]  ;;  %v6239_v5 = vld [vmem:[#allocation9 + $0x100] sm:$0xff] }
 0x4d9   :  { %v9497_v8 = vpack.c.bf16 %v6246_v1, %v6242_v0  ;;  %v6279_v1 = vld [vmem:[#allocation9 + $0x240] sm:$0xff] }
 0x4da   :  { %9224 = vmatpush1.bf16.msra.mxu0 %v9223_v11  ;;  %v6252_v11 = vld [vmem:[#allocation9 + $0x168] sm:$0xff] }
 0x4db   :  { %9352 = vmatpush1.bf16.msra.mxu1 %v9351_v12  ;;  %9354 = vmatprep.subr.bf16.mxu0 %v9353_v13  ;;  %v6250_v12 = vld [vmem:[#allocation9 + $0x158] sm:$0xff]  ;;  %v9373_v16 = vpack.c.bf16 %v6252_v11, %v6248_v10 }
 0x4dc   :  { %9482 = vmatprep.subr.bf16.mxu1 %v9481_v14  ;;  %v6254_v13 = vld [vmem:[#allocation9 + $0x178] sm:$0xff]  ;;  %v9371_v14 = vpack.c.bf16 %v6243_v6, %v6239_v5  ;;  %v6285_v5 = vld [vmem:[#allocation9 + $0x270] sm:$0xff]  ;;  %v6288_v6 = vld [vmem:[#allocation9 + $0x288] sm:$0xff] }
 0x4dd   :  { %5919 = vmatmul.mubr.f32.vlgmr.msra.gmra.mrb[0].mxu0 %v5494_v21  ;;  %v9501_v20 = vpack.c.bf16 %v6254_v13, %v6250_v12  ;;  %v9393_v12 = vpack.c.bf16 %v6292_v7, %v6288_v6  ;;  %v6287_v13 = vld [vmem:[#allocation9 + $0x280] sm:$0xff]  ;;  %v6330_v6 = vld [vmem:[#allocation9 + $0x3d8] sm:$0xff] }
 0x4de   :  { %6097 = vmatmul.mubr.f32.vlgmr.msra.gmra.mrb[0].mxu1 %v5494_v21  ;;  %5924 = vmatprep.mubr.f32.mxu0 %v5499_v24  ;;  %v6253_v21 = vld [vmem:[#allocation9 + $0x170] sm:$0xff] }
 0x4df   :  { %6102 = vmatprep.mubr.f32.mxu1 %v5499_v24  ;;  %9356 = vmatpush1.bf16.msra.mxu0 %v9355_v25  ;;  %v6258_v24 = vld [vmem:[#allocation9 + $0x198] sm:$0xff] }
 0x4e0   :  { %9484 = vmatpush1.bf16.msra.mxu1 %v9483_v26  ;;  %9358 = vmatprep.subr.bf16.mxu0 %v9357_v27  ;;  %v6262_v25 = vld [vmem:[#allocation9 + $0x1b8] sm:$0xff]  ;;  %v9375_v26 = vpack.c.bf16 %v6251_v18, %v6247_v17  ;;  %v9503_v27 = vpack.c.bf16 %v6253_v21, %v6249_v19  ;;  %v6293_v17 = vld [vmem:[#allocation9 + $0x2b0] sm:$0xff]  ;;  %v6296_v18 = vld [vmem:[#allocation9 + $0x2c8] sm:$0xff] }
 0x4e1   :  { %5925 = vmatmul.mubr.f32.gmra.mrb[2].mxu0 %v5498_v35  ;;  %9486 = vmatprep.subr.bf16.mxu1 %v9485_v31  ;;  %v6257_v31 = vld [vmem:[#allocation9 + $0x190] sm:$0xff]  ;;  %v9505_v32 = vpack.c.bf16 %v6262_v25, %v6258_v24  ;;  %v6300_v19 = vld [vmem:[#allocation9 + $0x2e8] sm:$0xff]  ;;  %v6302_v21 = vld [vmem:[#allocation9 + $0x2f8] sm:$0xff] }
 0x4e2   :  { %6103 = vmatmul.mubr.f32.gmra.mrb[2].mxu1 %v5498_v35  ;;  %5930 = vmatprep.mubr.f32.mxu0 %v5503_v38  ;;  %v6268_v35 = vld [vmem:[#allocation9 + $0x1e8] sm:$0xff]  ;;  %v9397_v24 = vpack.c.bf16 %v6300_v19, %v6296_v18  ;;  %v6295_v25 = vld [vmem:[#allocation9 + $0x2c0] sm:$0xff]  ;;  %v6338_v18 = vld [vmem:[#allocation9 + $0x418] sm:$0xff] }
 0x4e3   :  { %6108 = vmatprep.mubr.f32.mxu1 %v5503_v38  ;;  %9360 = vmatpush1.bf16.msra.mxu0 %v9359_v39  ;;  %v9379_v38 = vpack.c.bf16 %v6259_v30, %v6255_v29  ;;  %v9507_v39 = vpack.c.bf16 %v6261_v33, %v6257_v31  ;;  %v6301_v29 = vld [vmem:[#allocation9 + $0x2f0] sm:$0xff]  ;;  %v6304_v30 = vld [vmem:[#allocation9 + $0x308] sm:$0xff]  ;;  %v6310_v33 = vld [vmem:[#allocation9 + $0x338] sm:$0xff] }
 0x4e4   :  { %9488 = vmatpush1.bf16.msra.mxu1 %v9487_v40  ;;  %9362 = vmatprep.subr.bf16.mxu0 %v9361_v41  ;;  %v9381_v40 = vpack.c.bf16 %v6268_v35, %v6264_v34  ;;  %v6263_v41 = vld [vmem:[#allocation9 + $0x1c0] sm:$0xff]  ;;  %v6308_v31 = vld [vmem:[#allocation9 + $0x328] sm:$0xff] }
 0x4e5   :  { %5931 = vmatmul.mubr.f32.gmra.mrb[4].mxu0 %v5502_v49  ;;  %9490 = vmatprep.subr.bf16.mxu1 %v9489_v45  ;;  %v6269_v45 = vld [vmem:[#allocation9 + $0x1f0] sm:$0xff]  ;;  %v9383_v50 = vpack.c.bf16 %v6267_v42, %v6263_v41  ;;  %v9401_v36 = vpack.c.bf16 %v6308_v31, %v6304_v30  ;;  %v6312_v42 = vld [vmem:[#allocation9 + $0x348] sm:$0xff]  ;;  %v6335_v30 = vld [vmem:[#allocation9 + $0x400] sm:$0xff] }
 0x4e6   :  { %6109 = vmatmul.mubr.f32.gmra.mrb[4].mxu1 %v5502_v49  ;;  %5936 = vmatprep.mubr.f32.mxu0 %v5507_v52  ;;  %v6278_v49 = vld [vmem:[#allocation9 + $0x238] sm:$0xff]  ;;  %v9511_v51 = vpack.c.bf16 %v6269_v45, %v6265_v43  ;;  %v6309_v41 = vld [vmem:[#allocation9 + $0x330] sm:$0xff]  ;;  %v6316_v43 = vld [vmem:[#allocation9 + $0x368] sm:$0xff] }
 0x4e7   :  { %6114 = vmatprep.mubr.f32.mxu1 %v5507_v52  ;;  %9364 = vmatpush1.bf16.msra.mxu0 %v9363_v53  ;;  %v9385_v52 = vpack.c.bf16 %v6276_v47, %v6272_v46  ;;  %v6271_v53 = vld [vmem:[#allocation9 + $0x200] sm:$0xff]  ;;  %v9513_v56 = vpack.c.bf16 %v6278_v49, %v6274_v48  ;;  %v6318_v45 = vld [vmem:[#allocation9 + $0x378] sm:$0xff]  ;;  %v9405_v48 = vpack.c.bf16 %v6316_v43, %v6312_v42 }
 0x4e8   :  { %9492 = vmatpush1.bf16.msra.mxu1 %v9491_v54  ;;  %9366 = vmatprep.subr.bf16.mxu0 %v9365_v55  ;;  %v6275_v54 = vld [vmem:[#allocation9 + $0x220] sm:$0xff]  ;;  %v6273_v55 = vld [vmem:[#allocation9 + $0x210] sm:$0xff] }
 0x4e9   :  { %5937 = vmatmul.mubr.f32.gmra.mrb[6].mxu0 %v5506_v63  ;;  %9494 = vmatprep.subr.bf16.mxu1 %v9493_v59  ;;  %v6284_v59 = vld [vmem:[#allocation9 + $0x268] sm:$0xff]  ;;  %v9387_v62 = vpack.c.bf16 %v6275_v54, %v6271_v53  ;;  %v6311_v49 = vld [vmem:[#allocation9 + $0x340] sm:$0xff]  ;;  %v6317_v53 = vld [vmem:[#allocation9 + $0x370] sm:$0xff] }
 0x4ea   :  { %6115 = vmatmul.mubr.f32.gmra.mrb[6].mxu1 %v5506_v63  ;;  %v9515_v63 = vpack.c.bf16 %v6277_v57, %v6273_v55  ;;  %v9389_v0 = vpack.c.bf16 %v6284_v59, %v6280_v58  ;;  %v6320_v54 = vld [vmem:[#allocation9 + $0x388] sm:$0xff]  ;;  %v6326_v57 = vld [vmem:[#allocation9 + $0x3b8] sm:$0xff]  ;;  %v6339_v31 = vld [vmem:[#allocation9 + $0x420] sm:$0xff] }
 0x4eb   :  { %9368 = vmatpush1.bf16.msra.mxu0 %v9367_v2  ;;  %v6283_v2 = vld [vmem:[#allocation9 + $0x260] sm:$0xff]  ;;  %v6324_v55 = vld [vmem:[#allocation9 + $0x3a8] sm:$0xff] }
 0x4ec   :  { %9496 = vmatpush1.bf16.msra.mxu1 %v9495_v3  ;;  %9370 = vmatprep.subr.bf16.mxu0 %v9369_v4  ;;  %v6281_v3 = vld [vmem:[#allocation9 + $0x250] sm:$0xff]  ;;  %v9517_v4 = vpack.c.bf16 %v6286_v61, %v6282_v60  ;;  %v9391_v10 = vpack.c.bf16 %v6283_v2, %v6279_v1  ;;  %v9409_v60 = vpack.c.bf16 %v6324_v55, %v6320_v54  ;;  %v6319_v61 = vld [vmem:[#allocation9 + $0x380] sm:$0xff]  ;;  %v6352_v54 = vld [vmem:[#allocation9 + $0x488] sm:$0xff] }
 0x4ed   :  { %9498 = vmatprep.subr.bf16.mxu1 %v9497_v8  ;;  %v6290_v8 = vld [vmem:[#allocation9 + $0x298] sm:$0xff]  ;;  %v9519_v11 = vpack.c.bf16 %v6285_v5, %v6281_v3  ;;  %v6325_v1 = vld [vmem:[#allocation9 + $0x3b0] sm:$0xff]  ;;  %v6332_v5 = vld [vmem:[#allocation9 + $0x3e8] sm:$0xff] }
 0x4ef   :  { %9372 = vmatpush1.bf16.msra.mxu0 %v9371_v14  ;;  %v6291_v14 = vld [vmem:[#allocation9 + $0x2a0] sm:$0xff] }
 0x4f0   :  { %9500 = vmatpush1.bf16.msra.mxu1 %v9499_v15  ;;  %9374 = vmatprep.subr.bf16.mxu0 %v9373_v16  ;;  %v6289_v15 = vld [vmem:[#allocation9 + $0x290] sm:$0xff]  ;;  %v9521_v16 = vpack.c.bf16 %v6294_v9, %v6290_v8  ;;  %v9395_v22 = vpack.c.bf16 %v6291_v14, %v6287_v13  ;;  %v6334_v8 = vld [vmem:[#allocation9 + $0x3f8] sm:$0xff]  ;;  %v6327_v9 = vld [vmem:[#allocation9 + $0x3c0] sm:$0xff] }
 0x4f1   :  { %9502 = vmatprep.subr.bf16.mxu1 %v9501_v20  ;;  %v6298_v20 = vld [vmem:[#allocation9 + $0x2d8] sm:$0xff]  ;;  %v9523_v23 = vpack.c.bf16 %v6293_v17, %v6289_v15  ;;  %v6333_v13 = vld [vmem:[#allocation9 + $0x3f0] sm:$0xff]  ;;  %v6340_v17 = vld [vmem:[#allocation9 + $0x428] sm:$0xff] }
 0x4f3   :  { %9376 = vmatpush1.bf16.msra.mxu0 %v9375_v26  ;;  %v6299_v26 = vld [vmem:[#allocation9 + $0x2e0] sm:$0xff] }
 0x4f4   :  { %9504 = vmatpush1.bf16.msra.mxu1 %v9503_v27  ;;  %9378 = vmatprep.subr.bf16.mxu0 %v9377_v28  ;;  %v6297_v27 = vld [vmem:[#allocation9 + $0x2d0] sm:$0xff]  ;;  %v9525_v28 = vpack.c.bf16 %v6302_v21, %v6298_v20  ;;  %v9399_v34 = vpack.c.bf16 %v6299_v26, %v6295_v25  ;;  %v6342_v20 = vld [vmem:[#allocation9 + $0x438] sm:$0xff] }
 0x4f5   :  { %9506 = vmatprep.subr.bf16.mxu1 %v9505_v32  ;;  %v6306_v32 = vld [vmem:[#allocation9 + $0x318] sm:$0xff]  ;;  %v9527_v35 = vpack.c.bf16 %v6301_v29, %v6297_v27  ;;  %v9545_v21 = vpack.c.bf16 %v6342_v20, %v6338_v18 }
 0x4f6   :  { %v10181_v26 = vld [vmem:[#allocation8] sm:$0xf] }
 0x4f7   :  { %9380 = vmatpush1.bf16.msra.mxu0 %v9379_v38  ;;  %v6307_v38 = vld [vmem:[#allocation9 + $0x320] sm:$0xff] }
 0x4f8   :  { %9508 = vmatpush1.bf16.msra.mxu1 %v9507_v39  ;;  %9382 = vmatprep.subr.bf16.mxu0 %v9381_v40  ;;  %v6305_v39 = vld [vmem:[#allocation9 + $0x310] sm:$0xff]  ;;  %v9529_v40 = vpack.c.bf16 %v6310_v33, %v6306_v32  ;;  %v9403_v46 = vpack.c.bf16 %v6307_v38, %v6303_v37  ;;  %v6348_v37 = vld [vmem:[#allocation9 + $0x468] sm:$0xff]  ;;  %v6346_v38 = vld [vmem:[#allocation9 + $0x458] sm:$0xff] }
 0x4f9   :  { %9510 = vmatprep.subr.bf16.mxu1 %v9509_v44  ;;  %v6314_v44 = vld [vmem:[#allocation9 + $0x358] sm:$0xff]  ;;  %v9531_v47 = vpack.c.bf16 %v6309_v41, %v6305_v39  ;;  %v6337_v33 = vld [vmem:[#allocation9 + $0x410] sm:$0xff] }
 0x4fa   :  { %v6350_v39 = vld [vmem:[#allocation9 + $0x478] sm:$0xff] }
 0x4fb   :  { %9384 = vmatpush1.bf16.msra.mxu0 %v9383_v50  ;;  %v6315_v50 = vld [vmem:[#allocation9 + $0x360] sm:$0xff] }
 0x4fc   :  { %9512 = vmatpush1.bf16.msra.mxu1 %v9511_v51  ;;  %9386 = vmatprep.subr.bf16.mxu0 %v9385_v52  ;;  %v6313_v51 = vld [vmem:[#allocation9 + $0x350] sm:$0xff]  ;;  %v9533_v52 = vpack.c.bf16 %v6318_v45, %v6314_v44  ;;  %v9407_v58 = vpack.c.bf16 %v6315_v50, %v6311_v49  ;;  %v9419_v45 = vpack.c.bf16 %v6339_v31, %v6335_v30  ;;  %v6363_v30 = vld [vmem:[#allocation9 + $0x4e0] sm:$0xff] }
 0x4fd   :  { %9514 = vmatprep.subr.bf16.mxu1 %v9513_v56  ;;  %v6322_v56 = vld [vmem:[#allocation9 + $0x398] sm:$0xff]  ;;  %v9535_v59 = vpack.c.bf16 %v6317_v53, %v6313_v51  ;;  %v9549_v51 = vpack.c.bf16 %v6350_v39, %v6346_v38  ;;  %v6349_v53 = vld [vmem:[#allocation9 + $0x470] sm:$0xff]  ;;  %v6368_v38 = vld [vmem:[#allocation9 + $0x508] sm:$0xff] }
 0x4ff   :  { %9388 = vmatpush1.bf16.msra.mxu0 %v9387_v62  ;;  %v6323_v62 = vld [vmem:[#allocation9 + $0x3a0] sm:$0xff] }
 0x500   :  { %9516 = vmatpush1.bf16.msra.mxu1 %v9515_v63  ;;  %9390 = vmatprep.subr.bf16.mxu0 %v9389_v0  ;;  %v9537_v63 = vpack.c.bf16 %v6326_v57, %v6322_v56  ;;  %v6321_v0 = vld [vmem:[#allocation9 + $0x390] sm:$0xff]  ;;  %v9411_v2 = vpack.c.bf16 %v6323_v62, %v6319_v61  ;;  %v6356_v56 = vld [vmem:[#allocation9 + $0x4a8] sm:$0xff]  ;;  %v6354_v57 = vld [vmem:[#allocation9 + $0x498] sm:$0xff] }
 0x501   :  { %9518 = vmatprep.subr.bf16.mxu1 %v9517_v4  ;;  %v9539_v3 = vpack.c.bf16 %v6325_v1, %v6321_v0  ;;  %v6328_v4 = vld [vmem:[#allocation9 + $0x3c8] sm:$0xff] }
 0x502   :  { %v9413_v7 = vpack.c.bf16 %v6332_v5, %v6328_v4  ;;  %v9425_v5 = vpack.c.bf16 %v6356_v56, %v6352_v54  ;;  %v6369_v54 = vld [vmem:[#allocation9 + $0x510] sm:$0xff]  ;;  %v6376_v56 = vld [vmem:[#allocation9 + $0x548] sm:$0xff] }
 0x503   :  { %9392 = vmatpush1.bf16.msra.mxu0 %v9391_v10  ;;  %v9541_v10 = vpack.c.bf16 %v6334_v8, %v6330_v6  ;;  %v6357_v8 = vld [vmem:[#allocation9 + $0x4b0] sm:$0xff] }
 0x504   :  { %9520 = vmatpush1.bf16.msra.mxu1 %v9519_v11  ;;  %9394 = vmatprep.subr.bf16.mxu0 %v9393_v12  ;;  %v6331_v11 = vld [vmem:[#allocation9 + $0x3e0] sm:$0xff]  ;;  %v6329_v12 = vld [vmem:[#allocation9 + $0x3d0] sm:$0xff] }
 0x505   :  { %9522 = vmatprep.subr.bf16.mxu1 %v9521_v16  ;;  %v9415_v14 = vpack.c.bf16 %v6331_v11, %v6327_v9  ;;  %v9543_v15 = vpack.c.bf16 %v6333_v13, %v6329_v12  ;;  %v6336_v16 = vld [vmem:[#allocation9 + $0x408] sm:$0xff]  ;;  %v6362_v12 = vld [vmem:[#allocation9 + $0x4d8] sm:$0xff] }
 0x506   :  { %v9417_v19 = vpack.c.bf16 %v6340_v17, %v6336_v16  ;;  %v6360_v9 = vld [vmem:[#allocation9 + $0x4c8] sm:$0xff]  ;;  %v6366_v13 = vld [vmem:[#allocation9 + $0x4f8] sm:$0xff] }
 0x507   :  { %9396 = vmatpush1.bf16.msra.mxu0 %v9395_v22  ;;  %v6171_v22 = vlaneseq  ;;  %v6364_v11 = vld [vmem:[#allocation9 + $0x4e8] sm:$0xff] }
 0x508   :  { %9524 = vmatpush1.bf16.msra.mxu1 %v9523_v23  ;;  %9398 = vmatprep.subr.bf16.mxu0 %v9397_v24 }
 0x509   :  { %9526 = vmatprep.subr.bf16.mxu1 %v9525_v28  ;;  %v10177_v23 = vshrl.u32 %v6171_v22, 7  ;;  %v6359_v22 = vld [vmem:[#allocation9 + $0x4c0] sm:$0xff] }
 0x50b   :  { %9400 = vmatpush1.bf16.msra.mxu0 %v9399_v34  ;;  %v6181_v24 = vsub.s32 2, %v10177_v23  ;;  %v6177_v25 = vsub.s32 1, %v10177_v23  ;;  %v6173_v27 = vsub.s32 0, %v10177_v23  ;;  %v6341_v34 = vld [vmem:[#allocation9 + $0x430] sm:$0xff] }
 0x50c   :  { %9528 = vmatpush1.bf16.msra.mxu1 %v9527_v35  ;;  %9402 = vmatprep.subr.bf16.mxu0 %v9401_v36  ;;  %v6344_v35 = vld [vmem:[#allocation9 + $0x448] sm:$0xff] }
 0x50d   :  { %9530 = vmatprep.subr.bf16.mxu1 %v9529_v40  ;;  %v10187_v28 = vrot.slane %v10181_v26, %v6181_v24  ;;  %v10192_v29 = vrot.slane %v10181_v26, %v6177_v25  ;;  %v10197_v32 = vrot.slane %v10181_v26, %v6173_v27  ;;  %v9421_v50 = vpack.c.bf16 %v6348_v37, %v6344_v35  ;;  %v6361_v35 = vld [vmem:[#allocation9 + $0x4d0] sm:$0xff] }
 0x50f   :  { %9404 = vmatpush1.bf16.msra.mxu0 %v9403_v46  ;;  %v9547_v46 = vpack.c.bf16 %v6341_v34, %v6337_v33  ;;  %v9429_v33 = vpack.c.bf16 %v6364_v11, %v6360_v9  ;;  %v9557_v34 = vpack.c.bf16 %v6366_v13, %v6362_v12  ;;  %v6383_v11 = vld [vmem:[#allocation9 + $0x580] sm:$0xff] }
 0x510   :  { %9532 = vmatpush1.bf16.msra.mxu1 %v9531_v47  ;;  %9406 = vmatprep.subr.bf16.mxu0 %v9405_v48  ;;  %v6343_v47 = vld [vmem:[#allocation9 + $0x440] sm:$0xff] }
 0x511   :  { %9534 = vmatprep.subr.bf16.mxu1 %v9533_v52  ;;  %v6347_v48 = vld [vmem:[#allocation9 + $0x460] sm:$0xff]  ;;  %v6345_v52 = vld [vmem:[#allocation9 + $0x450] sm:$0xff] }
 0x512   :  { %v9423_v61 = vpack.c.bf16 %v6347_v48, %v6343_v47  ;;  %v9551_v1 = vpack.c.bf16 %v6349_v53, %v6345_v52  ;;  %v6374_v47 = vld [vmem:[#allocation9 + $0x538] sm:$0xff]  ;;  %v6371_v52 = vld [vmem:[#allocation9 + $0x520] sm:$0xff] }
 0x513   :  { %9408 = vmatpush1.bf16.msra.mxu0 %v9407_v58  ;;  %v6358_v58 = vld [vmem:[#allocation9 + $0x4b8] sm:$0xff]  ;;  %v6387_v12 = vld [vmem:[#allocation9 + $0x5a0] sm:$0xff] }
 0x514   :  { %9536 = vmatpush1.bf16.msra.mxu1 %v9535_v59  ;;  %9410 = vmatprep.subr.bf16.mxu0 %v9409_v60  ;;  %v9553_v6 = vpack.c.bf16 %v6358_v58, %v6354_v57  ;;  %v6380_v58 = vld [vmem:[#allocation9 + $0x568] sm:$0xff] }
 0x515   :  { %9538 = vmatprep.subr.bf16.mxu1 %v9537_v63 }
 0x517   :  { %9412 = vmatpush1.bf16.msra.mxu0 %v9411_v2  ;;  %v6351_v2 = vld [vmem:[#allocation9 + $0x480] sm:$0xff] }
 0x518   :  { %9540 = vmatpush1.bf16.msra.mxu1 %v9539_v3  ;;  %9414 = vmatprep.subr.bf16.mxu0 %v9413_v7  ;;  %v6355_v3 = vld [vmem:[#allocation9 + $0x4a0] sm:$0xff]  ;;  %v6353_v7 = vld [vmem:[#allocation9 + $0x490] sm:$0xff] }
 0x519   :  { %9542 = vmatprep.subr.bf16.mxu1 %v9541_v10  ;;  %v9427_v17 = vpack.c.bf16 %v6355_v3, %v6351_v2  ;;  %v9437_v2 = vpack.c.bf16 %v6380_v58, %v6376_v56  ;;  %v6408_v56 = vld [vmem:[#allocation9 + $0x648] sm:$0xff]  ;;  %v6414_v58 = vld [vmem:[#allocation9 + $0x678] sm:$0xff] }
 0x51b   :  { %9416 = vmatpush1.bf16.msra.mxu0 %v9415_v14  ;;  %v6185_v14 = vsub.s32 3, %v10177_v23 }
 0x51c   :  { %9544 = vmatpush1.bf16.msra.mxu1 %v9543_v15  ;;  %9418 = vmatprep.subr.bf16.mxu0 %v9417_v19 }
 0x51d   :  { %9546 = vmatprep.subr.bf16.mxu1 %v9545_v21  ;;  %v9555_v21 = vpack.c.bf16 %v6357_v8, %v6353_v7  ;;  %v10224_v39 = vrot.slane %v10181_v26, %v6185_v14  ;;  %v6367_v26 = vld [vmem:[#allocation9 + $0x500] sm:$0xff]  ;;  %v6388_v7 = vld [vmem:[#allocation9 + $0x5a8] sm:$0xff]  ;;  %v6386_v8 = vld [vmem:[#allocation9 + $0x598] sm:$0xff] }
 0x5b0   :  { %v5920_v36 = vpop.f32.mrb[0].mxu0 }
 0x5b1   :  { %v6098_v40 = vpop.f32.mrb[0].mxu1  ;;  %v5922_v41 = vpop.f32.mrb[1].mxu0  ;;  %v6191_v49 = vadd.f32 %v10197_v32, %v5920_v36  ;;  %v6365_v36 = vld [vmem:[#allocation9 + $0x4f0] sm:$0xff] }
 0x5b2   :  { %v10200_v42 = vadd.f32 %v10187_v28, %v6098_v40  ;;  %v6192_v43 = vadd.f32 %v10192_v29, %v5922_v41  ;;  %v10203_v44 = vpop.f32.mrb[1].mxu1 }
 0x5b4   :  { %v5926_v55 = vpop.f32.mrb[2].mxu0  ;;  %6549 = vmatprep.mubr.f32.mxu0 %v6192_v43  ;;  %6727 = vmatprep.mubr.f32.mxu1 %v6192_v43  ;;  %v9431_v43 = vpack.c.bf16 %v6363_v30, %v6359_v22  ;;  %v6394_v22 = vld [vmem:[#allocation9 + $0x5d8] sm:$0xff] }
 0x5b5   :  { %v6104_v59 = vpop.f32.mrb[2].mxu1  ;;  %v5928_v60 = vpop.f32.mrb[3].mxu0  ;;  %6550 = vmatmul.mubr.f32.vlgmr.msra.gmra.mrb[8].mxu0 %v6191_v49  ;;  %6728 = vmatmul.mubr.f32.vlgmr.msra.gmra.mrb[8].mxu1 %v6191_v49  ;;  %v6195_v4 = vadd.f32 %v10197_v32, %v5926_v55  ;;  %v6373_v55 = vld [vmem:[#allocation9 + $0x530] sm:$0xff]  ;;  %v6398_v30 = vld [vmem:[#allocation9 + $0x5f8] sm:$0xff] }
 0x5b6   :  { %v10207_v62 = vadd.f32 %v10187_v28, %v6104_v59  ;;  %v6196_v63 = vadd.f32 %v10192_v29, %v5928_v60  ;;  %v10210_v0 = vpop.f32.mrb[3].mxu1  ;;  %9420 = vmatpush1.bf16.msra.mxu0 %v9419_v45  ;;  %9548 = vmatpush1.bf16.msra.mxu1 %v9547_v46  ;;  %v6372_v45 = vld [vmem:[#allocation9 + $0x528] sm:$0xff]  ;;  %v6370_v46 = vld [vmem:[#allocation9 + $0x518] sm:$0xff]  ;;  %v6194_v60 = vadd.f32 %v10224_v39, %v10203_v44 }
 0x5b7   :  { %9422 = vmatprep.subr.bf16.mxu0 %v9421_v50  ;;  %9550 = vmatprep.subr.bf16.mxu1 %v9549_v51  ;;  %v9559_v51 = vpack.c.bf16 %v6365_v36, %v6361_v35  ;;  %v9561_v57 = vpack.c.bf16 %v6374_v47, %v6370_v46  ;;  %v6382_v59 = vld [vmem:[#allocation9 + $0x578] sm:$0xff]  ;;  %v6395_v35 = vld [vmem:[#allocation9 + $0x5e0] sm:$0xff] }
 0x5b8   :  { %v5932_v10 = vpop.f32.mrb[4].mxu0  ;;  %6555 = vmatprep.mubr.f32.mxu0 %v6196_v63  ;;  %6733 = vmatprep.mubr.f32.mxu1 %v6196_v63  ;;  %v6375_v63 = vld [vmem:[#allocation9 + $0x540] sm:$0xff]  ;;  %v6390_v44 = vld [vmem:[#allocation9 + $0x5b8] sm:$0xff] }
 0x5b9   :  { %v6110_v15 = vpop.f32.mrb[4].mxu1  ;;  %v5934_v16 = vpop.f32.mrb[5].mxu0  ;;  %6556 = vmatmul.mubr.f32.gmra.mrb[10].mxu0 %v6195_v4  ;;  %6734 = vmatmul.mubr.f32.gmra.mrb[10].mxu1 %v6195_v4  ;;  %v6199_v31 = vadd.f32 %v10197_v32, %v5932_v10  ;;  %v6377_v4 = vld [vmem:[#allocation9 + $0x550] sm:$0xff]  ;;  %v6406_v46 = vld [vmem:[#allocation9 + $0x638] sm:$0xff] }
 0x5ba   :  { %v10215_v18 = vadd.f32 %v10187_v28, %v6110_v15  ;;  %v6200_v19 = vadd.f32 %v10192_v29, %v5934_v16  ;;  %v10218_v20 = vpop.f32.mrb[5].mxu1  ;;  %9424 = vmatpush1.bf16.msra.mxu0 %v9423_v61  ;;  %9552 = vmatpush1.bf16.msra.mxu1 %v9551_v1  ;;  %v9563_v61 = vpack.c.bf16 %v6373_v55, %v6369_v54  ;;  %v6379_v1 = vld [vmem:[#allocation9 + $0x560] sm:$0xff]  ;;  %v6385_v16 = vld [vmem:[#allocation9 + $0x590] sm:$0xff] }
 0x5bb   :  { %9426 = vmatprep.subr.bf16.mxu0 %v9425_v5  ;;  %9554 = vmatprep.subr.bf16.mxu1 %v9553_v6  ;;  %v6381_v5 = vld [vmem:[#allocation9 + $0x570] sm:$0xff]  ;;  %v6384_v6 = vld [vmem:[#allocation9 + $0x588] sm:$0xff]  ;;  %v9439_v9 = vpack.c.bf16 %v6379_v1, %v6375_v63  ;;  %v9569_v15 = vpack.c.bf16 %v6390_v44, %v6386_v8  ;;  %v6415_v44 = vld [vmem:[#allocation9 + $0x680] sm:$0xff] }
 0x5bc   :  { %v5938_v37 = vpop.f32.mrb[6].mxu0  ;;  %6561 = vmatprep.mubr.f32.mxu0 %v6200_v19  ;;  %6739 = vmatprep.mubr.f32.mxu1 %v6200_v19  ;;  %v9567_v10 = vpack.c.bf16 %v6381_v5, %v6377_v4  ;;  %v9441_v13 = vpack.c.bf16 %v6388_v7, %v6384_v6  ;;  %v6392_v19 = vld [vmem:[#allocation9 + $0x5c8] sm:$0xff]  ;;  %v6401_v54 = vld [vmem:[#allocation9 + $0x610] sm:$0xff]  ;;  %v6418_v5 = vld [vmem:[#allocation9 + $0x698] sm:$0xff] }
 0x5bd   :  { %v6116_v40 = vpop.f32.mrb[6].mxu1  ;;  %v5940_v41 = vpop.f32.mrb[7].mxu0  ;;  %6562 = vmatmul.mubr.f32.gmra.mrb[12].mxu0 %v6199_v31  ;;  %6740 = vmatmul.mubr.f32.gmra.mrb[12].mxu1 %v6199_v31  ;;  %v6203_v53 = vadd.f32 %v10197_v32, %v5938_v37  ;;  %v9435_v32 = vpack.c.bf16 %v6371_v52, %v6367_v26  ;;  %v9443_v31 = vpack.c.bf16 %v6387_v12, %v6383_v11  ;;  %v6403_v26 = vld [vmem:[#allocation9 + $0x620] sm:$0xff]  ;;  %v6405_v55 = vld [vmem:[#allocation9 + $0x630] sm:$0xff]  ;;  %v6420_v4 = vld [vmem:[#allocation9 + $0x6a8] sm:$0xff] }
 0x5be   :  { %v10227_v48 = vadd.f32 %v10187_v28, %v6116_v40  ;;  %v6204_v49 = vadd.f32 %v10192_v29, %v5940_v41  ;;  %v10230_v50 = vpop.f32.mrb[7].mxu1  ;;  %9428 = vmatpush1.bf16.msra.mxu0 %v9427_v17  ;;  %9556 = vmatpush1.bf16.msra.mxu1 %v9555_v21  ;;  %v9433_v28 = vpack.c.bf16 %v6372_v45, %v6368_v38  ;;  %v6378_v29 = vld [vmem:[#allocation9 + $0x558] sm:$0xff]  ;;  %v6389_v17 = vld [vmem:[#allocation9 + $0x5b0] sm:$0xff]  ;;  %v6396_v21 = vld [vmem:[#allocation9 + $0x5e8] sm:$0xff] }
 0x5bf   :  { %9430 = vmatprep.subr.bf16.mxu0 %v9429_v33  ;;  %9558 = vmatprep.subr.bf16.mxu1 %v9557_v34  ;;  %v9565_v3 = vpack.c.bf16 %v6382_v59, %v6378_v29  ;;  %v9571_v33 = vpack.c.bf16 %v6389_v17, %v6385_v16  ;;  %v6391_v34 = vld [vmem:[#allocation9 + $0x5c0] sm:$0xff]  ;;  %v9445_v36 = vpack.c.bf16 %v6396_v21, %v6392_v19  ;;  %v6393_v38 = vld [vmem:[#allocation9 + $0x5d0] sm:$0xff]  ;;  %v6400_v41 = vld [vmem:[#allocation9 + $0x608] sm:$0xff] }
 0x5c0   :  { %6567 = vmatprep.mubr.f32.mxu0 %v6204_v49  ;;  %6745 = vmatprep.mubr.f32.mxu1 %v6204_v49  ;;  %v9573_v37 = vpack.c.bf16 %v6398_v30, %v6394_v22  ;;  %v6397_v40 = vld [vmem:[#allocation9 + $0x5f0] sm:$0xff]  ;;  %v6402_v45 = vld [vmem:[#allocation9 + $0x618] sm:$0xff]  ;;  %v9447_v47 = vpack.c.bf16 %v6395_v35, %v6391_v34  ;;  %v9579_v59 = vpack.c.bf16 %v6405_v55, %v6401_v54  ;;  %v6428_v16 = vld [vmem:[#allocation9 + $0x6e8] sm:$0xff] }
 0x5c1   :  { %6568 = vmatmul.mubr.f32.gmra.mrb[14].mxu0 %v6203_v53  ;;  %6746 = vmatmul.mubr.f32.gmra.mrb[14].mxu1 %v6203_v53  ;;  %v9575_v49 = vpack.c.bf16 %v6397_v40, %v6393_v38  ;;  %v9577_v53 = vpack.c.bf16 %v6406_v46, %v6402_v45  ;;  %v6409_v1 = vld [vmem:[#allocation9 + $0x650] sm:$0xff]  ;;  %v6422_v6 = vld [vmem:[#allocation9 + $0x6b8] sm:$0xff]  ;;  %v6423_v30 = vld [vmem:[#allocation9 + $0x6c0] sm:$0xff] }
 0x5c2   :  { %9432 = vmatpush1.bf16.msra.mxu0 %v9431_v43  ;;  %9560 = vmatpush1.bf16.msra.mxu1 %v9559_v51  ;;  %v6404_v43 = vld [vmem:[#allocation9 + $0x628] sm:$0xff]  ;;  %v6399_v51 = vld [vmem:[#allocation9 + $0x600] sm:$0xff]  ;;  %v9585_v11 = vpack.c.bf16 %v6422_v6, %v6418_v5  ;;  %v6417_v12 = vld [vmem:[#allocation9 + $0x690] sm:$0xff] }
 0x5c3   :  { %6638 = vmatprep.mubr.f32.mxu0 %v6194_v60  ;;  %6816 = vmatprep.mubr.f32.mxu1 %v6194_v60  ;;  %v9449_v52 = vpack.c.bf16 %v6404_v43, %v6400_v41  ;;  %v9451_v29 = vpack.c.bf16 %v6403_v26, %v6399_v51  ;;  %v6407_v60 = vld [vmem:[#allocation9 + $0x640] sm:$0xff]  ;;  %v6426_v17 = vld [vmem:[#allocation9 + $0x6d8] sm:$0xff]  ;;  %v6425_v35 = vld [vmem:[#allocation9 + $0x6d0] sm:$0xff] }
 0x5c4   :  { %9434 = vmatprep.subr.bf16.mxu0 %v9433_v28  ;;  %9562 = vmatprep.subr.bf16.mxu1 %v9561_v57  ;;  %v6412_v28 = vld [vmem:[#allocation9 + $0x668] sm:$0xff]  ;;  %v6410_v57 = vld [vmem:[#allocation9 + $0x658] sm:$0xff]  ;;  %v6431_v46 = vld [vmem:[#allocation9 + $0x700] sm:$0xff] }
 0x5c5   :  { %v9581_v63 = vpack.c.bf16 %v6414_v58, %v6410_v57  ;;  %v6430_v19 = vld [vmem:[#allocation9 + $0x6f8] sm:$0xff]  ;;  %v6436_v38 = vld [vmem:[#allocation9 + $0x728] sm:$0xff]  ;;  %v6433_v26 = vld [vmem:[#allocation9 + $0x710] sm:$0xff] }
 0x5c6   :  { %9436 = vmatpush1.bf16.msra.mxu0 %v9435_v32  ;;  %9564 = vmatpush1.bf16.msra.mxu1 %v9563_v61  ;;  %v6411_v32 = vld [vmem:[#allocation9 + $0x660] sm:$0xff]  ;;  %v9453_v61 = vpack.c.bf16 %v6412_v28, %v6408_v56  ;;  %v9589_v34 = vpack.c.bf16 %v6430_v19, %v6426_v17  ;;  %v6434_v40 = vld [vmem:[#allocation9 + $0x718] sm:$0xff]  ;;  %v6444_v54 = vld [vmem:[#allocation9 + $0x768] sm:$0xff] }
 0x5c7   :  { %9438 = vmatprep.subr.bf16.mxu0 %v9437_v2  ;;  %9566 = vmatprep.subr.bf16.mxu1 %v9565_v3  ;;  %v6413_v2 = vld [vmem:[#allocation9 + $0x670] sm:$0xff]  ;;  %v6416_v3 = vld [vmem:[#allocation9 + $0x688] sm:$0xff]  ;;  %v9455_v7 = vpack.c.bf16 %v6411_v32, %v6407_v60  ;;  %v6438_v41 = vld [vmem:[#allocation9 + $0x738] sm:$0xff] }
 0x5c8   :  { %v9583_v8 = vpack.c.bf16 %v6413_v2, %v6409_v1  ;;  %v9593_v51 = vpack.c.bf16 %v6438_v41, %v6434_v40  ;;  %v6442_v55 = vld [vmem:[#allocation9 + $0x758] sm:$0xff]  ;;  %v6439_v58 = vld [vmem:[#allocation9 + $0x740] sm:$0xff]  ;;  %v6441_v32 = vld [vmem:[#allocation9 + $0x750] sm:$0xff] }
 0x5c9   :  { %v6446_v56 = vld [vmem:[#allocation9 + $0x778] sm:$0xff]  ;;  %v6452_v1 = vld [vmem:[#allocation9 + $0x7a8] sm:$0xff]  ;;  %v6447_v6 = vld [vmem:[#allocation9 + $0x780] sm:$0xff] }
 0x5ca   :  { %9440 = vmatpush1.bf16.msra.mxu0 %v9439_v9  ;;  %9568 = vmatpush1.bf16.msra.mxu1 %v9567_v10  ;;  %v6419_v9 = vld [vmem:[#allocation9 + $0x6a0] sm:$0xff]  ;;  %v9457_v10 = vpack.c.bf16 %v6420_v4, %v6416_v3  ;;  %v9597_v60 = vpack.c.bf16 %v6446_v56, %v6442_v55  ;;  %v6450_v2 = vld [vmem:[#allocation9 + $0x798] sm:$0xff] }
 0x5cb   :  { %9442 = vmatprep.subr.bf16.mxu0 %v9441_v13  ;;  %9570 = vmatprep.subr.bf16.mxu1 %v9569_v15  ;;  %v6421_v13 = vld [vmem:[#allocation9 + $0x6b0] sm:$0xff]  ;;  %v6424_v15 = vld [vmem:[#allocation9 + $0x6c8] sm:$0xff]  ;;  %v9459_v21 = vpack.c.bf16 %v6419_v9, %v6415_v44  ;;  %v6454_v3 = vld [vmem:[#allocation9 + $0x7b8] sm:$0xff] }
 0x5cc   :  { %v9587_v22 = vpack.c.bf16 %v6421_v13, %v6417_v12  ;;  %v9601_v44 = vpack.c.bf16 %v6454_v3, %v6450_v2  ;;  %v6449_v9 = vld [vmem:[#allocation9 + $0x790] sm:$0xff]  ;;  %v6460_v12 = vld [vmem:[#allocation9 + $0x7e8] sm:$0xff]  ;;  %v6458_v13 = vld [vmem:[#allocation9 + $0x7d8] sm:$0xff] }
 0x5cd   :  { %v6455_v19 = vld [vmem:[#allocation9 + $0x7c0] sm:$0xff] }
 0x5ce   :  { %9444 = vmatpush1.bf16.msra.mxu0 %v9443_v31  ;;  %9572 = vmatpush1.bf16.msra.mxu1 %v9571_v33  ;;  %v6427_v31 = vld [vmem:[#allocation9 + $0x6e0] sm:$0xff]  ;;  %v9461_v33 = vpack.c.bf16 %v6428_v16, %v6424_v15  ;;  %v6462_v15 = vld [vmem:[#allocation9 + $0x7f8] sm:$0xff] }
 0x5cf   :  { %9446 = vmatprep.subr.bf16.mxu0 %v9445_v36  ;;  %9574 = vmatprep.subr.bf16.mxu1 %v9573_v37  ;;  %v6429_v36 = vld [vmem:[#allocation9 + $0x6f0] sm:$0xff]  ;;  %v6432_v37 = vld [vmem:[#allocation9 + $0x708] sm:$0xff]  ;;  %v9463_v43 = vpack.c.bf16 %v6427_v31, %v6423_v30  ;;  %v6459_v30 = vld [vmem:[#allocation9 + $0x7e0] sm:$0xff] }
 0x5d0   :  { %v9591_v45 = vpack.c.bf16 %v6429_v36, %v6425_v35  ;;  %v6457_v31 = vld [vmem:[#allocation9 + $0x7d0] sm:$0xff]  ;;  %v6198_v36 = vadd.f32 %v10224_v39, %v10210_v0 }
 0x5d2   :  { %9448 = vmatpush1.bf16.msra.mxu0 %v9447_v47  ;;  %9576 = vmatpush1.bf16.msra.mxu1 %v9575_v49  ;;  %v6435_v47 = vld [vmem:[#allocation9 + $0x720] sm:$0xff]  ;;  %v9465_v49 = vpack.c.bf16 %v6436_v38, %v6432_v37  ;;  %v6202_v37 = vadd.f32 %v10224_v39, %v10218_v20  ;;  %v6206_v38 = vadd.f32 %v10224_v39, %v10230_v50 }
 0x5d3   :  { %9450 = vmatprep.subr.bf16.mxu0 %v9449_v52  ;;  %9578 = vmatprep.subr.bf16.mxu1 %v9577_v53  ;;  %v6437_v52 = vld [vmem:[#allocation9 + $0x730] sm:$0xff]  ;;  %v6440_v53 = vld [vmem:[#allocation9 + $0x748] sm:$0xff]  ;;  %v9467_v28 = vpack.c.bf16 %v6435_v47, %v6431_v46 }
 0x5d4   :  { %v9595_v57 = vpack.c.bf16 %v6437_v52, %v6433_v26 }
 0x5d6   :  { %9452 = vmatpush1.bf16.msra.mxu0 %v9451_v29  ;;  %9580 = vmatpush1.bf16.msra.mxu1 %v9579_v59  ;;  %v6443_v29 = vld [vmem:[#allocation9 + $0x760] sm:$0xff]  ;;  %v9469_v59 = vpack.c.bf16 %v6444_v54, %v6440_v53 }
 0x5d7   :  { %9454 = vmatprep.subr.bf16.mxu0 %v9453_v61  ;;  %9582 = vmatprep.subr.bf16.mxu1 %v9581_v63  ;;  %v6445_v61 = vld [vmem:[#allocation9 + $0x770] sm:$0xff]  ;;  %v6448_v63 = vld [vmem:[#allocation9 + $0x788] sm:$0xff]  ;;  %v9471_v4 = vpack.c.bf16 %v6443_v29, %v6439_v58 }
 0x5d8   :  { %v9599_v5 = vpack.c.bf16 %v6445_v61, %v6441_v32 }
 0x5da   :  { %9456 = vmatpush1.bf16.msra.mxu0 %v9455_v7  ;;  %9584 = vmatpush1.bf16.msra.mxu1 %v9583_v8  ;;  %v6451_v7 = vld [vmem:[#allocation9 + $0x7a0] sm:$0xff]  ;;  %v9473_v8 = vpack.c.bf16 %v6452_v1, %v6448_v63 }
 0x5db   :  { %9458 = vmatprep.subr.bf16.mxu0 %v9457_v10  ;;  %9586 = vmatprep.subr.bf16.mxu1 %v9585_v11  ;;  %v6453_v10 = vld [vmem:[#allocation9 + $0x7b0] sm:$0xff]  ;;  %v6456_v11 = vld [vmem:[#allocation9 + $0x7c8] sm:$0xff]  ;;  %v9475_v16 = vpack.c.bf16 %v6451_v7, %v6447_v6 }
 0x5dc   :  { %v9603_v17 = vpack.c.bf16 %v6453_v10, %v6449_v9 }
 0x5de   :  { %9460 = vmatpush1.bf16.msra.mxu0 %v9459_v21  ;;  %9588 = vmatpush1.bf16.msra.mxu1 %v9587_v22  ;;  %v9477_v21 = vpack.c.bf16 %v6460_v12, %v6456_v11  ;;  %v9605_v22 = vpack.c.bf16 %v6462_v15, %v6458_v13 }
 0x5df   :  { %9462 = vmatprep.subr.bf16.mxu0 %v9461_v33  ;;  %9590 = vmatprep.subr.bf16.mxu1 %v9589_v34  ;;  %v6461_v33 = vld [vmem:[#allocation9 + $0x7f0] sm:$0xff]  ;;  %v9479_v34 = vpack.c.bf16 %v6459_v30, %v6455_v19 }
 0x5e0   :  { %v9607_v35 = vpack.c.bf16 %v6461_v33, %v6457_v31 }
 0x5e2   :  { %9464 = vmatpush1.bf16.msra.mxu0 %v9463_v43  ;;  %9592 = vmatpush1.bf16.msra.mxu1 %v9591_v45 }
 0x5e3   :  { %9466 = vmatprep.subr.bf16.mxu0 %v9465_v49  ;;  %9594 = vmatprep.subr.bf16.mxu1 %v9593_v51 }
 0x5e6   :  { %9468 = vmatpush1.bf16.msra.mxu0 %v9467_v28  ;;  %9596 = vmatpush1.bf16.msra.mxu1 %v9595_v57 }
 0x5e7   :  { %9470 = vmatprep.subr.bf16.mxu0 %v9469_v59  ;;  %9598 = vmatprep.subr.bf16.mxu1 %v9597_v60 }
 0x5ea   :  { %9472 = vmatpush1.bf16.msra.mxu0 %v9471_v4  ;;  %9600 = vmatpush1.bf16.msra.mxu1 %v9599_v5 }
 0x5eb   :  { %9474 = vmatprep.subr.bf16.mxu0 %v9473_v8  ;;  %9602 = vmatprep.subr.bf16.mxu1 %v9601_v44 }
 0x5ee   :  { %9476 = vmatpush1.bf16.msra.mxu0 %v9475_v16  ;;  %9604 = vmatpush1.bf16.msra.mxu1 %v9603_v17 }
 0x5ef   :  { %9478 = vmatprep.subr.bf16.mxu0 %v9477_v21  ;;  %9606 = vmatprep.subr.bf16.mxu1 %v9605_v22 }
 0x5f2   :  { %9480 = vmatpush1.bf16.msra.mxu0 %v9479_v34  ;;  %9608 = vmatpush1.bf16.msra.mxu1 %v9607_v35 }
 0x5f5   :  { %6639 = vmatmul.mubr.f32.vlgmr.msra.gmra.mrb[8].mxu0 %v10200_v42  ;;  %6817 = vmatmul.mubr.f32.vlgmr.msra.gmra.mrb[8].mxu1 %v10200_v42  ;;  %v6463_v42 = vld [vmem:[#allocation11] sm:$0xf] }
 0x5f6   :  { %6644 = vmatprep.mubr.f32.mxu0 %v6198_v36  ;;  %6822 = vmatprep.mubr.f32.mxu1 %v6198_v36  ;;  %v6468_v0 = vrot.slane %v6463_v42, %v6173_v27  ;;  %v6472_v20 = vrot.slane %v6463_v42, %v6177_v25 }
 0x5f9   :  { %6645 = vmatmul.mubr.f32.gmra.mrb[10].mxu0 %v10207_v62  ;;  %6823 = vmatmul.mubr.f32.gmra.mrb[10].mxu1 %v10207_v62  ;;  %v6476_v62 = vrot.slane %v6463_v42, %v6181_v24 }
 0x5fa   :  { %6650 = vmatprep.mubr.f32.mxu0 %v6202_v37  ;;  %6828 = vmatprep.mubr.f32.mxu1 %v6202_v37 }
 0x5fd   :  { %6651 = vmatmul.mubr.f32.gmra.mrb[12].mxu0 %v10215_v18  ;;  %6829 = vmatmul.mubr.f32.gmra.mrb[12].mxu1 %v10215_v18  ;;  %v6480_v18 = vrot.slane %v6463_v42, %v6185_v14 }
 0x5fe   :  { %6656 = vmatprep.mubr.f32.mxu0 %v6206_v38  ;;  %6834 = vmatprep.mubr.f32.mxu1 %v6206_v38 }
 0x601   :  { %6657 = vmatmul.mubr.f32.gmra.mrb[14].mxu0 %v10227_v48  ;;  %6835 = vmatmul.mubr.f32.gmra.mrb[14].mxu1 %v10227_v48 }
 0x6c8   :  { %v6640_v39 = vpop.f32.mrb[8].mxu0  ;;  %v6818_v50 = vpop.f32.mrb[8].mxu1 }
 0x6c9   :  { %v10257_v40 = vadd.f32 %v6640_v39, %v6468_v0  ;;  %v6642_v41 = vpop.f32.mrb[9].mxu0  ;;  %v6820_v43 = vpop.f32.mrb[9].mxu1  ;;  %v10259_v48 = vadd.f32 %v6818_v50, %v6476_v62 }
 0x6ca   :  { %v10261_v45 = vadd.f32 %v6642_v41, %v6472_v20  ;;  %v10267_v25 = vadd.f32 %v6820_v43, %v6480_v18 }
 0x6cb   :  { %v6841_v27 = vmul.f32 %v10257_v40, %v10257_v40  ;;  %v6843_v26 = vmul.f32 %v10259_v48, %v10259_v48 }
 0x6cc   :  { %v6842_v24 = vmul.f32 %v10261_v45, %v10261_v45  ;;  %v6646_v46 = vpop.f32.mrb[10].mxu0  ;;  %v6824_v47 = vpop.f32.mrb[10].mxu1  ;;  %v6844_v29 = vmul.f32 %v10267_v25, %v10267_v25 }
 0x6cd   :  { %v10269_v49 = vadd.f32 %v6646_v46, %v6468_v0  ;;  %v6648_v14 = vpop.f32.mrb[11].mxu0  ;;  %v6826_v51 = vpop.f32.mrb[11].mxu1  ;;  %v10273_v52 = vadd.f32 %v6824_v47, %v6476_v62 }
 0x6ce   :  { %v10275_v53 = vadd.f32 %v6648_v14, %v6472_v20  ;;  %v6857_v54 = vadd.f32 %v6842_v24, %v6841_v27  ;;  %v10281_v28 = vadd.f32 %v6826_v51, %v6480_v18 }
 0x6cf   :  { %v6845_v55 = vmul.f32 %v10269_v49, %v10269_v49  ;;  %v6847_v1 = vmul.f32 %v10273_v52, %v10273_v52 }
 0x6d0   :  { %v6846_v56 = vmul.f32 %v10275_v53, %v10275_v53  ;;  %v6652_v57 = vpop.f32.mrb[12].mxu0  ;;  %v6830_v58 = vpop.f32.mrb[12].mxu1  ;;  %v6858_v59 = vadd.f32 %v6857_v54, %v6843_v26  ;;  %v6848_v6 = vmul.f32 %v10281_v28, %v10281_v28 }
 0x6d1   :  { %v10285_v60 = vadd.f32 %v6652_v57, %v6468_v0  ;;  %v10287_v32 = vadd.f32 %v6830_v58, %v6476_v62  ;;  %v6654_v61 = vpop.f32.mrb[13].mxu0  ;;  %v6832_v63 = vpop.f32.mrb[13].mxu1 }
 0x6d2   :  { %v6862_v2 = vadd.f32 %v6846_v56, %v6845_v55  ;;  %v10291_v3 = vadd.f32 %v6654_v61, %v6472_v20  ;;  %v6859_v4 = vadd.f32 %v6858_v59, %v6844_v29  ;;  %v10299_v8 = vadd.f32 %v6832_v63, %v6480_v18 }
 0x6d3   :  { %v6849_v5 = vmul.f32 %v10285_v60, %v10285_v60  ;;  %v6851_v11 = vmul.f32 %v10287_v32, %v10287_v32 }
 0x6d4   :  { %v6850_v7 = vmul.f32 %v10291_v3, %v10291_v3  ;;  %v6658_v44 = vpop.f32.mrb[14].mxu0  ;;  %v6836_v9 = vpop.f32.mrb[14].mxu1  ;;  %6860 = vadd.xlane.f32.xlu1 %v6859_v4  ;;  %v6863_v10 = vadd.f32 %v6862_v2, %v6847_v1  ;;  %v6852_v33 = vmul.f32 %v10299_v8, %v10299_v8 }
 0x6d5   :  { %v10303_v12 = vadd.f32 %v6658_v44, %v6468_v0  ;;  %v6660_v13 = vpop.f32.mrb[15].mxu0  ;;  %v6838_v15 = vpop.f32.mrb[15].mxu1  ;;  %v10305_v16 = vadd.f32 %v6836_v9, %v6476_v62 }
 0x6d6   :  { %v10307_v17 = vadd.f32 %v6660_v13, %v6472_v20  ;;  %v6864_v19 = vadd.f32 %v6863_v10, %v6848_v6  ;;  %v6867_v21 = vadd.f32 %v6850_v7, %v6849_v5  ;;  %v10313_v31 = vadd.f32 %v6838_v15, %v6480_v18 }
 0x6d7   :  { %v6853_v22 = vmul.f32 %v10303_v12, %v10303_v12  ;;  %v6855_v35 = vmul.f32 %v10305_v16, %v10305_v16 }
 0x6d8   :  { %v6854_v30 = vmul.f32 %v10307_v17, %v10307_v17  ;;  %6865 = vadd.xlane.f32.xlu1 %v6864_v19  ;;  %v6868_v34 = vadd.f32 %v6867_v21, %v6851_v11  ;;  %v6856_v38 = vmul.f32 %v10313_v31, %v10313_v31 }
 0x6da   :  { %v6872_v36 = vadd.f32 %v6854_v30, %v6853_v22  ;;  %v6869_v37 = vadd.f32 %v6868_v34, %v6852_v33 }
 0x6dc   :  { %6870 = vadd.xlane.f32.xlu0 %v6869_v37  ;;  %v6873_v42 = vadd.f32 %v6872_v36, %v6855_v35 }
 0x6de   :  { %v6874_v0 = vadd.f32 %v6873_v42, %v6856_v38 }
 0x6e0   :  { %6875 = vadd.xlane.f32.xlu0 %v6874_v0 }
 0x761   :  { %v6861_v62 = vpop.xlane.xlu1 %6860 }
 0x765   :  { %v6866_v20 = vpop.xlane.xlu1 %6865 }
 0x766   :  { %v6877_v39 = vmax.f32 %v6861_v62, %v6866_v20 }
 0x768   :  { %v6878_v50 = vrot.slane %v6877_v39, 4 }
 0x769   :  { %v6871_v18 = vpop.xlane.xlu0 %6870 }
 0x76a   :  { %v6879_v41 = vmax.f32 %v6877_v39, %v6878_v50 }
 0x76c   :  { %v6880_v43 = vrot.slane %v6879_v41, 2 }
 0x76d   :  { %v6876_v27 = vpop.xlane.xlu0 %6875 }
 0x76e   :  { %v6881_v24 = vmax.f32 %v6879_v41, %v6880_v43  ;;  %v6884_v46 = vmax.f32 %v6871_v18, %v6876_v27 }
 0x770   :  { %v6882_v47 = vrot.slane %v6881_v24, 1  ;;  %v6885_v14 = vrot.slane %v6884_v46, 4 }
 0x772   :  { %v6883_v51 = vmax.f32 %v6881_v24, %v6882_v47  ;;  %v6886_v26 = vmax.f32 %v6884_v46, %v6885_v14 }
 0x774   :  { %vm6891_vm0 = vcmp.ge.f32.partialorder %v6861_v62, %v6883_v51  ;;  %vm6892_vm1 = vcmp.ge.f32.partialorder %v6866_v20, %v6883_v51  ;;  %v6887_v54 = vrot.slane %v6886_v26, 2  ;;  %v10069_v20 = vmov 1983009808  }
 0x775   :  { %v6903_v55 = vsel %vm6891_vm0, %v10257_v40, 0.0  ;;  %v6904_v56 = vsel %vm6891_vm0, %v10261_v45, 0.0  ;;  %v6905_v57 = vsel %vm6891_vm0, %v10259_v48, 0.0  ;;  %v6906_v58 = vsel %vm6891_vm0, %v10267_v25, 0.0 }
 0x776   :  { %v6907_v29 = vsel %vm6892_vm1, %v10269_v49, 0.0  ;;  %v6908_v59 = vsel %vm6892_vm1, %v10275_v53, 0.0  ;;  %v6909_v61 = vsel %vm6892_vm1, %v10273_v52, 0.0  ;;  %v6910_v63 = vsel %vm6892_vm1, %v10281_v28, 0.0 }
 0x777   :  { %v6919_v1 = vmax.f32 %v6903_v55, %v6907_v29  ;;  %v6926_v2 = vmax.f32 %v6904_v56, %v6908_v59  ;;  %v6933_v4 = vmax.f32 %v6905_v57, %v6909_v61  ;;  %v6940_v5 = vmax.f32 %v6906_v58, %v6910_v63 }
 0x778   :  { %v6888_v6 = vmax.f32 %v6886_v26, %v6887_v54 }
 0x779   :  { %v6920_v40 = vrot.slane %v6919_v1, 4  ;;  %v6927_v7 = vrot.slane %v6926_v2, 4  ;;  %v6934_v45 = vrot.slane %v6933_v4, 4  ;;  %v6941_v44 = vrot.slane %v6940_v5, 4 }
 0x77a   :  { %v6889_v48 = vrot.slane %v6888_v6, 1 }
 0x77b   :  { %v6921_v9 = vmax.f32 %v6919_v1, %v6920_v40  ;;  %v6928_v25 = vmax.f32 %v6926_v2, %v6927_v7  ;;  %v6935_v10 = vmax.f32 %v6933_v4, %v6934_v45  ;;  %v6942_v49 = vmax.f32 %v6940_v5, %v6941_v44 }
 0x77c   :  { %v6890_v11 = vmax.f32 %v6888_v6, %v6889_v48 }
 0x77d   :  { %v6922_v53 = vrot.slane %v6921_v9, 2  ;;  %v6929_v52 = vrot.slane %v6928_v25, 2  ;;  %v6936_v13 = vrot.slane %v6935_v10, 2  ;;  %v6943_v28 = vrot.slane %v6942_v49, 2 }
 0x77e   :  { %vm6893_vm2 = vcmp.ge.f32.partialorder %v6871_v18, %v6890_v11  ;;  %vm6894_vm3 = vcmp.ge.f32.partialorder %v6876_v27, %v6890_v11 }
 0x77f   :  { %v6911_v15 = vsel %vm6893_vm2, %v10285_v60, 0.0  ;;  %v6912_v19 = vsel %vm6893_vm2, %v10291_v3, 0.0  ;;  %v6913_v21 = vsel %vm6893_vm2, %v10287_v32, 0.0  ;;  %v6914_v22 = vsel %vm6893_vm2, %v10299_v8, 0.0 }
 0x780   :  { %v6915_v30 = vsel %vm6894_vm3, %v10303_v12, 0.0  ;;  %v6916_v33 = vsel %vm6894_vm3, %v10307_v17, 0.0  ;;  %v6917_v34 = vsel %vm6894_vm3, %v10305_v16, 0.0  ;;  %v6918_v35 = vsel %vm6894_vm3, %v10313_v31, 0.0 }
 0x781   :  { %v6923_v36 = vmax.f32 %v6921_v9, %v6922_v53  ;;  %v6930_v37 = vmax.f32 %v6928_v25, %v6929_v52  ;;  %v6937_v38 = vmax.f32 %v6935_v10, %v6936_v13  ;;  %v6944_v42 = vmax.f32 %v6942_v49, %v6943_v28 }
 0x782   :  { %v6947_v0 = vmax.f32 %v6911_v15, %v6915_v30  ;;  %v6954_v60 = vmax.f32 %v6912_v19, %v6916_v33  ;;  %v6961_v62 = vmax.f32 %v6913_v21, %v6917_v34  ;;  %v6968_v3 = vmax.f32 %v6914_v22, %v6918_v35 }
 0x783   :  { %v6986_v32 = vunpack.c.l.s4 %v10069_v20  ;;  %v6924_v18 = vrot.slane %v6923_v36, 1  ;;  %v6931_v17 = vrot.slane %v6930_v37, 1  ;;  %v6938_v41 = vrot.slane %v6937_v38, 1 }
 0x784   :  { %v6948_v39 = vrot.slane %v6947_v0, 4  ;;  %v6955_v8 = vrot.slane %v6954_v60, 4  ;;  %v6962_v50 = vrot.slane %v6961_v62, 4  ;;  %v6969_v12 = vrot.slane %v6968_v3, 4 }
 0x785   :  { %v6945_v16 = vrot.slane %v6944_v42, 1  ;;  %v6987_v46 = vunpack.c.0.s8 %v6986_v32  ;;  %v6925_v54 = vmax.f32 %v6923_v36, %v6924_v18  ;;  %v6932_v55 = vmax.f32 %v6930_v37, %v6931_v17 }
 0x786   :  { %v6949_v43 = vmax.f32 %v6947_v0, %v6948_v39  ;;  %v6956_v31 = vmax.f32 %v6954_v60, %v6955_v8  ;;  %v6963_v27 = vmax.f32 %v6961_v62, %v6962_v50  ;;  %v6970_v24 = vmax.f32 %v6968_v3, %v6969_v12 }
 0x787   :  { %v6939_v56 = vmax.f32 %v6937_v38, %v6938_v41  ;;  %v6946_v57 = vmax.f32 %v6944_v42, %v6945_v16  ;;  %v6990_v5 = vsub.s32 %v6987_v46, %v10177_v23  ;;  %v6983_v6 = vcombine.low %v6925_v54, %v6932_v55 }
 0x788   :  { %v6950_v47 = vrot.slane %v6949_v43, 2  ;;  %v6957_v14 = vrot.slane %v6956_v31, 2  ;;  %v6964_v51 = vrot.slane %v6963_v27, 2  ;;  %v6971_v26 = vrot.slane %v6970_v24, 2 }
 0x789   :  { %v6984_v40 = vcombine.low %v6939_v56, %v6946_v57  ;;  %v6991_v10 = vrot.slane %v6983_v6, %v6990_v5 }
 0x78a   :  { %v6951_v58 = vmax.f32 %v6949_v43, %v6950_v47  ;;  %v6958_v29 = vmax.f32 %v6956_v31, %v6957_v14  ;;  %v6965_v59 = vmax.f32 %v6963_v27, %v6964_v51  ;;  %v6972_v61 = vmax.f32 %v6970_v24, %v6971_v26 }
 0x78b   :  { %v6998_v49 = vrot.slane %v6984_v40, %v6990_v5 }
 0x78c   :  { %v6952_v63 = vrot.slane %v6951_v58, 1  ;;  %v6959_v1 = vrot.slane %v6958_v29, 1  ;;  %v6966_v2 = vrot.slane %v6965_v59, 1  ;;  %v6973_v4 = vrot.slane %v6972_v61, 1 }
 0x78d   :  { %v6999_v13 = vcombine.low %v6991_v10, %v6998_v49 }
 0x78e   :  { %v6953_v7 = vmax.f32 %v6951_v58, %v6952_v63  ;;  %v6960_v45 = vmax.f32 %v6958_v29, %v6959_v1  ;;  %v6967_v44 = vmax.f32 %v6965_v59, %v6966_v2  ;;  %v6974_v48 = vmax.f32 %v6972_v61, %v6973_v4 }
 0x790   :  { %v7000_v9 = vcombine.low %v6953_v7, %v6960_v45  ;;  %v7001_v25 = vcombine.low %v6967_v44, %v6974_v48 }
 0x792   :  { %v7008_v11 = vrot.slane %v7000_v9, %v6990_v5  ;;  %v7015_v53 = vrot.slane %v7001_v25, %v6990_v5 }
 0x794   :  { %v7016_v52 = vcombine.low %v7008_v11, %v7015_v53 }
 0x796   :  { %v7021_v28 = vrot.slane %v7016_v52, 7 }
 0x798   :  { %v7023_v23 = vsel %vm7022_vm4, %v7021_v28, %v6999_v13 }
 0x799   :  { %v7025_v15 = vsel %vm7024_vm5, %v7021_v28, %v7023_v23 }
 0x79a   :  { %v7027_v19 = vsel %vm7026_vm6, %v7021_v28, %v7025_v15 }
 0x79b   :  { %v7029_v21 = vsel %vm7028_vm7, %v7021_v28, %v7027_v19 }
 0x79c   :  { %7031 = vst [vmem:[#allocation12] sm:$0xff] %v7029_v21 }
 0x79d   :  { %10043 = shalt.err (!%p10040_p2)
}
 0x79e   :  { %s10044_s3 = scalar_lea.hbm %s10355_s5, 128 }
 0x79f   :  { %p10045_p3 = scmp.ne.s32.totalorder %s10355_s5, %s10044_s3  ;;  %p10048_p4 = scmp.lt.u32.totalorder %s10044_s3, %s10355_s5 }
 0x7a1   :  { %p10050_p5 = pnand %p10048_p4, %p10045_p3 }
 0x7a3   :  { %10053 = shalt.err (!%p10050_p5)
}
 0x7a4   :  { %7041 = dma.vmem_to_hbm [thread:$0]  %s7039_s26, 128, %s10355_s5, [#allocation5]  }
 0x7a5   :  { %10060 = dma.done.wait [#allocation5], 128  }
 0x7a6   :  { %10061 = vsyncadd [#allocation5], 4294967168 }
 0x7a7   :  { %7045 = vsyncpa [#allocation4], 1 }
 0x7a8   :  { %7046 = vsyncpa [#allocation7], 1 }
 0x7a9   :  { %7047 = vsyncpa [#allocation10], 1 }
 0x7aa   :  { %7048 = vsyncpa [#allocation5], 1 }

</bundles_post_ra>
